<compile_context>
chip_gen: v7x
topology: tpu7x:2x2x1
jax: 0.10.0
libtpu: 0.0.40
codegen_flags: <defaults>
</compile_context>

<pallas_src>
import functools
import math

import numpy as np

import jax
import jax.numpy as jnp
from jax.experimental import pallas as pl
from jax.experimental.pallas import tpu as pltpu

# ----------------------------- configuration ---------------------------------
INPUT_SIZE = 8        # input feature dim
OUTPUT_SIZE = 32      # attention dim
HEADS = 4
LINEAR_UNITS = 64
NUM_BLOCKS = 2
CNN_KERNEL = 7        # (k - 1) % 2 == 0
LN_EPS = 1e-5
BN_EPS = 1e-5


# ------------------- one-time probe for pltpu.roll semantics ------------------
@functools.lru_cache(maxsize=None)
def _tpu_roll_ok(t, c):
    """Validate pltpu.roll (incl. per-row strided shifts) against the exact legacy
    rel_shift reference at the exact shapes used by the encoder kernel.  If the op is
    unavailable or its convention differs, the kernel falls back to an exact
    select-based formulation.  Runs eagerly once per (T, C)."""
    if t < 2:
        return False
    try:
        bd = (np.arange(t * t, dtype=np.float32).reshape(t, t) * 0.25) + 1.0
        y = (np.arange(t * c, dtype=np.float32).reshape(t, c) * 0.125) - 3.0

        def kern(bd_ref, y_ref, o1_ref, o2_ref):
            b = bd_ref[...]
            p1 = pltpu.roll(b, 1, 1, stride=1, stride_axis=0)       # row i rolled by i+1
            bu = jnp.concatenate([b[1:], b[:1]], axis=0)            # row i -> b[i+1]
            p2 = pltpu.roll(bu, 2, 1, stride=1, stride_axis=0)      # row i rolled by i+2
            ri = jax.lax.broadcasted_iota(jnp.int32, (t, t), 0)
            ci = jax.lax.broadcasted_iota(jnp.int32, (t, t), 1)
            r = ci - ri
            o1_ref[...] = jnp.where(r <= 0, p1, jnp.where(r == 1, 0.0, p2))
            o2_ref[...] = pltpu.roll(y_ref[...], 2, 0)

        o1, o2 = pl.pallas_call(
            kern,
            out_shape=(jax.ShapeDtypeStruct((t, t), jnp.float32),
                       jax.ShapeDtypeStruct((t, c), jnp.float32)),
        )(jnp.asarray(bd), jnp.asarray(y))
        # exact legacy rel_shift reference: pad one zero column, reshape, drop row 0
        xp = np.concatenate([np.zeros((t, 1), np.float32), bd], axis=1)
        ref1 = xp.reshape(t + 1, t)[1:]
        ref2 = np.roll(y, 2, axis=0)
        return bool(np.allclose(np.asarray(o1), ref1) and
                    np.allclose(np.asarray(o2), ref2))
    except Exception:
        return False


# --------------------- fused whole-encoder Pallas kernel ----------------------
def _encoder_stack_kernel(x_ref, pos_ref, mask_ref, *refs, heads, use_roll):
    """All NUM_BLOCKS Conformer layers + after_norm for one batch element."""
    (ln1_g, ln1_b, w_qkv, b_qkv, pbu, pbv, w_out, b_out,
     ln2_g, ln2_b, w_pw1, b_pw1, w_dw, b_dw, bn_s, bn_h, w_pw2, b_pw2,
     ln3_g, ln3_b, ff_w1, ff_b1, ff_w2, ff_b2, ln4_g, ln4_b,
     aft_g, aft_b, o_ref, ctx_scr) = refs

    T, C = x_ref.shape
    H = heads
    D = C // H
    L = ln1_g.shape[0]
    K = w_dw.shape[1]
    pad = (K - 1) // 2
    scale = 1.0 / math.sqrt(D)
    neg = jnp.finfo(jnp.float32).min        # finite -> no NaN for fully-masked rows

    # ---- hoisted, layer/head-invariant quantities (built once per grid step) ----
    valid = mask_ref[...] > 0.5                                   # (1, T) key validity
    ri = jax.lax.broadcasted_iota(jnp.int32, (T, T), 0)
    ci = jax.lax.broadcasted_iota(jnp.int32, (T, T), 1)
    rel = ci - ri
    t_idx = jax.lax.broadcasted_iota(jnp.int32, (T, 1), 0)
    tap_valid = [(t_idx + (j - pad) >= 0) & (t_idx + (j - pad) <= T - 1)
                 for j in range(K)]

    def ln(v, g, b):
        m = jnp.mean(v, axis=-1, keepdims=True)
        cdev = v - m
        var = jnp.mean(cdev * cdev, axis=-1, keepdims=True)
        return cdev * jax.lax.rsqrt(var + LN_EPS) * g + b

    def rel_shift(bd):
        """Legacy espnet rel_shift:
             out[i, j] = bd[i, T-1+j-i]   for j <= i
             out[i, j] = 0                for j == i+1
             out[i, j] = bd[i+1, j-i-2]   for j >= i+2"""
        if use_roll:
            part1 = pltpu.roll(bd, 1, 1, stride=1, stride_axis=0)     # row i by i+1
            bd_up = jnp.concatenate([bd[1:], bd[:1]], axis=0)         # row i -> bd[i+1]
            part2 = pltpu.roll(bd_up, 2, 1, stride=1, stride_axis=0)  # row i by i+2
            return jnp.where(rel <= 0, part1, jnp.where(rel == 1, 0.0, part2))
        # exact select-based fallback (O(T) diagonal accumulation)
        out = jnp.zeros((T, T), jnp.float32)
        for r in range(-(T - 1), 1):
            out = out + jnp.where(rel == r, bd[:, T - 1 + r:T + r], 0.0)
        for r in range(2, T):
            col = jnp.concatenate([bd[1:, r - 2:r - 1],
                                   jnp.zeros((1, 1), jnp.float32)], axis=0)
            out = out + jnp.where(rel == r, col, 0.0)
        return out

    x = x_ref[...]                                               # (T, C)
    for l in range(L):                                           # static, NUM_BLOCKS small
        # ----------------- multi-headed rel-pos self-attention -----------------
        xn = ln(x, ln1_g[l], ln1_b[l])
        qkv = jnp.dot(xn, w_qkv[l], preferred_element_type=jnp.float32) + b_qkv[l]  # (T,3C)
        q = qkv[:, :C]
        k = qkv[:, C:2 * C]
        v = qkv[:, 2 * C:]
        p_all = pos_ref[l]                                       # (T, C) hoisted pos proj
        qu = q + pbu[l]
        qv = q + pbv[l]
        for h in range(H):                                       # static unroll (tiny T)
            s0, s1 = h * D, (h + 1) * D
            ac = jax.lax.dot_general(qu[:, s0:s1], k[:, s0:s1],
                                     (((1,), (1,)), ((), ())),
                                     preferred_element_type=jnp.float32)           # (T,T)
            bd = jax.lax.dot_general(qv[:, s0:s1], p_all[:, s0:s1],
                                     (((1,), (1,)), ((), ())),
                                     preferred_element_type=jnp.float32)           # (T,T)
            scores = (ac + rel_shift(bd)) * scale
            scores = jnp.where(valid, scores, neg)
            mx = jnp.max(scores, axis=-1, keepdims=True)
            ex = jnp.exp(scores - mx)
            den = jnp.sum(ex, axis=-1, keepdims=True)
            attn = jnp.where(valid, ex * pl.reciprocal(den, approx=True), 0.0)
            ctx_scr[:, s0:s1] = jnp.dot(attn, v[:, s0:s1],
                                        preferred_element_type=jnp.float32)
        ctx = ctx_scr[...]                                       # (T, C) head-major
        x = x + jnp.dot(ctx, w_out[l], preferred_element_type=jnp.float32) + b_out[l]

        # --------------------------- convolution module -------------------------
        xn = ln(x, ln2_g[l], ln2_b[l])
        pw1 = jnp.dot(xn, w_pw1[l], preferred_element_type=jnp.float32) + b_pw1[l]  # (T,2C)
        y = pw1[:, :C] * jax.nn.sigmoid(pw1[:, C:])              # GLU
        wdw = w_dw[l]                                            # (K, C)
        acc = jnp.zeros((T, C), jnp.float32)
        for j in range(K):                                       # static tap unroll
            shift = j - pad                                      # want sh[t] = y[t + shift]
            if shift == 0:
                sh = y
            elif use_roll:
                sh = pltpu.roll(y, (-shift) % T, 0)
            elif shift > 0:
                sh = jnp.concatenate([y[shift:], jnp.zeros((shift, C), jnp.float32)],
                                     axis=0)
            else:
                sh = jnp.concatenate([jnp.zeros((-shift, C), jnp.float32), y[:T + shift]],
                                     axis=0)
            acc = acc + jnp.where(tap_valid[j], sh, 0.0) * wdw[j:j + 1, :]
        y = acc + b_dw[l]
        y = y * bn_s[l] + bn_h[l]                                # folded eval BatchNorm
        y = y * jax.nn.sigmoid(y)                                # Swish
        x = x + jnp.dot(y, w_pw2[l], preferred_element_type=jnp.float32) + b_pw2[l]

        # ------------------------------ feed-forward ----------------------------
        xn = ln(x, ln3_g[l], ln3_b[l])
        hdn = jnp.dot(xn, ff_w1[l], preferred_element_type=jnp.float32) + ff_b1[l]
        hdn = hdn * jax.nn.sigmoid(hdn)                          # Swish
        x = x + jnp.dot(hdn, ff_w2[l], preferred_element_type=jnp.float32) + ff_b2[l]

        # ------------------------- per-layer final LayerNorm --------------------
        x = ln(x, ln4_g[l], ln4_b[l])

    # encoder-level after_norm fused into the same kernel
    o_ref[...] = ln(x, aft_g[...], aft_b[...])


def fused_conformer_encoder(x, pos_emb, maskf, lp, after_g, after_b):
    """x: (B, T, C); pos_emb: (1, T, C); maskf: (B, 1, T) float 1/0; lp: stacked layer params."""
    B, T, C = x.shape
    pos2 = pos_emb.reshape(T, C)
    # batch-invariant positional projection, hoisted out of the kernel (once per layer)
    pos_proj = jnp.einsum('tc,lcd->ltd', pos2, lp['w_pos'])              # (L, T, C)
    # fold eval-mode BatchNorm into a per-channel scale/shift
    bn_scale = lp['bn_gamma'] / jnp.sqrt(lp['bn_rv'] + BN_EPS)
    bn_shift = lp['bn_beta'] - lp['bn_rm'] * bn_scale
    bn_scale = bn_scale[:, None, :]
    bn_shift = bn_shift[:, None, :]

    weights = [
        lp['ln1_g'], lp['ln1_b'], lp['w_qkv'], lp['b_qkv'],
        lp['pos_bias_u'], lp['pos_bias_v'], lp['w_out'], lp['b_out'],
        lp['ln2_g'], lp['ln2_b'], lp['w_pw1'], lp['b_pw1'],
        lp['w_dw'], lp['b_dw'], bn_scale, bn_shift, lp['w_pw2'], lp['b_pw2'],
        lp['ln3_g'], lp['ln3_b'], lp['ff_w1'], lp['ff_b1'], lp['ff_w2'], lp['ff_b2'],
        lp['ln4_g'], lp['ln4_b'], after_g, after_b,
    ]

    def rep_spec(a):                    # whole array resident, fetched once (constant index map)
        nd = a.ndim
        return pl.BlockSpec(a.shape, lambda b, _n=nd: (0,) * _n)

    in_specs = ([pl.BlockSpec((None, T, C), lambda b: (b, 0, 0)),        # x (batched)
                 rep_spec(pos_proj),                                     # pos projections
                 pl.BlockSpec((None, 1, T), lambda b: (b, 0, 0))]        # mask (batched)
                + [rep_spec(w) for w in weights])

    kernel = functools.partial(_encoder_stack_kernel, heads=HEADS,
                               use_roll=_tpu_roll_ok(T, C))

    return pl.pallas_call(
        kernel,
        out_shape=jax.ShapeDtypeStruct((B, T, C), jnp.float32),
        grid=(B,),
        in_specs=in_specs,
        out_specs=pl.BlockSpec((None, T, C), lambda b: (b, 0, 0)),
        scratch_shapes=[pltpu.VMEM((T, C), jnp.float32)],                # per-head ctx slab
        compiler_params=pltpu.CompilerParams(dimension_semantics=("parallel",)),
    )(x, pos_proj, maskf, *weights)


# --------------------------------- glue ops -----------------------------------
def make_pad_mask_valid(ilens, maxlen):
    idx = jnp.arange(maxlen)[None, :]
    return idx < ilens[:, None]                      # True where valid


def sinusoidal_pe(t, d):
    pos = jnp.arange(t, dtype=jnp.float32)[:, None]
    div = jnp.exp(jnp.arange(0, d, 2, dtype=jnp.float32) * (-math.log(10000.0) / d))
    pe = jnp.zeros((t, d), jnp.float32)
    pe = pe.at[:, 0::2].set(jnp.sin(pos * div))
    pe = pe.at[:, 1::2].set(jnp.cos(pos * div))
    return pe[None]                                  # (1, t, d)


def conv2d_subsampling(xs_pad, mask_valid, p):
    """Conv2dSubsampling (2x Conv2d stride-2 + ReLU + Linear) + legacy rel-pos encoding.
    Kept in plain XLA per perf review: these shapes are below one MXU tile, so Pallas
    launch/DMA setup would exceed the compute itself."""
    b = xs_pad.shape[0]
    c = OUTPUT_SIZE
    x = xs_pad[:, None, :, :]                                            # (b, 1, L, F) NCHW
    y = jax.lax.conv_general_dilated(x, p['conv1_w'], (2, 2), 'VALID',
                                     dimension_numbers=('NCHW', 'OIHW', 'NCHW'))
    y = jnp.maximum(y + p['conv1_b'][None, :, None, None], 0.0)
    y = jax.lax.conv_general_dilated(y, p['conv2_w'], (2, 2), 'VALID',
                                     dimension_numbers=('NCHW', 'OIHW', 'NCHW'))
    y = jnp.maximum(y + p['conv2_b'][None, :, None, None], 0.0)          # (b, c, t2, f2)
    _, _, t2, f2 = y.shape
    y = jnp.transpose(y, (0, 2, 1, 3)).reshape(b, t2, c * f2)            # (b, t2, c*f2)
    # fold legacy RelPositionalEncoding xscale = sqrt(d_model) into the output linear
    xe = y @ (p['out_w'] * math.sqrt(c)) + p['out_b'] * math.sqrt(c)
    pos_emb = sinusoidal_pe(t2, c)
    m = mask_valid[:, :-2:2][:, :-2:2]                                   # subsampled mask
    return xe, pos_emb, m


def conformer_encoder_forward(params, xs_pad, ilens):
    b, l, _ = xs_pad.shape
    mask_valid = make_pad_mask_valid(ilens, l)                           # (b, l)
    x, pos_emb, mask_valid = conv2d_subsampling(xs_pad, mask_valid, params['embed'])
    maskf = mask_valid.astype(jnp.float32)[:, None, :]                   # (b, 1, t)
    x = fused_conformer_encoder(x, pos_emb, maskf, params['layers'],
                                params['after_g'], params['after_b'])
    olens = mask_valid.astype(jnp.int32).sum(axis=-1)
    return x, olens, None


# ------------------------------ parameter init --------------------------------
def init_params(key):
    c, h, ff, k, f, nb = OUTPUT_SIZE, HEADS, LINEAR_UNITS, CNN_KERNEL, INPUT_SIZE, NUM_BLOCKS
    del h
    keys = iter(jax.random.split(key, 128))

    def nrm(shape, s=0.1):
        return (s * jax.random.normal(next(keys), shape)).astype(jnp.float32)

    flin = c * (((f - 1) // 2 - 1) // 2)             # Conv2dSubsampling linear in-dim
    embed = dict(conv1_w=nrm((c, 1, 3, 3)), conv1_b=nrm((c,)),
                 conv2_w=nrm((c, c, 3, 3)), conv2_b=nrm((c,)),
                 out_w=nrm((flin, c)), out_b=nrm((c,)))

    # per-layer weights stacked on a leading NUM_BLOCKS axis; q/k/v columns and
    # linear_out rows are head-major (h*d_k + d) matching the PyTorch head split.
    layers = dict(
        ln1_g=1.0 + nrm((nb, 1, c), 0.05), ln1_b=nrm((nb, 1, c), 0.05),
        w_qkv=nrm((nb, c, 3 * c)), b_qkv=nrm((nb, 1, 3 * c)),
        w_pos=nrm((nb, c, c)),                       # linear_pos (no bias)
        pos_bias_u=nrm((nb, 1, c)), pos_bias_v=nrm((nb, 1, c)),
        w_out=nrm((nb, c, c)), b_out=nrm((nb, 1, c)),
        ln2_g=1.0 + nrm((nb, 1, c), 0.05), ln2_b=nrm((nb, 1, c), 0.05),
        w_pw1=nrm((nb, c, 2 * c)), b_pw1=nrm((nb, 1, 2 * c)),   # [value | gate] (GLU)
        w_dw=nrm((nb, k, c)), b_dw=nrm((nb, 1, c)),
        bn_gamma=1.0 + nrm((nb, c), 0.05), bn_beta=nrm((nb, c), 0.05),
        bn_rm=nrm((nb, c), 0.05), bn_rv=1.0 + jnp.abs(nrm((nb, c), 0.05)),
        w_pw2=nrm((nb, c, c)), b_pw2=nrm((nb, 1, c)),
        ln3_g=1.0 + nrm((nb, 1, c), 0.05), ln3_b=nrm((nb, 1, c), 0.05),
        ff_w1=nrm((nb, c, ff)), ff_b1=nrm((nb, 1, ff)),
        ff_w2=nrm((nb, ff, c)), ff_b2=nrm((nb, 1, c)),
        ln4_g=1.0 + nrm((nb, 1, c), 0.05), ln4_b=nrm((nb, 1, c), 0.05),
    )

    return dict(embed=embed, layers=layers,
                after_g=1.0 + nrm((1, c), 0.05), after_b=nrm((1, c), 0.05))


if __name__ == "__main__":
    key = jax.random.PRNGKey(0)
    pkey, xkey = jax.random.split(key)
    params = init_params(pkey)

    B, L = 2, 32
    xs_pad = jax.random.normal(xkey, (B, L, INPUT_SIZE), dtype=jnp.float32)
    ilens = jnp.array([32, 24], dtype=jnp.int32)

    # Warm the roll-semantics probe outside of jit tracing (subsampled T for L=32).
    _ = _tpu_roll_ok(((L - 1) // 2 - 1) // 2, OUTPUT_SIZE)

    fwd = jax.jit(conformer_encoder_forward)
    xs_out, olens, _unused = fwd(params, xs_pad, ilens)
    jax.block_until_ready(xs_out)
    jax.block_until_ready(olens)

    assert xs_out.shape == (B, 7, OUTPUT_SIZE), xs_out.shape
    assert olens.shape == (B,), olens.shape
    print("KERNEL_OK")
</pallas_src>

<mosaic_0001>
module attributes {stable_mosaic.version = 11 : i64} {
  func.func @kern(%arg0: memref<7x7xf32, #tpu.memory_space<vmem>>, %arg1: memref<7x32xf32, #tpu.memory_space<vmem>>, %arg2: memref<7x7xf32, #tpu.memory_space<vmem>>, %arg3: memref<7x32xf32, #tpu.memory_space<vmem>>) attributes {dimension_semantics = [], scalar_prefetch = 0 : i64, scratch_operands = 0 : i64, tpu.core_type = #tpu.core_type<tc>} {
    %c0 = arith.constant 0 : index
    %c0_0 = arith.constant 0 : index
    %0 = vector.load %arg0[%c0, %c0_0] : memref<7x7xf32, #tpu.memory_space<vmem>>, vector<7x7xf32>
    %c1_i32 = arith.constant 1 : i32
    %1 = tpu.dynamic_rotate %0 by %c1_i32 dim 1 {stride = 1 : si32, stride_dimension = 0 : si32} : vector<7x7xf32>, i32 -> vector<7x7xf32>
    %2 = vector.extract_strided_slice %0 {offsets = [1, 0], sizes = [6, 7], strides = [1, 1]} : vector<7x7xf32> to vector<6x7xf32>
    %3 = vector.extract_strided_slice %0 {offsets = [0, 0], sizes = [1, 7], strides = [1, 1]} : vector<7x7xf32> to vector<1x7xf32>
    %4 = tpu.concatenate %2, %3 in 0 : vector<6x7xf32>, vector<1x7xf32> -> vector<7x7xf32>
    %c2_i32 = arith.constant 2 : i32
    %5 = tpu.dynamic_rotate %4 by %c2_i32 dim 1 {stride = 1 : si32, stride_dimension = 0 : si32} : vector<7x7xf32>, i32 -> vector<7x7xf32>
    %6 = tpu.iota {dimensions = array<i32: 0>} : vector<7x7xi32>
    %7 = tpu.iota {dimensions = array<i32: 1>} : vector<7x7xi32>
    %8 = arith.subi %7, %6 : vector<7x7xi32>
    %c0_i32 = arith.constant 0 : i32
    %9 = vector.broadcast %c0_i32 : i32 to vector<7x7xi32>
    %10 = arith.cmpi sle, %8, %9 : vector<7x7xi32>
    %c1_i32_1 = arith.constant 1 : i32
    %11 = vector.broadcast %c1_i32_1 : i32 to vector<7x7xi32>
    %12 = arith.cmpi eq, %8, %11 : vector<7x7xi32>
    %cst = arith.constant 0.000000e+00 : f32
    %13 = vector.broadcast %cst : f32 to vector<7x7xf32>
    %14 = arith.select %12, %13, %5 : vector<7x7xi1>, vector<7x7xf32>
    %15 = arith.select %10, %1, %14 : vector<7x7xi1>, vector<7x7xf32>
    %c0_2 = arith.constant 0 : index
    %c0_3 = arith.constant 0 : index
    %16 = vector.load %arg2[%c0_2, %c0_3] : memref<7x7xf32, #tpu.memory_space<vmem>>, vector<7x7xf32>
    tpu.vector_store %arg2[%c0_2, %c0_3], %15 {strides = array<i32>} : memref<7x7xf32, #tpu.memory_space<vmem>>, vector<7x7xf32>,
    %c0_4 = arith.constant 0 : index
    %c0_5 = arith.constant 0 : index
    %17 = vector.load %arg1[%c0_4, %c0_5] : memref<7x32xf32, #tpu.memory_space<vmem>>, vector<7x32xf32>
    %c2_i32_6 = arith.constant 2 : i32
    %18 = tpu.dynamic_rotate %17 by %c2_i32_6 dim 0 : vector<7x32xf32>, i32 -> vector<7x32xf32>
    %c0_7 = arith.constant 0 : index
    %c0_8 = arith.constant 0 : index
    %19 = vector.load %arg3[%c0_7, %c0_8] : memref<7x32xf32, #tpu.memory_space<vmem>>, vector<7x32xf32>
    tpu.vector_store %arg3[%c0_7, %c0_8], %18 {strides = array<i32>} : memref<7x32xf32, #tpu.memory_space<vmem>>, vector<7x32xf32>,
    return
  }
}

module attributes {stable_mosaic.version = 11 : i64} {
  func.func @_encoder_stack_kernel(%arg0: i32, %arg1: memref<1x7x32xf32, #tpu.memory_space<vmem>>, %arg2: memref<2x7x32xf32, #tpu.memory_space<vmem>>, %arg3: memref<1x1x7xf32, #tpu.memory_space<vmem>>, %arg4: memref<2x1x32xf32, #tpu.memory_space<vmem>>, %arg5: memref<2x1x32xf32, #tpu.memory_space<vmem>>, %arg6: memref<2x32x96xf32, #tpu.memory_space<vmem>>, %arg7: memref<2x1x96xf32, #tpu.memory_space<vmem>>, %arg8: memref<2x1x32xf32, #tpu.memory_space<vmem>>, %arg9: memref<2x1x32xf32, #tpu.memory_space<vmem>>, %arg10: memref<2x32x32xf32, #tpu.memory_space<vmem>>, %arg11: memref<2x1x32xf32, #tpu.memory_space<vmem>>, %arg12: memref<2x1x32xf32, #tpu.memory_space<vmem>>, %arg13: memref<2x1x32xf32, #tpu.memory_space<vmem>>, %arg14: memref<2x32x64xf32, #tpu.memory_space<vmem>>, %arg15: memref<2x1x64xf32, #tpu.memory_space<vmem>>, %arg16: memref<2x7x32xf32, #tpu.memory_space<vmem>>, %arg17: memref<2x1x32xf32, #tpu.memory_space<vmem>>, %arg18: memref<2x1x32xf32, #tpu.memory_space<vmem>>, %arg19: memref<2x1x32xf32, #tpu.memory_space<vmem>>, %arg20: memref<2x32x32xf32, #tpu.memory_space<vmem>>, %arg21: memref<2x1x32xf32, #tpu.memory_space<vmem>>, %arg22: memref<2x1x32xf32, #tpu.memory_space<vmem>>, %arg23: memref<2x1x32xf32, #tpu.memory_space<vmem>>, %arg24: memref<2x32x64xf32, #tpu.memory_space<vmem>>, %arg25: memref<2x1x64xf32, #tpu.memory_space<vmem>>, %arg26: memref<2x64x32xf32, #tpu.memory_space<vmem>>, %arg27: memref<2x1x32xf32, #tpu.memory_space<vmem>>, %arg28: memref<2x1x32xf32, #tpu.memory_space<vmem>>, %arg29: memref<2x1x32xf32, #tpu.memory_space<vmem>>, %arg30: memref<1x32xf32, #tpu.memory_space<vmem>>, %arg31: memref<1x32xf32, #tpu.memory_space<vmem>>, %arg32: memref<1x7x32xf32, #tpu.memory_space<vmem>>, %arg33: memref<7x32xf32, #tpu.memory_space<vmem>>) attributes {dimension_semantics = [#tpu.dimension_semantics<parallel>], iteration_bounds = array<i64: 2>, scalar_prefetch = 0 : i64, scratch_operands = 1 : i64, tpu.core_type = #tpu.core_type<tc>, window_params = [{transform_indices = @transform_0, window_bounds = array<i64: 1, 7, 32>}, {pipeline_mode = #tpu.pipeline_mode<synchronous>, transform_indices = @transform_1, window_bounds = array<i64: 2, 7, 32>}, {transform_indices = @transform_2, window_bounds = array<i64: 1, 1, 7>}, {pipeline_mode = #tpu.pipeline_mode<synchronous>, transform_indices = @transform_3, window_bounds = array<i64: 2, 1, 32>}, {pipeline_mode = #tpu.pipeline_mode<synchronous>, transform_indices = @transform_4, window_bounds = array<i64: 2, 1, 32>}, {pipeline_mode = #tpu.pipeline_mode<synchronous>, transform_indices = @transform_5, window_bounds = array<i64: 2, 32, 96>}, {pipeline_mode = #tpu.pipeline_mode<synchronous>, transform_indices = @transform_6, window_bounds = array<i64: 2, 1, 96>}, {pipeline_mode = #tpu.pipeline_mode<synchronous>, transform_indices = @transform_7, window_bounds = array<i64: 2, 1, 32>}, {pipeline_mode = #tpu.pipeline_mode<synchronous>, transform_indices = @transform_8, window_bounds = array<i64: 2, 1, 32>}, {pipeline_mode = #tpu.pipeline_mode<synchronous>, transform_indices = @transform_9, window_bounds = array<i64: 2, 32, 32>}, {pipeline_mode = #tpu.pipeline_mode<synchronous>, transform_indices = @transform_10, window_bounds = array<i64: 2, 1, 32>}, {pipeline_mode = #tpu.pipeline_mode<synchronous>, transform_indices = @transform_11, window_bounds = array<i64: 2, 1, 32>}, {pipeline_mode = #tpu.pipeline_mode<synchronous>, transform_indices = @transform_12, window_bounds = array<i64: 2, 1, 32>}, {pipeline_mode = #tpu.pipeline_mode<synchronous>, transform_indices = @transform_13, window_bounds = array<i64: 2, 32, 64>}, {pipeline_mode = #tpu.pipeline_mode<synchronous>, transform_indices = @transform_14, window_bounds = array<i64: 2, 1, 64>}, {pipeline_mode = #tpu.pipeline_mode<synchronous>, transform_indices = @transform_15, window_bounds = array<i64: 2, 7, 32>}, {pipeline_mode = #tpu.pipeline_mode<synchronous>, transform_indices = @transform_16, window_bounds = array<i64: 2, 1, 32>}, {pipeline_mode = #tpu.pipeline_mode<synchronous>, transform_indices = @transform_17, window_bounds = array<i64: 2, 1, 32>}, {pipeline_mode = #tpu.pipeline_mode<synchronous>, transform_indices = @transform_18, window_bounds = array<i64: 2, 1, 32>}, {pipeline_mode = #tpu.pipeline_mode<synchronous>, transform_indices = @transform_19, window_bounds = array<i64: 2, 32, 32>}, {pipeline_mode = #tpu.pipeline_mode<synchronous>, transform_indices = @transform_20, window_bounds = array<i64: 2, 1, 32>}, {pipeline_mode = #tpu.pipeline_mode<synchronous>, transform_indices = @transform_21, window_bounds = array<i64: 2, 1, 32>}, {pipeline_mode = #tpu.pipeline_mode<synchronous>, transform_indices = @transform_22, window_bounds = array<i64: 2, 1, 32>}, {pipeline_mode = #tpu.pipeline_mode<synchronous>, transform_indices = @transform_23, window_bounds = array<i64: 2, 32, 64>}, {pipeline_mode = #tpu.pipeline_mode<synchronous>, transform_indices = @transform_24, window_bounds = array<i64: 2, 1, 64>}, {pipeline_mode = #tpu.pipeline_mode<synchronous>, transform_indices = @transform_25, window_bounds = array<i64: 2, 64, 32>}, {pipeline_mode = #tpu.pipeline_mode<synchronous>, transform_indices = @transform_26, window_bounds = array<i64: 2, 1, 32>}, {pipeline_mode = #tpu.pipeline_mode<synchronous>, transform_indices = @transform_27, window_bounds = array<i64: 2, 1, 32>}, {pipeline_mode = #tpu.pipeline_mode<synchronous>, transform_indices = @transform_28, window_bounds = array<i64: 2, 1, 32>}, {pipeline_mode = #tpu.pipeline_mode<synchronous>, transform_indices = @transform_29, window_bounds = array<i64: 1, 32>}, {pipeline_mode = #tpu.pipeline_mode<synchronous>, transform_indices = @transform_30, window_bounds = array<i64: 1, 32>}, {transform_indices = @transform_31, window_bounds = array<i64: 1, 7, 32>}]} {
    %c0 = arith.constant 0 : index
    %c0_0 = arith.constant 0 : index
    %c0_1 = arith.constant 0 : index
    %0 = vector.load %arg3[%c0, %c0_0, %c0_1] : memref<1x1x7xf32, #tpu.memory_space<vmem>>, vector<1x1x7xf32>
    %1 = vector.shape_cast %0 : vector<1x1x7xf32> to vector<1x7xf32>
    %cst = arith.constant 5.000000e-01 : f32
    %2 = vector.broadcast %cst : f32 to vector<1x7xf32>
    %3 = arith.cmpf ogt, %1, %2 : vector<1x7xf32>
    %4 = tpu.iota {dimensions = array<i32: 0>} : vector<7x7xi32>
    %5 = tpu.iota {dimensions = array<i32: 1>} : vector<7x7xi32>
    %6 = arith.subi %5, %4 : vector<7x7xi32>
    %7 = tpu.iota {dimensions = array<i32: 0>} : vector<7x1xi32>
    %c-3_i32 = arith.constant -3 : i32
    %8 = vector.broadcast %c-3_i32 : i32 to vector<7x1xi32>
    %9 = arith.addi %7, %8 : vector<7x1xi32>
    %c0_i32 = arith.constant 0 : i32
    %10 = vector.broadcast %c0_i32 : i32 to vector<7x1xi32>
    %11 = arith.cmpi sge, %9, %10 : vector<7x1xi32>
    %c-3_i32_2 = arith.constant -3 : i32
    %12 = vector.broadcast %c-3_i32_2 : i32 to vector<7x1xi32>
    %13 = arith.addi %7, %12 : vector<7x1xi32>
    %c6_i32 = arith.constant 6 : i32
    %14 = vector.broadcast %c6_i32 : i32 to vector<7x1xi32>
    %15 = arith.cmpi sle, %13, %14 : vector<7x1xi32>
    %16 = arith.andi %11, %15 : vector<7x1xi1>
    %c-2_i32 = arith.constant -2 : i32
    %17 = vector.broadcast %c-2_i32 : i32 to vector<7x1xi32>
    %18 = arith.addi %7, %17 : vector<7x1xi32>
    %c0_i32_3 = arith.constant 0 : i32
    %19 = vector.broadcast %c0_i32_3 : i32 to vector<7x1xi32>
    %20 = arith.cmpi sge, %18, %19 : vector<7x1xi32>
    %c-2_i32_4 = arith.constant -2 : i32
    %21 = vector.broadcast %c-2_i32_4 : i32 to vector<7x1xi32>
    %22 = arith.addi %7, %21 : vector<7x1xi32>
    %c6_i32_5 = arith.constant 6 : i32
    %23 = vector.broadcast %c6_i32_5 : i32 to vector<7x1xi32>
    %24 = arith.cmpi sle, %22, %23 : vector<7x1xi32>
    %25 = arith.andi %20, %24 : vector<7x1xi1>
    %c-1_i32 = arith.constant -1 : i32
    %26 = vector.broadcast %c-1_i32 : i32 to vector<7x1xi32>
    %27 = arith.addi %7, %26 : vector<7x1xi32>
    %c0_i32_6 = arith.constant 0 : i32
    %28 = vector.broadcast %c0_i32_6 : i32 to vector<7x1xi32>
    %29 = arith.cmpi sge, %27, %28 : vector<7x1xi32>
    %c-1_i32_7 = arith.constant -1 : i32
    %30 = vector.broadcast %c-1_i32_7 : i32 to vector<7x1xi32>
    %31 = arith.addi %7, %30 : vector<7x1xi32>
    %c6_i32_8 = arith.constant 6 : i32
    %32 = vector.broadcast %c6_i32_8 : i32 to vector<7x1xi32>
    %33 = arith.cmpi sle, %31, %32 : vector<7x1xi32>
    %34 = arith.andi %29, %33 : vector<7x1xi1>
    %c0_i32_9 = arith.constant 0 : i32
    %35 = vector.broadcast %c0_i32_9 : i32 to vector<7x1xi32>
    %36 = arith.addi %7, %35 : vector<7x1xi32>
    %c0_i32_10 = arith.constant 0 : i32
    %37 = vector.broadcast %c0_i32_10 : i32 to vector<7x1xi32>
    %38 = arith.cmpi sge, %36, %37 : vector<7x1xi32>
    %c0_i32_11 = arith.constant 0 : i32
    %39 = vector.broadcast %c0_i32_11 : i32 to vector<7x1xi32>
    %40 = arith.addi %7, %39 : vector<7x1xi32>
    %c6_i32_12 = arith.constant 6 : i32
    %41 = vector.broadcast %c6_i32_12 : i32 to vector<7x1xi32>
    %42 = arith.cmpi sle, %40, %41 : vector<7x1xi32>
    %43 = arith.andi %38, %42 : vector<7x1xi1>
    %c1_i32 = arith.constant 1 : i32
    %44 = vector.broadcast %c1_i32 : i32 to vector<7x1xi32>
    %45 = arith.addi %7, %44 : vector<7x1xi32>
    %c0_i32_13 = arith.constant 0 : i32
    %46 = vector.broadcast %c0_i32_13 : i32 to vector<7x1xi32>
    %47 = arith.cmpi sge, %45, %46 : vector<7x1xi32>
    %c1_i32_14 = arith.constant 1 : i32
    %48 = vector.broadcast %c1_i32_14 : i32 to vector<7x1xi32>
    %49 = arith.addi %7, %48 : vector<7x1xi32>
    %c6_i32_15 = arith.constant 6 : i32
    %50 = vector.broadcast %c6_i32_15 : i32 to vector<7x1xi32>
    %51 = arith.cmpi sle, %49, %50 : vector<7x1xi32>
    %52 = arith.andi %47, %51 : vector<7x1xi1>
    %c2_i32 = arith.constant 2 : i32
    %53 = vector.broadcast %c2_i32 : i32 to vector<7x1xi32>
    %54 = arith.addi %7, %53 : vector<7x1xi32>
    %c0_i32_16 = arith.constant 0 : i32
    %55 = vector.broadcast %c0_i32_16 : i32 to vector<7x1xi32>
    %56 = arith.cmpi sge, %54, %55 : vector<7x1xi32>
    %c2_i32_17 = arith.constant 2 : i32
    %57 = vector.broadcast %c2_i32_17 : i32 to vector<7x1xi32>
    %58 = arith.addi %7, %57 : vector<7x1xi32>
    %c6_i32_18 = arith.constant 6 : i32
    %59 = vector.broadcast %c6_i32_18 : i32 to vector<7x1xi32>
    %60 = arith.cmpi sle, %58, %59 : vector<7x1xi32>
    %61 = arith.andi %56, %60 : vector<7x1xi1>
    %c3_i32 = arith.constant 3 : i32
    %62 = vector.broadcast %c3_i32 : i32 to vector<7x1xi32>
    %63 = arith.addi %7, %62 : vector<7x1xi32>
    %c0_i32_19 = arith.constant 0 : i32
    %64 = vector.broadcast %c0_i32_19 : i32 to vector<7x1xi32>
    %65 = arith.cmpi sge, %63, %64 : vector<7x1xi32>
    %c3_i32_20 = arith.constant 3 : i32
    %66 = vector.broadcast %c3_i32_20 : i32 to vector<7x1xi32>
    %67 = arith.addi %7, %66 : vector<7x1xi32>
    %c6_i32_21 = arith.constant 6 : i32
    %68 = vector.broadcast %c6_i32_21 : i32 to vector<7x1xi32>
    %69 = arith.cmpi sle, %67, %68 : vector<7x1xi32>
    %70 = arith.andi %65, %69 : vector<7x1xi1>
    %c0_22 = arith.constant 0 : index
    %c0_23 = arith.constant 0 : index
    %c0_24 = arith.constant 0 : index
    %71 = vector.load %arg1[%c0_22, %c0_23, %c0_24] : memref<1x7x32xf32, #tpu.memory_space<vmem>>, vector<1x7x32xf32>
    %72 = vector.shape_cast %71 : vector<1x7x32xf32> to vector<7x32xf32>
    %c0_25 = arith.constant 0 : index
    %c0_26 = arith.constant 0 : index
    %c0_27 = arith.constant 0 : index
    %73 = vector.load %arg4[%c0_25, %c0_26, %c0_27] : memref<2x1x32xf32, #tpu.memory_space<vmem>>, vector<1x1x32xf32>
    %74 = vector.shape_cast %73 : vector<1x1x32xf32> to vector<1x32xf32>
    %c0_28 = arith.constant 0 : index
    %c0_29 = arith.constant 0 : index
    %c0_30 = arith.constant 0 : index
    %75 = vector.load %arg5[%c0_28, %c0_29, %c0_30] : memref<2x1x32xf32, #tpu.memory_space<vmem>>, vector<1x1x32xf32>
    %76 = vector.shape_cast %75 : vector<1x1x32xf32> to vector<1x32xf32>
    %cst_31 = arith.constant dense<0.000000e+00> : vector<7xf32>
    %77 = vector.multi_reduction <add>, %72, %cst_31 [1] : vector<7x32xf32> to vector<7xf32>
    %78 = vector.shape_cast %77 : vector<7xf32> to vector<7x1xf32>
    %cst_32 = arith.constant 3.200000e+01 : f32
    %79 = vector.broadcast %cst_32 : f32 to vector<7x1xf32>
    %80 = arith.divf %78, %79 : vector<7x1xf32>
    %81 = vector.broadcast %80 : vector<7x1xf32> to vector<7x32xf32>
    %82 = arith.subf %72, %81 : vector<7x32xf32>
    %83 = arith.mulf %82, %82 : vector<7x32xf32>
    %cst_33 = arith.constant dense<0.000000e+00> : vector<7xf32>
    %84 = vector.multi_reduction <add>, %83, %cst_33 [1] : vector<7x32xf32> to vector<7xf32>
    %85 = vector.shape_cast %84 : vector<7xf32> to vector<7x1xf32>
    %cst_34 = arith.constant 3.200000e+01 : f32
    %86 = vector.broadcast %cst_34 : f32 to vector<7x1xf32>
    %87 = arith.divf %85, %86 : vector<7x1xf32>
    %cst_35 = arith.constant 9.99999974E-6 : f32
    %88 = vector.broadcast %cst_35 : f32 to vector<7x1xf32>
    %89 = arith.addf %87, %88 : vector<7x1xf32>
    %90 = math.rsqrt %89 : vector<7x1xf32>
    %91 = vector.broadcast %90 : vector<7x1xf32> to vector<7x32xf32>
    %92 = arith.mulf %82, %91 : vector<7x32xf32>
    %93 = vector.broadcast %74 : vector<1x32xf32> to vector<7x32xf32>
    %94 = arith.mulf %92, %93 : vector<7x32xf32>
    %95 = vector.broadcast %76 : vector<1x32xf32> to vector<7x32xf32>
    %96 = arith.addf %94, %95 : vector<7x32xf32>
    %c0_36 = arith.constant 0 : index
    %c0_37 = arith.constant 0 : index
    %c0_38 = arith.constant 0 : index
    %97 = vector.load %arg6[%c0_36, %c0_37, %c0_38] : memref<2x32x96xf32, #tpu.memory_space<vmem>>, vector<1x32x96xf32>
    %98 = vector.shape_cast %97 : vector<1x32x96xf32> to vector<32x96xf32>
    %cst_39 = arith.constant dense<0.000000e+00> : vector<7x96xf32>
    %99 = tpu.matmul %96, %98, %cst_39 {dimension_numbers = #tpu.dot_dimension_numbers<[1], [0], [0], [1], [0, 0, 1, 1], [], []>} : vector<7x32xf32>, vector<32x96xf32>, vector<7x96xf32> -> vector<7x96xf32>
    %c0_40 = arith.constant 0 : index
    %c0_41 = arith.constant 0 : index
    %c0_42 = arith.constant 0 : index
    %100 = vector.load %arg7[%c0_40, %c0_41, %c0_42] : memref<2x1x96xf32, #tpu.memory_space<vmem>>, vector<1x1x96xf32>
    %101 = vector.shape_cast %100 : vector<1x1x96xf32> to vector<1x96xf32>
    %102 = vector.broadcast %101 : vector<1x96xf32> to vector<7x96xf32>
    %103 = arith.addf %99, %102 : vector<7x96xf32>
    %104 = vector.extract_strided_slice %103 {offsets = [0, 0], sizes = [7, 32], strides = [1, 1]} : vector<7x96xf32> to vector<7x32xf32>
    %105 = vector.extract_strided_slice %103 {offsets = [0, 32], sizes = [7, 32], strides = [1, 1]} : vector<7x96xf32> to vector<7x32xf32>
    %106 = vector.extract_strided_slice %103 {offsets = [0, 64], sizes = [7, 32], strides = [1, 1]} : vector<7x96xf32> to vector<7x32xf32>
    %c0_43 = arith.constant 0 : index
    %c0_44 = arith.constant 0 : index
    %c0_45 = arith.constant 0 : index
    %107 = vector.load %arg2[%c0_43, %c0_44, %c0_45] : memref<2x7x32xf32, #tpu.memory_space<vmem>>, vector<1x7x32xf32>
    %108 = vector.shape_cast %107 : vector<1x7x32xf32> to vector<7x32xf32>
    %c0_46 = arith.constant 0 : index
    %c0_47 = arith.constant 0 : index
    %c0_48 = arith.constant 0 : index
    %109 = vector.load %arg8[%c0_46, %c0_47, %c0_48] : memref<2x1x32xf32, #tpu.memory_space<vmem>>, vector<1x1x32xf32>
    %110 = vector.shape_cast %109 : vector<1x1x32xf32> to vector<1x32xf32>
    %111 = vector.broadcast %110 : vector<1x32xf32> to vector<7x32xf32>
    %112 = arith.addf %104, %111 : vector<7x32xf32>
    %c0_49 = arith.constant 0 : index
    %c0_50 = arith.constant 0 : index
    %c0_51 = arith.constant 0 : index
    %113 = vector.load %arg9[%c0_49, %c0_50, %c0_51] : memref<2x1x32xf32, #tpu.memory_space<vmem>>, vector<1x1x32xf32>
    %114 = vector.shape_cast %113 : vector<1x1x32xf32> to vector<1x32xf32>
    %115 = vector.broadcast %114 : vector<1x32xf32> to vector<7x32xf32>
    %116 = arith.addf %104, %115 : vector<7x32xf32>
    %117 = vector.extract_strided_slice %112 {offsets = [0, 0], sizes = [7, 8], strides = [1, 1]} : vector<7x32xf32> to vector<7x8xf32>
    %118 = vector.extract_strided_slice %105 {offsets = [0, 0], sizes = [7, 8], strides = [1, 1]} : vector<7x32xf32> to vector<7x8xf32>
    %cst_52 = arith.constant dense<0.000000e+00> : vector<7x7xf32>
    %119 = tpu.matmul %117, %118, %cst_52 {dimension_numbers = #tpu.dot_dimension_numbers<[1], [1], [0], [0], [0, 0, 1, 0], [], []>} : vector<7x8xf32>, vector<7x8xf32>, vector<7x7xf32> -> vector<7x7xf32>
    %120 = vector.extract_strided_slice %116 {offsets = [0, 0], sizes = [7, 8], strides = [1, 1]} : vector<7x32xf32> to vector<7x8xf32>
    %121 = vector.extract_strided_slice %108 {offsets = [0, 0], sizes = [7, 8], strides = [1, 1]} : vector<7x32xf32> to vector<7x8xf32>
    %cst_53 = arith.constant dense<0.000000e+00> : vector<7x7xf32>
    %122 = tpu.matmul %120, %121, %cst_53 {dimension_numbers = #tpu.dot_dimension_numbers<[1], [1], [0], [0], [0, 0, 1, 0], [], []>} : vector<7x8xf32>, vector<7x8xf32>, vector<7x7xf32> -> vector<7x7xf32>
    %cst_54 = arith.constant 0.000000e+00 : f32
    %123 = vector.broadcast %cst_54 : f32 to vector<7x7xf32>
    %c-6_i32 = arith.constant -6 : i32
    %124 = vector.broadcast %c-6_i32 : i32 to vector<7x7xi32>
    %125 = arith.cmpi eq, %6, %124 : vector<7x7xi32>
    %126 = vector.extract_strided_slice %122 {offsets = [0, 0], sizes = [7, 1], strides = [1, 1]} : vector<7x7xf32> to vector<7x1xf32>
    %cst_55 = arith.constant 0.000000e+00 : f32
    %127 = vector.shape_cast %126 : vector<7x1xf32> to vector<7x1xf32>
    %128 = vector.broadcast %127 : vector<7x1xf32> to vector<7x7xf32>
    %129 = vector.broadcast %cst_55 : f32 to vector<7x7xf32>
    %130 = arith.select %125, %128, %129 : vector<7x7xi1>, vector<7x7xf32>
    %131 = arith.addf %123, %130 : vector<7x7xf32>
    %c-5_i32 = arith.constant -5 : i32
    %132 = vector.broadcast %c-5_i32 : i32 to vector<7x7xi32>
    %133 = arith.cmpi eq, %6, %132 : vector<7x7xi32>
    %134 = vector.extract_strided_slice %122 {offsets = [0, 1], sizes = [7, 1], strides = [1, 1]} : vector<7x7xf32> to vector<7x1xf32>
    %cst_56 = arith.constant 0.000000e+00 : f32
    %135 = vector.shape_cast %134 : vector<7x1xf32> to vector<7x1xf32>
    %136 = vector.broadcast %135 : vector<7x1xf32> to vector<7x7xf32>
    %137 = vector.broadcast %cst_56 : f32 to vector<7x7xf32>
    %138 = arith.select %133, %136, %137 : vector<7x7xi1>, vector<7x7xf32>
    %139 = arith.addf %131, %138 : vector<7x7xf32>
    %c-4_i32 = arith.constant -4 : i32
    %140 = vector.broadcast %c-4_i32 : i32 to vector<7x7xi32>
    %141 = arith.cmpi eq, %6, %140 : vector<7x7xi32>
    %142 = vector.extract_strided_slice %122 {offsets = [0, 2], sizes = [7, 1], strides = [1, 1]} : vector<7x7xf32> to vector<7x1xf32>
    %cst_57 = arith.constant 0.000000e+00 : f32
    %143 = vector.shape_cast %142 : vector<7x1xf32> to vector<7x1xf32>
    %144 = vector.broadcast %143 : vector<7x1xf32> to vector<7x7xf32>
    %145 = vector.broadcast %cst_57 : f32 to vector<7x7xf32>
    %146 = arith.select %141, %144, %145 : vector<7x7xi1>, vector<7x7xf32>
    %147 = arith.addf %139, %146 : vector<7x7xf32>
    %c-3_i32_58 = arith.constant -3 : i32
    %148 = vector.broadcast %c-3_i32_58 : i32 to vector<7x7xi32>
    %149 = arith.cmpi eq, %6, %148 : vector<7x7xi32>
    %150 = vector.extract_strided_slice %122 {offsets = [0, 3], sizes = [7, 1], strides = [1, 1]} : vector<7x7xf32> to vector<7x1xf32>
    %cst_59 = arith.constant 0.000000e+00 : f32
    %151 = vector.shape_cast %150 : vector<7x1xf32> to vector<7x1xf32>
    %152 = vector.broadcast %151 : vector<7x1xf32> to vector<7x7xf32>
    %153 = vector.broadcast %cst_59 : f32 to vector<7x7xf32>
    %154 = arith.select %149, %152, %153 : vector<7x7xi1>, vector<7x7xf32>
    %155 = arith.addf %147, %154 : vector<7x7xf32>
    %c-2_i32_60 = arith.constant -2 : i32
    %156 = vector.broadcast %c-2_i32_60 : i32 to vector<7x7xi32>
    %157 = arith.cmpi eq, %6, %156 : vector<7x7xi32>
    %158 = vector.extract_strided_slice %122 {offsets = [0, 4], sizes = [7, 1], strides = [1, 1]} : vector<7x7xf32> to vector<7x1xf32>
    %cst_61 = arith.constant 0.000000e+00 : f32
    %159 = vector.shape_cast %158 : vector<7x1xf32> to vector<7x1xf32>
    %160 = vector.broadcast %159 : vector<7x1xf32> to vector<7x7xf32>
    %161 = vector.broadcast %cst_61 : f32 to vector<7x7xf32>
    %162 = arith.select %157, %160, %161 : vector<7x7xi1>, vector<7x7xf32>
    %163 = arith.addf %155, %162 : vector<7x7xf32>
    %c-1_i32_62 = arith.constant -1 : i32
    %164 = vector.broadcast %c-1_i32_62 : i32 to vector<7x7xi32>
    %165 = arith.cmpi eq, %6, %164 : vector<7x7xi32>
    %166 = vector.extract_strided_slice %122 {offsets = [0, 5], sizes = [7, 1], strides = [1, 1]} : vector<7x7xf32> to vector<7x1xf32>
    %cst_63 = arith.constant 0.000000e+00 : f32
    %167 = vector.shape_cast %166 : vector<7x1xf32> to vector<7x1xf32>
    %168 = vector.broadcast %167 : vector<7x1xf32> to vector<7x7xf32>
    %169 = vector.broadcast %cst_63 : f32 to vector<7x7xf32>
    %170 = arith.select %165, %168, %169 : vector<7x7xi1>, vector<7x7xf32>
    %171 = arith.addf %163, %170 : vector<7x7xf32>
    %c0_i32_64 = arith.constant 0 : i32
    %172 = vector.broadcast %c0_i32_64 : i32 to vector<7x7xi32>
    %173 = arith.cmpi eq, %6, %172 : vector<7x7xi32>
    %174 = vector.extract_strided_slice %122 {offsets = [0, 6], sizes = [7, 1], strides = [1, 1]} : vector<7x7xf32> to vector<7x1xf32>
    %cst_65 = arith.constant 0.000000e+00 : f32
    %175 = vector.shape_cast %174 : vector<7x1xf32> to vector<7x1xf32>
    %176 = vector.broadcast %175 : vector<7x1xf32> to vector<7x7xf32>
    %177 = vector.broadcast %cst_65 : f32 to vector<7x7xf32>
    %178 = arith.select %173, %176, %177 : vector<7x7xi1>, vector<7x7xf32>
    %179 = arith.addf %171, %178 : vector<7x7xf32>
    %180 = vector.extract_strided_slice %122 {offsets = [1, 0], sizes = [6, 1], strides = [1, 1]} : vector<7x7xf32> to vector<6x1xf32>
    %cst_66 = arith.constant 0.000000e+00 : f32
    %181 = vector.broadcast %cst_66 : f32 to vector<1x1xf32>
    %182 = tpu.concatenate %180, %181 in 0 : vector<6x1xf32>, vector<1x1xf32> -> vector<7x1xf32>
    %c2_i32_67 = arith.constant 2 : i32
    %183 = vector.broadcast %c2_i32_67 : i32 to vector<7x7xi32>
    %184 = arith.cmpi eq, %6, %183 : vector<7x7xi32>
    %cst_68 = arith.constant 0.000000e+00 : f32
    %185 = vector.shape_cast %182 : vector<7x1xf32> to vector<7x1xf32>
    %186 = vector.broadcast %185 : vector<7x1xf32> to vector<7x7xf32>
    %187 = vector.broadcast %cst_68 : f32 to vector<7x7xf32>
    %188 = arith.select %184, %186, %187 : vector<7x7xi1>, vector<7x7xf32>
    %189 = arith.addf %179, %188 : vector<7x7xf32>
    %190 = vector.extract_strided_slice %122 {offsets = [1, 1], sizes = [6, 1], strides = [1, 1]} : vector<7x7xf32> to vector<6x1xf32>
    %cst_69 = arith.constant 0.000000e+00 : f32
    %191 = vector.broadcast %cst_69 : f32 to vector<1x1xf32>
    %192 = tpu.concatenate %190, %191 in 0 : vector<6x1xf32>, vector<1x1xf32> -> vector<7x1xf32>
    %c3_i32_70 = arith.constant 3 : i32
    %193 = vector.broadcast %c3_i32_70 : i32 to vector<7x7xi32>
    %194 = arith.cmpi eq, %6, %193 : vector<7x7xi32>
    %cst_71 = arith.constant 0.000000e+00 : f32
    %195 = vector.shape_cast %192 : vector<7x1xf32> to vector<7x1xf32>
    %196 = vector.broadcast %195 : vector<7x1xf32> to vector<7x7xf32>
    %197 = vector.broadcast %cst_71 : f32 to vector<7x7xf32>
    %198 = arith.select %194, %196, %197 : vector<7x7xi1>, vector<7x7xf32>
    %199 = arith.addf %189, %198 : vector<7x7xf32>
    %200 = vector.extract_strided_slice %122 {offsets = [1, 2], sizes = [6, 1], strides = [1, 1]} : vector<7x7xf32> to vector<6x1xf32>
    %cst_72 = arith.constant 0.000000e+00 : f32
    %201 = vector.broadcast %cst_72 : f32 to vector<1x1xf32>
    %202 = tpu.concatenate %200, %201 in 0 : vector<6x1xf32>, vector<1x1xf32> -> vector<7x1xf32>
    %c4_i32 = arith.constant 4 : i32
    %203 = vector.broadcast %c4_i32 : i32 to vector<7x7xi32>
    %204 = arith.cmpi eq, %6, %203 : vector<7x7xi32>
    %cst_73 = arith.constant 0.000000e+00 : f32
    %205 = vector.shape_cast %202 : vector<7x1xf32> to vector<7x1xf32>
    %206 = vector.broadcast %205 : vector<7x1xf32> to vector<7x7xf32>
    %207 = vector.broadcast %cst_73 : f32 to vector<7x7xf32>
    %208 = arith.select %204, %206, %207 : vector<7x7xi1>, vector<7x7xf32>
    %209 = arith.addf %199, %208 : vector<7x7xf32>
    %210 = vector.extract_strided_slice %122 {offsets = [1, 3], sizes = [6, 1], strides = [1, 1]} : vector<7x7xf32> to vector<6x1xf32>
    %cst_74 = arith.constant 0.000000e+00 : f32
    %211 = vector.broadcast %cst_74 : f32 to vector<1x1xf32>
    %212 = tpu.concatenate %210, %211 in 0 : vector<6x1xf32>, vector<1x1xf32> -> vector<7x1xf32>
    %c5_i32 = arith.constant 5 : i32
    %213 = vector.broadcast %c5_i32 : i32 to vector<7x7xi32>
    %214 = arith.cmpi eq, %6, %213 : vector<7x7xi32>
    %cst_75 = arith.constant 0.000000e+00 : f32
    %215 = vector.shape_cast %212 : vector<7x1xf32> to vector<7x1xf32>
    %216 = vector.broadcast %215 : vector<7x1xf32> to vector<7x7xf32>
    %217 = vector.broadcast %cst_75 : f32 to vector<7x7xf32>
    %218 = arith.select %214, %216, %217 : vector<7x7xi1>, vector<7x7xf32>
    %219 = arith.addf %209, %218 : vector<7x7xf32>
    %220 = vector.extract_strided_slice %122 {offsets = [1, 4], sizes = [6, 1], strides = [1, 1]} : vector<7x7xf32> to vector<6x1xf32>
    %cst_76 = arith.constant 0.000000e+00 : f32
    %221 = vector.broadcast %cst_76 : f32 to vector<1x1xf32>
    %222 = tpu.concatenate %220, %221 in 0 : vector<6x1xf32>, vector<1x1xf32> -> vector<7x1xf32>
    %c6_i32_77 = arith.constant 6 : i32
    %223 = vector.broadcast %c6_i32_77 : i32 to vector<7x7xi32>
    %224 = arith.cmpi eq, %6, %223 : vector<7x7xi32>
    %cst_78 = arith.constant 0.000000e+00 : f32
    %225 = vector.shape_cast %222 : vector<7x1xf32> to vector<7x1xf32>
    %226 = vector.broadcast %225 : vector<7x1xf32> to vector<7x7xf32>
    %227 = vector.broadcast %cst_78 : f32 to vector<7x7xf32>
    %228 = arith.select %224, %226, %227 : vector<7x7xi1>, vector<7x7xf32>
    %229 = arith.addf %219, %228 : vector<7x7xf32>
    %230 = arith.addf %119, %229 : vector<7x7xf32>
    %cst_79 = arith.constant 0.353553385 : f32
    %231 = vector.broadcast %cst_79 : f32 to vector<7x7xf32>
    %232 = arith.mulf %230, %231 : vector<7x7xf32>
    %cst_80 = arith.constant -3.40282347E+38 : f32
    %233 = vector.shape_cast %3 : vector<1x7xi1> to vector<1x7xi1>
    %234 = vector.broadcast %233 : vector<1x7xi1> to vector<7x7xi1>
    %235 = vector.broadcast %cst_80 : f32 to vector<7x7xf32>
    %236 = arith.select %234, %232, %235 : vector<7x7xi1>, vector<7x7xf32>
    %cst_81 = arith.constant dense<0xFF800000> : vector<7xf32>
    %237 = vector.multi_reduction <maximumf>, %236, %cst_81 [1] : vector<7x7xf32> to vector<7xf32>
    %238 = vector.shape_cast %237 : vector<7xf32> to vector<7x1xf32>
    %239 = vector.broadcast %238 : vector<7x1xf32> to vector<7x7xf32>
    %240 = arith.subf %236, %239 : vector<7x7xf32>
    %241 = math.exp %240 : vector<7x7xf32>
    %cst_82 = arith.constant dense<0.000000e+00> : vector<7xf32>
    %242 = vector.multi_reduction <add>, %241, %cst_82 [1] : vector<7x7xf32> to vector<7xf32>
    %243 = vector.shape_cast %242 : vector<7xf32> to vector<7x1xf32>
    %244 = tpu.reciprocal %243 {approx = true} : vector<7x1xf32> -> vector<7x1xf32>
    %245 = vector.broadcast %244 : vector<7x1xf32> to vector<7x7xf32>
    %246 = arith.mulf %241, %245 : vector<7x7xf32>
    %cst_83 = arith.constant 0.000000e+00 : f32
    %247 = vector.shape_cast %3 : vector<1x7xi1> to vector<1x7xi1>
    %248 = vector.broadcast %247 : vector<1x7xi1> to vector<7x7xi1>
    %249 = vector.broadcast %cst_83 : f32 to vector<7x7xf32>
    %250 = arith.select %248, %246, %249 : vector<7x7xi1>, vector<7x7xf32>
    %251 = vector.extract_strided_slice %106 {offsets = [0, 0], sizes = [7, 8], strides = [1, 1]} : vector<7x32xf32> to vector<7x8xf32>
    %cst_84 = arith.constant dense<0.000000e+00> : vector<7x8xf32>
    %252 = tpu.matmul %250, %251, %cst_84 {dimension_numbers = #tpu.dot_dimension_numbers<[1], [0], [0], [1], [0, 0, 1, 1], [], []>} : vector<7x7xf32>, vector<7x8xf32>, vector<7x8xf32> -> vector<7x8xf32>
    %c0_85 = arith.constant 0 : index
    %c0_86 = arith.constant 0 : index
    %253 = vector.load %arg33[%c0_85, %c0_86] : memref<7x32xf32, #tpu.memory_space<vmem>>, vector<7x8xf32>
    tpu.vector_store %arg33[%c0_85, %c0_86], %252 {strides = array<i32>} : memref<7x32xf32, #tpu.memory_space<vmem>>, vector<7x8xf32>,
    %254 = vector.extract_strided_slice %112 {offsets = [0, 8], sizes = [7, 8], strides = [1, 1]} : vector<7x32xf32> to vector<7x8xf32>
    %255 = vector.extract_strided_slice %105 {offsets = [0, 8], sizes = [7, 8], strides = [1, 1]} : vector<7x32xf32> to vector<7x8xf32>
    %cst_87 = arith.constant dense<0.000000e+00> : vector<7x7xf32>
    %256 = tpu.matmul %254, %255, %cst_87 {dimension_numbers = #tpu.dot_dimension_numbers<[1], [1], [0], [0], [0, 0, 1, 0], [], []>} : vector<7x8xf32>, vector<7x8xf32>, vector<7x7xf32> -> vector<7x7xf32>
    %257 = vector.extract_strided_slice %116 {offsets = [0, 8], sizes = [7, 8], strides = [1, 1]} : vector<7x32xf32> to vector<7x8xf32>
    %258 = vector.extract_strided_slice %108 {offsets = [0, 8], sizes = [7, 8], strides = [1, 1]} : vector<7x32xf32> to vector<7x8xf32>
    %cst_88 = arith.constant dense<0.000000e+00> : vector<7x7xf32>
    %259 = tpu.matmul %257, %258, %cst_88 {dimension_numbers = #tpu.dot_dimension_numbers<[1], [1], [0], [0], [0, 0, 1, 0], [], []>} : vector<7x8xf32>, vector<7x8xf32>, vector<7x7xf32> -> vector<7x7xf32>
    %cst_89 = arith.constant 0.000000e+00 : f32
    %260 = vector.broadcast %cst_89 : f32 to vector<7x7xf32>
    %c-6_i32_90 = arith.constant -6 : i32
    %261 = vector.broadcast %c-6_i32_90 : i32 to vector<7x7xi32>
    %262 = arith.cmpi eq, %6, %261 : vector<7x7xi32>
    %263 = vector.extract_strided_slice %259 {offsets = [0, 0], sizes = [7, 1], strides = [1, 1]} : vector<7x7xf32> to vector<7x1xf32>
    %cst_91 = arith.constant 0.000000e+00 : f32
    %264 = vector.shape_cast %263 : vector<7x1xf32> to vector<7x1xf32>
    %265 = vector.broadcast %264 : vector<7x1xf32> to vector<7x7xf32>
    %266 = vector.broadcast %cst_91 : f32 to vector<7x7xf32>
    %267 = arith.select %262, %265, %266 : vector<7x7xi1>, vector<7x7xf32>
    %268 = arith.addf %260, %267 : vector<7x7xf32>
    %c-5_i32_92 = arith.constant -5 : i32
    %269 = vector.broadcast %c-5_i32_92 : i32 to vector<7x7xi32>
    %270 = arith.cmpi eq, %6, %269 : vector<7x7xi32>
    %271 = vector.extract_strided_slice %259 {offsets = [0, 1], sizes = [7, 1], strides = [1, 1]} : vector<7x7xf32> to vector<7x1xf32>
    %cst_93 = arith.constant 0.000000e+00 : f32
    %272 = vector.shape_cast %271 : vector<7x1xf32> to vector<7x1xf32>
    %273 = vector.broadcast %272 : vector<7x1xf32> to vector<7x7xf32>
    %274 = vector.broadcast %cst_93 : f32 to vector<7x7xf32>
    %275 = arith.select %270, %273, %274 : vector<7x7xi1>, vector<7x7xf32>
    %276 = arith.addf %268, %275 : vector<7x7xf32>
    %c-4_i32_94 = arith.constant -4 : i32
    %277 = vector.broadcast %c-4_i32_94 : i32 to vector<7x7xi32>
    %278 = arith.cmpi eq, %6, %277 : vector<7x7xi32>
    %279 = vector.extract_strided_slice %259 {offsets = [0, 2], sizes = [7, 1], strides = [1, 1]} : vector<7x7xf32> to vector<7x1xf32>
    %cst_95 = arith.constant 0.000000e+00 : f32
    %280 = vector.shape_cast %279 : vector<7x1xf32> to vector<7x1xf32>
    %281 = vector.broadcast %280 : vector<7x1xf32> to vector<7x7xf32>
    %282 = vector.broadcast %cst_95 : f32 to vector<7x7xf32>
    %283 = arith.select %278, %281, %282 : vector<7x7xi1>, vector<7x7xf32>
    %284 = arith.addf %276, %283 : vector<7x7xf32>
    %c-3_i32_96 = arith.constant -3 : i32
    %285 = vector.broadcast %c-3_i32_96 : i32 to vector<7x7xi32>
    %286 = arith.cmpi eq, %6, %285 : vector<7x7xi32>
    %287 = vector.extract_strided_slice %259 {offsets = [0, 3], sizes = [7, 1], strides = [1, 1]} : vector<7x7xf32> to vector<7x1xf32>
    %cst_97 = arith.constant 0.000000e+00 : f32
    %288 = vector.shape_cast %287 : vector<7x1xf32> to vector<7x1xf32>
    %289 = vector.broadcast %288 : vector<7x1xf32> to vector<7x7xf32>
    %290 = vector.broadcast %cst_97 : f32 to vector<7x7xf32>
    %291 = arith.select %286, %289, %290 : vector<7x7xi1>, vector<7x7xf32>
    %292 = arith.addf %284, %291 : vector<7x7xf32>
    %c-2_i32_98 = arith.constant -2 : i32
    %293 = vector.broadcast %c-2_i32_98 : i32 to vector<7x7xi32>
    %294 = arith.cmpi eq, %6, %293 : vector<7x7xi32>
    %295 = vector.extract_strided_slice %259 {offsets = [0, 4], sizes = [7, 1], strides = [1, 1]} : vector<7x7xf32> to vector<7x1xf32>
    %cst_99 = arith.constant 0.000000e+00 : f32
    %296 = vector.shape_cast %295 : vector<7x1xf32> to vector<7x1xf32>
    %297 = vector.broadcast %296 : vector<7x1xf32> to vector<7x7xf32>
    %298 = vector.broadcast %cst_99 : f32 to vector<7x7xf32>
    %299 = arith.select %294, %297, %298 : vector<7x7xi1>, vector<7x7xf32>
    %300 = arith.addf %292, %299 : vector<7x7xf32>
    %c-1_i32_100 = arith.constant -1 : i32
    %301 = vector.broadcast %c-1_i32_100 : i32 to vector<7x7xi32>
    %302 = arith.cmpi eq, %6, %301 : vector<7x7xi32>
    %303 = vector.extract_strided_slice %259 {offsets = [0, 5], sizes = [7, 1], strides = [1, 1]} : vector<7x7xf32> to vector<7x1xf32>
    %cst_101 = arith.constant 0.000000e+00 : f32
    %304 = vector.shape_cast %303 : vector<7x1xf32> to vector<7x1xf32>
    %305 = vector.broadcast %304 : vector<7x1xf32> to vector<7x7xf32>
    %306 = vector.broadcast %cst_101 : f32 to vector<7x7xf32>
    %307 = arith.select %302, %305, %306 : vector<7x7xi1>, vector<7x7xf32>
    %308 = arith.addf %300, %307 : vector<7x7xf32>
    %c0_i32_102 = arith.constant 0 : i32
    %309 = vector.broadcast %c0_i32_102 : i32 to vector<7x7xi32>
    %310 = arith.cmpi eq, %6, %309 : vector<7x7xi32>
    %311 = vector.extract_strided_slice %259 {offsets = [0, 6], sizes = [7, 1], strides = [1, 1]} : vector<7x7xf32> to vector<7x1xf32>
    %cst_103 = arith.constant 0.000000e+00 : f32
    %312 = vector.shape_cast %311 : vector<7x1xf32> to vector<7x1xf32>
    %313 = vector.broadcast %312 : vector<7x1xf32> to vector<7x7xf32>
    %314 = vector.broadcast %cst_103 : f32 to vector<7x7xf32>
    %315 = arith.select %310, %313, %314 : vector<7x7xi1>, vector<7x7xf32>
    %316 = arith.addf %308, %315 : vector<7x7xf32>
    %317 = vector.extract_strided_slice %259 {offsets = [1, 0], sizes = [6, 1], strides = [1, 1]} : vector<7x7xf32> to vector<6x1xf32>
    %cst_104 = arith.constant 0.000000e+00 : f32
    %318 = vector.broadcast %cst_104 : f32 to vector<1x1xf32>
    %319 = tpu.concatenate %317, %318 in 0 : vector<6x1xf32>, vector<1x1xf32> -> vector<7x1xf32>
    %c2_i32_105 = arith.constant 2 : i32
    %320 = vector.broadcast %c2_i32_105 : i32 to vector<7x7xi32>
    %321 = arith.cmpi eq, %6, %320 : vector<7x7xi32>
    %cst_106 = arith.constant 0.000000e+00 : f32
    %322 = vector.shape_cast %319 : vector<7x1xf32> to vector<7x1xf32>
    %323 = vector.broadcast %322 : vector<7x1xf32> to vector<7x7xf32>
    %324 = vector.broadcast %cst_106 : f32 to vector<7x7xf32>
    %325 = arith.select %321, %323, %324 : vector<7x7xi1>, vector<7x7xf32>
    %326 = arith.addf %316, %325 : vector<7x7xf32>
    %327 = vector.extract_strided_slice %259 {offsets = [1, 1], sizes = [6, 1], strides = [1, 1]} : vector<7x7xf32> to vector<6x1xf32>
    %cst_107 = arith.constant 0.000000e+00 : f32
    %328 = vector.broadcast %cst_107 : f32 to vector<1x1xf32>
    %329 = tpu.concatenate %327, %328 in 0 : vector<6x1xf32>, vector<1x1xf32> -> vector<7x1xf32>
    %c3_i32_108 = arith.constant 3 : i32
    %330 = vector.broadcast %c3_i32_108 : i32 to vector<7x7xi32>
    %331 = arith.cmpi eq, %6, %330 : vector<7x7xi32>
    %cst_109 = arith.constant 0.000000e+00 : f32
    %332 = vector.shape_cast %329 : vector<7x1xf32> to vector<7x1xf32>
    %333 = vector.broadcast %332 : vector<7x1xf32> to vector<7x7xf32>
    %334 = vector.broadcast %cst_109 : f32 to vector<7x7xf32>
    %335 = arith.select %331, %333, %334 : vector<7x7xi1>, vector<7x7xf32>
    %336 = arith.addf %326, %335 : vector<7x7xf32>
    %337 = vector.extract_strided_slice %259 {offsets = [1, 2], sizes = [6, 1], strides = [1, 1]} : vector<7x7xf32> to vector<6x1xf32>
    %cst_110 = arith.constant 0.000000e+00 : f32
    %338 = vector.broadcast %cst_110 : f32 to vector<1x1xf32>
    %339 = tpu.concatenate %337, %338 in 0 : vector<6x1xf32>, vector<1x1xf32> -> vector<7x1xf32>
    %c4_i32_111 = arith.constant 4 : i32
    %340 = vector.broadcast %c4_i32_111 : i32 to vector<7x7xi32>
    %341 = arith.cmpi eq, %6, %340 : vector<7x7xi32>
    %cst_112 = arith.constant 0.000000e+00 : f32
    %342 = vector.shape_cast %339 : vector<7x1xf32> to vector<7x1xf32>
    %343 = vector.broadcast %342 : vector<7x1xf32> to vector<7x7xf32>
    %344 = vector.broadcast %cst_112 : f32 to vector<7x7xf32>
    %345 = arith.select %341, %343, %344 : vector<7x7xi1>, vector<7x7xf32>
    %346 = arith.addf %336, %345 : vector<7x7xf32>
    %347 = vector.extract_strided_slice %259 {offsets = [1, 3], sizes = [6, 1], strides = [1, 1]} : vector<7x7xf32> to vector<6x1xf32>
    %cst_113 = arith.constant 0.000000e+00 : f32
    %348 = vector.broadcast %cst_113 : f32 to vector<1x1xf32>
    %349 = tpu.concatenate %347, %348 in 0 : vector<6x1xf32>, vector<1x1xf32> -> vector<7x1xf32>
    %c5_i32_114 = arith.constant 5 : i32
    %350 = vector.broadcast %c5_i32_114 : i32 to vector<7x7xi32>
    %351 = arith.cmpi eq, %6, %350 : vector<7x7xi32>
    %cst_115 = arith.constant 0.000000e+00 : f32
    %352 = vector.shape_cast %349 : vector<7x1xf32> to vector<7x1xf32>
    %353 = vector.broadcast %352 : vector<7x1xf32> to vector<7x7xf32>
    %354 = vector.broadcast %cst_115 : f32 to vector<7x7xf32>
    %355 = arith.select %351, %353, %354 : vector<7x7xi1>, vector<7x7xf32>
    %356 = arith.addf %346, %355 : vector<7x7xf32>
    %357 = vector.extract_strided_slice %259 {offsets = [1, 4], sizes = [6, 1], strides = [1, 1]} : vector<7x7xf32> to vector<6x1xf32>
    %cst_116 = arith.constant 0.000000e+00 : f32
    %358 = vector.broadcast %cst_116 : f32 to vector<1x1xf32>
    %359 = tpu.concatenate %357, %358 in 0 : vector<6x1xf32>, vector<1x1xf32> -> vector<7x1xf32>
    %c6_i32_117 = arith.constant 6 : i32
    %360 = vector.broadcast %c6_i32_117 : i32 to vector<7x7xi32>
    %361 = arith.cmpi eq, %6, %360 : vector<7x7xi32>
    %cst_118 = arith.constant 0.000000e+00 : f32
    %362 = vector.shape_cast %359 : vector<7x1xf32> to vector<7x1xf32>
    %363 = vector.broadcast %362 : vector<7x1xf32> to vector<7x7xf32>
    %364 = vector.broadcast %cst_118 : f32 to vector<7x7xf32>
    %365 = arith.select %361, %363, %364 : vector<7x7xi1>, vector<7x7xf32>
    %366 = arith.addf %356, %365 : vector<7x7xf32>
    %367 = arith.addf %256, %366 : vector<7x7xf32>
    %cst_119 = arith.constant 0.353553385 : f32
    %368 = vector.broadcast %cst_119 : f32 to vector<7x7xf32>
    %369 = arith.mulf %367, %368 : vector<7x7xf32>
    %cst_120 = arith.constant -3.40282347E+38 : f32
    %370 = vector.shape_cast %3 : vector<1x7xi1> to vector<1x7xi1>
    %371 = vector.broadcast %370 : vector<1x7xi1> to vector<7x7xi1>
    %372 = vector.broadcast %cst_120 : f32 to vector<7x7xf32>
    %373 = arith.select %371, %369, %372 : vector<7x7xi1>, vector<7x7xf32>
    %cst_121 = arith.constant dense<0xFF800000> : vector<7xf32>
    %374 = vector.multi_reduction <maximumf>, %373, %cst_121 [1] : vector<7x7xf32> to vector<7xf32>
    %375 = vector.shape_cast %374 : vector<7xf32> to vector<7x1xf32>
    %376 = vector.broadcast %375 : vector<7x1xf32> to vector<7x7xf32>
    %377 = arith.subf %373, %376 : vector<7x7xf32>
    %378 = math.exp %377 : vector<7x7xf32>
    %cst_122 = arith.constant dense<0.000000e+00> : vector<7xf32>
    %379 = vector.multi_reduction <add>, %378, %cst_122 [1] : vector<7x7xf32> to vector<7xf32>
    %380 = vector.shape_cast %379 : vector<7xf32> to vector<7x1xf32>
    %381 = tpu.reciprocal %380 {approx = true} : vector<7x1xf32> -> vector<7x1xf32>
    %382 = vector.broadcast %381 : vector<7x1xf32> to vector<7x7xf32>
    %383 = arith.mulf %378, %382 : vector<7x7xf32>
    %cst_123 = arith.constant 0.000000e+00 : f32
    %384 = vector.shape_cast %3 : vector<1x7xi1> to vector<1x7xi1>
    %385 = vector.broadcast %384 : vector<1x7xi1> to vector<7x7xi1>
    %386 = vector.broadcast %cst_123 : f32 to vector<7x7xf32>
    %387 = arith.select %385, %383, %386 : vector<7x7xi1>, vector<7x7xf32>
    %388 = vector.extract_strided_slice %106 {offsets = [0, 8], sizes = [7, 8], strides = [1, 1]} : vector<7x32xf32> to vector<7x8xf32>
    %cst_124 = arith.constant dense<0.000000e+00> : vector<7x8xf32>
    %389 = tpu.matmul %387, %388, %cst_124 {dimension_numbers = #tpu.dot_dimension_numbers<[1], [0], [0], [1], [0, 0, 1, 1], [], []>} : vector<7x7xf32>, vector<7x8xf32>, vector<7x8xf32> -> vector<7x8xf32>
    %c0_125 = arith.constant 0 : index
    %c8 = arith.constant 8 : index
    %390 = vector.load %arg33[%c0_125, %c8] : memref<7x32xf32, #tpu.memory_space<vmem>>, vector<7x8xf32>
    tpu.vector_store %arg33[%c0_125, %c8], %389 {strides = array<i32>} : memref<7x32xf32, #tpu.memory_space<vmem>>, vector<7x8xf32>,
    %391 = vector.extract_strided_slice %112 {offsets = [0, 16], sizes = [7, 8], strides = [1, 1]} : vector<7x32xf32> to vector<7x8xf32>
    %392 = vector.extract_strided_slice %105 {offsets = [0, 16], sizes = [7, 8], strides = [1, 1]} : vector<7x32xf32> to vector<7x8xf32>
    %cst_126 = arith.constant dense<0.000000e+00> : vector<7x7xf32>
    %393 = tpu.matmul %391, %392, %cst_126 {dimension_numbers = #tpu.dot_dimension_numbers<[1], [1], [0], [0], [0, 0, 1, 0], [], []>} : vector<7x8xf32>, vector<7x8xf32>, vector<7x7xf32> -> vector<7x7xf32>
    %394 = vector.extract_strided_slice %116 {offsets = [0, 16], sizes = [7, 8], strides = [1, 1]} : vector<7x32xf32> to vector<7x8xf32>
    %395 = vector.extract_strided_slice %108 {offsets = [0, 16], sizes = [7, 8], strides = [1, 1]} : vector<7x32xf32> to vector<7x8xf32>
    %cst_127 = arith.constant dense<0.000000e+00> : vector<7x7xf32>
    %396 = tpu.matmul %394, %395, %cst_127 {dimension_numbers = #tpu.dot_dimension_numbers<[1], [1], [0], [0], [0, 0, 1, 0], [], []>} : vector<7x8xf32>, vector<7x8xf32>, vector<7x7xf32> -> vector<7x7xf32>
    %cst_128 = arith.constant 0.000000e+00 : f32
    %397 = vector.broadcast %cst_128 : f32 to vector<7x7xf32>
    %c-6_i32_129 = arith.constant -6 : i32
    %398 = vector.broadcast %c-6_i32_129 : i32 to vector<7x7xi32>
    %399 = arith.cmpi eq, %6, %398 : vector<7x7xi32>
    %400 = vector.extract_strided_slice %396 {offsets = [0, 0], sizes = [7, 1], strides = [1, 1]} : vector<7x7xf32> to vector<7x1xf32>
    %cst_130 = arith.constant 0.000000e+00 : f32
    %401 = vector.shape_cast %400 : vector<7x1xf32> to vector<7x1xf32>
    %402 = vector.broadcast %401 : vector<7x1xf32> to vector<7x7xf32>
    %403 = vector.broadcast %cst_130 : f32 to vector<7x7xf32>
    %404 = arith.select %399, %402, %403 : vector<7x7xi1>, vector<7x7xf32>
    %405 = arith.addf %397, %404 : vector<7x7xf32>
    %c-5_i32_131 = arith.constant -5 : i32
    %406 = vector.broadcast %c-5_i32_131 : i32 to vector<7x7xi32>
    %407 = arith.cmpi eq, %6, %406 : vector<7x7xi32>
    %408 = vector.extract_strided_slice %396 {offsets = [0, 1], sizes = [7, 1], strides = [1, 1]} : vector<7x7xf32> to vector<7x1xf32>
    %cst_132 = arith.constant 0.000000e+00 : f32
    %409 = vector.shape_cast %408 : vector<7x1xf32> to vector<7x1xf32>
    %410 = vector.broadcast %409 : vector<7x1xf32> to vector<7x7xf32>
    %411 = vector.broadcast %cst_132 : f32 to vector<7x7xf32>
    %412 = arith.select %407, %410, %411 : vector<7x7xi1>, vector<7x7xf32>
    %413 = arith.addf %405, %412 : vector<7x7xf32>
    %c-4_i32_133 = arith.constant -4 : i32
    %414 = vector.broadcast %c-4_i32_133 : i32 to vector<7x7xi32>
    %415 = arith.cmpi eq, %6, %414 : vector<7x7xi32>
    %416 = vector.extract_strided_slice %396 {offsets = [0, 2], sizes = [7, 1], strides = [1, 1]} : vector<7x7xf32> to vector<7x1xf32>
    %cst_134 = arith.constant 0.000000e+00 : f32
    %417 = vector.shape_cast %416 : vector<7x1xf32> to vector<7x1xf32>
    %418 = vector.broadcast %417 : vector<7x1xf32> to vector<7x7xf32>
    %419 = vector.broadcast %cst_134 : f32 to vector<7x7xf32>
    %420 = arith.select %415, %418, %419 : vector<7x7xi1>, vector<7x7xf32>
    %421 = arith.addf %413, %420 : vector<7x7xf32>
    %c-3_i32_135 = arith.constant -3 : i32
    %422 = vector.broadcast %c-3_i32_135 : i32 to vector<7x7xi32>
    %423 = arith.cmpi eq, %6, %422 : vector<7x7xi32>
    %424 = vector.extract_strided_slice %396 {offsets = [0, 3], sizes = [7, 1], strides = [1, 1]} : vector<7x7xf32> to vector<7x1xf32>
    %cst_136 = arith.constant 0.000000e+00 : f32
    %425 = vector.shape_cast %424 : vector<7x1xf32> to vector<7x1xf32>
    %426 = vector.broadcast %425 : vector<7x1xf32> to vector<7x7xf32>
    %427 = vector.broadcast %cst_136 : f32 to vector<7x7xf32>
    %428 = arith.select %423, %426, %427 : vector<7x7xi1>, vector<7x7xf32>
    %429 = arith.addf %421, %428 : vector<7x7xf32>
    %c-2_i32_137 = arith.constant -2 : i32
    %430 = vector.broadcast %c-2_i32_137 : i32 to vector<7x7xi32>
    %431 = arith.cmpi eq, %6, %430 : vector<7x7xi32>
    %432 = vector.extract_strided_slice %396 {offsets = [0, 4], sizes = [7, 1], strides = [1, 1]} : vector<7x7xf32> to vector<7x1xf32>
    %cst_138 = arith.constant 0.000000e+00 : f32
    %433 = vector.shape_cast %432 : vector<7x1xf32> to vector<7x1xf32>
    %434 = vector.broadcast %433 : vector<7x1xf32> to vector<7x7xf32>
    %435 = vector.broadcast %cst_138 : f32 to vector<7x7xf32>
    %436 = arith.select %431, %434, %435 : vector<7x7xi1>, vector<7x7xf32>
    %437 = arith.addf %429, %436 : vector<7x7xf32>
    %c-1_i32_139 = arith.constant -1 : i32
    %438 = vector.broadcast %c-1_i32_139 : i32 to vector<7x7xi32>
    %439 = arith.cmpi eq, %6, %438 : vector<7x7xi32>
    %440 = vector.extract_strided_slice %396 {offsets = [0, 5], sizes = [7, 1], strides = [1, 1]} : vector<7x7xf32> to vector<7x1xf32>
    %cst_140 = arith.constant 0.000000e+00 : f32
    %441 = vector.shape_cast %440 : vector<7x1xf32> to vector<7x1xf32>
    %442 = vector.broadcast %441 : vector<7x1xf32> to vector<7x7xf32>
    %443 = vector.broadcast %cst_140 : f32 to vector<7x7xf32>
    %444 = arith.select %439, %442, %443 : vector<7x7xi1>, vector<7x7xf32>
    %445 = arith.addf %437, %444 : vector<7x7xf32>
    %c0_i32_141 = arith.constant 0 : i32
    %446 = vector.broadcast %c0_i32_141 : i32 to vector<7x7xi32>
    %447 = arith.cmpi eq, %6, %446 : vector<7x7xi32>
    %448 = vector.extract_strided_slice %396 {offsets = [0, 6], sizes = [7, 1], strides = [1, 1]} : vector<7x7xf32> to vector<7x1xf32>
    %cst_142 = arith.constant 0.000000e+00 : f32
    %449 = vector.shape_cast %448 : vector<7x1xf32> to vector<7x1xf32>
    %450 = vector.broadcast %449 : vector<7x1xf32> to vector<7x7xf32>
    %451 = vector.broadcast %cst_142 : f32 to vector<7x7xf32>
    %452 = arith.select %447, %450, %451 : vector<7x7xi1>, vector<7x7xf32>
    %453 = arith.addf %445, %452 : vector<7x7xf32>
    %454 = vector.extract_strided_slice %396 {offsets = [1, 0], sizes = [6, 1], strides = [1, 1]} : vector<7x7xf32> to vector<6x1xf32>
    %cst_143 = arith.constant 0.000000e+00 : f32
    %455 = vector.broadcast %cst_143 : f32 to vector<1x1xf32>
    %456 = tpu.concatenate %454, %455 in 0 : vector<6x1xf32>, vector<1x1xf32> -> vector<7x1xf32>
    %c2_i32_144 = arith.constant 2 : i32
    %457 = vector.broadcast %c2_i32_144 : i32 to vector<7x7xi32>
    %458 = arith.cmpi eq, %6, %457 : vector<7x7xi32>
    %cst_145 = arith.constant 0.000000e+00 : f32
    %459 = vector.shape_cast %456 : vector<7x1xf32> to vector<7x1xf32>
    %460 = vector.broadcast %459 : vector<7x1xf32> to vector<7x7xf32>
    %461 = vector.broadcast %cst_145 : f32 to vector<7x7xf32>
    %462 = arith.select %458, %460, %461 : vector<7x7xi1>, vector<7x7xf32>
    %463 = arith.addf %453, %462 : vector<7x7xf32>
    %464 = vector.extract_strided_slice %396 {offsets = [1, 1], sizes = [6, 1], strides = [1, 1]} : vector<7x7xf32> to vector<6x1xf32>
    %cst_146 = arith.constant 0.000000e+00 : f32
    %465 = vector.broadcast %cst_146 : f32 to vector<1x1xf32>
    %466 = tpu.concatenate %464, %465 in 0 : vector<6x1xf32>, vector<1x1xf32> -> vector<7x1xf32>
    %c3_i32_147 = arith.constant 3 : i32
    %467 = vector.broadcast %c3_i32_147 : i32 to vector<7x7xi32>
    %468 = arith.cmpi eq, %6, %467 : vector<7x7xi32>
    %cst_148 = arith.constant 0.000000e+00 : f32
    %469 = vector.shape_cast %466 : vector<7x1xf32> to vector<7x1xf32>
    %470 = vector.broadcast %469 : vector<7x1xf32> to vector<7x7xf32>
    %471 = vector.broadcast %cst_148 : f32 to vector<7x7xf32>
    %472 = arith.select %468, %470, %471 : vector<7x7xi1>, vector<7x7xf32>
    %473 = arith.addf %463, %472 : vector<7x7xf32>
    %474 = vector.extract_strided_slice %396 {offsets = [1, 2], sizes = [6, 1], strides = [1, 1]} : vector<7x7xf32> to vector<6x1xf32>
    %cst_149 = arith.constant 0.000000e+00 : f32
    %475 = vector.broadcast %cst_149 : f32 to vector<1x1xf32>
    %476 = tpu.concatenate %474, %475 in 0 : vector<6x1xf32>, vector<1x1xf32> -> vector<7x1xf32>
    %c4_i32_150 = arith.constant 4 : i32
    %477 = vector.broadcast %c4_i32_150 : i32 to vector<7x7xi32>
    %478 = arith.cmpi eq, %6, %477 : vector<7x7xi32>
    %cst_151 = arith.constant 0.000000e+00 : f32
    %479 = vector.shape_cast %476 : vector<7x1xf32> to vector<7x1xf32>
    %480 = vector.broadcast %479 : vector<7x1xf32> to vector<7x7xf32>
    %481 = vector.broadcast %cst_151 : f32 to vector<7x7xf32>
    %482 = arith.select %478, %480, %481 : vector<7x7xi1>, vector<7x7xf32>
    %483 = arith.addf %473, %482 : vector<7x7xf32>
    %484 = vector.extract_strided_slice %396 {offsets = [1, 3], sizes = [6, 1], strides = [1, 1]} : vector<7x7xf32> to vector<6x1xf32>
    %cst_152 = arith.constant 0.000000e+00 : f32
    %485 = vector.broadcast %cst_152 : f32 to vector<1x1xf32>
    %486 = tpu.concatenate %484, %485 in 0 : vector<6x1xf32>, vector<1x1xf32> -> vector<7x1xf32>
    %c5_i32_153 = arith.constant 5 : i32
    %487 = vector.broadcast %c5_i32_153 : i32 to vector<7x7xi32>
    %488 = arith.cmpi eq, %6, %487 : vector<7x7xi32>
    %cst_154 = arith.constant 0.000000e+00 : f32
    %489 = vector.shape_cast %486 : vector<7x1xf32> to vector<7x1xf32>
    %490 = vector.broadcast %489 : vector<7x1xf32> to vector<7x7xf32>
    %491 = vector.broadcast %cst_154 : f32 to vector<7x7xf32>
    %492 = arith.select %488, %490, %491 : vector<7x7xi1>, vector<7x7xf32>
    %493 = arith.addf %483, %492 : vector<7x7xf32>
    %494 = vector.extract_strided_slice %396 {offsets = [1, 4], sizes = [6, 1], strides = [1, 1]} : vector<7x7xf32> to vector<6x1xf32>
    %cst_155 = arith.constant 0.000000e+00 : f32
    %495 = vector.broadcast %cst_155 : f32 to vector<1x1xf32>
    %496 = tpu.concatenate %494, %495 in 0 : vector<6x1xf32>, vector<1x1xf32> -> vector<7x1xf32>
    %c6_i32_156 = arith.constant 6 : i32
    %497 = vector.broadcast %c6_i32_156 : i32 to vector<7x7xi32>
    %498 = arith.cmpi eq, %6, %497 : vector<7x7xi32>
    %cst_157 = arith.constant 0.000000e+00 : f32
    %499 = vector.shape_cast %496 : vector<7x1xf32> to vector<7x1xf32>
    %500 = vector.broadcast %499 : vector<7x1xf32> to vector<7x7xf32>
    %501 = vector.broadcast %cst_157 : f32 to vector<7x7xf32>
    %502 = arith.select %498, %500, %501 : vector<7x7xi1>, vector<7x7xf32>
    %503 = arith.addf %493, %502 : vector<7x7xf32>
    %504 = arith.addf %393, %503 : vector<7x7xf32>
    %cst_158 = arith.constant 0.353553385 : f32
    %505 = vector.broadcast %cst_158 : f32 to vector<7x7xf32>
    %506 = arith.mulf %504, %505 : vector<7x7xf32>
    %cst_159 = arith.constant -3.40282347E+38 : f32
    %507 = vector.shape_cast %3 : vector<1x7xi1> to vector<1x7xi1>
    %508 = vector.broadcast %507 : vector<1x7xi1> to vector<7x7xi1>
    %509 = vector.broadcast %cst_159 : f32 to vector<7x7xf32>
    %510 = arith.select %508, %506, %509 : vector<7x7xi1>, vector<7x7xf32>
    %cst_160 = arith.constant dense<0xFF800000> : vector<7xf32>
    %511 = vector.multi_reduction <maximumf>, %510, %cst_160 [1] : vector<7x7xf32> to vector<7xf32>
    %512 = vector.shape_cast %511 : vector<7xf32> to vector<7x1xf32>
    %513 = vector.broadcast %512 : vector<7x1xf32> to vector<7x7xf32>
    %514 = arith.subf %510, %513 : vector<7x7xf32>
    %515 = math.exp %514 : vector<7x7xf32>
    %cst_161 = arith.constant dense<0.000000e+00> : vector<7xf32>
    %516 = vector.multi_reduction <add>, %515, %cst_161 [1] : vector<7x7xf32> to vector<7xf32>
    %517 = vector.shape_cast %516 : vector<7xf32> to vector<7x1xf32>
    %518 = tpu.reciprocal %517 {approx = true} : vector<7x1xf32> -> vector<7x1xf32>
    %519 = vector.broadcast %518 : vector<7x1xf32> to vector<7x7xf32>
    %520 = arith.mulf %515, %519 : vector<7x7xf32>
    %cst_162 = arith.constant 0.000000e+00 : f32
    %521 = vector.shape_cast %3 : vector<1x7xi1> to vector<1x7xi1>
    %522 = vector.broadcast %521 : vector<1x7xi1> to vector<7x7xi1>
    %523 = vector.broadcast %cst_162 : f32 to vector<7x7xf32>
    %524 = arith.select %522, %520, %523 : vector<7x7xi1>, vector<7x7xf32>
    %525 = vector.extract_strided_slice %106 {offsets = [0, 16], sizes = [7, 8], strides = [1, 1]} : vector<7x32xf32> to vector<7x8xf32>
    %cst_163 = arith.constant dense<0.000000e+00> : vector<7x8xf32>
    %526 = tpu.matmul %524, %525, %cst_163 {dimension_numbers = #tpu.dot_dimension_numbers<[1], [0], [0], [1], [0, 0, 1, 1], [], []>} : vector<7x7xf32>, vector<7x8xf32>, vector<7x8xf32> -> vector<7x8xf32>
    %c0_164 = arith.constant 0 : index
    %c16 = arith.constant 16 : index
    %527 = vector.load %arg33[%c0_164, %c16] : memref<7x32xf32, #tpu.memory_space<vmem>>, vector<7x8xf32>
    tpu.vector_store %arg33[%c0_164, %c16], %526 {strides = array<i32>} : memref<7x32xf32, #tpu.memory_space<vmem>>, vector<7x8xf32>,
    %528 = vector.extract_strided_slice %112 {offsets = [0, 24], sizes = [7, 8], strides = [1, 1]} : vector<7x32xf32> to vector<7x8xf32>
    %529 = vector.extract_strided_slice %105 {offsets = [0, 24], sizes = [7, 8], strides = [1, 1]} : vector<7x32xf32> to vector<7x8xf32>
    %cst_165 = arith.constant dense<0.000000e+00> : vector<7x7xf32>
    %530 = tpu.matmul %528, %529, %cst_165 {dimension_numbers = #tpu.dot_dimension_numbers<[1], [1], [0], [0], [0, 0, 1, 0], [], []>} : vector<7x8xf32>, vector<7x8xf32>, vector<7x7xf32> -> vector<7x7xf32>
    %531 = vector.extract_strided_slice %116 {offsets = [0, 24], sizes = [7, 8], strides = [1, 1]} : vector<7x32xf32> to vector<7x8xf32>
    %532 = vector.extract_strided_slice %108 {offsets = [0, 24], sizes = [7, 8], strides = [1, 1]} : vector<7x32xf32> to vector<7x8xf32>
    %cst_166 = arith.constant dense<0.000000e+00> : vector<7x7xf32>
    %533 = tpu.matmul %531, %532, %cst_166 {dimension_numbers = #tpu.dot_dimension_numbers<[1], [1], [0], [0], [0, 0, 1, 0], [], []>} : vector<7x8xf32>, vector<7x8xf32>, vector<7x7xf32> -> vector<7x7xf32>
    %cst_167 = arith.constant 0.000000e+00 : f32
    %534 = vector.broadcast %cst_167 : f32 to vector<7x7xf32>
    %c-6_i32_168 = arith.constant -6 : i32
    %535 = vector.broadcast %c-6_i32_168 : i32 to vector<7x7xi32>
    %536 = arith.cmpi eq, %6, %535 : vector<7x7xi32>
    %537 = vector.extract_strided_slice %533 {offsets = [0, 0], sizes = [7, 1], strides = [1, 1]} : vector<7x7xf32> to vector<7x1xf32>
    %cst_169 = arith.constant 0.000000e+00 : f32
    %538 = vector.shape_cast %537 : vector<7x1xf32> to vector<7x1xf32>
    %539 = vector.broadcast %538 : vector<7x1xf32> to vector<7x7xf32>
    %540 = vector.broadcast %cst_169 : f32 to vector<7x7xf32>
    %541 = arith.select %536, %539, %540 : vector<7x7xi1>, vector<7x7xf32>
    %542 = arith.addf %534, %541 : vector<7x7xf32>
    %c-5_i32_170 = arith.constant -5 : i32
    %543 = vector.broadcast %c-5_i32_170 : i32 to vector<7x7xi32>
    %544 = arith.cmpi eq, %6, %543 : vector<7x7xi32>
    %545 = vector.extract_strided_slice %533 {offsets = [0, 1], sizes = [7, 1], strides = [1, 1]} : vector<7x7xf32> to vector<7x1xf32>
    %cst_171 = arith.constant 0.000000e+00 : f32
    %546 = vector.shape_cast %545 : vector<7x1xf32> to vector<7x1xf32>
    %547 = vector.broadcast %546 : vector<7x1xf32> to vector<7x7xf32>
    %548 = vector.broadcast %cst_171 : f32 to vector<7x7xf32>
    %549 = arith.select %544, %547, %548 : vector<7x7xi1>, vector<7x7xf32>
    %550 = arith.addf %542, %549 : vector<7x7xf32>
    %c-4_i32_172 = arith.constant -4 : i32
    %551 = vector.broadcast %c-4_i32_172 : i32 to vector<7x7xi32>
    %552 = arith.cmpi eq, %6, %551 : vector<7x7xi32>
    %553 = vector.extract_strided_slice %533 {offsets = [0, 2], sizes = [7, 1], strides = [1, 1]} : vector<7x7xf32> to vector<7x1xf32>
    %cst_173 = arith.constant 0.000000e+00 : f32
    %554 = vector.shape_cast %553 : vector<7x1xf32> to vector<7x1xf32>
    %555 = vector.broadcast %554 : vector<7x1xf32> to vector<7x7xf32>
    %556 = vector.broadcast %cst_173 : f32 to vector<7x7xf32>
    %557 = arith.select %552, %555, %556 : vector<7x7xi1>, vector<7x7xf32>
    %558 = arith.addf %550, %557 : vector<7x7xf32>
    %c-3_i32_174 = arith.constant -3 : i32
    %559 = vector.broadcast %c-3_i32_174 : i32 to vector<7x7xi32>
    %560 = arith.cmpi eq, %6, %559 : vector<7x7xi32>
    %561 = vector.extract_strided_slice %533 {offsets = [0, 3], sizes = [7, 1], strides = [1, 1]} : vector<7x7xf32> to vector<7x1xf32>
    %cst_175 = arith.constant 0.000000e+00 : f32
    %562 = vector.shape_cast %561 : vector<7x1xf32> to vector<7x1xf32>
    %563 = vector.broadcast %562 : vector<7x1xf32> to vector<7x7xf32>
    %564 = vector.broadcast %cst_175 : f32 to vector<7x7xf32>
    %565 = arith.select %560, %563, %564 : vector<7x7xi1>, vector<7x7xf32>
    %566 = arith.addf %558, %565 : vector<7x7xf32>
    %c-2_i32_176 = arith.constant -2 : i32
    %567 = vector.broadcast %c-2_i32_176 : i32 to vector<7x7xi32>
    %568 = arith.cmpi eq, %6, %567 : vector<7x7xi32>
    %569 = vector.extract_strided_slice %533 {offsets = [0, 4], sizes = [7, 1], strides = [1, 1]} : vector<7x7xf32> to vector<7x1xf32>
    %cst_177 = arith.constant 0.000000e+00 : f32
    %570 = vector.shape_cast %569 : vector<7x1xf32> to vector<7x1xf32>
    %571 = vector.broadcast %570 : vector<7x1xf32> to vector<7x7xf32>
    %572 = vector.broadcast %cst_177 : f32 to vector<7x7xf32>
    %573 = arith.select %568, %571, %572 : vector<7x7xi1>, vector<7x7xf32>
    %574 = arith.addf %566, %573 : vector<7x7xf32>
    %c-1_i32_178 = arith.constant -1 : i32
    %575 = vector.broadcast %c-1_i32_178 : i32 to vector<7x7xi32>
    %576 = arith.cmpi eq, %6, %575 : vector<7x7xi32>
    %577 = vector.extract_strided_slice %533 {offsets = [0, 5], sizes = [7, 1], strides = [1, 1]} : vector<7x7xf32> to vector<7x1xf32>
    %cst_179 = arith.constant 0.000000e+00 : f32
    %578 = vector.shape_cast %577 : vector<7x1xf32> to vector<7x1xf32>
    %579 = vector.broadcast %578 : vector<7x1xf32> to vector<7x7xf32>
    %580 = vector.broadcast %cst_179 : f32 to vector<7x7xf32>
    %581 = arith.select %576, %579, %580 : vector<7x7xi1>, vector<7x7xf32>
    %582 = arith.addf %574, %581 : vector<7x7xf32>
    %c0_i32_180 = arith.constant 0 : i32
    %583 = vector.broadcast %c0_i32_180 : i32 to vector<7x7xi32>
    %584 = arith.cmpi eq, %6, %583 : vector<7x7xi32>
    %585 = vector.extract_strided_slice %533 {offsets = [0, 6], sizes = [7, 1], strides = [1, 1]} : vector<7x7xf32> to vector<7x1xf32>
    %cst_181 = arith.constant 0.000000e+00 : f32
    %586 = vector.shape_cast %585 : vector<7x1xf32> to vector<7x1xf32>
    %587 = vector.broadcast %586 : vector<7x1xf32> to vector<7x7xf32>
    %588 = vector.broadcast %cst_181 : f32 to vector<7x7xf32>
    %589 = arith.select %584, %587, %588 : vector<7x7xi1>, vector<7x7xf32>
    %590 = arith.addf %582, %589 : vector<7x7xf32>
    %591 = vector.extract_strided_slice %533 {offsets = [1, 0], sizes = [6, 1], strides = [1, 1]} : vector<7x7xf32> to vector<6x1xf32>
    %cst_182 = arith.constant 0.000000e+00 : f32
    %592 = vector.broadcast %cst_182 : f32 to vector<1x1xf32>
    %593 = tpu.concatenate %591, %592 in 0 : vector<6x1xf32>, vector<1x1xf32> -> vector<7x1xf32>
    %c2_i32_183 = arith.constant 2 : i32
    %594 = vector.broadcast %c2_i32_183 : i32 to vector<7x7xi32>
    %595 = arith.cmpi eq, %6, %594 : vector<7x7xi32>
    %cst_184 = arith.constant 0.000000e+00 : f32
    %596 = vector.shape_cast %593 : vector<7x1xf32> to vector<7x1xf32>
    %597 = vector.broadcast %596 : vector<7x1xf32> to vector<7x7xf32>
    %598 = vector.broadcast %cst_184 : f32 to vector<7x7xf32>
    %599 = arith.select %595, %597, %598 : vector<7x7xi1>, vector<7x7xf32>
    %600 = arith.addf %590, %599 : vector<7x7xf32>
    %601 = vector.extract_strided_slice %533 {offsets = [1, 1], sizes = [6, 1], strides = [1, 1]} : vector<7x7xf32> to vector<6x1xf32>
    %cst_185 = arith.constant 0.000000e+00 : f32
    %602 = vector.broadcast %cst_185 : f32 to vector<1x1xf32>
    %603 = tpu.concatenate %601, %602 in 0 : vector<6x1xf32>, vector<1x1xf32> -> vector<7x1xf32>
    %c3_i32_186 = arith.constant 3 : i32
    %604 = vector.broadcast %c3_i32_186 : i32 to vector<7x7xi32>
    %605 = arith.cmpi eq, %6, %604 : vector<7x7xi32>
    %cst_187 = arith.constant 0.000000e+00 : f32
    %606 = vector.shape_cast %603 : vector<7x1xf32> to vector<7x1xf32>
    %607 = vector.broadcast %606 : vector<7x1xf32> to vector<7x7xf32>
    %608 = vector.broadcast %cst_187 : f32 to vector<7x7xf32>
    %609 = arith.select %605, %607, %608 : vector<7x7xi1>, vector<7x7xf32>
    %610 = arith.addf %600, %609 : vector<7x7xf32>
    %611 = vector.extract_strided_slice %533 {offsets = [1, 2], sizes = [6, 1], strides = [1, 1]} : vector<7x7xf32> to vector<6x1xf32>
    %cst_188 = arith.constant 0.000000e+00 : f32
    %612 = vector.broadcast %cst_188 : f32 to vector<1x1xf32>
    %613 = tpu.concatenate %611, %612 in 0 : vector<6x1xf32>, vector<1x1xf32> -> vector<7x1xf32>
    %c4_i32_189 = arith.constant 4 : i32
    %614 = vector.broadcast %c4_i32_189 : i32 to vector<7x7xi32>
    %615 = arith.cmpi eq, %6, %614 : vector<7x7xi32>
    %cst_190 = arith.constant 0.000000e+00 : f32
    %616 = vector.shape_cast %613 : vector<7x1xf32> to vector<7x1xf32>
    %617 = vector.broadcast %616 : vector<7x1xf32> to vector<7x7xf32>
    %618 = vector.broadcast %cst_190 : f32 to vector<7x7xf32>
    %619 = arith.select %615, %617, %618 : vector<7x7xi1>, vector<7x7xf32>
    %620 = arith.addf %610, %619 : vector<7x7xf32>
    %621 = vector.extract_strided_slice %533 {offsets = [1, 3], sizes = [6, 1], strides = [1, 1]} : vector<7x7xf32> to vector<6x1xf32>
    %cst_191 = arith.constant 0.000000e+00 : f32
    %622 = vector.broadcast %cst_191 : f32 to vector<1x1xf32>
    %623 = tpu.concatenate %621, %622 in 0 : vector<6x1xf32>, vector<1x1xf32> -> vector<7x1xf32>
    %c5_i32_192 = arith.constant 5 : i32
    %624 = vector.broadcast %c5_i32_192 : i32 to vector<7x7xi32>
    %625 = arith.cmpi eq, %6, %624 : vector<7x7xi32>
    %cst_193 = arith.constant 0.000000e+00 : f32
    %626 = vector.shape_cast %623 : vector<7x1xf32> to vector<7x1xf32>
    %627 = vector.broadcast %626 : vector<7x1xf32> to vector<7x7xf32>
    %628 = vector.broadcast %cst_193 : f32 to vector<7x7xf32>
    %629 = arith.select %625, %627, %628 : vector<7x7xi1>, vector<7x7xf32>
    %630 = arith.addf %620, %629 : vector<7x7xf32>
    %631 = vector.extract_strided_slice %533 {offsets = [1, 4], sizes = [6, 1], strides = [1, 1]} : vector<7x7xf32> to vector<6x1xf32>
    %cst_194 = arith.constant 0.000000e+00 : f32
    %632 = vector.broadcast %cst_194 : f32 to vector<1x1xf32>
    %633 = tpu.concatenate %631, %632 in 0 : vector<6x1xf32>, vector<1x1xf32> -> vector<7x1xf32>
    %c6_i32_195 = arith.constant 6 : i32
    %634 = vector.broadcast %c6_i32_195 : i32 to vector<7x7xi32>
    %635 = arith.cmpi eq, %6, %634 : vector<7x7xi32>
    %cst_196 = arith.constant 0.000000e+00 : f32
    %636 = vector.shape_cast %633 : vector<7x1xf32> to vector<7x1xf32>
    %637 = vector.broadcast %636 : vector<7x1xf32> to vector<7x7xf32>
    %638 = vector.broadcast %cst_196 : f32 to vector<7x7xf32>
    %639 = arith.select %635, %637, %638 : vector<7x7xi1>, vector<7x7xf32>
    %640 = arith.addf %630, %639 : vector<7x7xf32>
    %641 = arith.addf %530, %640 : vector<7x7xf32>
    %cst_197 = arith.constant 0.353553385 : f32
    %642 = vector.broadcast %cst_197 : f32 to vector<7x7xf32>
    %643 = arith.mulf %641, %642 : vector<7x7xf32>
    %cst_198 = arith.constant -3.40282347E+38 : f32
    %644 = vector.shape_cast %3 : vector<1x7xi1> to vector<1x7xi1>
    %645 = vector.broadcast %644 : vector<1x7xi1> to vector<7x7xi1>
    %646 = vector.broadcast %cst_198 : f32 to vector<7x7xf32>
    %647 = arith.select %645, %643, %646 : vector<7x7xi1>, vector<7x7xf32>
    %cst_199 = arith.constant dense<0xFF800000> : vector<7xf32>
    %648 = vector.multi_reduction <maximumf>, %647, %cst_199 [1] : vector<7x7xf32> to vector<7xf32>
    %649 = vector.shape_cast %648 : vector<7xf32> to vector<7x1xf32>
    %650 = vector.broadcast %649 : vector<7x1xf32> to vector<7x7xf32>
    %651 = arith.subf %647, %650 : vector<7x7xf32>
    %652 = math.exp %651 : vector<7x7xf32>
    %cst_200 = arith.constant dense<0.000000e+00> : vector<7xf32>
    %653 = vector.multi_reduction <add>, %652, %cst_200 [1] : vector<7x7xf32> to vector<7xf32>
    %654 = vector.shape_cast %653 : vector<7xf32> to vector<7x1xf32>
    %655 = tpu.reciprocal %654 {approx = true} : vector<7x1xf32> -> vector<7x1xf32>
    %656 = vector.broadcast %655 : vector<7x1xf32> to vector<7x7xf32>
    %657 = arith.mulf %652, %656 : vector<7x7xf32>
    %cst_201 = arith.constant 0.000000e+00 : f32
    %658 = vector.shape_cast %3 : vector<1x7xi1> to vector<1x7xi1>
    %659 = vector.broadcast %658 : vector<1x7xi1> to vector<7x7xi1>
    %660 = vector.broadcast %cst_201 : f32 to vector<7x7xf32>
    %661 = arith.select %659, %657, %660 : vector<7x7xi1>, vector<7x7xf32>
    %662 = vector.extract_strided_slice %106 {offsets = [0, 24], sizes = [7, 8], strides = [1, 1]} : vector<7x32xf32> to vector<7x8xf32>
    %cst_202 = arith.constant dense<0.000000e+00> : vector<7x8xf32>
    %663 = tpu.matmul %661, %662, %cst_202 {dimension_numbers = #tpu.dot_dimension_numbers<[1], [0], [0], [1], [0, 0, 1, 1], [], []>} : vector<7x7xf32>, vector<7x8xf32>, vector<7x8xf32> -> vector<7x8xf32>
    %c0_203 = arith.constant 0 : index
    %c24 = arith.constant 24 : index
    %664 = vector.load %arg33[%c0_203, %c24] : memref<7x32xf32, #tpu.memory_space<vmem>>, vector<7x8xf32>
    tpu.vector_store %arg33[%c0_203, %c24], %663 {strides = array<i32>} : memref<7x32xf32, #tpu.memory_space<vmem>>, vector<7x8xf32>,
    %c0_204 = arith.constant 0 : index
    %c0_205 = arith.constant 0 : index
    %665 = vector.load %arg33[%c0_204, %c0_205] : memref<7x32xf32, #tpu.memory_space<vmem>>, vector<7x32xf32>
    %c0_206 = arith.constant 0 : index
    %c0_207 = arith.constant 0 : index
    %c0_208 = arith.constant 0 : index
    %666 = vector.load %arg10[%c0_206, %c0_207, %c0_208] : memref<2x32x32xf32, #tpu.memory_space<vmem>>, vector<1x32x32xf32>
    %667 = vector.shape_cast %666 : vector<1x32x32xf32> to vector<32x32xf32>
    %cst_209 = arith.constant dense<0.000000e+00> : vector<7x32xf32>
    %668 = tpu.matmul %665, %667, %cst_209 {dimension_numbers = #tpu.dot_dimension_numbers<[1], [0], [0], [1], [0, 0, 1, 1], [], []>} : vector<7x32xf32>, vector<32x32xf32>, vector<7x32xf32> -> vector<7x32xf32>
    %669 = arith.addf %72, %668 : vector<7x32xf32>
    %c0_210 = arith.constant 0 : index
    %c0_211 = arith.constant 0 : index
    %c0_212 = arith.constant 0 : index
    %670 = vector.load %arg11[%c0_210, %c0_211, %c0_212] : memref<2x1x32xf32, #tpu.memory_space<vmem>>, vector<1x1x32xf32>
    %671 = vector.shape_cast %670 : vector<1x1x32xf32> to vector<1x32xf32>
    %672 = vector.broadcast %671 : vector<1x32xf32> to vector<7x32xf32>
    %673 = arith.addf %669, %672 : vector<7x32xf32>
    %c0_213 = arith.constant 0 : index
    %c0_214 = arith.constant 0 : index
    %c0_215 = arith.constant 0 : index
    %674 = vector.load %arg12[%c0_213, %c0_214, %c0_215] : memref<2x1x32xf32, #tpu.memory_space<vmem>>, vector<1x1x32xf32>
    %675 = vector.shape_cast %674 : vector<1x1x32xf32> to vector<1x32xf32>
    %c0_216 = arith.constant 0 : index
    %c0_217 = arith.constant 0 : index
    %c0_218 = arith.constant 0 : index
    %676 = vector.load %arg13[%c0_216, %c0_217, %c0_218] : memref<2x1x32xf32, #tpu.memory_space<vmem>>, vector<1x1x32xf32>
    %677 = vector.shape_cast %676 : vector<1x1x32xf32> to vector<1x32xf32>
    %cst_219 = arith.constant dense<0.000000e+00> : vector<7xf32>
    %678 = vector.multi_reduction <add>, %673, %cst_219 [1] : vector<7x32xf32> to vector<7xf32>
    %679 = vector.shape_cast %678 : vector<7xf32> to vector<7x1xf32>
    %cst_220 = arith.constant 3.200000e+01 : f32
    %680 = vector.broadcast %cst_220 : f32 to vector<7x1xf32>
    %681 = arith.divf %679, %680 : vector<7x1xf32>
    %682 = vector.broadcast %681 : vector<7x1xf32> to vector<7x32xf32>
    %683 = arith.subf %673, %682 : vector<7x32xf32>
    %684 = arith.mulf %683, %683 : vector<7x32xf32>
    %cst_221 = arith.constant dense<0.000000e+00> : vector<7xf32>
    %685 = vector.multi_reduction <add>, %684, %cst_221 [1] : vector<7x32xf32> to vector<7xf32>
    %686 = vector.shape_cast %685 : vector<7xf32> to vector<7x1xf32>
    %cst_222 = arith.constant 3.200000e+01 : f32
    %687 = vector.broadcast %cst_222 : f32 to vector<7x1xf32>
    %688 = arith.divf %686, %687 : vector<7x1xf32>
    %cst_223 = arith.constant 9.99999974E-6 : f32
    %689 = vector.broadcast %cst_223 : f32 to vector<7x1xf32>
    %690 = arith.addf %688, %689 : vector<7x1xf32>
    %691 = math.rsqrt %690 : vector<7x1xf32>
    %692 = vector.broadcast %691 : vector<7x1xf32> to vector<7x32xf32>
    %693 = arith.mulf %683, %692 : vector<7x32xf32>
    %694 = vector.broadcast %675 : vector<1x32xf32> to vector<7x32xf32>
    %695 = arith.mulf %693, %694 : vector<7x32xf32>
    %696 = vector.broadcast %677 : vector<1x32xf32> to vector<7x32xf32>
    %697 = arith.addf %695, %696 : vector<7x32xf32>
    %c0_224 = arith.constant 0 : index
    %c0_225 = arith.constant 0 : index
    %c0_226 = arith.constant 0 : index
    %698 = vector.load %arg14[%c0_224, %c0_225, %c0_226] : memref<2x32x64xf32, #tpu.memory_space<vmem>>, vector<1x32x64xf32>
    %699 = vector.shape_cast %698 : vector<1x32x64xf32> to vector<32x64xf32>
    %cst_227 = arith.constant dense<0.000000e+00> : vector<7x64xf32>
    %700 = tpu.matmul %697, %699, %cst_227 {dimension_numbers = #tpu.dot_dimension_numbers<[1], [0], [0], [1], [0, 0, 1, 1], [], []>} : vector<7x32xf32>, vector<32x64xf32>, vector<7x64xf32> -> vector<7x64xf32>
    %c0_228 = arith.constant 0 : index
    %c0_229 = arith.constant 0 : index
    %c0_230 = arith.constant 0 : index
    %701 = vector.load %arg15[%c0_228, %c0_229, %c0_230] : memref<2x1x64xf32, #tpu.memory_space<vmem>>, vector<1x1x64xf32>
    %702 = vector.shape_cast %701 : vector<1x1x64xf32> to vector<1x64xf32>
    %703 = vector.broadcast %702 : vector<1x64xf32> to vector<7x64xf32>
    %704 = arith.addf %700, %703 : vector<7x64xf32>
    %705 = vector.extract_strided_slice %704 {offsets = [0, 0], sizes = [7, 32], strides = [1, 1]} : vector<7x64xf32> to vector<7x32xf32>
    %706 = vector.extract_strided_slice %704 {offsets = [0, 32], sizes = [7, 32], strides = [1, 1]} : vector<7x64xf32> to vector<7x32xf32>
    %707 = arith.negf %706 : vector<7x32xf32>
    %708 = math.exp %707 : vector<7x32xf32>
    %cst_231 = arith.constant 1.000000e+00 : f32
    %709 = vector.broadcast %cst_231 : f32 to vector<7x32xf32>
    %710 = arith.addf %709, %708 : vector<7x32xf32>
    %711 = arith.divf %709, %710 : vector<7x32xf32>
    %712 = arith.mulf %705, %711 : vector<7x32xf32>
    %c0_232 = arith.constant 0 : index
    %c0_233 = arith.constant 0 : index
    %c0_234 = arith.constant 0 : index
    %713 = vector.load %arg16[%c0_232, %c0_233, %c0_234] : memref<2x7x32xf32, #tpu.memory_space<vmem>>, vector<1x7x32xf32>
    %714 = vector.shape_cast %713 : vector<1x7x32xf32> to vector<7x32xf32>
    %cst_235 = arith.constant 0.000000e+00 : f32
    %715 = vector.broadcast %cst_235 : f32 to vector<7x32xf32>
    %cst_236 = arith.constant 0.000000e+00 : f32
    %716 = vector.broadcast %cst_236 : f32 to vector<3x32xf32>
    %717 = vector.extract_strided_slice %712 {offsets = [0, 0], sizes = [4, 32], strides = [1, 1]} : vector<7x32xf32> to vector<4x32xf32>
    %718 = tpu.concatenate %716, %717 in 0 : vector<3x32xf32>, vector<4x32xf32> -> vector<7x32xf32>
    %cst_237 = arith.constant 0.000000e+00 : f32
    %719 = vector.shape_cast %16 : vector<7x1xi1> to vector<7x1xi1>
    %720 = vector.broadcast %719 : vector<7x1xi1> to vector<7x32xi1>
    %721 = vector.broadcast %cst_237 : f32 to vector<7x32xf32>
    %722 = arith.select %720, %718, %721 : vector<7x32xi1>, vector<7x32xf32>
    %723 = vector.extract_strided_slice %714 {offsets = [0, 0], sizes = [1, 32], strides = [1, 1]} : vector<7x32xf32> to vector<1x32xf32>
    %724 = vector.broadcast %723 : vector<1x32xf32> to vector<7x32xf32>
    %725 = arith.mulf %722, %724 : vector<7x32xf32>
    %726 = arith.addf %715, %725 : vector<7x32xf32>
    %cst_238 = arith.constant 0.000000e+00 : f32
    %727 = vector.broadcast %cst_238 : f32 to vector<2x32xf32>
    %728 = vector.extract_strided_slice %712 {offsets = [0, 0], sizes = [5, 32], strides = [1, 1]} : vector<7x32xf32> to vector<5x32xf32>
    %729 = tpu.concatenate %727, %728 in 0 : vector<2x32xf32>, vector<5x32xf32> -> vector<7x32xf32>
    %cst_239 = arith.constant 0.000000e+00 : f32
    %730 = vector.shape_cast %25 : vector<7x1xi1> to vector<7x1xi1>
    %731 = vector.broadcast %730 : vector<7x1xi1> to vector<7x32xi1>
    %732 = vector.broadcast %cst_239 : f32 to vector<7x32xf32>
    %733 = arith.select %731, %729, %732 : vector<7x32xi1>, vector<7x32xf32>
    %734 = vector.extract_strided_slice %714 {offsets = [1, 0], sizes = [1, 32], strides = [1, 1]} : vector<7x32xf32> to vector<1x32xf32>
    %735 = vector.broadcast %734 : vector<1x32xf32> to vector<7x32xf32>
    %736 = arith.mulf %733, %735 : vector<7x32xf32>
    %737 = arith.addf %726, %736 : vector<7x32xf32>
    %cst_240 = arith.constant 0.000000e+00 : f32
    %738 = vector.broadcast %cst_240 : f32 to vector<1x32xf32>
    %739 = vector.extract_strided_slice %712 {offsets = [0, 0], sizes = [6, 32], strides = [1, 1]} : vector<7x32xf32> to vector<6x32xf32>
    %740 = tpu.concatenate %738, %739 in 0 : vector<1x32xf32>, vector<6x32xf32> -> vector<7x32xf32>
    %cst_241 = arith.constant 0.000000e+00 : f32
    %741 = vector.shape_cast %34 : vector<7x1xi1> to vector<7x1xi1>
    %742 = vector.broadcast %741 : vector<7x1xi1> to vector<7x32xi1>
    %743 = vector.broadcast %cst_241 : f32 to vector<7x32xf32>
    %744 = arith.select %742, %740, %743 : vector<7x32xi1>, vector<7x32xf32>
    %745 = vector.extract_strided_slice %714 {offsets = [2, 0], sizes = [1, 32], strides = [1, 1]} : vector<7x32xf32> to vector<1x32xf32>
    %746 = vector.broadcast %745 : vector<1x32xf32> to vector<7x32xf32>
    %747 = arith.mulf %744, %746 : vector<7x32xf32>
    %748 = arith.addf %737, %747 : vector<7x32xf32>
    %cst_242 = arith.constant 0.000000e+00 : f32
    %749 = vector.shape_cast %43 : vector<7x1xi1> to vector<7x1xi1>
    %750 = vector.broadcast %749 : vector<7x1xi1> to vector<7x32xi1>
    %751 = vector.broadcast %cst_242 : f32 to vector<7x32xf32>
    %752 = arith.select %750, %712, %751 : vector<7x32xi1>, vector<7x32xf32>
    %753 = vector.extract_strided_slice %714 {offsets = [3, 0], sizes = [1, 32], strides = [1, 1]} : vector<7x32xf32> to vector<1x32xf32>
    %754 = vector.broadcast %753 : vector<1x32xf32> to vector<7x32xf32>
    %755 = arith.mulf %752, %754 : vector<7x32xf32>
    %756 = arith.addf %748, %755 : vector<7x32xf32>
    %757 = vector.extract_strided_slice %712 {offsets = [1, 0], sizes = [6, 32], strides = [1, 1]} : vector<7x32xf32> to vector<6x32xf32>
    %cst_243 = arith.constant 0.000000e+00 : f32
    %758 = vector.broadcast %cst_243 : f32 to vector<1x32xf32>
    %759 = tpu.concatenate %757, %758 in 0 : vector<6x32xf32>, vector<1x32xf32> -> vector<7x32xf32>
    %cst_244 = arith.constant 0.000000e+00 : f32
    %760 = vector.shape_cast %52 : vector<7x1xi1> to vector<7x1xi1>
    %761 = vector.broadcast %760 : vector<7x1xi1> to vector<7x32xi1>
    %762 = vector.broadcast %cst_244 : f32 to vector<7x32xf32>
    %763 = arith.select %761, %759, %762 : vector<7x32xi1>, vector<7x32xf32>
    %764 = vector.extract_strided_slice %714 {offsets = [4, 0], sizes = [1, 32], strides = [1, 1]} : vector<7x32xf32> to vector<1x32xf32>
    %765 = vector.broadcast %764 : vector<1x32xf32> to vector<7x32xf32>
    %766 = arith.mulf %763, %765 : vector<7x32xf32>
    %767 = arith.addf %756, %766 : vector<7x32xf32>
    %768 = vector.extract_strided_slice %712 {offsets = [2, 0], sizes = [5, 32], strides = [1, 1]} : vector<7x32xf32> to vector<5x32xf32>
    %cst_245 = arith.constant 0.000000e+00 : f32
    %769 = vector.broadcast %cst_245 : f32 to vector<2x32xf32>
    %770 = tpu.concatenate %768, %769 in 0 : vector<5x32xf32>, vector<2x32xf32> -> vector<7x32xf32>
    %cst_246 = arith.constant 0.000000e+00 : f32
    %771 = vector.shape_cast %61 : vector<7x1xi1> to vector<7x1xi1>
    %772 = vector.broadcast %771 : vector<7x1xi1> to vector<7x32xi1>
    %773 = vector.broadcast %cst_246 : f32 to vector<7x32xf32>
    %774 = arith.select %772, %770, %773 : vector<7x32xi1>, vector<7x32xf32>
    %775 = vector.extract_strided_slice %714 {offsets = [5, 0], sizes = [1, 32], strides = [1, 1]} : vector<7x32xf32> to vector<1x32xf32>
    %776 = vector.broadcast %775 : vector<1x32xf32> to vector<7x32xf32>
    %777 = arith.mulf %774, %776 : vector<7x32xf32>
    %778 = arith.addf %767, %777 : vector<7x32xf32>
    %779 = vector.extract_strided_slice %712 {offsets = [3, 0], sizes = [4, 32], strides = [1, 1]} : vector<7x32xf32> to vector<4x32xf32>
    %cst_247 = arith.constant 0.000000e+00 : f32
    %780 = vector.broadcast %cst_247 : f32 to vector<3x32xf32>
    %781 = tpu.concatenate %779, %780 in 0 : vector<4x32xf32>, vector<3x32xf32> -> vector<7x32xf32>
    %cst_248 = arith.constant 0.000000e+00 : f32
    %782 = vector.shape_cast %70 : vector<7x1xi1> to vector<7x1xi1>
    %783 = vector.broadcast %782 : vector<7x1xi1> to vector<7x32xi1>
    %784 = vector.broadcast %cst_248 : f32 to vector<7x32xf32>
    %785 = arith.select %783, %781, %784 : vector<7x32xi1>, vector<7x32xf32>
    %786 = vector.extract_strided_slice %714 {offsets = [6, 0], sizes = [1, 32], strides = [1, 1]} : vector<7x32xf32> to vector<1x32xf32>
    %787 = vector.broadcast %786 : vector<1x32xf32> to vector<7x32xf32>
    %788 = arith.mulf %785, %787 : vector<7x32xf32>
    %789 = arith.addf %778, %788 : vector<7x32xf32>
    %c0_249 = arith.constant 0 : index
    %c0_250 = arith.constant 0 : index
    %c0_251 = arith.constant 0 : index
    %790 = vector.load %arg17[%c0_249, %c0_250, %c0_251] : memref<2x1x32xf32, #tpu.memory_space<vmem>>, vector<1x1x32xf32>
    %791 = vector.shape_cast %790 : vector<1x1x32xf32> to vector<1x32xf32>
    %792 = vector.broadcast %791 : vector<1x32xf32> to vector<7x32xf32>
    %793 = arith.addf %789, %792 : vector<7x32xf32>
    %c0_252 = arith.constant 0 : index
    %c0_253 = arith.constant 0 : index
    %c0_254 = arith.constant 0 : index
    %794 = vector.load %arg18[%c0_252, %c0_253, %c0_254] : memref<2x1x32xf32, #tpu.memory_space<vmem>>, vector<1x1x32xf32>
    %795 = vector.shape_cast %794 : vector<1x1x32xf32> to vector<1x32xf32>
    %796 = vector.broadcast %795 : vector<1x32xf32> to vector<7x32xf32>
    %797 = arith.mulf %793, %796 : vector<7x32xf32>
    %c0_255 = arith.constant 0 : index
    %c0_256 = arith.constant 0 : index
    %c0_257 = arith.constant 0 : index
    %798 = vector.load %arg19[%c0_255, %c0_256, %c0_257] : memref<2x1x32xf32, #tpu.memory_space<vmem>>, vector<1x1x32xf32>
    %799 = vector.shape_cast %798 : vector<1x1x32xf32> to vector<1x32xf32>
    %800 = vector.broadcast %799 : vector<1x32xf32> to vector<7x32xf32>
    %801 = arith.addf %797, %800 : vector<7x32xf32>
    %802 = arith.negf %801 : vector<7x32xf32>
    %803 = math.exp %802 : vector<7x32xf32>
    %cst_258 = arith.constant 1.000000e+00 : f32
    %804 = vector.broadcast %cst_258 : f32 to vector<7x32xf32>
    %805 = arith.addf %804, %803 : vector<7x32xf32>
    %806 = arith.divf %804, %805 : vector<7x32xf32>
    %807 = arith.mulf %801, %806 : vector<7x32xf32>
    %c0_259 = arith.constant 0 : index
    %c0_260 = arith.constant 0 : index
    %c0_261 = arith.constant 0 : index
    %808 = vector.load %arg20[%c0_259, %c0_260, %c0_261] : memref<2x32x32xf32, #tpu.memory_space<vmem>>, vector<1x32x32xf32>
    %809 = vector.shape_cast %808 : vector<1x32x32xf32> to vector<32x32xf32>
    %cst_262 = arith.constant dense<0.000000e+00> : vector<7x32xf32>
    %810 = tpu.matmul %807, %809, %cst_262 {dimension_numbers = #tpu.dot_dimension_numbers<[1], [0], [0], [1], [0, 0, 1, 1], [], []>} : vector<7x32xf32>, vector<32x32xf32>, vector<7x32xf32> -> vector<7x32xf32>
    %811 = arith.addf %673, %810 : vector<7x32xf32>
    %c0_263 = arith.constant 0 : index
    %c0_264 = arith.constant 0 : index
    %c0_265 = arith.constant 0 : index
    %812 = vector.load %arg21[%c0_263, %c0_264, %c0_265] : memref<2x1x32xf32, #tpu.memory_space<vmem>>, vector<1x1x32xf32>
    %813 = vector.shape_cast %812 : vector<1x1x32xf32> to vector<1x32xf32>
    %814 = vector.broadcast %813 : vector<1x32xf32> to vector<7x32xf32>
    %815 = arith.addf %811, %814 : vector<7x32xf32>
    %c0_266 = arith.constant 0 : index
    %c0_267 = arith.constant 0 : index
    %c0_268 = arith.constant 0 : index
    %816 = vector.load %arg22[%c0_266, %c0_267, %c0_268] : memref<2x1x32xf32, #tpu.memory_space<vmem>>, vector<1x1x32xf32>
    %817 = vector.shape_cast %816 : vector<1x1x32xf32> to vector<1x32xf32>
    %c0_269 = arith.constant 0 : index
    %c0_270 = arith.constant 0 : index
    %c0_271 = arith.constant 0 : index
    %818 = vector.load %arg23[%c0_269, %c0_270, %c0_271] : memref<2x1x32xf32, #tpu.memory_space<vmem>>, vector<1x1x32xf32>
    %819 = vector.shape_cast %818 : vector<1x1x32xf32> to vector<1x32xf32>
    %cst_272 = arith.constant dense<0.000000e+00> : vector<7xf32>
    %820 = vector.multi_reduction <add>, %815, %cst_272 [1] : vector<7x32xf32> to vector<7xf32>
    %821 = vector.shape_cast %820 : vector<7xf32> to vector<7x1xf32>
    %cst_273 = arith.constant 3.200000e+01 : f32
    %822 = vector.broadcast %cst_273 : f32 to vector<7x1xf32>
    %823 = arith.divf %821, %822 : vector<7x1xf32>
    %824 = vector.broadcast %823 : vector<7x1xf32> to vector<7x32xf32>
    %825 = arith.subf %815, %824 : vector<7x32xf32>
    %826 = arith.mulf %825, %825 : vector<7x32xf32>
    %cst_274 = arith.constant dense<0.000000e+00> : vector<7xf32>
    %827 = vector.multi_reduction <add>, %826, %cst_274 [1] : vector<7x32xf32> to vector<7xf32>
    %828 = vector.shape_cast %827 : vector<7xf32> to vector<7x1xf32>
    %cst_275 = arith.constant 3.200000e+01 : f32
    %829 = vector.broadcast %cst_275 : f32 to vector<7x1xf32>
    %830 = arith.divf %828, %829 : vector<7x1xf32>
    %cst_276 = arith.constant 9.99999974E-6 : f32
    %831 = vector.broadcast %cst_276 : f32 to vector<7x1xf32>
    %832 = arith.addf %830, %831 : vector<7x1xf32>
    %833 = math.rsqrt %832 : vector<7x1xf32>
    %834 = vector.broadcast %833 : vector<7x1xf32> to vector<7x32xf32>
    %835 = arith.mulf %825, %834 : vector<7x32xf32>
    %836 = vector.broadcast %817 : vector<1x32xf32> to vector<7x32xf32>
    %837 = arith.mulf %835, %836 : vector<7x32xf32>
    %838 = vector.broadcast %819 : vector<1x32xf32> to vector<7x32xf32>
    %839 = arith.addf %837, %838 : vector<7x32xf32>
    %c0_277 = arith.constant 0 : index
    %c0_278 = arith.constant 0 : index
    %c0_279 = arith.constant 0 : index
    %840 = vector.load %arg24[%c0_277, %c0_278, %c0_279] : memref<2x32x64xf32, #tpu.memory_space<vmem>>, vector<1x32x64xf32>
    %841 = vector.shape_cast %840 : vector<1x32x64xf32> to vector<32x64xf32>
    %cst_280 = arith.constant dense<0.000000e+00> : vector<7x64xf32>
    %842 = tpu.matmul %839, %841, %cst_280 {dimension_numbers = #tpu.dot_dimension_numbers<[1], [0], [0], [1], [0, 0, 1, 1], [], []>} : vector<7x32xf32>, vector<32x64xf32>, vector<7x64xf32> -> vector<7x64xf32>
    %c0_281 = arith.constant 0 : index
    %c0_282 = arith.constant 0 : index
    %c0_283 = arith.constant 0 : index
    %843 = vector.load %arg25[%c0_281, %c0_282, %c0_283] : memref<2x1x64xf32, #tpu.memory_space<vmem>>, vector<1x1x64xf32>
    %844 = vector.shape_cast %843 : vector<1x1x64xf32> to vector<1x64xf32>
    %845 = vector.broadcast %844 : vector<1x64xf32> to vector<7x64xf32>
    %846 = arith.addf %842, %845 : vector<7x64xf32>
    %847 = arith.negf %846 : vector<7x64xf32>
    %848 = math.exp %847 : vector<7x64xf32>
    %cst_284 = arith.constant 1.000000e+00 : f32
    %849 = vector.broadcast %cst_284 : f32 to vector<7x64xf32>
    %850 = arith.addf %849, %848 : vector<7x64xf32>
    %851 = arith.divf %849, %850 : vector<7x64xf32>
    %852 = arith.mulf %846, %851 : vector<7x64xf32>
    %c0_285 = arith.constant 0 : index
    %c0_286 = arith.constant 0 : index
    %c0_287 = arith.constant 0 : index
    %853 = vector.load %arg26[%c0_285, %c0_286, %c0_287] : memref<2x64x32xf32, #tpu.memory_space<vmem>>, vector<1x64x32xf32>
    %854 = vector.shape_cast %853 : vector<1x64x32xf32> to vector<64x32xf32>
    %cst_288 = arith.constant dense<0.000000e+00> : vector<7x32xf32>
    %855 = tpu.matmul %852, %854, %cst_288 {dimension_numbers = #tpu.dot_dimension_numbers<[1], [0], [0], [1], [0, 0, 1, 1], [], []>} : vector<7x64xf32>, vector<64x32xf32>, vector<7x32xf32> -> vector<7x32xf32>
    %856 = arith.addf %815, %855 : vector<7x32xf32>
    %c0_289 = arith.constant 0 : index
    %c0_290 = arith.constant 0 : index
    %c0_291 = arith.constant 0 : index
    %857 = vector.load %arg27[%c0_289, %c0_290, %c0_291] : memref<2x1x32xf32, #tpu.memory_space<vmem>>, vector<1x1x32xf32>
    %858 = vector.shape_cast %857 : vector<1x1x32xf32> to vector<1x32xf32>
    %859 = vector.broadcast %858 : vector<1x32xf32> to vector<7x32xf32>
    %860 = arith.addf %856, %859 : vector<7x32xf32>
    %c0_292 = arith.constant 0 : index
    %c0_293 = arith.constant 0 : index
    %c0_294 = arith.constant 0 : index
    %861 = vector.load %arg28[%c0_292, %c0_293, %c0_294] : memref<2x1x32xf32, #tpu.memory_space<vmem>>, vector<1x1x32xf32>
    %862 = vector.shape_cast %861 : vector<1x1x32xf32> to vector<1x32xf32>
    %c0_295 = arith.constant 0 : index
    %c0_296 = arith.constant 0 : index
    %c0_297 = arith.constant 0 : index
    %863 = vector.load %arg29[%c0_295, %c0_296, %c0_297] : memref<2x1x32xf32, #tpu.memory_space<vmem>>, vector<1x1x32xf32>
    %864 = vector.shape_cast %863 : vector<1x1x32xf32> to vector<1x32xf32>
    %cst_298 = arith.constant dense<0.000000e+00> : vector<7xf32>
    %865 = vector.multi_reduction <add>, %860, %cst_298 [1] : vector<7x32xf32> to vector<7xf32>
    %866 = vector.shape_cast %865 : vector<7xf32> to vector<7x1xf32>
    %cst_299 = arith.constant 3.200000e+01 : f32
    %867 = vector.broadcast %cst_299 : f32 to vector<7x1xf32>
    %868 = arith.divf %866, %867 : vector<7x1xf32>
    %869 = vector.broadcast %868 : vector<7x1xf32> to vector<7x32xf32>
    %870 = arith.subf %860, %869 : vector<7x32xf32>
    %871 = arith.mulf %870, %870 : vector<7x32xf32>
    %cst_300 = arith.constant dense<0.000000e+00> : vector<7xf32>
    %872 = vector.multi_reduction <add>, %871, %cst_300 [1] : vector<7x32xf32> to vector<7xf32>
    %873 = vector.shape_cast %872 : vector<7xf32> to vector<7x1xf32>
    %cst_301 = arith.constant 3.200000e+01 : f32
    %874 = vector.broadcast %cst_301 : f32 to vector<7x1xf32>
    %875 = arith.divf %873, %874 : vector<7x1xf32>
    %cst_302 = arith.constant 9.99999974E-6 : f32
    %876 = vector.broadcast %cst_302 : f32 to vector<7x1xf32>
    %877 = arith.addf %875, %876 : vector<7x1xf32>
    %878 = math.rsqrt %877 : vector<7x1xf32>
    %879 = vector.broadcast %878 : vector<7x1xf32> to vector<7x32xf32>
    %880 = arith.mulf %870, %879 : vector<7x32xf32>
    %881 = vector.broadcast %862 : vector<1x32xf32> to vector<7x32xf32>
    %882 = arith.mulf %880, %881 : vector<7x32xf32>
    %883 = vector.broadcast %864 : vector<1x32xf32> to vector<7x32xf32>
    %884 = arith.addf %882, %883 : vector<7x32xf32>
    %c1 = arith.constant 1 : index
    %c0_303 = arith.constant 0 : index
    %c0_304 = arith.constant 0 : index
    %885 = vector.load %arg4[%c1, %c0_303, %c0_304] : memref<2x1x32xf32, #tpu.memory_space<vmem>>, vector<1x1x32xf32>
    %886 = vector.shape_cast %885 : vector<1x1x32xf32> to vector<1x32xf32>
    %c1_305 = arith.constant 1 : index
    %c0_306 = arith.constant 0 : index
    %c0_307 = arith.constant 0 : index
    %887 = vector.load %arg5[%c1_305, %c0_306, %c0_307] : memref<2x1x32xf32, #tpu.memory_space<vmem>>, vector<1x1x32xf32>
    %888 = vector.shape_cast %887 : vector<1x1x32xf32> to vector<1x32xf32>
    %cst_308 = arith.constant dense<0.000000e+00> : vector<7xf32>
    %889 = vector.multi_reduction <add>, %884, %cst_308 [1] : vector<7x32xf32> to vector<7xf32>
    %890 = vector.shape_cast %889 : vector<7xf32> to vector<7x1xf32>
    %cst_309 = arith.constant 3.200000e+01 : f32
    %891 = vector.broadcast %cst_309 : f32 to vector<7x1xf32>
    %892 = arith.divf %890, %891 : vector<7x1xf32>
    %893 = vector.broadcast %892 : vector<7x1xf32> to vector<7x32xf32>
    %894 = arith.subf %884, %893 : vector<7x32xf32>
    %895 = arith.mulf %894, %894 : vector<7x32xf32>
    %cst_310 = arith.constant dense<0.000000e+00> : vector<7xf32>
    %896 = vector.multi_reduction <add>, %895, %cst_310 [1] : vector<7x32xf32> to vector<7xf32>
    %897 = vector.shape_cast %896 : vector<7xf32> to vector<7x1xf32>
    %cst_311 = arith.constant 3.200000e+01 : f32
    %898 = vector.broadcast %cst_311 : f32 to vector<7x1xf32>
    %899 = arith.divf %897, %898 : vector<7x1xf32>
    %cst_312 = arith.constant 9.99999974E-6 : f32
    %900 = vector.broadcast %cst_312 : f32 to vector<7x1xf32>
    %901 = arith.addf %899, %900 : vector<7x1xf32>
    %902 = math.rsqrt %901 : vector<7x1xf32>
    %903 = vector.broadcast %902 : vector<7x1xf32> to vector<7x32xf32>
    %904 = arith.mulf %894, %903 : vector<7x32xf32>
    %905 = vector.broadcast %886 : vector<1x32xf32> to vector<7x32xf32>
    %906 = arith.mulf %904, %905 : vector<7x32xf32>
    %907 = vector.broadcast %888 : vector<1x32xf32> to vector<7x32xf32>
    %908 = arith.addf %906, %907 : vector<7x32xf32>
    %c1_313 = arith.constant 1 : index
    %c0_314 = arith.constant 0 : index
    %c0_315 = arith.constant 0 : index
    %909 = vector.load %arg6[%c1_313, %c0_314, %c0_315] : memref<2x32x96xf32, #tpu.memory_space<vmem>>, vector<1x32x96xf32>
    %910 = vector.shape_cast %909 : vector<1x32x96xf32> to vector<32x96xf32>
    %cst_316 = arith.constant dense<0.000000e+00> : vector<7x96xf32>
    %911 = tpu.matmul %908, %910, %cst_316 {dimension_numbers = #tpu.dot_dimension_numbers<[1], [0], [0], [1], [0, 0, 1, 1], [], []>} : vector<7x32xf32>, vector<32x96xf32>, vector<7x96xf32> -> vector<7x96xf32>
    %c1_317 = arith.constant 1 : index
    %c0_318 = arith.constant 0 : index
    %c0_319 = arith.constant 0 : index
    %912 = vector.load %arg7[%c1_317, %c0_318, %c0_319] : memref<2x1x96xf32, #tpu.memory_space<vmem>>, vector<1x1x96xf32>
    %913 = vector.shape_cast %912 : vector<1x1x96xf32> to vector<1x96xf32>
    %914 = vector.broadcast %913 : vector<1x96xf32> to vector<7x96xf32>
    %915 = arith.addf %911, %914 : vector<7x96xf32>
    %916 = vector.extract_strided_slice %915 {offsets = [0, 0], sizes = [7, 32], strides = [1, 1]} : vector<7x96xf32> to vector<7x32xf32>
    %917 = vector.extract_strided_slice %915 {offsets = [0, 32], sizes = [7, 32], strides = [1, 1]} : vector<7x96xf32> to vector<7x32xf32>
    %918 = vector.extract_strided_slice %915 {offsets = [0, 64], sizes = [7, 32], strides = [1, 1]} : vector<7x96xf32> to vector<7x32xf32>
    %c1_320 = arith.constant 1 : index
    %c0_321 = arith.constant 0 : index
    %c0_322 = arith.constant 0 : index
    %919 = vector.load %arg2[%c1_320, %c0_321, %c0_322] : memref<2x7x32xf32, #tpu.memory_space<vmem>>, vector<1x7x32xf32>
    %920 = vector.shape_cast %919 : vector<1x7x32xf32> to vector<7x32xf32>
    %c1_323 = arith.constant 1 : index
    %c0_324 = arith.constant 0 : index
    %c0_325 = arith.constant 0 : index
    %921 = vector.load %arg8[%c1_323, %c0_324, %c0_325] : memref<2x1x32xf32, #tpu.memory_space<vmem>>, vector<1x1x32xf32>
    %922 = vector.shape_cast %921 : vector<1x1x32xf32> to vector<1x32xf32>
    %923 = vector.broadcast %922 : vector<1x32xf32> to vector<7x32xf32>
    %924 = arith.addf %916, %923 : vector<7x32xf32>
    %c1_326 = arith.constant 1 : index
    %c0_327 = arith.constant 0 : index
    %c0_328 = arith.constant 0 : index
    %925 = vector.load %arg9[%c1_326, %c0_327, %c0_328] : memref<2x1x32xf32, #tpu.memory_space<vmem>>, vector<1x1x32xf32>
    %926 = vector.shape_cast %925 : vector<1x1x32xf32> to vector<1x32xf32>
    %927 = vector.broadcast %926 : vector<1x32xf32> to vector<7x32xf32>
    %928 = arith.addf %916, %927 : vector<7x32xf32>
    %929 = vector.extract_strided_slice %924 {offsets = [0, 0], sizes = [7, 8], strides = [1, 1]} : vector<7x32xf32> to vector<7x8xf32>
    %930 = vector.extract_strided_slice %917 {offsets = [0, 0], sizes = [7, 8], strides = [1, 1]} : vector<7x32xf32> to vector<7x8xf32>
    %cst_329 = arith.constant dense<0.000000e+00> : vector<7x7xf32>
    %931 = tpu.matmul %929, %930, %cst_329 {dimension_numbers = #tpu.dot_dimension_numbers<[1], [1], [0], [0], [0, 0, 1, 0], [], []>} : vector<7x8xf32>, vector<7x8xf32>, vector<7x7xf32> -> vector<7x7xf32>
    %932 = vector.extract_strided_slice %928 {offsets = [0, 0], sizes = [7, 8], strides = [1, 1]} : vector<7x32xf32> to vector<7x8xf32>
    %933 = vector.extract_strided_slice %920 {offsets = [0, 0], sizes = [7, 8], strides = [1, 1]} : vector<7x32xf32> to vector<7x8xf32>
    %cst_330 = arith.constant dense<0.000000e+00> : vector<7x7xf32>
    %934 = tpu.matmul %932, %933, %cst_330 {dimension_numbers = #tpu.dot_dimension_numbers<[1], [1], [0], [0], [0, 0, 1, 0], [], []>} : vector<7x8xf32>, vector<7x8xf32>, vector<7x7xf32> -> vector<7x7xf32>
    %cst_331 = arith.constant 0.000000e+00 : f32
    %935 = vector.broadcast %cst_331 : f32 to vector<7x7xf32>
    %c-6_i32_332 = arith.constant -6 : i32
    %936 = vector.broadcast %c-6_i32_332 : i32 to vector<7x7xi32>
    %937 = arith.cmpi eq, %6, %936 : vector<7x7xi32>
    %938 = vector.extract_strided_slice %934 {offsets = [0, 0], sizes = [7, 1], strides = [1, 1]} : vector<7x7xf32> to vector<7x1xf32>
    %cst_333 = arith.constant 0.000000e+00 : f32
    %939 = vector.shape_cast %938 : vector<7x1xf32> to vector<7x1xf32>
    %940 = vector.broadcast %939 : vector<7x1xf32> to vector<7x7xf32>
    %941 = vector.broadcast %cst_333 : f32 to vector<7x7xf32>
    %942 = arith.select %937, %940, %941 : vector<7x7xi1>, vector<7x7xf32>
    %943 = arith.addf %935, %942 : vector<7x7xf32>
    %c-5_i32_334 = arith.constant -5 : i32
    %944 = vector.broadcast %c-5_i32_334 : i32 to vector<7x7xi32>
    %945 = arith.cmpi eq, %6, %944 : vector<7x7xi32>
    %946 = vector.extract_strided_slice %934 {offsets = [0, 1], sizes = [7, 1], strides = [1, 1]} : vector<7x7xf32> to vector<7x1xf32>
    %cst_335 = arith.constant 0.000000e+00 : f32
    %947 = vector.shape_cast %946 : vector<7x1xf32> to vector<7x1xf32>
    %948 = vector.broadcast %947 : vector<7x1xf32> to vector<7x7xf32>
    %949 = vector.broadcast %cst_335 : f32 to vector<7x7xf32>
    %950 = arith.select %945, %948, %949 : vector<7x7xi1>, vector<7x7xf32>
    %951 = arith.addf %943, %950 : vector<7x7xf32>
    %c-4_i32_336 = arith.constant -4 : i32
    %952 = vector.broadcast %c-4_i32_336 : i32 to vector<7x7xi32>
    %953 = arith.cmpi eq, %6, %952 : vector<7x7xi32>
    %954 = vector.extract_strided_slice %934 {offsets = [0, 2], sizes = [7, 1], strides = [1, 1]} : vector<7x7xf32> to vector<7x1xf32>
    %cst_337 = arith.constant 0.000000e+00 : f32
    %955 = vector.shape_cast %954 : vector<7x1xf32> to vector<7x1xf32>
    %956 = vector.broadcast %955 : vector<7x1xf32> to vector<7x7xf32>
    %957 = vector.broadcast %cst_337 : f32 to vector<7x7xf32>
    %958 = arith.select %953, %956, %957 : vector<7x7xi1>, vector<7x7xf32>
    %959 = arith.addf %951, %958 : vector<7x7xf32>
    %c-3_i32_338 = arith.constant -3 : i32
    %960 = vector.broadcast %c-3_i32_338 : i32 to vector<7x7xi32>
    %961 = arith.cmpi eq, %6, %960 : vector<7x7xi32>
    %962 = vector.extract_strided_slice %934 {offsets = [0, 3], sizes = [7, 1], strides = [1, 1]} : vector<7x7xf32> to vector<7x1xf32>
    %cst_339 = arith.constant 0.000000e+00 : f32
    %963 = vector.shape_cast %962 : vector<7x1xf32> to vector<7x1xf32>
    %964 = vector.broadcast %963 : vector<7x1xf32> to vector<7x7xf32>
    %965 = vector.broadcast %cst_339 : f32 to vector<7x7xf32>
    %966 = arith.select %961, %964, %965 : vector<7x7xi1>, vector<7x7xf32>
    %967 = arith.addf %959, %966 : vector<7x7xf32>
    %c-2_i32_340 = arith.constant -2 : i32
    %968 = vector.broadcast %c-2_i32_340 : i32 to vector<7x7xi32>
    %969 = arith.cmpi eq, %6, %968 : vector<7x7xi32>
    %970 = vector.extract_strided_slice %934 {offsets = [0, 4], sizes = [7, 1], strides = [1, 1]} : vector<7x7xf32> to vector<7x1xf32>
    %cst_341 = arith.constant 0.000000e+00 : f32
    %971 = vector.shape_cast %970 : vector<7x1xf32> to vector<7x1xf32>
    %972 = vector.broadcast %971 : vector<7x1xf32> to vector<7x7xf32>
    %973 = vector.broadcast %cst_341 : f32 to vector<7x7xf32>
    %974 = arith.select %969, %972, %973 : vector<7x7xi1>, vector<7x7xf32>
    %975 = arith.addf %967, %974 : vector<7x7xf32>
    %c-1_i32_342 = arith.constant -1 : i32
    %976 = vector.broadcast %c-1_i32_342 : i32 to vector<7x7xi32>
    %977 = arith.cmpi eq, %6, %976 : vector<7x7xi32>
    %978 = vector.extract_strided_slice %934 {offsets = [0, 5], sizes = [7, 1], strides = [1, 1]} : vector<7x7xf32> to vector<7x1xf32>
    %cst_343 = arith.constant 0.000000e+00 : f32
    %979 = vector.shape_cast %978 : vector<7x1xf32> to vector<7x1xf32>
    %980 = vector.broadcast %979 : vector<7x1xf32> to vector<7x7xf32>
    %981 = vector.broadcast %cst_343 : f32 to vector<7x7xf32>
    %982 = arith.select %977, %980, %981 : vector<7x7xi1>, vector<7x7xf32>
    %983 = arith.addf %975, %982 : vector<7x7xf32>
    %c0_i32_344 = arith.constant 0 : i32
    %984 = vector.broadcast %c0_i32_344 : i32 to vector<7x7xi32>
    %985 = arith.cmpi eq, %6, %984 : vector<7x7xi32>
    %986 = vector.extract_strided_slice %934 {offsets = [0, 6], sizes = [7, 1], strides = [1, 1]} : vector<7x7xf32> to vector<7x1xf32>
    %cst_345 = arith.constant 0.000000e+00 : f32
    %987 = vector.shape_cast %986 : vector<7x1xf32> to vector<7x1xf32>
    %988 = vector.broadcast %987 : vector<7x1xf32> to vector<7x7xf32>
    %989 = vector.broadcast %cst_345 : f32 to vector<7x7xf32>
    %990 = arith.select %985, %988, %989 : vector<7x7xi1>, vector<7x7xf32>
    %991 = arith.addf %983, %990 : vector<7x7xf32>
    %992 = vector.extract_strided_slice %934 {offsets = [1, 0], sizes = [6, 1], strides = [1, 1]} : vector<7x7xf32> to vector<6x1xf32>
    %cst_346 = arith.constant 0.000000e+00 : f32
    %993 = vector.broadcast %cst_346 : f32 to vector<1x1xf32>
    %994 = tpu.concatenate %992, %993 in 0 : vector<6x1xf32>, vector<1x1xf32> -> vector<7x1xf32>
    %c2_i32_347 = arith.constant 2 : i32
    %995 = vector.broadcast %c2_i32_347 : i32 to vector<7x7xi32>
    %996 = arith.cmpi eq, %6, %995 : vector<7x7xi32>
    %cst_348 = arith.constant 0.000000e+00 : f32
    %997 = vector.shape_cast %994 : vector<7x1xf32> to vector<7x1xf32>
    %998 = vector.broadcast %997 : vector<7x1xf32> to vector<7x7xf32>
    %999 = vector.broadcast %cst_348 : f32 to vector<7x7xf32>
    %1000 = arith.select %996, %998, %999 : vector<7x7xi1>, vector<7x7xf32>
    %1001 = arith.addf %991, %1000 : vector<7x7xf32>
    %1002 = vector.extract_strided_slice %934 {offsets = [1, 1], sizes = [6, 1], strides = [1, 1]} : vector<7x7xf32> to vector<6x1xf32>
    %cst_349 = arith.constant 0.000000e+00 : f32
    %1003 = vector.broadcast %cst_349 : f32 to vector<1x1xf32>
    %1004 = tpu.concatenate %1002, %1003 in 0 : vector<6x1xf32>, vector<1x1xf32> -> vector<7x1xf32>
    %c3_i32_350 = arith.constant 3 : i32
    %1005 = vector.broadcast %c3_i32_350 : i32 to vector<7x7xi32>
    %1006 = arith.cmpi eq, %6, %1005 : vector<7x7xi32>
    %cst_351 = arith.constant 0.000000e+00 : f32
    %1007 = vector.shape_cast %1004 : vector<7x1xf32> to vector<7x1xf32>
    %1008 = vector.broadcast %1007 : vector<7x1xf32> to vector<7x7xf32>
    %1009 = vector.broadcast %cst_351 : f32 to vector<7x7xf32>
    %1010 = arith.select %1006, %1008, %1009 : vector<7x7xi1>, vector<7x7xf32>
    %1011 = arith.addf %1001, %1010 : vector<7x7xf32>
    %1012 = vector.extract_strided_slice %934 {offsets = [1, 2], sizes = [6, 1], strides = [1, 1]} : vector<7x7xf32> to vector<6x1xf32>
    %cst_352 = arith.constant 0.000000e+00 : f32
    %1013 = vector.broadcast %cst_352 : f32 to vector<1x1xf32>
    %1014 = tpu.concatenate %1012, %1013 in 0 : vector<6x1xf32>, vector<1x1xf32> -> vector<7x1xf32>
    %c4_i32_353 = arith.constant 4 : i32
    %1015 = vector.broadcast %c4_i32_353 : i32 to vector<7x7xi32>
    %1016 = arith.cmpi eq, %6, %1015 : vector<7x7xi32>
    %cst_354 = arith.constant 0.000000e+00 : f32
    %1017 = vector.shape_cast %1014 : vector<7x1xf32> to vector<7x1xf32>
    %1018 = vector.broadcast %1017 : vector<7x1xf32> to vector<7x7xf32>
    %1019 = vector.broadcast %cst_354 : f32 to vector<7x7xf32>
    %1020 = arith.select %1016, %1018, %1019 : vector<7x7xi1>, vector<7x7xf32>
    %1021 = arith.addf %1011, %1020 : vector<7x7xf32>
    %1022 = vector.extract_strided_slice %934 {offsets = [1, 3], sizes = [6, 1], strides = [1, 1]} : vector<7x7xf32> to vector<6x1xf32>
    %cst_355 = arith.constant 0.000000e+00 : f32
    %1023 = vector.broadcast %cst_355 : f32 to vector<1x1xf32>
    %1024 = tpu.concatenate %1022, %1023 in 0 : vector<6x1xf32>, vector<1x1xf32> -> vector<7x1xf32>
    %c5_i32_356 = arith.constant 5 : i32
    %1025 = vector.broadcast %c5_i32_356 : i32 to vector<7x7xi32>
    %1026 = arith.cmpi eq, %6, %1025 : vector<7x7xi32>
    %cst_357 = arith.constant 0.000000e+00 : f32
    %1027 = vector.shape_cast %1024 : vector<7x1xf32> to vector<7x1xf32>
    %1028 = vector.broadcast %1027 : vector<7x1xf32> to vector<7x7xf32>
    %1029 = vector.broadcast %cst_357 : f32 to vector<7x7xf32>
    %1030 = arith.select %1026, %1028, %1029 : vector<7x7xi1>, vector<7x7xf32>
    %1031 = arith.addf %1021, %1030 : vector<7x7xf32>
    %1032 = vector.extract_strided_slice %934 {offsets = [1, 4], sizes = [6, 1], strides = [1, 1]} : vector<7x7xf32> to vector<6x1xf32>
    %cst_358 = arith.constant 0.000000e+00 : f32
    %1033 = vector.broadcast %cst_358 : f32 to vector<1x1xf32>
    %1034 = tpu.concatenate %1032, %1033 in 0 : vector<6x1xf32>, vector<1x1xf32> -> vector<7x1xf32>
    %c6_i32_359 = arith.constant 6 : i32
    %1035 = vector.broadcast %c6_i32_359 : i32 to vector<7x7xi32>
    %1036 = arith.cmpi eq, %6, %1035 : vector<7x7xi32>
    %cst_360 = arith.constant 0.000000e+00 : f32
    %1037 = vector.shape_cast %1034 : vector<7x1xf32> to vector<7x1xf32>
    %1038 = vector.broadcast %1037 : vector<7x1xf32> to vector<7x7xf32>
    %1039 = vector.broadcast %cst_360 : f32 to vector<7x7xf32>
    %1040 = arith.select %1036, %1038, %1039 : vector<7x7xi1>, vector<7x7xf32>
    %1041 = arith.addf %1031, %1040 : vector<7x7xf32>
    %1042 = arith.addf %931, %1041 : vector<7x7xf32>
    %cst_361 = arith.constant 0.353553385 : f32
    %1043 = vector.broadcast %cst_361 : f32 to vector<7x7xf32>
    %1044 = arith.mulf %1042, %1043 : vector<7x7xf32>
    %cst_362 = arith.constant -3.40282347E+38 : f32
    %1045 = vector.shape_cast %3 : vector<1x7xi1> to vector<1x7xi1>
    %1046 = vector.broadcast %1045 : vector<1x7xi1> to vector<7x7xi1>
    %1047 = vector.broadcast %cst_362 : f32 to vector<7x7xf32>
    %1048 = arith.select %1046, %1044, %1047 : vector<7x7xi1>, vector<7x7xf32>
    %cst_363 = arith.constant dense<0xFF800000> : vector<7xf32>
    %1049 = vector.multi_reduction <maximumf>, %1048, %cst_363 [1] : vector<7x7xf32> to vector<7xf32>
    %1050 = vector.shape_cast %1049 : vector<7xf32> to vector<7x1xf32>
    %1051 = vector.broadcast %1050 : vector<7x1xf32> to vector<7x7xf32>
    %1052 = arith.subf %1048, %1051 : vector<7x7xf32>
    %1053 = math.exp %1052 : vector<7x7xf32>
    %cst_364 = arith.constant dense<0.000000e+00> : vector<7xf32>
    %1054 = vector.multi_reduction <add>, %1053, %cst_364 [1] : vector<7x7xf32> to vector<7xf32>
    %1055 = vector.shape_cast %1054 : vector<7xf32> to vector<7x1xf32>
    %1056 = tpu.reciprocal %1055 {approx = true} : vector<7x1xf32> -> vector<7x1xf32>
    %1057 = vector.broadcast %1056 : vector<7x1xf32> to vector<7x7xf32>
    %1058 = arith.mulf %1053, %1057 : vector<7x7xf32>
    %cst_365 = arith.constant 0.000000e+00 : f32
    %1059 = vector.shape_cast %3 : vector<1x7xi1> to vector<1x7xi1>
    %1060 = vector.broadcast %1059 : vector<1x7xi1> to vector<7x7xi1>
    %1061 = vector.broadcast %cst_365 : f32 to vector<7x7xf32>
    %1062 = arith.select %1060, %1058, %1061 : vector<7x7xi1>, vector<7x7xf32>
    %1063 = vector.extract_strided_slice %918 {offsets = [0, 0], sizes = [7, 8], strides = [1, 1]} : vector<7x32xf32> to vector<7x8xf32>
    %cst_366 = arith.constant dense<0.000000e+00> : vector<7x8xf32>
    %1064 = tpu.matmul %1062, %1063, %cst_366 {dimension_numbers = #tpu.dot_dimension_numbers<[1], [0], [0], [1], [0, 0, 1, 1], [], []>} : vector<7x7xf32>, vector<7x8xf32>, vector<7x8xf32> -> vector<7x8xf32>
    %c0_367 = arith.constant 0 : index
    %c0_368 = arith.constant 0 : index
    %1065 = vector.load %arg33[%c0_367, %c0_368] : memref<7x32xf32, #tpu.memory_space<vmem>>, vector<7x8xf32>
    tpu.vector_store %arg33[%c0_367, %c0_368], %1064 {strides = array<i32>} : memref<7x32xf32, #tpu.memory_space<vmem>>, vector<7x8xf32>,
    %1066 = vector.extract_strided_slice %924 {offsets = [0, 8], sizes = [7, 8], strides = [1, 1]} : vector<7x32xf32> to vector<7x8xf32>
    %1067 = vector.extract_strided_slice %917 {offsets = [0, 8], sizes = [7, 8], strides = [1, 1]} : vector<7x32xf32> to vector<7x8xf32>
    %cst_369 = arith.constant dense<0.000000e+00> : vector<7x7xf32>
    %1068 = tpu.matmul %1066, %1067, %cst_369 {dimension_numbers = #tpu.dot_dimension_numbers<[1], [1], [0], [0], [0, 0, 1, 0], [], []>} : vector<7x8xf32>, vector<7x8xf32>, vector<7x7xf32> -> vector<7x7xf32>
    %1069 = vector.extract_strided_slice %928 {offsets = [0, 8], sizes = [7, 8], strides = [1, 1]} : vector<7x32xf32> to vector<7x8xf32>
    %1070 = vector.extract_strided_slice %920 {offsets = [0, 8], sizes = [7, 8], strides = [1, 1]} : vector<7x32xf32> to vector<7x8xf32>
    %cst_370 = arith.constant dense<0.000000e+00> : vector<7x7xf32>
    %1071 = tpu.matmul %1069, %1070, %cst_370 {dimension_numbers = #tpu.dot_dimension_numbers<[1], [1], [0], [0], [0, 0, 1, 0], [], []>} : vector<7x8xf32>, vector<7x8xf32>, vector<7x7xf32> -> vector<7x7xf32>
    %cst_371 = arith.constant 0.000000e+00 : f32
    %1072 = vector.broadcast %cst_371 : f32 to vector<7x7xf32>
    %c-6_i32_372 = arith.constant -6 : i32
    %1073 = vector.broadcast %c-6_i32_372 : i32 to vector<7x7xi32>
    %1074 = arith.cmpi eq, %6, %1073 : vector<7x7xi32>
    %1075 = vector.extract_strided_slice %1071 {offsets = [0, 0], sizes = [7, 1], strides = [1, 1]} : vector<7x7xf32> to vector<7x1xf32>
    %cst_373 = arith.constant 0.000000e+00 : f32
    %1076 = vector.shape_cast %1075 : vector<7x1xf32> to vector<7x1xf32>
    %1077 = vector.broadcast %1076 : vector<7x1xf32> to vector<7x7xf32>
    %1078 = vector.broadcast %cst_373 : f32 to vector<7x7xf32>
    %1079 = arith.select %1074, %1077, %1078 : vector<7x7xi1>, vector<7x7xf32>
    %1080 = arith.addf %1072, %1079 : vector<7x7xf32>
    %c-5_i32_374 = arith.constant -5 : i32
    %1081 = vector.broadcast %c-5_i32_374 : i32 to vector<7x7xi32>
    %1082 = arith.cmpi eq, %6, %1081 : vector<7x7xi32>
    %1083 = vector.extract_strided_slice %1071 {offsets = [0, 1], sizes = [7, 1], strides = [1, 1]} : vector<7x7xf32> to vector<7x1xf32>
    %cst_375 = arith.constant 0.000000e+00 : f32
    %1084 = vector.shape_cast %1083 : vector<7x1xf32> to vector<7x1xf32>
    %1085 = vector.broadcast %1084 : vector<7x1xf32> to vector<7x7xf32>
    %1086 = vector.broadcast %cst_375 : f32 to vector<7x7xf32>
    %1087 = arith.select %1082, %1085, %1086 : vector<7x7xi1>, vector<7x7xf32>
    %1088 = arith.addf %1080, %1087 : vector<7x7xf32>
    %c-4_i32_376 = arith.constant -4 : i32
    %1089 = vector.broadcast %c-4_i32_376 : i32 to vector<7x7xi32>
    %1090 = arith.cmpi eq, %6, %1089 : vector<7x7xi32>
    %1091 = vector.extract_strided_slice %1071 {offsets = [0, 2], sizes = [7, 1], strides = [1, 1]} : vector<7x7xf32> to vector<7x1xf32>
    %cst_377 = arith.constant 0.000000e+00 : f32
    %1092 = vector.shape_cast %1091 : vector<7x1xf32> to vector<7x1xf32>
    %1093 = vector.broadcast %1092 : vector<7x1xf32> to vector<7x7xf32>
    %1094 = vector.broadcast %cst_377 : f32 to vector<7x7xf32>
    %1095 = arith.select %1090, %1093, %1094 : vector<7x7xi1>, vector<7x7xf32>
    %1096 = arith.addf %1088, %1095 : vector<7x7xf32>
    %c-3_i32_378 = arith.constant -3 : i32
    %1097 = vector.broadcast %c-3_i32_378 : i32 to vector<7x7xi32>
    %1098 = arith.cmpi eq, %6, %1097 : vector<7x7xi32>
    %1099 = vector.extract_strided_slice %1071 {offsets = [0, 3], sizes = [7, 1], strides = [1, 1]} : vector<7x7xf32> to vector<7x1xf32>
    %cst_379 = arith.constant 0.000000e+00 : f32
    %1100 = vector.shape_cast %1099 : vector<7x1xf32> to vector<7x1xf32>
    %1101 = vector.broadcast %1100 : vector<7x1xf32> to vector<7x7xf32>
    %1102 = vector.broadcast %cst_379 : f32 to vector<7x7xf32>
    %1103 = arith.select %1098, %1101, %1102 : vector<7x7xi1>, vector<7x7xf32>
    %1104 = arith.addf %1096, %1103 : vector<7x7xf32>
    %c-2_i32_380 = arith.constant -2 : i32
    %1105 = vector.broadcast %c-2_i32_380 : i32 to vector<7x7xi32>
    %1106 = arith.cmpi eq, %6, %1105 : vector<7x7xi32>
    %1107 = vector.extract_strided_slice %1071 {offsets = [0, 4], sizes = [7, 1], strides = [1, 1]} : vector<7x7xf32> to vector<7x1xf32>
    %cst_381 = arith.constant 0.000000e+00 : f32
    %1108 = vector.shape_cast %1107 : vector<7x1xf32> to vector<7x1xf32>
    %1109 = vector.broadcast %1108 : vector<7x1xf32> to vector<7x7xf32>
    %1110 = vector.broadcast %cst_381 : f32 to vector<7x7xf32>
    %1111 = arith.select %1106, %1109, %1110 : vector<7x7xi1>, vector<7x7xf32>
    %1112 = arith.addf %1104, %1111 : vector<7x7xf32>
    %c-1_i32_382 = arith.constant -1 : i32
    %1113 = vector.broadcast %c-1_i32_382 : i32 to vector<7x7xi32>
    %1114 = arith.cmpi eq, %6, %1113 : vector<7x7xi32>
    %1115 = vector.extract_strided_slice %1071 {offsets = [0, 5], sizes = [7, 1], strides = [1, 1]} : vector<7x7xf32> to vector<7x1xf32>
    %cst_383 = arith.constant 0.000000e+00 : f32
    %1116 = vector.shape_cast %1115 : vector<7x1xf32> to vector<7x1xf32>
    %1117 = vector.broadcast %1116 : vector<7x1xf32> to vector<7x7xf32>
    %1118 = vector.broadcast %cst_383 : f32 to vector<7x7xf32>
    %1119 = arith.select %1114, %1117, %1118 : vector<7x7xi1>, vector<7x7xf32>
    %1120 = arith.addf %1112, %1119 : vector<7x7xf32>
    %c0_i32_384 = arith.constant 0 : i32
    %1121 = vector.broadcast %c0_i32_384 : i32 to vector<7x7xi32>
    %1122 = arith.cmpi eq, %6, %1121 : vector<7x7xi32>
    %1123 = vector.extract_strided_slice %1071 {offsets = [0, 6], sizes = [7, 1], strides = [1, 1]} : vector<7x7xf32> to vector<7x1xf32>
    %cst_385 = arith.constant 0.000000e+00 : f32
    %1124 = vector.shape_cast %1123 : vector<7x1xf32> to vector<7x1xf32>
    %1125 = vector.broadcast %1124 : vector<7x1xf32> to vector<7x7xf32>
    %1126 = vector.broadcast %cst_385 : f32 to vector<7x7xf32>
    %1127 = arith.select %1122, %1125, %1126 : vector<7x7xi1>, vector<7x7xf32>
    %1128 = arith.addf %1120, %1127 : vector<7x7xf32>
    %1129 = vector.extract_strided_slice %1071 {offsets = [1, 0], sizes = [6, 1], strides = [1, 1]} : vector<7x7xf32> to vector<6x1xf32>
    %cst_386 = arith.constant 0.000000e+00 : f32
    %1130 = vector.broadcast %cst_386 : f32 to vector<1x1xf32>
    %1131 = tpu.concatenate %1129, %1130 in 0 : vector<6x1xf32>, vector<1x1xf32> -> vector<7x1xf32>
    %c2_i32_387 = arith.constant 2 : i32
    %1132 = vector.broadcast %c2_i32_387 : i32 to vector<7x7xi32>
    %1133 = arith.cmpi eq, %6, %1132 : vector<7x7xi32>
    %cst_388 = arith.constant 0.000000e+00 : f32
    %1134 = vector.shape_cast %1131 : vector<7x1xf32> to vector<7x1xf32>
    %1135 = vector.broadcast %1134 : vector<7x1xf32> to vector<7x7xf32>
    %1136 = vector.broadcast %cst_388 : f32 to vector<7x7xf32>
    %1137 = arith.select %1133, %1135, %1136 : vector<7x7xi1>, vector<7x7xf32>
    %1138 = arith.addf %1128, %1137 : vector<7x7xf32>
    %1139 = vector.extract_strided_slice %1071 {offsets = [1, 1], sizes = [6, 1], strides = [1, 1]} : vector<7x7xf32> to vector<6x1xf32>
    %cst_389 = arith.constant 0.000000e+00 : f32
    %1140 = vector.broadcast %cst_389 : f32 to vector<1x1xf32>
    %1141 = tpu.concatenate %1139, %1140 in 0 : vector<6x1xf32>, vector<1x1xf32> -> vector<7x1xf32>
    %c3_i32_390 = arith.constant 3 : i32
    %1142 = vector.broadcast %c3_i32_390 : i32 to vector<7x7xi32>
    %1143 = arith.cmpi eq, %6, %1142 : vector<7x7xi32>
    %cst_391 = arith.constant 0.000000e+00 : f32
    %1144 = vector.shape_cast %1141 : vector<7x1xf32> to vector<7x1xf32>
    %1145 = vector.broadcast %1144 : vector<7x1xf32> to vector<7x7xf32>
    %1146 = vector.broadcast %cst_391 : f32 to vector<7x7xf32>
    %1147 = arith.select %1143, %1145, %1146 : vector<7x7xi1>, vector<7x7xf32>
    %1148 = arith.addf %1138, %1147 : vector<7x7xf32>
    %1149 = vector.extract_strided_slice %1071 {offsets = [1, 2], sizes = [6, 1], strides = [1, 1]} : vector<7x7xf32> to vector<6x1xf32>
    %cst_392 = arith.constant 0.000000e+00 : f32
    %1150 = vector.broadcast %cst_392 : f32 to vector<1x1xf32>
    %1151 = tpu.concatenate %1149, %1150 in 0 : vector<6x1xf32>, vector<1x1xf32> -> vector<7x1xf32>
    %c4_i32_393 = arith.constant 4 : i32
    %1152 = vector.broadcast %c4_i32_393 : i32 to vector<7x7xi32>
    %1153 = arith.cmpi eq, %6, %1152 : vector<7x7xi32>
    %cst_394 = arith.constant 0.000000e+00 : f32
    %1154 = vector.shape_cast %1151 : vector<7x1xf32> to vector<7x1xf32>
    %1155 = vector.broadcast %1154 : vector<7x1xf32> to vector<7x7xf32>
    %1156 = vector.broadcast %cst_394 : f32 to vector<7x7xf32>
    %1157 = arith.select %1153, %1155, %1156 : vector<7x7xi1>, vector<7x7xf32>
    %1158 = arith.addf %1148, %1157 : vector<7x7xf32>
    %1159 = vector.extract_strided_slice %1071 {offsets = [1, 3], sizes = [6, 1], strides = [1, 1]} : vector<7x7xf32> to vector<6x1xf32>
    %cst_395 = arith.constant 0.000000e+00 : f32
    %1160 = vector.broadcast %cst_395 : f32 to vector<1x1xf32>
    %1161 = tpu.concatenate %1159, %1160 in 0 : vector<6x1xf32>, vector<1x1xf32> -> vector<7x1xf32>
    %c5_i32_396 = arith.constant 5 : i32
    %1162 = vector.broadcast %c5_i32_396 : i32 to vector<7x7xi32>
    %1163 = arith.cmpi eq, %6, %1162 : vector<7x7xi32>
    %cst_397 = arith.constant 0.000000e+00 : f32
    %1164 = vector.shape_cast %1161 : vector<7x1xf32> to vector<7x1xf32>
    %1165 = vector.broadcast %1164 : vector<7x1xf32> to vector<7x7xf32>
    %1166 = vector.broadcast %cst_397 : f32 to vector<7x7xf32>
    %1167 = arith.select %1163, %1165, %1166 : vector<7x7xi1>, vector<7x7xf32>
    %1168 = arith.addf %1158, %1167 : vector<7x7xf32>
    %1169 = vector.extract_strided_slice %1071 {offsets = [1, 4], sizes = [6, 1], strides = [1, 1]} : vector<7x7xf32> to vector<6x1xf32>
    %cst_398 = arith.constant 0.000000e+00 : f32
    %1170 = vector.broadcast %cst_398 : f32 to vector<1x1xf32>
    %1171 = tpu.concatenate %1169, %1170 in 0 : vector<6x1xf32>, vector<1x1xf32> -> vector<7x1xf32>
    %c6_i32_399 = arith.constant 6 : i32
    %1172 = vector.broadcast %c6_i32_399 : i32 to vector<7x7xi32>
    %1173 = arith.cmpi eq, %6, %1172 : vector<7x7xi32>
    %cst_400 = arith.constant 0.000000e+00 : f32
    %1174 = vector.shape_cast %1171 : vector<7x1xf32> to vector<7x1xf32>
    %1175 = vector.broadcast %1174 : vector<7x1xf32> to vector<7x7xf32>
    %1176 = vector.broadcast %cst_400 : f32 to vector<7x7xf32>
    %1177 = arith.select %1173, %1175, %1176 : vector<7x7xi1>, vector<7x7xf32>
    %1178 = arith.addf %1168, %1177 : vector<7x7xf32>
    %1179 = arith.addf %1068, %1178 : vector<7x7xf32>
    %cst_401 = arith.constant 0.353553385 : f32
    %1180 = vector.broadcast %cst_401 : f32 to vector<7x7xf32>
    %1181 = arith.mulf %1179, %1180 : vector<7x7xf32>
    %cst_402 = arith.constant -3.40282347E+38 : f32
    %1182 = vector.shape_cast %3 : vector<1x7xi1> to vector<1x7xi1>
    %1183 = vector.broadcast %1182 : vector<1x7xi1> to vector<7x7xi1>
    %1184 = vector.broadcast %cst_402 : f32 to vector<7x7xf32>
    %1185 = arith.select %1183, %1181, %1184 : vector<7x7xi1>, vector<7x7xf32>
    %cst_403 = arith.constant dense<0xFF800000> : vector<7xf32>
    %1186 = vector.multi_reduction <maximumf>, %1185, %cst_403 [1] : vector<7x7xf32> to vector<7xf32>
    %1187 = vector.shape_cast %1186 : vector<7xf32> to vector<7x1xf32>
    %1188 = vector.broadcast %1187 : vector<7x1xf32> to vector<7x7xf32>
    %1189 = arith.subf %1185, %1188 : vector<7x7xf32>
    %1190 = math.exp %1189 : vector<7x7xf32>
    %cst_404 = arith.constant dense<0.000000e+00> : vector<7xf32>
    %1191 = vector.multi_reduction <add>, %1190, %cst_404 [1] : vector<7x7xf32> to vector<7xf32>
    %1192 = vector.shape_cast %1191 : vector<7xf32> to vector<7x1xf32>
    %1193 = tpu.reciprocal %1192 {approx = true} : vector<7x1xf32> -> vector<7x1xf32>
    %1194 = vector.broadcast %1193 : vector<7x1xf32> to vector<7x7xf32>
    %1195 = arith.mulf %1190, %1194 : vector<7x7xf32>
    %cst_405 = arith.constant 0.000000e+00 : f32
    %1196 = vector.shape_cast %3 : vector<1x7xi1> to vector<1x7xi1>
    %1197 = vector.broadcast %1196 : vector<1x7xi1> to vector<7x7xi1>
    %1198 = vector.broadcast %cst_405 : f32 to vector<7x7xf32>
    %1199 = arith.select %1197, %1195, %1198 : vector<7x7xi1>, vector<7x7xf32>
    %1200 = vector.extract_strided_slice %918 {offsets = [0, 8], sizes = [7, 8], strides = [1, 1]} : vector<7x32xf32> to vector<7x8xf32>
    %cst_406 = arith.constant dense<0.000000e+00> : vector<7x8xf32>
    %1201 = tpu.matmul %1199, %1200, %cst_406 {dimension_numbers = #tpu.dot_dimension_numbers<[1], [0], [0], [1], [0, 0, 1, 1], [], []>} : vector<7x7xf32>, vector<7x8xf32>, vector<7x8xf32> -> vector<7x8xf32>
    %c0_407 = arith.constant 0 : index
    %c8_408 = arith.constant 8 : index
    %1202 = vector.load %arg33[%c0_407, %c8_408] : memref<7x32xf32, #tpu.memory_space<vmem>>, vector<7x8xf32>
    tpu.vector_store %arg33[%c0_407, %c8_408], %1201 {strides = array<i32>} : memref<7x32xf32, #tpu.memory_space<vmem>>, vector<7x8xf32>,
    %1203 = vector.extract_strided_slice %924 {offsets = [0, 16], sizes = [7, 8], strides = [1, 1]} : vector<7x32xf32> to vector<7x8xf32>
    %1204 = vector.extract_strided_slice %917 {offsets = [0, 16], sizes = [7, 8], strides = [1, 1]} : vector<7x32xf32> to vector<7x8xf32>
    %cst_409 = arith.constant dense<0.000000e+00> : vector<7x7xf32>
    %1205 = tpu.matmul %1203, %1204, %cst_409 {dimension_numbers = #tpu.dot_dimension_numbers<[1], [1], [0], [0], [0, 0, 1, 0], [], []>} : vector<7x8xf32>, vector<7x8xf32>, vector<7x7xf32> -> vector<7x7xf32>
    %1206 = vector.extract_strided_slice %928 {offsets = [0, 16], sizes = [7, 8], strides = [1, 1]} : vector<7x32xf32> to vector<7x8xf32>
    %1207 = vector.extract_strided_slice %920 {offsets = [0, 16], sizes = [7, 8], strides = [1, 1]} : vector<7x32xf32> to vector<7x8xf32>
    %cst_410 = arith.constant dense<0.000000e+00> : vector<7x7xf32>
    %1208 = tpu.matmul %1206, %1207, %cst_410 {dimension_numbers = #tpu.dot_dimension_numbers<[1], [1], [0], [0], [0, 0, 1, 0], [], []>} : vector<7x8xf32>, vector<7x8xf32>, vector<7x7xf32> -> vector<7x7xf32>
    %cst_411 = arith.constant 0.000000e+00 : f32
    %1209 = vector.broadcast %cst_411 : f32 to vector<7x7xf32>
    %c-6_i32_412 = arith.constant -6 : i32
    %1210 = vector.broadcast %c-6_i32_412 : i32 to vector<7x7xi32>
    %1211 = arith.cmpi eq, %6, %1210 : vector<7x7xi32>
    %1212 = vector.extract_strided_slice %1208 {offsets = [0, 0], sizes = [7, 1], strides = [1, 1]} : vector<7x7xf32> to vector<7x1xf32>
    %cst_413 = arith.constant 0.000000e+00 : f32
    %1213 = vector.shape_cast %1212 : vector<7x1xf32> to vector<7x1xf32>
    %1214 = vector.broadcast %1213 : vector<7x1xf32> to vector<7x7xf32>
    %1215 = vector.broadcast %cst_413 : f32 to vector<7x7xf32>
    %1216 = arith.select %1211, %1214, %1215 : vector<7x7xi1>, vector<7x7xf32>
    %1217 = arith.addf %1209, %1216 : vector<7x7xf32>
    %c-5_i32_414 = arith.constant -5 : i32
    %1218 = vector.broadcast %c-5_i32_414 : i32 to vector<7x7xi32>
    %1219 = arith.cmpi eq, %6, %1218 : vector<7x7xi32>
    %1220 = vector.extract_strided_slice %1208 {offsets = [0, 1], sizes = [7, 1], strides = [1, 1]} : vector<7x7xf32> to vector<7x1xf32>
    %cst_415 = arith.constant 0.000000e+00 : f32
    %1221 = vector.shape_cast %1220 : vector<7x1xf32> to vector<7x1xf32>
    %1222 = vector.broadcast %1221 : vector<7x1xf32> to vector<7x7xf32>
    %1223 = vector.broadcast %cst_415 : f32 to vector<7x7xf32>
    %1224 = arith.select %1219, %1222, %1223 : vector<7x7xi1>, vector<7x7xf32>
    %1225 = arith.addf %1217, %1224 : vector<7x7xf32>
    %c-4_i32_416 = arith.constant -4 : i32
    %1226 = vector.broadcast %c-4_i32_416 : i32 to vector<7x7xi32>
    %1227 = arith.cmpi eq, %6, %1226 : vector<7x7xi32>
    %1228 = vector.extract_strided_slice %1208 {offsets = [0, 2], sizes = [7, 1], strides = [1, 1]} : vector<7x7xf32> to vector<7x1xf32>
    %cst_417 = arith.constant 0.000000e+00 : f32
    %1229 = vector.shape_cast %1228 : vector<7x1xf32> to vector<7x1xf32>
    %1230 = vector.broadcast %1229 : vector<7x1xf32> to vector<7x7xf32>
    %1231 = vector.broadcast %cst_417 : f32 to vector<7x7xf32>
    %1232 = arith.select %1227, %1230, %1231 : vector<7x7xi1>, vector<7x7xf32>
    %1233 = arith.addf %1225, %1232 : vector<7x7xf32>
    %c-3_i32_418 = arith.constant -3 : i32
    %1234 = vector.broadcast %c-3_i32_418 : i32 to vector<7x7xi32>
    %1235 = arith.cmpi eq, %6, %1234 : vector<7x7xi32>
    %1236 = vector.extract_strided_slice %1208 {offsets = [0, 3], sizes = [7, 1], strides = [1, 1]} : vector<7x7xf32> to vector<7x1xf32>
    %cst_419 = arith.constant 0.000000e+00 : f32
    %1237 = vector.shape_cast %1236 : vector<7x1xf32> to vector<7x1xf32>
    %1238 = vector.broadcast %1237 : vector<7x1xf32> to vector<7x7xf32>
    %1239 = vector.broadcast %cst_419 : f32 to vector<7x7xf32>
    %1240 = arith.select %1235, %1238, %1239 : vector<7x7xi1>, vector<7x7xf32>
    %1241 = arith.addf %1233, %1240 : vector<7x7xf32>
    %c-2_i32_420 = arith.constant -2 : i32
    %1242 = vector.broadcast %c-2_i32_420 : i32 to vector<7x7xi32>
    %1243 = arith.cmpi eq, %6, %1242 : vector<7x7xi32>
    %1244 = vector.extract_strided_slice %1208 {offsets = [0, 4], sizes = [7, 1], strides = [1, 1]} : vector<7x7xf32> to vector<7x1xf32>
    %cst_421 = arith.constant 0.000000e+00 : f32
    %1245 = vector.shape_cast %1244 : vector<7x1xf32> to vector<7x1xf32>
    %1246 = vector.broadcast %1245 : vector<7x1xf32> to vector<7x7xf32>
    %1247 = vector.broadcast %cst_421 : f32 to vector<7x7xf32>
    %1248 = arith.select %1243, %1246, %1247 : vector<7x7xi1>, vector<7x7xf32>
    %1249 = arith.addf %1241, %1248 : vector<7x7xf32>
    %c-1_i32_422 = arith.constant -1 : i32
    %1250 = vector.broadcast %c-1_i32_422 : i32 to vector<7x7xi32>
    %1251 = arith.cmpi eq, %6, %1250 : vector<7x7xi32>
    %1252 = vector.extract_strided_slice %1208 {offsets = [0, 5], sizes = [7, 1], strides = [1, 1]} : vector<7x7xf32> to vector<7x1xf32>
    %cst_423 = arith.constant 0.000000e+00 : f32
    %1253 = vector.shape_cast %1252 : vector<7x1xf32> to vector<7x1xf32>
    %1254 = vector.broadcast %1253 : vector<7x1xf32> to vector<7x7xf32>
    %1255 = vector.broadcast %cst_423 : f32 to vector<7x7xf32>
    %1256 = arith.select %1251, %1254, %1255 : vector<7x7xi1>, vector<7x7xf32>
    %1257 = arith.addf %1249, %1256 : vector<7x7xf32>
    %c0_i32_424 = arith.constant 0 : i32
    %1258 = vector.broadcast %c0_i32_424 : i32 to vector<7x7xi32>
    %1259 = arith.cmpi eq, %6, %1258 : vector<7x7xi32>
    %1260 = vector.extract_strided_slice %1208 {offsets = [0, 6], sizes = [7, 1], strides = [1, 1]} : vector<7x7xf32> to vector<7x1xf32>
    %cst_425 = arith.constant 0.000000e+00 : f32
    %1261 = vector.shape_cast %1260 : vector<7x1xf32> to vector<7x1xf32>
    %1262 = vector.broadcast %1261 : vector<7x1xf32> to vector<7x7xf32>
    %1263 = vector.broadcast %cst_425 : f32 to vector<7x7xf32>
    %1264 = arith.select %1259, %1262, %1263 : vector<7x7xi1>, vector<7x7xf32>
    %1265 = arith.addf %1257, %1264 : vector<7x7xf32>
    %1266 = vector.extract_strided_slice %1208 {offsets = [1, 0], sizes = [6, 1], strides = [1, 1]} : vector<7x7xf32> to vector<6x1xf32>
    %cst_426 = arith.constant 0.000000e+00 : f32
    %1267 = vector.broadcast %cst_426 : f32 to vector<1x1xf32>
    %1268 = tpu.concatenate %1266, %1267 in 0 : vector<6x1xf32>, vector<1x1xf32> -> vector<7x1xf32>
    %c2_i32_427 = arith.constant 2 : i32
    %1269 = vector.broadcast %c2_i32_427 : i32 to vector<7x7xi32>
    %1270 = arith.cmpi eq, %6, %1269 : vector<7x7xi32>
    %cst_428 = arith.constant 0.000000e+00 : f32
    %1271 = vector.shape_cast %1268 : vector<7x1xf32> to vector<7x1xf32>
    %1272 = vector.broadcast %1271 : vector<7x1xf32> to vector<7x7xf32>
    %1273 = vector.broadcast %cst_428 : f32 to vector<7x7xf32>
    %1274 = arith.select %1270, %1272, %1273 : vector<7x7xi1>, vector<7x7xf32>
    %1275 = arith.addf %1265, %1274 : vector<7x7xf32>
    %1276 = vector.extract_strided_slice %1208 {offsets = [1, 1], sizes = [6, 1], strides = [1, 1]} : vector<7x7xf32> to vector<6x1xf32>
    %cst_429 = arith.constant 0.000000e+00 : f32
    %1277 = vector.broadcast %cst_429 : f32 to vector<1x1xf32>
    %1278 = tpu.concatenate %1276, %1277 in 0 : vector<6x1xf32>, vector<1x1xf32> -> vector<7x1xf32>
    %c3_i32_430 = arith.constant 3 : i32
    %1279 = vector.broadcast %c3_i32_430 : i32 to vector<7x7xi32>
    %1280 = arith.cmpi eq, %6, %1279 : vector<7x7xi32>
    %cst_431 = arith.constant 0.000000e+00 : f32
    %1281 = vector.shape_cast %1278 : vector<7x1xf32> to vector<7x1xf32>
    %1282 = vector.broadcast %1281 : vector<7x1xf32> to vector<7x7xf32>
    %1283 = vector.broadcast %cst_431 : f32 to vector<7x7xf32>
    %1284 = arith.select %1280, %1282, %1283 : vector<7x7xi1>, vector<7x7xf32>
    %1285 = arith.addf %1275, %1284 : vector<7x7xf32>
    %1286 = vector.extract_strided_slice %1208 {offsets = [1, 2], sizes = [6, 1], strides = [1, 1]} : vector<7x7xf32> to vector<6x1xf32>
    %cst_432 = arith.constant 0.000000e+00 : f32
    %1287 = vector.broadcast %cst_432 : f32 to vector<1x1xf32>
    %1288 = tpu.concatenate %1286, %1287 in 0 : vector<6x1xf32>, vector<1x1xf32> -> vector<7x1xf32>
    %c4_i32_433 = arith.constant 4 : i32
    %1289 = vector.broadcast %c4_i32_433 : i32 to vector<7x7xi32>
    %1290 = arith.cmpi eq, %6, %1289 : vector<7x7xi32>
    %cst_434 = arith.constant 0.000000e+00 : f32
    %1291 = vector.shape_cast %1288 : vector<7x1xf32> to vector<7x1xf32>
    %1292 = vector.broadcast %1291 : vector<7x1xf32> to vector<7x7xf32>
    %1293 = vector.broadcast %cst_434 : f32 to vector<7x7xf32>
    %1294 = arith.select %1290, %1292, %1293 : vector<7x7xi1>, vector<7x7xf32>
    %1295 = arith.addf %1285, %1294 : vector<7x7xf32>
    %1296 = vector.extract_strided_slice %1208 {offsets = [1, 3], sizes = [6, 1], strides = [1, 1]} : vector<7x7xf32> to vector<6x1xf32>
    %cst_435 = arith.constant 0.000000e+00 : f32
    %1297 = vector.broadcast %cst_435 : f32 to vector<1x1xf32>
    %1298 = tpu.concatenate %1296, %1297 in 0 : vector<6x1xf32>, vector<1x1xf32> -> vector<7x1xf32>
    %c5_i32_436 = arith.constant 5 : i32
    %1299 = vector.broadcast %c5_i32_436 : i32 to vector<7x7xi32>
    %1300 = arith.cmpi eq, %6, %1299 : vector<7x7xi32>
    %cst_437 = arith.constant 0.000000e+00 : f32
    %1301 = vector.shape_cast %1298 : vector<7x1xf32> to vector<7x1xf32>
    %1302 = vector.broadcast %1301 : vector<7x1xf32> to vector<7x7xf32>
    %1303 = vector.broadcast %cst_437 : f32 to vector<7x7xf32>
    %1304 = arith.select %1300, %1302, %1303 : vector<7x7xi1>, vector<7x7xf32>
    %1305 = arith.addf %1295, %1304 : vector<7x7xf32>
    %1306 = vector.extract_strided_slice %1208 {offsets = [1, 4], sizes = [6, 1], strides = [1, 1]} : vector<7x7xf32> to vector<6x1xf32>
    %cst_438 = arith.constant 0.000000e+00 : f32
    %1307 = vector.broadcast %cst_438 : f32 to vector<1x1xf32>
    %1308 = tpu.concatenate %1306, %1307 in 0 : vector<6x1xf32>, vector<1x1xf32> -> vector<7x1xf32>
    %c6_i32_439 = arith.constant 6 : i32
    %1309 = vector.broadcast %c6_i32_439 : i32 to vector<7x7xi32>
    %1310 = arith.cmpi eq, %6, %1309 : vector<7x7xi32>
    %cst_440 = arith.constant 0.000000e+00 : f32
    %1311 = vector.shape_cast %1308 : vector<7x1xf32> to vector<7x1xf32>
    %1312 = vector.broadcast %1311 : vector<7x1xf32> to vector<7x7xf32>
    %1313 = vector.broadcast %cst_440 : f32 to vector<7x7xf32>
    %1314 = arith.select %1310, %1312, %1313 : vector<7x7xi1>, vector<7x7xf32>
    %1315 = arith.addf %1305, %1314 : vector<7x7xf32>
    %1316 = arith.addf %1205, %1315 : vector<7x7xf32>
    %cst_441 = arith.constant 0.353553385 : f32
    %1317 = vector.broadcast %cst_441 : f32 to vector<7x7xf32>
    %1318 = arith.mulf %1316, %1317 : vector<7x7xf32>
    %cst_442 = arith.constant -3.40282347E+38 : f32
    %1319 = vector.shape_cast %3 : vector<1x7xi1> to vector<1x7xi1>
    %1320 = vector.broadcast %1319 : vector<1x7xi1> to vector<7x7xi1>
    %1321 = vector.broadcast %cst_442 : f32 to vector<7x7xf32>
    %1322 = arith.select %1320, %1318, %1321 : vector<7x7xi1>, vector<7x7xf32>
    %cst_443 = arith.constant dense<0xFF800000> : vector<7xf32>
    %1323 = vector.multi_reduction <maximumf>, %1322, %cst_443 [1] : vector<7x7xf32> to vector<7xf32>
    %1324 = vector.shape_cast %1323 : vector<7xf32> to vector<7x1xf32>
    %1325 = vector.broadcast %1324 : vector<7x1xf32> to vector<7x7xf32>
    %1326 = arith.subf %1322, %1325 : vector<7x7xf32>
    %1327 = math.exp %1326 : vector<7x7xf32>
    %cst_444 = arith.constant dense<0.000000e+00> : vector<7xf32>
    %1328 = vector.multi_reduction <add>, %1327, %cst_444 [1] : vector<7x7xf32> to vector<7xf32>
    %1329 = vector.shape_cast %1328 : vector<7xf32> to vector<7x1xf32>
    %1330 = tpu.reciprocal %1329 {approx = true} : vector<7x1xf32> -> vector<7x1xf32>
    %1331 = vector.broadcast %1330 : vector<7x1xf32> to vector<7x7xf32>
    %1332 = arith.mulf %1327, %1331 : vector<7x7xf32>
    %cst_445 = arith.constant 0.000000e+00 : f32
    %1333 = vector.shape_cast %3 : vector<1x7xi1> to vector<1x7xi1>
    %1334 = vector.broadcast %1333 : vector<1x7xi1> to vector<7x7xi1>
    %1335 = vector.broadcast %cst_445 : f32 to vector<7x7xf32>
    %1336 = arith.select %1334, %1332, %1335 : vector<7x7xi1>, vector<7x7xf32>
    %1337 = vector.extract_strided_slice %918 {offsets = [0, 16], sizes = [7, 8], strides = [1, 1]} : vector<7x32xf32> to vector<7x8xf32>
    %cst_446 = arith.constant dense<0.000000e+00> : vector<7x8xf32>
    %1338 = tpu.matmul %1336, %1337, %cst_446 {dimension_numbers = #tpu.dot_dimension_numbers<[1], [0], [0], [1], [0, 0, 1, 1], [], []>} : vector<7x7xf32>, vector<7x8xf32>, vector<7x8xf32> -> vector<7x8xf32>
    %c0_447 = arith.constant 0 : index
    %c16_448 = arith.constant 16 : index
    %1339 = vector.load %arg33[%c0_447, %c16_448] : memref<7x32xf32, #tpu.memory_space<vmem>>, vector<7x8xf32>
    tpu.vector_store %arg33[%c0_447, %c16_448], %1338 {strides = array<i32>} : memref<7x32xf32, #tpu.memory_space<vmem>>, vector<7x8xf32>,
    %1340 = vector.extract_strided_slice %924 {offsets = [0, 24], sizes = [7, 8], strides = [1, 1]} : vector<7x32xf32> to vector<7x8xf32>
    %1341 = vector.extract_strided_slice %917 {offsets = [0, 24], sizes = [7, 8], strides = [1, 1]} : vector<7x32xf32> to vector<7x8xf32>
    %cst_449 = arith.constant dense<0.000000e+00> : vector<7x7xf32>
    %1342 = tpu.matmul %1340, %1341, %cst_449 {dimension_numbers = #tpu.dot_dimension_numbers<[1], [1], [0], [0], [0, 0, 1, 0], [], []>} : vector<7x8xf32>, vector<7x8xf32>, vector<7x7xf32> -> vector<7x7xf32>
    %1343 = vector.extract_strided_slice %928 {offsets = [0, 24], sizes = [7, 8], strides = [1, 1]} : vector<7x32xf32> to vector<7x8xf32>
    %1344 = vector.extract_strided_slice %920 {offsets = [0, 24], sizes = [7, 8], strides = [1, 1]} : vector<7x32xf32> to vector<7x8xf32>
    %cst_450 = arith.constant dense<0.000000e+00> : vector<7x7xf32>
    %1345 = tpu.matmul %1343, %1344, %cst_450 {dimension_numbers = #tpu.dot_dimension_numbers<[1], [1], [0], [0], [0, 0, 1, 0], [], []>} : vector<7x8xf32>, vector<7x8xf32>, vector<7x7xf32> -> vector<7x7xf32>
    %cst_451 = arith.constant 0.000000e+00 : f32
    %1346 = vector.broadcast %cst_451 : f32 to vector<7x7xf32>
    %c-6_i32_452 = arith.constant -6 : i32
    %1347 = vector.broadcast %c-6_i32_452 : i32 to vector<7x7xi32>
    %1348 = arith.cmpi eq, %6, %1347 : vector<7x7xi32>
    %1349 = vector.extract_strided_slice %1345 {offsets = [0, 0], sizes = [7, 1], strides = [1, 1]} : vector<7x7xf32> to vector<7x1xf32>
    %cst_453 = arith.constant 0.000000e+00 : f32
    %1350 = vector.shape_cast %1349 : vector<7x1xf32> to vector<7x1xf32>
    %1351 = vector.broadcast %1350 : vector<7x1xf32> to vector<7x7xf32>
    %1352 = vector.broadcast %cst_453 : f32 to vector<7x7xf32>
    %1353 = arith.select %1348, %1351, %1352 : vector<7x7xi1>, vector<7x7xf32>
    %1354 = arith.addf %1346, %1353 : vector<7x7xf32>
    %c-5_i32_454 = arith.constant -5 : i32
    %1355 = vector.broadcast %c-5_i32_454 : i32 to vector<7x7xi32>
    %1356 = arith.cmpi eq, %6, %1355 : vector<7x7xi32>
    %1357 = vector.extract_strided_slice %1345 {offsets = [0, 1], sizes = [7, 1], strides = [1, 1]} : vector<7x7xf32> to vector<7x1xf32>
    %cst_455 = arith.constant 0.000000e+00 : f32
    %1358 = vector.shape_cast %1357 : vector<7x1xf32> to vector<7x1xf32>
    %1359 = vector.broadcast %1358 : vector<7x1xf32> to vector<7x7xf32>
    %1360 = vector.broadcast %cst_455 : f32 to vector<7x7xf32>
    %1361 = arith.select %1356, %1359, %1360 : vector<7x7xi1>, vector<7x7xf32>
    %1362 = arith.addf %1354, %1361 : vector<7x7xf32>
    %c-4_i32_456 = arith.constant -4 : i32
    %1363 = vector.broadcast %c-4_i32_456 : i32 to vector<7x7xi32>
    %1364 = arith.cmpi eq, %6, %1363 : vector<7x7xi32>
    %1365 = vector.extract_strided_slice %1345 {offsets = [0, 2], sizes = [7, 1], strides = [1, 1]} : vector<7x7xf32> to vector<7x1xf32>
    %cst_457 = arith.constant 0.000000e+00 : f32
    %1366 = vector.shape_cast %1365 : vector<7x1xf32> to vector<7x1xf32>
    %1367 = vector.broadcast %1366 : vector<7x1xf32> to vector<7x7xf32>
    %1368 = vector.broadcast %cst_457 : f32 to vector<7x7xf32>
    %1369 = arith.select %1364, %1367, %1368 : vector<7x7xi1>, vector<7x7xf32>
    %1370 = arith.addf %1362, %1369 : vector<7x7xf32>
    %c-3_i32_458 = arith.constant -3 : i32
    %1371 = vector.broadcast %c-3_i32_458 : i32 to vector<7x7xi32>
    %1372 = arith.cmpi eq, %6, %1371 : vector<7x7xi32>
    %1373 = vector.extract_strided_slice %1345 {offsets = [0, 3], sizes = [7, 1], strides = [1, 1]} : vector<7x7xf32> to vector<7x1xf32>
    %cst_459 = arith.constant 0.000000e+00 : f32
    %1374 = vector.shape_cast %1373 : vector<7x1xf32> to vector<7x1xf32>
    %1375 = vector.broadcast %1374 : vector<7x1xf32> to vector<7x7xf32>
    %1376 = vector.broadcast %cst_459 : f32 to vector<7x7xf32>
    %1377 = arith.select %1372, %1375, %1376 : vector<7x7xi1>, vector<7x7xf32>
    %1378 = arith.addf %1370, %1377 : vector<7x7xf32>
    %c-2_i32_460 = arith.constant -2 : i32
    %1379 = vector.broadcast %c-2_i32_460 : i32 to vector<7x7xi32>
    %1380 = arith.cmpi eq, %6, %1379 : vector<7x7xi32>
    %1381 = vector.extract_strided_slice %1345 {offsets = [0, 4], sizes = [7, 1], strides = [1, 1]} : vector<7x7xf32> to vector<7x1xf32>
    %cst_461 = arith.constant 0.000000e+00 : f32
    %1382 = vector.shape_cast %1381 : vector<7x1xf32> to vector<7x1xf32>
    %1383 = vector.broadcast %1382 : vector<7x1xf32> to vector<7x7xf32>
    %1384 = vector.broadcast %cst_461 : f32 to vector<7x7xf32>
    %1385 = arith.select %1380, %1383, %1384 : vector<7x7xi1>, vector<7x7xf32>
    %1386 = arith.addf %1378, %1385 : vector<7x7xf32>
    %c-1_i32_462 = arith.constant -1 : i32
    %1387 = vector.broadcast %c-1_i32_462 : i32 to vector<7x7xi32>
    %1388 = arith.cmpi eq, %6, %1387 : vector<7x7xi32>
    %1389 = vector.extract_strided_slice %1345 {offsets = [0, 5], sizes = [7, 1], strides = [1, 1]} : vector<7x7xf32> to vector<7x1xf32>
    %cst_463 = arith.constant 0.000000e+00 : f32
    %1390 = vector.shape_cast %1389 : vector<7x1xf32> to vector<7x1xf32>
    %1391 = vector.broadcast %1390 : vector<7x1xf32> to vector<7x7xf32>
    %1392 = vector.broadcast %cst_463 : f32 to vector<7x7xf32>
    %1393 = arith.select %1388, %1391, %1392 : vector<7x7xi1>, vector<7x7xf32>
    %1394 = arith.addf %1386, %1393 : vector<7x7xf32>
    %c0_i32_464 = arith.constant 0 : i32
    %1395 = vector.broadcast %c0_i32_464 : i32 to vector<7x7xi32>
    %1396 = arith.cmpi eq, %6, %1395 : vector<7x7xi32>
    %1397 = vector.extract_strided_slice %1345 {offsets = [0, 6], sizes = [7, 1], strides = [1, 1]} : vector<7x7xf32> to vector<7x1xf32>
    %cst_465 = arith.constant 0.000000e+00 : f32
    %1398 = vector.shape_cast %1397 : vector<7x1xf32> to vector<7x1xf32>
    %1399 = vector.broadcast %1398 : vector<7x1xf32> to vector<7x7xf32>
    %1400 = vector.broadcast %cst_465 : f32 to vector<7x7xf32>
    %1401 = arith.select %1396, %1399, %1400 : vector<7x7xi1>, vector<7x7xf32>
    %1402 = arith.addf %1394, %1401 : vector<7x7xf32>
    %1403 = vector.extract_strided_slice %1345 {offsets = [1, 0], sizes = [6, 1], strides = [1, 1]} : vector<7x7xf32> to vector<6x1xf32>
    %cst_466 = arith.constant 0.000000e+00 : f32
    %1404 = vector.broadcast %cst_466 : f32 to vector<1x1xf32>
    %1405 = tpu.concatenate %1403, %1404 in 0 : vector<6x1xf32>, vector<1x1xf32> -> vector<7x1xf32>
    %c2_i32_467 = arith.constant 2 : i32
    %1406 = vector.broadcast %c2_i32_467 : i32 to vector<7x7xi32>
    %1407 = arith.cmpi eq, %6, %1406 : vector<7x7xi32>
    %cst_468 = arith.constant 0.000000e+00 : f32
    %1408 = vector.shape_cast %1405 : vector<7x1xf32> to vector<7x1xf32>
    %1409 = vector.broadcast %1408 : vector<7x1xf32> to vector<7x7xf32>
    %1410 = vector.broadcast %cst_468 : f32 to vector<7x7xf32>
    %1411 = arith.select %1407, %1409, %1410 : vector<7x7xi1>, vector<7x7xf32>
    %1412 = arith.addf %1402, %1411 : vector<7x7xf32>
    %1413 = vector.extract_strided_slice %1345 {offsets = [1, 1], sizes = [6, 1], strides = [1, 1]} : vector<7x7xf32> to vector<6x1xf32>
    %cst_469 = arith.constant 0.000000e+00 : f32
    %1414 = vector.broadcast %cst_469 : f32 to vector<1x1xf32>
    %1415 = tpu.concatenate %1413, %1414 in 0 : vector<6x1xf32>, vector<1x1xf32> -> vector<7x1xf32>
    %c3_i32_470 = arith.constant 3 : i32
    %1416 = vector.broadcast %c3_i32_470 : i32 to vector<7x7xi32>
    %1417 = arith.cmpi eq, %6, %1416 : vector<7x7xi32>
    %cst_471 = arith.constant 0.000000e+00 : f32
    %1418 = vector.shape_cast %1415 : vector<7x1xf32> to vector<7x1xf32>
    %1419 = vector.broadcast %1418 : vector<7x1xf32> to vector<7x7xf32>
    %1420 = vector.broadcast %cst_471 : f32 to vector<7x7xf32>
    %1421 = arith.select %1417, %1419, %1420 : vector<7x7xi1>, vector<7x7xf32>
    %1422 = arith.addf %1412, %1421 : vector<7x7xf32>
    %1423 = vector.extract_strided_slice %1345 {offsets = [1, 2], sizes = [6, 1], strides = [1, 1]} : vector<7x7xf32> to vector<6x1xf32>
    %cst_472 = arith.constant 0.000000e+00 : f32
    %1424 = vector.broadcast %cst_472 : f32 to vector<1x1xf32>
    %1425 = tpu.concatenate %1423, %1424 in 0 : vector<6x1xf32>, vector<1x1xf32> -> vector<7x1xf32>
    %c4_i32_473 = arith.constant 4 : i32
    %1426 = vector.broadcast %c4_i32_473 : i32 to vector<7x7xi32>
    %1427 = arith.cmpi eq, %6, %1426 : vector<7x7xi32>
    %cst_474 = arith.constant 0.000000e+00 : f32
    %1428 = vector.shape_cast %1425 : vector<7x1xf32> to vector<7x1xf32>
    %1429 = vector.broadcast %1428 : vector<7x1xf32> to vector<7x7xf32>
    %1430 = vector.broadcast %cst_474 : f32 to vector<7x7xf32>
    %1431 = arith.select %1427, %1429, %1430 : vector<7x7xi1>, vector<7x7xf32>
    %1432 = arith.addf %1422, %1431 : vector<7x7xf32>
    %1433 = vector.extract_strided_slice %1345 {offsets = [1, 3], sizes = [6, 1], strides = [1, 1]} : vector<7x7xf32> to vector<6x1xf32>
    %cst_475 = arith.constant 0.000000e+00 : f32
    %1434 = vector.broadcast %cst_475 : f32 to vector<1x1xf32>
    %1435 = tpu.concatenate %1433, %1434 in 0 : vector<6x1xf32>, vector<1x1xf32> -> vector<7x1xf32>
    %c5_i32_476 = arith.constant 5 : i32
    %1436 = vector.broadcast %c5_i32_476 : i32 to vector<7x7xi32>
    %1437 = arith.cmpi eq, %6, %1436 : vector<7x7xi32>
    %cst_477 = arith.constant 0.000000e+00 : f32
    %1438 = vector.shape_cast %1435 : vector<7x1xf32> to vector<7x1xf32>
    %1439 = vector.broadcast %1438 : vector<7x1xf32> to vector<7x7xf32>
    %1440 = vector.broadcast %cst_477 : f32 to vector<7x7xf32>
    %1441 = arith.select %1437, %1439, %1440 : vector<7x7xi1>, vector<7x7xf32>
    %1442 = arith.addf %1432, %1441 : vector<7x7xf32>
    %1443 = vector.extract_strided_slice %1345 {offsets = [1, 4], sizes = [6, 1], strides = [1, 1]} : vector<7x7xf32> to vector<6x1xf32>
    %cst_478 = arith.constant 0.000000e+00 : f32
    %1444 = vector.broadcast %cst_478 : f32 to vector<1x1xf32>
    %1445 = tpu.concatenate %1443, %1444 in 0 : vector<6x1xf32>, vector<1x1xf32> -> vector<7x1xf32>
    %c6_i32_479 = arith.constant 6 : i32
    %1446 = vector.broadcast %c6_i32_479 : i32 to vector<7x7xi32>
    %1447 = arith.cmpi eq, %6, %1446 : vector<7x7xi32>
    %cst_480 = arith.constant 0.000000e+00 : f32
    %1448 = vector.shape_cast %1445 : vector<7x1xf32> to vector<7x1xf32>
    %1449 = vector.broadcast %1448 : vector<7x1xf32> to vector<7x7xf32>
    %1450 = vector.broadcast %cst_480 : f32 to vector<7x7xf32>
    %1451 = arith.select %1447, %1449, %1450 : vector<7x7xi1>, vector<7x7xf32>
    %1452 = arith.addf %1442, %1451 : vector<7x7xf32>
    %1453 = arith.addf %1342, %1452 : vector<7x7xf32>
    %cst_481 = arith.constant 0.353553385 : f32
    %1454 = vector.broadcast %cst_481 : f32 to vector<7x7xf32>
    %1455 = arith.mulf %1453, %1454 : vector<7x7xf32>
    %cst_482 = arith.constant -3.40282347E+38 : f32
    %1456 = vector.shape_cast %3 : vector<1x7xi1> to vector<1x7xi1>
    %1457 = vector.broadcast %1456 : vector<1x7xi1> to vector<7x7xi1>
    %1458 = vector.broadcast %cst_482 : f32 to vector<7x7xf32>
    %1459 = arith.select %1457, %1455, %1458 : vector<7x7xi1>, vector<7x7xf32>
    %cst_483 = arith.constant dense<0xFF800000> : vector<7xf32>
    %1460 = vector.multi_reduction <maximumf>, %1459, %cst_483 [1] : vector<7x7xf32> to vector<7xf32>
    %1461 = vector.shape_cast %1460 : vector<7xf32> to vector<7x1xf32>
    %1462 = vector.broadcast %1461 : vector<7x1xf32> to vector<7x7xf32>
    %1463 = arith.subf %1459, %1462 : vector<7x7xf32>
    %1464 = math.exp %1463 : vector<7x7xf32>
    %cst_484 = arith.constant dense<0.000000e+00> : vector<7xf32>
    %1465 = vector.multi_reduction <add>, %1464, %cst_484 [1] : vector<7x7xf32> to vector<7xf32>
    %1466 = vector.shape_cast %1465 : vector<7xf32> to vector<7x1xf32>
    %1467 = tpu.reciprocal %1466 {approx = true} : vector<7x1xf32> -> vector<7x1xf32>
    %1468 = vector.broadcast %1467 : vector<7x1xf32> to vector<7x7xf32>
    %1469 = arith.mulf %1464, %1468 : vector<7x7xf32>
    %cst_485 = arith.constant 0.000000e+00 : f32
    %1470 = vector.shape_cast %3 : vector<1x7xi1> to vector<1x7xi1>
    %1471 = vector.broadcast %1470 : vector<1x7xi1> to vector<7x7xi1>
    %1472 = vector.broadcast %cst_485 : f32 to vector<7x7xf32>
    %1473 = arith.select %1471, %1469, %1472 : vector<7x7xi1>, vector<7x7xf32>
    %1474 = vector.extract_strided_slice %918 {offsets = [0, 24], sizes = [7, 8], strides = [1, 1]} : vector<7x32xf32> to vector<7x8xf32>
    %cst_486 = arith.constant dense<0.000000e+00> : vector<7x8xf32>
    %1475 = tpu.matmul %1473, %1474, %cst_486 {dimension_numbers = #tpu.dot_dimension_numbers<[1], [0], [0], [1], [0, 0, 1, 1], [], []>} : vector<7x7xf32>, vector<7x8xf32>, vector<7x8xf32> -> vector<7x8xf32>
    %c0_487 = arith.constant 0 : index
    %c24_488 = arith.constant 24 : index
    %1476 = vector.load %arg33[%c0_487, %c24_488] : memref<7x32xf32, #tpu.memory_space<vmem>>, vector<7x8xf32>
    tpu.vector_store %arg33[%c0_487, %c24_488], %1475 {strides = array<i32>} : memref<7x32xf32, #tpu.memory_space<vmem>>, vector<7x8xf32>,
    %c0_489 = arith.constant 0 : index
    %c0_490 = arith.constant 0 : index
    %1477 = vector.load %arg33[%c0_489, %c0_490] : memref<7x32xf32, #tpu.memory_space<vmem>>, vector<7x32xf32>
    %c1_491 = arith.constant 1 : index
    %c0_492 = arith.constant 0 : index
    %c0_493 = arith.constant 0 : index
    %1478 = vector.load %arg10[%c1_491, %c0_492, %c0_493] : memref<2x32x32xf32, #tpu.memory_space<vmem>>, vector<1x32x32xf32>
    %1479 = vector.shape_cast %1478 : vector<1x32x32xf32> to vector<32x32xf32>
    %cst_494 = arith.constant dense<0.000000e+00> : vector<7x32xf32>
    %1480 = tpu.matmul %1477, %1479, %cst_494 {dimension_numbers = #tpu.dot_dimension_numbers<[1], [0], [0], [1], [0, 0, 1, 1], [], []>} : vector<7x32xf32>, vector<32x32xf32>, vector<7x32xf32> -> vector<7x32xf32>
    %1481 = arith.addf %884, %1480 : vector<7x32xf32>
    %c1_495 = arith.constant 1 : index
    %c0_496 = arith.constant 0 : index
    %c0_497 = arith.constant 0 : index
    %1482 = vector.load %arg11[%c1_495, %c0_496, %c0_497] : memref<2x1x32xf32, #tpu.memory_space<vmem>>, vector<1x1x32xf32>
    %1483 = vector.shape_cast %1482 : vector<1x1x32xf32> to vector<1x32xf32>
    %1484 = vector.broadcast %1483 : vector<1x32xf32> to vector<7x32xf32>
    %1485 = arith.addf %1481, %1484 : vector<7x32xf32>
    %c1_498 = arith.constant 1 : index
    %c0_499 = arith.constant 0 : index
    %c0_500 = arith.constant 0 : index
    %1486 = vector.load %arg12[%c1_498, %c0_499, %c0_500] : memref<2x1x32xf32, #tpu.memory_space<vmem>>, vector<1x1x32xf32>
    %1487 = vector.shape_cast %1486 : vector<1x1x32xf32> to vector<1x32xf32>
    %c1_501 = arith.constant 1 : index
    %c0_502 = arith.constant 0 : index
    %c0_503 = arith.constant 0 : index
    %1488 = vector.load %arg13[%c1_501, %c0_502, %c0_503] : memref<2x1x32xf32, #tpu.memory_space<vmem>>, vector<1x1x32xf32>
    %1489 = vector.shape_cast %1488 : vector<1x1x32xf32> to vector<1x32xf32>
    %cst_504 = arith.constant dense<0.000000e+00> : vector<7xf32>
    %1490 = vector.multi_reduction <add>, %1485, %cst_504 [1] : vector<7x32xf32> to vector<7xf32>
    %1491 = vector.shape_cast %1490 : vector<7xf32> to vector<7x1xf32>
    %cst_505 = arith.constant 3.200000e+01 : f32
    %1492 = vector.broadcast %cst_505 : f32 to vector<7x1xf32>
    %1493 = arith.divf %1491, %1492 : vector<7x1xf32>
    %1494 = vector.broadcast %1493 : vector<7x1xf32> to vector<7x32xf32>
    %1495 = arith.subf %1485, %1494 : vector<7x32xf32>
    %1496 = arith.mulf %1495, %1495 : vector<7x32xf32>
    %cst_506 = arith.constant dense<0.000000e+00> : vector<7xf32>
    %1497 = vector.multi_reduction <add>, %1496, %cst_506 [1] : vector<7x32xf32> to vector<7xf32>
    %1498 = vector.shape_cast %1497 : vector<7xf32> to vector<7x1xf32>
    %cst_507 = arith.constant 3.200000e+01 : f32
    %1499 = vector.broadcast %cst_507 : f32 to vector<7x1xf32>
    %1500 = arith.divf %1498, %1499 : vector<7x1xf32>
    %cst_508 = arith.constant 9.99999974E-6 : f32
    %1501 = vector.broadcast %cst_508 : f32 to vector<7x1xf32>
    %1502 = arith.addf %1500, %1501 : vector<7x1xf32>
    %1503 = math.rsqrt %1502 : vector<7x1xf32>
    %1504 = vector.broadcast %1503 : vector<7x1xf32> to vector<7x32xf32>
    %1505 = arith.mulf %1495, %1504 : vector<7x32xf32>
    %1506 = vector.broadcast %1487 : vector<1x32xf32> to vector<7x32xf32>
    %1507 = arith.mulf %1505, %1506 : vector<7x32xf32>
    %1508 = vector.broadcast %1489 : vector<1x32xf32> to vector<7x32xf32>
    %1509 = arith.addf %1507, %1508 : vector<7x32xf32>
    %c1_509 = arith.constant 1 : index
    %c0_510 = arith.constant 0 : index
    %c0_511 = arith.constant 0 : index
    %1510 = vector.load %arg14[%c1_509, %c0_510, %c0_511] : memref<2x32x64xf32, #tpu.memory_space<vmem>>, vector<1x32x64xf32>
    %1511 = vector.shape_cast %1510 : vector<1x32x64xf32> to vector<32x64xf32>
    %cst_512 = arith.constant dense<0.000000e+00> : vector<7x64xf32>
    %1512 = tpu.matmul %1509, %1511, %cst_512 {dimension_numbers = #tpu.dot_dimension_numbers<[1], [0], [0], [1], [0, 0, 1, 1], [], []>} : vector<7x32xf32>, vector<32x64xf32>, vector<7x64xf32> -> vector<7x64xf32>
    %c1_513 = arith.constant 1 : index
    %c0_514 = arith.constant 0 : index
    %c0_515 = arith.constant 0 : index
    %1513 = vector.load %arg15[%c1_513, %c0_514, %c0_515] : memref<2x1x64xf32, #tpu.memory_space<vmem>>, vector<1x1x64xf32>
    %1514 = vector.shape_cast %1513 : vector<1x1x64xf32> to vector<1x64xf32>
    %1515 = vector.broadcast %1514 : vector<1x64xf32> to vector<7x64xf32>
    %1516 = arith.addf %1512, %1515 : vector<7x64xf32>
    %1517 = vector.extract_strided_slice %1516 {offsets = [0, 0], sizes = [7, 32], strides = [1, 1]} : vector<7x64xf32> to vector<7x32xf32>
    %1518 = vector.extract_strided_slice %1516 {offsets = [0, 32], sizes = [7, 32], strides = [1, 1]} : vector<7x64xf32> to vector<7x32xf32>
    %1519 = arith.negf %1518 : vector<7x32xf32>
    %1520 = math.exp %1519 : vector<7x32xf32>
    %cst_516 = arith.constant 1.000000e+00 : f32
    %1521 = vector.broadcast %cst_516 : f32 to vector<7x32xf32>
    %1522 = arith.addf %1521, %1520 : vector<7x32xf32>
    %1523 = arith.divf %1521, %1522 : vector<7x32xf32>
    %1524 = arith.mulf %1517, %1523 : vector<7x32xf32>
    %c1_517 = arith.constant 1 : index
    %c0_518 = arith.constant 0 : index
    %c0_519 = arith.constant 0 : index
    %1525 = vector.load %arg16[%c1_517, %c0_518, %c0_519] : memref<2x7x32xf32, #tpu.memory_space<vmem>>, vector<1x7x32xf32>
    %1526 = vector.shape_cast %1525 : vector<1x7x32xf32> to vector<7x32xf32>
    %cst_520 = arith.constant 0.000000e+00 : f32
    %1527 = vector.broadcast %cst_520 : f32 to vector<7x32xf32>
    %cst_521 = arith.constant 0.000000e+00 : f32
    %1528 = vector.broadcast %cst_521 : f32 to vector<3x32xf32>
    %1529 = vector.extract_strided_slice %1524 {offsets = [0, 0], sizes = [4, 32], strides = [1, 1]} : vector<7x32xf32> to vector<4x32xf32>
    %1530 = tpu.concatenate %1528, %1529 in 0 : vector<3x32xf32>, vector<4x32xf32> -> vector<7x32xf32>
    %cst_522 = arith.constant 0.000000e+00 : f32
    %1531 = vector.shape_cast %16 : vector<7x1xi1> to vector<7x1xi1>
    %1532 = vector.broadcast %1531 : vector<7x1xi1> to vector<7x32xi1>
    %1533 = vector.broadcast %cst_522 : f32 to vector<7x32xf32>
    %1534 = arith.select %1532, %1530, %1533 : vector<7x32xi1>, vector<7x32xf32>
    %1535 = vector.extract_strided_slice %1526 {offsets = [0, 0], sizes = [1, 32], strides = [1, 1]} : vector<7x32xf32> to vector<1x32xf32>
    %1536 = vector.broadcast %1535 : vector<1x32xf32> to vector<7x32xf32>
    %1537 = arith.mulf %1534, %1536 : vector<7x32xf32>
    %1538 = arith.addf %1527, %1537 : vector<7x32xf32>
    %cst_523 = arith.constant 0.000000e+00 : f32
    %1539 = vector.broadcast %cst_523 : f32 to vector<2x32xf32>
    %1540 = vector.extract_strided_slice %1524 {offsets = [0, 0], sizes = [5, 32], strides = [1, 1]} : vector<7x32xf32> to vector<5x32xf32>
    %1541 = tpu.concatenate %1539, %1540 in 0 : vector<2x32xf32>, vector<5x32xf32> -> vector<7x32xf32>
    %cst_524 = arith.constant 0.000000e+00 : f32
    %1542 = vector.shape_cast %25 : vector<7x1xi1> to vector<7x1xi1>
    %1543 = vector.broadcast %1542 : vector<7x1xi1> to vector<7x32xi1>
    %1544 = vector.broadcast %cst_524 : f32 to vector<7x32xf32>
    %1545 = arith.select %1543, %1541, %1544 : vector<7x32xi1>, vector<7x32xf32>
    %1546 = vector.extract_strided_slice %1526 {offsets = [1, 0], sizes = [1, 32], strides = [1, 1]} : vector<7x32xf32> to vector<1x32xf32>
    %1547 = vector.broadcast %1546 : vector<1x32xf32> to vector<7x32xf32>
    %1548 = arith.mulf %1545, %1547 : vector<7x32xf32>
    %1549 = arith.addf %1538, %1548 : vector<7x32xf32>
    %cst_525 = arith.constant 0.000000e+00 : f32
    %1550 = vector.broadcast %cst_525 : f32 to vector<1x32xf32>
    %1551 = vector.extract_strided_slice %1524 {offsets = [0, 0], sizes = [6, 32], strides = [1, 1]} : vector<7x32xf32> to vector<6x32xf32>
    %1552 = tpu.concatenate %1550, %1551 in 0 : vector<1x32xf32>, vector<6x32xf32> -> vector<7x32xf32>
    %cst_526 = arith.constant 0.000000e+00 : f32
    %1553 = vector.shape_cast %34 : vector<7x1xi1> to vector<7x1xi1>
    %1554 = vector.broadcast %1553 : vector<7x1xi1> to vector<7x32xi1>
    %1555 = vector.broadcast %cst_526 : f32 to vector<7x32xf32>
    %1556 = arith.select %1554, %1552, %1555 : vector<7x32xi1>, vector<7x32xf32>
    %1557 = vector.extract_strided_slice %1526 {offsets = [2, 0], sizes = [1, 32], strides = [1, 1]} : vector<7x32xf32> to vector<1x32xf32>
    %1558 = vector.broadcast %1557 : vector<1x32xf32> to vector<7x32xf32>
    %1559 = arith.mulf %1556, %1558 : vector<7x32xf32>
    %1560 = arith.addf %1549, %1559 : vector<7x32xf32>
    %cst_527 = arith.constant 0.000000e+00 : f32
    %1561 = vector.shape_cast %43 : vector<7x1xi1> to vector<7x1xi1>
    %1562 = vector.broadcast %1561 : vector<7x1xi1> to vector<7x32xi1>
    %1563 = vector.broadcast %cst_527 : f32 to vector<7x32xf32>
    %1564 = arith.select %1562, %1524, %1563 : vector<7x32xi1>, vector<7x32xf32>
    %1565 = vector.extract_strided_slice %1526 {offsets = [3, 0], sizes = [1, 32], strides = [1, 1]} : vector<7x32xf32> to vector<1x32xf32>
    %1566 = vector.broadcast %1565 : vector<1x32xf32> to vector<7x32xf32>
    %1567 = arith.mulf %1564, %1566 : vector<7x32xf32>
    %1568 = arith.addf %1560, %1567 : vector<7x32xf32>
    %1569 = vector.extract_strided_slice %1524 {offsets = [1, 0], sizes = [6, 32], strides = [1, 1]} : vector<7x32xf32> to vector<6x32xf32>
    %cst_528 = arith.constant 0.000000e+00 : f32
    %1570 = vector.broadcast %cst_528 : f32 to vector<1x32xf32>
    %1571 = tpu.concatenate %1569, %1570 in 0 : vector<6x32xf32>, vector<1x32xf32> -> vector<7x32xf32>
    %cst_529 = arith.constant 0.000000e+00 : f32
    %1572 = vector.shape_cast %52 : vector<7x1xi1> to vector<7x1xi1>
    %1573 = vector.broadcast %1572 : vector<7x1xi1> to vector<7x32xi1>
    %1574 = vector.broadcast %cst_529 : f32 to vector<7x32xf32>
    %1575 = arith.select %1573, %1571, %1574 : vector<7x32xi1>, vector<7x32xf32>
    %1576 = vector.extract_strided_slice %1526 {offsets = [4, 0], sizes = [1, 32], strides = [1, 1]} : vector<7x32xf32> to vector<1x32xf32>
    %1577 = vector.broadcast %1576 : vector<1x32xf32> to vector<7x32xf32>
    %1578 = arith.mulf %1575, %1577 : vector<7x32xf32>
    %1579 = arith.addf %1568, %1578 : vector<7x32xf32>
    %1580 = vector.extract_strided_slice %1524 {offsets = [2, 0], sizes = [5, 32], strides = [1, 1]} : vector<7x32xf32> to vector<5x32xf32>
    %cst_530 = arith.constant 0.000000e+00 : f32
    %1581 = vector.broadcast %cst_530 : f32 to vector<2x32xf32>
    %1582 = tpu.concatenate %1580, %1581 in 0 : vector<5x32xf32>, vector<2x32xf32> -> vector<7x32xf32>
    %cst_531 = arith.constant 0.000000e+00 : f32
    %1583 = vector.shape_cast %61 : vector<7x1xi1> to vector<7x1xi1>
    %1584 = vector.broadcast %1583 : vector<7x1xi1> to vector<7x32xi1>
    %1585 = vector.broadcast %cst_531 : f32 to vector<7x32xf32>
    %1586 = arith.select %1584, %1582, %1585 : vector<7x32xi1>, vector<7x32xf32>
    %1587 = vector.extract_strided_slice %1526 {offsets = [5, 0], sizes = [1, 32], strides = [1, 1]} : vector<7x32xf32> to vector<1x32xf32>
    %1588 = vector.broadcast %1587 : vector<1x32xf32> to vector<7x32xf32>
    %1589 = arith.mulf %1586, %1588 : vector<7x32xf32>
    %1590 = arith.addf %1579, %1589 : vector<7x32xf32>
    %1591 = vector.extract_strided_slice %1524 {offsets = [3, 0], sizes = [4, 32], strides = [1, 1]} : vector<7x32xf32> to vector<4x32xf32>
    %cst_532 = arith.constant 0.000000e+00 : f32
    %1592 = vector.broadcast %cst_532 : f32 to vector<3x32xf32>
    %1593 = tpu.concatenate %1591, %1592 in 0 : vector<4x32xf32>, vector<3x32xf32> -> vector<7x32xf32>
    %cst_533 = arith.constant 0.000000e+00 : f32
    %1594 = vector.shape_cast %70 : vector<7x1xi1> to vector<7x1xi1>
    %1595 = vector.broadcast %1594 : vector<7x1xi1> to vector<7x32xi1>
    %1596 = vector.broadcast %cst_533 : f32 to vector<7x32xf32>
    %1597 = arith.select %1595, %1593, %1596 : vector<7x32xi1>, vector<7x32xf32>
    %1598 = vector.extract_strided_slice %1526 {offsets = [6, 0], sizes = [1, 32], strides = [1, 1]} : vector<7x32xf32> to vector<1x32xf32>
    %1599 = vector.broadcast %1598 : vector<1x32xf32> to vector<7x32xf32>
    %1600 = arith.mulf %1597, %1599 : vector<7x32xf32>
    %1601 = arith.addf %1590, %1600 : vector<7x32xf32>
    %c1_534 = arith.constant 1 : index
    %c0_535 = arith.constant 0 : index
    %c0_536 = arith.constant 0 : index
    %1602 = vector.load %arg17[%c1_534, %c0_535, %c0_536] : memref<2x1x32xf32, #tpu.memory_space<vmem>>, vector<1x1x32xf32>
    %1603 = vector.shape_cast %1602 : vector<1x1x32xf32> to vector<1x32xf32>
    %1604 = vector.broadcast %1603 : vector<1x32xf32> to vector<7x32xf32>
    %1605 = arith.addf %1601, %1604 : vector<7x32xf32>
    %c1_537 = arith.constant 1 : index
    %c0_538 = arith.constant 0 : index
    %c0_539 = arith.constant 0 : index
    %1606 = vector.load %arg18[%c1_537, %c0_538, %c0_539] : memref<2x1x32xf32, #tpu.memory_space<vmem>>, vector<1x1x32xf32>
    %1607 = vector.shape_cast %1606 : vector<1x1x32xf32> to vector<1x32xf32>
    %1608 = vector.broadcast %1607 : vector<1x32xf32> to vector<7x32xf32>
    %1609 = arith.mulf %1605, %1608 : vector<7x32xf32>
    %c1_540 = arith.constant 1 : index
    %c0_541 = arith.constant 0 : index
    %c0_542 = arith.constant 0 : index
    %1610 = vector.load %arg19[%c1_540, %c0_541, %c0_542] : memref<2x1x32xf32, #tpu.memory_space<vmem>>, vector<1x1x32xf32>
    %1611 = vector.shape_cast %1610 : vector<1x1x32xf32> to vector<1x32xf32>
    %1612 = vector.broadcast %1611 : vector<1x32xf32> to vector<7x32xf32>
    %1613 = arith.addf %1609, %1612 : vector<7x32xf32>
    %1614 = arith.negf %1613 : vector<7x32xf32>
    %1615 = math.exp %1614 : vector<7x32xf32>
    %cst_543 = arith.constant 1.000000e+00 : f32
    %1616 = vector.broadcast %cst_543 : f32 to vector<7x32xf32>
    %1617 = arith.addf %1616, %1615 : vector<7x32xf32>
    %1618 = arith.divf %1616, %1617 : vector<7x32xf32>
    %1619 = arith.mulf %1613, %1618 : vector<7x32xf32>
    %c1_544 = arith.constant 1 : index
    %c0_545 = arith.constant 0 : index
    %c0_546 = arith.constant 0 : index
    %1620 = vector.load %arg20[%c1_544, %c0_545, %c0_546] : memref<2x32x32xf32, #tpu.memory_space<vmem>>, vector<1x32x32xf32>
    %1621 = vector.shape_cast %1620 : vector<1x32x32xf32> to vector<32x32xf32>
    %cst_547 = arith.constant dense<0.000000e+00> : vector<7x32xf32>
    %1622 = tpu.matmul %1619, %1621, %cst_547 {dimension_numbers = #tpu.dot_dimension_numbers<[1], [0], [0], [1], [0, 0, 1, 1], [], []>} : vector<7x32xf32>, vector<32x32xf32>, vector<7x32xf32> -> vector<7x32xf32>
    %1623 = arith.addf %1485, %1622 : vector<7x32xf32>
    %c1_548 = arith.constant 1 : index
    %c0_549 = arith.constant 0 : index
    %c0_550 = arith.constant 0 : index
    %1624 = vector.load %arg21[%c1_548, %c0_549, %c0_550] : memref<2x1x32xf32, #tpu.memory_space<vmem>>, vector<1x1x32xf32>
    %1625 = vector.shape_cast %1624 : vector<1x1x32xf32> to vector<1x32xf32>
    %1626 = vector.broadcast %1625 : vector<1x32xf32> to vector<7x32xf32>
    %1627 = arith.addf %1623, %1626 : vector<7x32xf32>
    %c1_551 = arith.constant 1 : index
    %c0_552 = arith.constant 0 : index
    %c0_553 = arith.constant 0 : index
    %1628 = vector.load %arg22[%c1_551, %c0_552, %c0_553] : memref<2x1x32xf32, #tpu.memory_space<vmem>>, vector<1x1x32xf32>
    %1629 = vector.shape_cast %1628 : vector<1x1x32xf32> to vector<1x32xf32>
    %c1_554 = arith.constant 1 : index
    %c0_555 = arith.constant 0 : index
    %c0_556 = arith.constant 0 : index
    %1630 = vector.load %arg23[%c1_554, %c0_555, %c0_556] : memref<2x1x32xf32, #tpu.memory_space<vmem>>, vector<1x1x32xf32>
    %1631 = vector.shape_cast %1630 : vector<1x1x32xf32> to vector<1x32xf32>
    %cst_557 = arith.constant dense<0.000000e+00> : vector<7xf32>
    %1632 = vector.multi_reduction <add>, %1627, %cst_557 [1] : vector<7x32xf32> to vector<7xf32>
    %1633 = vector.shape_cast %1632 : vector<7xf32> to vector<7x1xf32>
    %cst_558 = arith.constant 3.200000e+01 : f32
    %1634 = vector.broadcast %cst_558 : f32 to vector<7x1xf32>
    %1635 = arith.divf %1633, %1634 : vector<7x1xf32>
    %1636 = vector.broadcast %1635 : vector<7x1xf32> to vector<7x32xf32>
    %1637 = arith.subf %1627, %1636 : vector<7x32xf32>
    %1638 = arith.mulf %1637, %1637 : vector<7x32xf32>
    %cst_559 = arith.constant dense<0.000000e+00> : vector<7xf32>
    %1639 = vector.multi_reduction <add>, %1638, %cst_559 [1] : vector<7x32xf32> to vector<7xf32>
    %1640 = vector.shape_cast %1639 : vector<7xf32> to vector<7x1xf32>
    %cst_560 = arith.constant 3.200000e+01 : f32
    %1641 = vector.broadcast %cst_560 : f32 to vector<7x1xf32>
    %1642 = arith.divf %1640, %1641 : vector<7x1xf32>
    %cst_561 = arith.constant 9.99999974E-6 : f32
    %1643 = vector.broadcast %cst_561 : f32 to vector<7x1xf32>
    %1644 = arith.addf %1642, %1643 : vector<7x1xf32>
    %1645 = math.rsqrt %1644 : vector<7x1xf32>
    %1646 = vector.broadcast %1645 : vector<7x1xf32> to vector<7x32xf32>
    %1647 = arith.mulf %1637, %1646 : vector<7x32xf32>
    %1648 = vector.broadcast %1629 : vector<1x32xf32> to vector<7x32xf32>
    %1649 = arith.mulf %1647, %1648 : vector<7x32xf32>
    %1650 = vector.broadcast %1631 : vector<1x32xf32> to vector<7x32xf32>
    %1651 = arith.addf %1649, %1650 : vector<7x32xf32>
    %c1_562 = arith.constant 1 : index
    %c0_563 = arith.constant 0 : index
    %c0_564 = arith.constant 0 : index
    %1652 = vector.load %arg24[%c1_562, %c0_563, %c0_564] : memref<2x32x64xf32, #tpu.memory_space<vmem>>, vector<1x32x64xf32>
    %1653 = vector.shape_cast %1652 : vector<1x32x64xf32> to vector<32x64xf32>
    %cst_565 = arith.constant dense<0.000000e+00> : vector<7x64xf32>
    %1654 = tpu.matmul %1651, %1653, %cst_565 {dimension_numbers = #tpu.dot_dimension_numbers<[1], [0], [0], [1], [0, 0, 1, 1], [], []>} : vector<7x32xf32>, vector<32x64xf32>, vector<7x64xf32> -> vector<7x64xf32>
    %c1_566 = arith.constant 1 : index
    %c0_567 = arith.constant 0 : index
    %c0_568 = arith.constant 0 : index
    %1655 = vector.load %arg25[%c1_566, %c0_567, %c0_568] : memref<2x1x64xf32, #tpu.memory_space<vmem>>, vector<1x1x64xf32>
    %1656 = vector.shape_cast %1655 : vector<1x1x64xf32> to vector<1x64xf32>
    %1657 = vector.broadcast %1656 : vector<1x64xf32> to vector<7x64xf32>
    %1658 = arith.addf %1654, %1657 : vector<7x64xf32>
    %1659 = arith.negf %1658 : vector<7x64xf32>
    %1660 = math.exp %1659 : vector<7x64xf32>
    %cst_569 = arith.constant 1.000000e+00 : f32
    %1661 = vector.broadcast %cst_569 : f32 to vector<7x64xf32>
    %1662 = arith.addf %1661, %1660 : vector<7x64xf32>
    %1663 = arith.divf %1661, %1662 : vector<7x64xf32>
    %1664 = arith.mulf %1658, %1663 : vector<7x64xf32>
    %c1_570 = arith.constant 1 : index
    %c0_571 = arith.constant 0 : index
    %c0_572 = arith.constant 0 : index
    %1665 = vector.load %arg26[%c1_570, %c0_571, %c0_572] : memref<2x64x32xf32, #tpu.memory_space<vmem>>, vector<1x64x32xf32>
    %1666 = vector.shape_cast %1665 : vector<1x64x32xf32> to vector<64x32xf32>
    %cst_573 = arith.constant dense<0.000000e+00> : vector<7x32xf32>
    %1667 = tpu.matmul %1664, %1666, %cst_573 {dimension_numbers = #tpu.dot_dimension_numbers<[1], [0], [0], [1], [0, 0, 1, 1], [], []>} : vector<7x64xf32>, vector<64x32xf32>, vector<7x32xf32> -> vector<7x32xf32>
    %1668 = arith.addf %1627, %1667 : vector<7x32xf32>
    %c1_574 = arith.constant 1 : index
    %c0_575 = arith.constant 0 : index
    %c0_576 = arith.constant 0 : index
    %1669 = vector.load %arg27[%c1_574, %c0_575, %c0_576] : memref<2x1x32xf32, #tpu.memory_space<vmem>>, vector<1x1x32xf32>
    %1670 = vector.shape_cast %1669 : vector<1x1x32xf32> to vector<1x32xf32>
    %1671 = vector.broadcast %1670 : vector<1x32xf32> to vector<7x32xf32>
    %1672 = arith.addf %1668, %1671 : vector<7x32xf32>
    %c1_577 = arith.constant 1 : index
    %c0_578 = arith.constant 0 : index
    %c0_579 = arith.constant 0 : index
    %1673 = vector.load %arg28[%c1_577, %c0_578, %c0_579] : memref<2x1x32xf32, #tpu.memory_space<vmem>>, vector<1x1x32xf32>
    %1674 = vector.shape_cast %1673 : vector<1x1x32xf32> to vector<1x32xf32>
    %c1_580 = arith.constant 1 : index
    %c0_581 = arith.constant 0 : index
    %c0_582 = arith.constant 0 : index
    %1675 = vector.load %arg29[%c1_580, %c0_581, %c0_582] : memref<2x1x32xf32, #tpu.memory_space<vmem>>, vector<1x1x32xf32>
    %1676 = vector.shape_cast %1675 : vector<1x1x32xf32> to vector<1x32xf32>
    %cst_583 = arith.constant dense<0.000000e+00> : vector<7xf32>
    %1677 = vector.multi_reduction <add>, %1672, %cst_583 [1] : vector<7x32xf32> to vector<7xf32>
    %1678 = vector.shape_cast %1677 : vector<7xf32> to vector<7x1xf32>
    %cst_584 = arith.constant 3.200000e+01 : f32
    %1679 = vector.broadcast %cst_584 : f32 to vector<7x1xf32>
    %1680 = arith.divf %1678, %1679 : vector<7x1xf32>
    %1681 = vector.broadcast %1680 : vector<7x1xf32> to vector<7x32xf32>
    %1682 = arith.subf %1672, %1681 : vector<7x32xf32>
    %1683 = arith.mulf %1682, %1682 : vector<7x32xf32>
    %cst_585 = arith.constant dense<0.000000e+00> : vector<7xf32>
    %1684 = vector.multi_reduction <add>, %1683, %cst_585 [1] : vector<7x32xf32> to vector<7xf32>
    %1685 = vector.shape_cast %1684 : vector<7xf32> to vector<7x1xf32>
    %cst_586 = arith.constant 3.200000e+01 : f32
    %1686 = vector.broadcast %cst_586 : f32 to vector<7x1xf32>
    %1687 = arith.divf %1685, %1686 : vector<7x1xf32>
    %cst_587 = arith.constant 9.99999974E-6 : f32
    %1688 = vector.broadcast %cst_587 : f32 to vector<7x1xf32>
    %1689 = arith.addf %1687, %1688 : vector<7x1xf32>
    %1690 = math.rsqrt %1689 : vector<7x1xf32>
    %1691 = vector.broadcast %1690 : vector<7x1xf32> to vector<7x32xf32>
    %1692 = arith.mulf %1682, %1691 : vector<7x32xf32>
    %1693 = vector.broadcast %1674 : vector<1x32xf32> to vector<7x32xf32>
    %1694 = arith.mulf %1692, %1693 : vector<7x32xf32>
    %1695 = vector.broadcast %1676 : vector<1x32xf32> to vector<7x32xf32>
    %1696 = arith.addf %1694, %1695 : vector<7x32xf32>
    %c0_588 = arith.constant 0 : index
    %c0_589 = arith.constant 0 : index
    %1697 = vector.load %arg30[%c0_588, %c0_589] : memref<1x32xf32, #tpu.memory_space<vmem>>, vector<1x32xf32>
    %c0_590 = arith.constant 0 : index
    %c0_591 = arith.constant 0 : index
    %1698 = vector.load %arg31[%c0_590, %c0_591] : memref<1x32xf32, #tpu.memory_space<vmem>>, vector<1x32xf32>
    %cst_592 = arith.constant dense<0.000000e+00> : vector<7xf32>
    %1699 = vector.multi_reduction <add>, %1696, %cst_592 [1] : vector<7x32xf32> to vector<7xf32>
    %1700 = vector.shape_cast %1699 : vector<7xf32> to vector<7x1xf32>
    %cst_593 = arith.constant 3.200000e+01 : f32
    %1701 = vector.broadcast %cst_593 : f32 to vector<7x1xf32>
    %1702 = arith.divf %1700, %1701 : vector<7x1xf32>
    %1703 = vector.broadcast %1702 : vector<7x1xf32> to vector<7x32xf32>
    %1704 = arith.subf %1696, %1703 : vector<7x32xf32>
    %1705 = arith.mulf %1704, %1704 : vector<7x32xf32>
    %cst_594 = arith.constant dense<0.000000e+00> : vector<7xf32>
    %1706 = vector.multi_reduction <add>, %1705, %cst_594 [1] : vector<7x32xf32> to vector<7xf32>
    %1707 = vector.shape_cast %1706 : vector<7xf32> to vector<7x1xf32>
    %cst_595 = arith.constant 3.200000e+01 : f32
    %1708 = vector.broadcast %cst_595 : f32 to vector<7x1xf32>
    %1709 = arith.divf %1707, %1708 : vector<7x1xf32>
    %cst_596 = arith.constant 9.99999974E-6 : f32
    %1710 = vector.broadcast %cst_596 : f32 to vector<7x1xf32>
    %1711 = arith.addf %1709, %1710 : vector<7x1xf32>
    %1712 = math.rsqrt %1711 : vector<7x1xf32>
    %1713 = vector.broadcast %1712 : vector<7x1xf32> to vector<7x32xf32>
    %1714 = arith.mulf %1704, %1713 : vector<7x32xf32>
    %1715 = vector.broadcast %1697 : vector<1x32xf32> to vector<7x32xf32>
    %1716 = arith.mulf %1714, %1715 : vector<7x32xf32>
    %1717 = vector.broadcast %1698 : vector<1x32xf32> to vector<7x32xf32>
    %1718 = arith.addf %1716, %1717 : vector<7x32xf32>
    %c0_597 = arith.constant 0 : index
    %c0_598 = arith.constant 0 : index
    %c0_599 = arith.constant 0 : index
    %1719 = vector.load %arg32[%c0_597, %c0_598, %c0_599] : memref<1x7x32xf32, #tpu.memory_space<vmem>>, vector<1x7x32xf32>
    %1720 = vector.shape_cast %1719 : vector<1x7x32xf32> to vector<7x32xf32>
    %1721 = vector.shape_cast %1718 : vector<7x32xf32> to vector<1x7x32xf32>
    tpu.vector_store %arg32[%c0_597, %c0_598, %c0_599], %1721 {strides = array<i32>} : memref<1x7x32xf32, #tpu.memory_space<vmem>>, vector<1x7x32xf32>,
    return
  }
  func.func @transform_0(%arg0: i32) -> (i32, i32, i32) {
    %c0_i32 = arith.constant 0 : i32
    %c0_i32_0 = arith.constant 0 : i32
    %c0_i32_1 = arith.constant 0 : i32
    return %arg0, %c0_i32, %c0_i32_0 : i32, i32, i32
  }
  func.func @transform_1(%arg0: i32) -> (i32, i32, i32) {
    %c0_i32 = arith.constant 0 : i32
    %c0_i32_0 = arith.constant 0 : i32
    %c0_i32_1 = arith.constant 0 : i32
    %c0_i32_2 = arith.constant 0 : i32
    return %c0_i32, %c0_i32_0, %c0_i32_1 : i32, i32, i32
  }
  func.func @transform_2(%arg0: i32) -> (i32, i32, i32) {
    %c0_i32 = arith.constant 0 : i32
    %c0_i32_0 = arith.constant 0 : i32
    %c0_i32_1 = arith.constant 0 : i32
    return %arg0, %c0_i32, %c0_i32_0 : i32, i32, i32
  }
  func.func @transform_3(%arg0: i32) -> (i32, i32, i32) {
    %c0_i32 = arith.constant 0 : i32
    %c0_i32_0 = arith.constant 0 : i32
    %c0_i32_1 = arith.constant 0 : i32
    %c0_i32_2 = arith.constant 0 : i32
    return %c0_i32, %c0_i32_0, %c0_i32_1 : i32, i32, i32
  }
  func.func @transform_4(%arg0: i32) -> (i32, i32, i32) {
    %c0_i32 = arith.constant 0 : i32
    %c0_i32_0 = arith.constant 0 : i32
    %c0_i32_1 = arith.constant 0 : i32
    %c0_i32_2 = arith.constant 0 : i32
    return %c0_i32, %c0_i32_0, %c0_i32_1 : i32, i32, i32
  }
  func.func @transform_5(%arg0: i32) -> (i32, i32, i32) {
    %c0_i32 = arith.constant 0 : i32
    %c0_i32_0 = arith.constant 0 : i32
    %c0_i32_1 = arith.constant 0 : i32
    %c0_i32_2 = arith.constant 0 : i32
    return %c0_i32, %c0_i32_0, %c0_i32_1 : i32, i32, i32
  }
  func.func @transform_6(%arg0: i32) -> (i32, i32, i32) {
    %c0_i32 = arith.constant 0 : i32
    %c0_i32_0 = arith.constant 0 : i32
    %c0_i32_1 = arith.constant 0 : i32
    %c0_i32_2 = arith.constant 0 : i32
    return %c0_i32, %c0_i32_0, %c0_i32_1 : i32, i32, i32
  }
  func.func @transform_7(%arg0: i32) -> (i32, i32, i32) {
    %c0_i32 = arith.constant 0 : i32
    %c0_i32_0 = arith.constant 0 : i32
    %c0_i32_1 = arith.constant 0 : i32
    %c0_i32_2 = arith.constant 0 : i32
    return %c0_i32, %c0_i32_0, %c0_i32_1 : i32, i32, i32
  }
  func.func @transform_8(%arg0: i32) -> (i32, i32, i32) {
    %c0_i32 = arith.constant 0 : i32
    %c0_i32_0 = arith.constant 0 : i32
    %c0_i32_1 = arith.constant 0 : i32
    %c0_i32_2 = arith.constant 0 : i32
    return %c0_i32, %c0_i32_0, %c0_i32_1 : i32, i32, i32
  }
  func.func @transform_9(%arg0: i32) -> (i32, i32, i32) {
    %c0_i32 = arith.constant 0 : i32
    %c0_i32_0 = arith.constant 0 : i32
    %c0_i32_1 = arith.constant 0 : i32
    %c0_i32_2 = arith.constant 0 : i32
    return %c0_i32, %c0_i32_0, %c0_i32_1 : i32, i32, i32
  }
  func.func @transform_10(%arg0: i32) -> (i32, i32, i32) {
    %c0_i32 = arith.constant 0 : i32
    %c0_i32_0 = arith.constant 0 : i32
    %c0_i32_1 = arith.constant 0 : i32
    %c0_i32_2 = arith.constant 0 : i32
    return %c0_i32, %c0_i32_0, %c0_i32_1 : i32, i32, i32
  }
  func.func @transform_11(%arg0: i32) -> (i32, i32, i32) {
    %c0_i32 = arith.constant 0 : i32
    %c0_i32_0 = arith.constant 0 : i32
    %c0_i32_1 = arith.constant 0 : i32
    %c0_i32_2 = arith.constant 0 : i32
    return %c0_i32, %c0_i32_0, %c0_i32_1 : i32, i32, i32
  }
  func.func @transform_12(%arg0: i32) -> (i32, i32, i32) {
    %c0_i32 = arith.constant 0 : i32
    %c0_i32_0 = arith.constant 0 : i32
    %c0_i32_1 = arith.constant 0 : i32
    %c0_i32_2 = arith.constant 0 : i32
    return %c0_i32, %c0_i32_0, %c0_i32_1 : i32, i32, i32
  }
  func.func @transform_13(%arg0: i32) -> (i32, i32, i32) {
    %c0_i32 = arith.constant 0 : i32
    %c0_i32_0 = arith.constant 0 : i32
    %c0_i32_1 = arith.constant 0 : i32
    %c0_i32_2 = arith.constant 0 : i32
    return %c0_i32, %c0_i32_0, %c0_i32_1 : i32, i32, i32
  }
  func.func @transform_14(%arg0: i32) -> (i32, i32, i32) {
    %c0_i32 = arith.constant 0 : i32
    %c0_i32_0 = arith.constant 0 : i32
    %c0_i32_1 = arith.constant 0 : i32
    %c0_i32_2 = arith.constant 0 : i32
    return %c0_i32, %c0_i32_0, %c0_i32_1 : i32, i32, i32
  }
  func.func @transform_15(%arg0: i32) -> (i32, i32, i32) {
    %c0_i32 = arith.constant 0 : i32
    %c0_i32_0 = arith.constant 0 : i32
    %c0_i32_1 = arith.constant 0 : i32
    %c0_i32_2 = arith.constant 0 : i32
    return %c0_i32, %c0_i32_0, %c0_i32_1 : i32, i32, i32
  }
  func.func @transform_16(%arg0: i32) -> (i32, i32, i32) {
    %c0_i32 = arith.constant 0 : i32
    %c0_i32_0 = arith.constant 0 : i32
    %c0_i32_1 = arith.constant 0 : i32
    %c0_i32_2 = arith.constant 0 : i32
    return %c0_i32, %c0_i32_0, %c0_i32_1 : i32, i32, i32
  }
  func.func @transform_17(%arg0: i32) -> (i32, i32, i32) {
    %c0_i32 = arith.constant 0 : i32
    %c0_i32_0 = arith.constant 0 : i32
    %c0_i32_1 = arith.constant 0 : i32
    %c0_i32_2 = arith.constant 0 : i32
    return %c0_i32, %c0_i32_0, %c0_i32_1 : i32, i32, i32
  }
  func.func @transform_18(%arg0: i32) -> (i32, i32, i32) {
    %c0_i32 = arith.constant 0 : i32
    %c0_i32_0 = arith.constant 0 : i32
    %c0_i32_1 = arith.constant 0 : i32
    %c0_i32_2 = arith.constant 0 : i32
    return %c0_i32, %c0_i32_0, %c0_i32_1 : i32, i32, i32
  }
  func.func @transform_19(%arg0: i32) -> (i32, i32, i32) {
    %c0_i32 = arith.constant 0 : i32
    %c0_i32_0 = arith.constant 0 : i32
    %c0_i32_1 = arith.constant 0 : i32
    %c0_i32_2 = arith.constant 0 : i32
    return %c0_i32, %c0_i32_0, %c0_i32_1 : i32, i32, i32
  }
  func.func @transform_20(%arg0: i32) -> (i32, i32, i32) {
    %c0_i32 = arith.constant 0 : i32
    %c0_i32_0 = arith.constant 0 : i32
    %c0_i32_1 = arith.constant 0 : i32
    %c0_i32_2 = arith.constant 0 : i32
    return %c0_i32, %c0_i32_0, %c0_i32_1 : i32, i32, i32
  }
  func.func @transform_21(%arg0: i32) -> (i32, i32, i32) {
    %c0_i32 = arith.constant 0 : i32
    %c0_i32_0 = arith.constant 0 : i32
    %c0_i32_1 = arith.constant 0 : i32
    %c0_i32_2 = arith.constant 0 : i32
    return %c0_i32, %c0_i32_0, %c0_i32_1 : i32, i32, i32
  }
  func.func @transform_22(%arg0: i32) -> (i32, i32, i32) {
    %c0_i32 = arith.constant 0 : i32
    %c0_i32_0 = arith.constant 0 : i32
    %c0_i32_1 = arith.constant 0 : i32
    %c0_i32_2 = arith.constant 0 : i32
    return %c0_i32, %c0_i32_0, %c0_i32_1 : i32, i32, i32
  }
  func.func @transform_23(%arg0: i32) -> (i32, i32, i32) {
    %c0_i32 = arith.constant 0 : i32
    %c0_i32_0 = arith.constant 0 : i32
    %c0_i32_1 = arith.constant 0 : i32
    %c0_i32_2 = arith.constant 0 : i32
    return %c0_i32, %c0_i32_0, %c0_i32_1 : i32, i32, i32
  }
  func.func @transform_24(%arg0: i32) -> (i32, i32, i32) {
    %c0_i32 = arith.constant 0 : i32
    %c0_i32_0 = arith.constant 0 : i32
    %c0_i32_1 = arith.constant 0 : i32
    %c0_i32_2 = arith.constant 0 : i32
    return %c0_i32, %c0_i32_0, %c0_i32_1 : i32, i32, i32
  }
  func.func @transform_25(%arg0: i32) -> (i32, i32, i32) {
    %c0_i32 = arith.constant 0 : i32
    %c0_i32_0 = arith.constant 0 : i32
    %c0_i32_1 = arith.constant 0 : i32
    %c0_i32_2 = arith.constant 0 : i32
    return %c0_i32, %c0_i32_0, %c0_i32_1 : i32, i32, i32
  }
  func.func @transform_26(%arg0: i32) -> (i32, i32, i32) {
    %c0_i32 = arith.constant 0 : i32
    %c0_i32_0 = arith.constant 0 : i32
    %c0_i32_1 = arith.constant 0 : i32
    %c0_i32_2 = arith.constant 0 : i32
    return %c0_i32, %c0_i32_0, %c0_i32_1 : i32, i32, i32
  }
  func.func @transform_27(%arg0: i32) -> (i32, i32, i32) {
    %c0_i32 = arith.constant 0 : i32
    %c0_i32_0 = arith.constant 0 : i32
    %c0_i32_1 = arith.constant 0 : i32
    %c0_i32_2 = arith.constant 0 : i32
    return %c0_i32, %c0_i32_0, %c0_i32_1 : i32, i32, i32
  }
  func.func @transform_28(%arg0: i32) -> (i32, i32, i32) {
    %c0_i32 = arith.constant 0 : i32
    %c0_i32_0 = arith.constant 0 : i32
    %c0_i32_1 = arith.constant 0 : i32
    %c0_i32_2 = arith.constant 0 : i32
    return %c0_i32, %c0_i32_0, %c0_i32_1 : i32, i32, i32
  }
  func.func @transform_29(%arg0: i32) -> (i32, i32) {
    %c0_i32 = arith.constant 0 : i32
    %c0_i32_0 = arith.constant 0 : i32
    %c0_i32_1 = arith.constant 0 : i32
    return %c0_i32, %c0_i32_0 : i32, i32
  }
  func.func @transform_30(%arg0: i32) -> (i32, i32) {
    %c0_i32 = arith.constant 0 : i32
    %c0_i32_0 = arith.constant 0 : i32
    %c0_i32_1 = arith.constant 0 : i32
    return %c0_i32, %c0_i32_0 : i32, i32
  }
  func.func @transform_31(%arg0: i32) -> (i32, i32, i32) {
    %c0_i32 = arith.constant 0 : i32
    %c0_i32_0 = arith.constant 0 : i32
    %c0_i32_1 = arith.constant 0 : i32
    return %arg0, %c0_i32, %c0_i32_0 : i32, i32, i32
  }
}

</mosaic_0001>

<bundles_post_ra>
// kernel: conformer_encoder_forward.1
= control target key start
LH: loop header
LB: loop body
LE: loop exit
PB: predicated region body
PF: predicated region fallthrough
CT: control target
= control target key end

     0   :  { %s6230_s6 = smov 1   ;;  %s6231_s10 = smov 2   ;;  %s7386_s0 = inlined_call_operand.smem [shape: u32[32], index: -1, kind: input, shape index: {}] }
   0x1   :  { %s6293_s5 = sld [smem:[%s7386_s0]]   ;;  %s6232_s14 = smov 3  }
   0x2   :  { %s6298_s9 = sld [smem:[%s7386_s0 + %s6230_s6]]   ;;  %s6233_s18 = smov 4  }
   0x3   :  { %s6303_s13 = sld [smem:[%s7386_s0 + %s6231_s10]]   ;;  %s6234_s22 = smov 5  }
   0x4   :  { %s6308_s17 = sld [smem:[%s7386_s0 + %s6232_s14]]   ;;  %s6235_s26 = smov 6  }
   0x5   :  { %s6313_s21 = sld [smem:[%s7386_s0 + %s6233_s18]]   ;;  %s6236_s30 = smov 7  }
   0x6   :  { %s6318_s25 = sld [smem:[%s7386_s0 + %s6234_s22]]   ;;  %s6237_s4 = smov 8  }
   0x7   :  { %7451 = sst [smem:[#allocation3_spill]] %s6293_s5  ;;  %s6238_s10 = smov 9  }
   0x8   :  { %7452 = sst [smem:[#allocation4_spill]] %s6298_s9  ;;  %s6239_s15 = smov 10  }
   0x9   :  { %7453 = sst [smem:[#allocation5_spill]] %s6303_s13  ;;  %s6240_s20 = smov 11  }
   0xa   :  { %s6323_s29 = sld [smem:[%s7386_s0 + %s6235_s26]]   ;;  %s6241_s26 = smov 12  }
   0xb   :  { %s6328_s3 = sld [smem:[%s7386_s0 + %s6236_s30]]   ;;  %s6242_s1 = smov 13  }
   0xc   :  { %s6333_s8 = sld [smem:[%s7386_s0 + %s6237_s4]]   ;;  %s6243_s7 = smov 14  }
   0xd   :  { %s6338_s14 = sld [smem:[%s7386_s0 + %s6238_s10]]   ;;  %s6245_s22 = smov 16  }
   0xe   :  { %s6343_s19 = sld [smem:[%s7386_s0 + %s6239_s15]]   ;;  %s6244_s15 = smov 15  }
   0xf   :  { %s6348_s24 = sld [smem:[%s7386_s0 + %s6240_s20]]   ;;  %s6246_s28 = smov 17  }
  0x10   :  { %s6353_s30 = sld [smem:[%s7386_s0 + %s6241_s26]]  }
  0x11   :  { %7454 = sst [smem:[#allocation6_spill]] %s6328_s3 }
  0x12   :  { %7455 = sst [smem:[#allocation7_spill]] %s6333_s8 }
  0x13   :  { %s6358_s6 = sld [smem:[%s7386_s0 + %s6242_s1]]  }
  0x14   :  { %s6363_s12 = sld [smem:[%s7386_s0 + %s6243_s7]]   ;;  %s6247_s7 = smov 18  }
  0x15   :  { %s6368_s20 = sld [smem:[%s7386_s0 + %s6244_s15]]   ;;  %s6248_s15 = smov 19  }
  0x16   :  { %s6373_s27 = sld [smem:[%s7386_s0 + %s6245_s22]]   ;;  %s6249_s22 = smov 20  }
  0x17   :  { %s6378_s4 = sld [smem:[%s7386_s0 + %s6246_s28]]   ;;  %s6250_s28 = smov 21  }
  0x1a   :  { %7456 = sst [smem:[#allocation8_spill]] %s6363_s12 }
  0x1b   :  { %7457 = sst [smem:[#allocation9_spill]] %s6368_s20 }
  0x1c   :  { %7458 = sst [smem:[#allocation10_spill]] %s6373_s27 }
  0x1d   :  { %7459 = sst [smem:[#allocation11_spill]] %s6378_s4 }
  0x1e   :  { %s6383_s12 = sld [smem:[%s7386_s0 + %s6247_s7]]   ;;  %s6251_s7 = smov 22  }
  0x1f   :  { %s6388_s20 = sld [smem:[%s7386_s0 + %s6248_s15]]   ;;  %s6252_s15 = smov 23  }
  0x20   :  { %s6393_s27 = sld [smem:[%s7386_s0 + %s6249_s22]]   ;;  %s6253_s22 = smov 24  }
  0x21   :  { %s6398_s4 = sld [smem:[%s7386_s0 + %s6250_s28]]   ;;  %s6254_s28 = smov 25  }
  0x24   :  { %7460 = sst [smem:[#allocation12_spill]] %s6383_s12 }
  0x25   :  { %7461 = sst [smem:[#allocation13_spill]] %s6388_s20 }
  0x26   :  { %7462 = sst [smem:[#allocation14_spill]] %s6393_s27 }
  0x27   :  { %7463 = sst [smem:[#allocation15_spill]] %s6398_s4 }
  0x28   :  { %s6403_s12 = sld [smem:[%s7386_s0 + %s6251_s7]]   ;;  %s6255_s7 = smov 26  }
  0x29   :  { %s6408_s20 = sld [smem:[%s7386_s0 + %s6252_s15]]   ;;  %s6256_s15 = smov 27  }
  0x2a   :  { %s6413_s27 = sld [smem:[%s7386_s0 + %s6253_s22]]   ;;  %s6257_s22 = smov 28  }
  0x2b   :  { %s6418_s4 = sld [smem:[%s7386_s0 + %s6254_s28]]   ;;  %s6258_s28 = smov 29  }
  0x2e   :  { %7464 = sst [smem:[#allocation16_spill]] %s6403_s12 }
  0x2f   :  { %7465 = sst [smem:[#allocation17_spill]] %s6408_s20 }
  0x30   :  { %7466 = sst [smem:[#allocation18_spill]] %s6413_s27 }
  0x31   :  { %7467 = sst [smem:[#allocation19_spill]] %s6418_s4 }
  0x32   :  { %s6423_s12 = sld [smem:[%s7386_s0 + %s6255_s7]]   ;;  %s6259_s7 = smov 30  }
  0x33   :  { %s6428_s20 = sld [smem:[%s7386_s0 + %s6256_s15]]   ;;  %s6260_s15 = smov 31  }
  0x34   :  { %s6433_s27 = sld [smem:[%s7386_s0 + %s6257_s22]]   ;;  %s6450_s22 = smov 0  }
  0x35   :  { %s6438_s4 = sld [smem:[%s7386_s0 + %s6258_s28]]  }
  0x38   :  { %7468 = sst [smem:[#allocation20_spill]] %s6423_s12 }
  0x39   :  { %7469 = sst [smem:[#allocation21_spill]] %s6428_s20 }
  0x3a   :  { %s6443_s12 = sld [smem:[%s7386_s0 + %s6259_s7]]  }
  0x3b   :  { %s6448_s20 = sld [smem:[%s7386_s0 + %s6260_s15]]  }
  0x41   :  { %7470 = sst [smem:[#allocation22_spill]] %s6448_s20 }
  0x42 LB: > { %s7471_s9 = sld [smem:[#allocation4_spill]]  ;;  %s7472_s3 = sld [smem:[#allocation6_spill]]  ;;  %s6228_s22 = sphi %s6450_s22, %s73_s22  }
  0x43   : > { %s7473_s8 = sld [smem:[#allocation7_spill]]  ;;  %s5355_s23 = sadd.s32 4294967295, %s6228_s22  }
  0x44   : > { %7474 = sst [smem:[#allocation23_spill]] %s6228_s22  ;;  %p5359_p0 = scmp.ge.s32.totalorder %s6228_s22, 1 }
  0x45   : > { %p876_p1 = scmp.lt.s32.totalorder %s6228_s22, 3 }
  0x47   : > { %p877_p2 = pnand %p5359_p0, %p876_p1 }
  0x48   : > { %p957_p3 = scmp.lt.s32.totalorder (!%p877_p2), %s5355_s23, 1  ;;  %s7475_s5 = sld [smem:[#allocation3_spill]] (!%p877_p2)  ;;  %v6261_v0 = vmov (!%p877_p2), 0   ;;  %vm7401_vm0 = vcmask (!%p877_p2), 260096   ;;  %v1034_v8 = vld [vmem:[%s6318_s25] sm:$0xff] (!%p877_p2)  ;;  %v1035_v9 = vld [vmem:[%s6318_s25 + $0x8] sm:$0xff] (!%p877_p2)  ;;  %v970_v53 = vlaneseq (!%p877_p2) }
  0x49   : > { %880 = sbr.rel (%p877_p2) target bundleno = 11244 (0x2bec), region = 144  ;;  %6050 = vset.pattern.permute.xlu1 (!%p877_p2), %v6261_v0  ;;  %v1036_v10 = vld [vmem:[%s6318_s25 + $0x10] sm:$0xff] (!%p877_p2)  ;;  %v6262_v11 = vmov (!%p877_p2), 0.0|0.0   ;;  %v5904_v12 = vpack.c.bf16 (!%p877_p2), %v1035_v9, %v1034_v8  ;;  %v1037_v13 = vld [vmem:[%s6318_s25 + $0x18] sm:$0xff] (!%p877_p2)  ;;  %vm6263_vm1 = vmmov (!%p877_p2), 0   ;;  %v6264_v14 = vmov (!%p877_p2), 0.0  }
  0x4a   : > { %5903 = vmatprep.subr.bf16.mxu1 (!%p877_p2), %v6262_v11  ;;  %5643 = vmatprep.mubr.msk.f32.mxu1 (!%p877_p2), %vm6263_vm1, %v6264_v14  ;;  %v5907_v15 = vpack.c.bf16 (!%p877_p2), %v1037_v13, %v1036_v10  ;;  %v5362_v20 = vld [vmem:[%s6308_s17] ss:$0 sm:$0xff] (!%p877_p2)  ;;  %vm7402_vm2 = vcmask (!%p877_p2), 261120   ;;  %vm1136_vm3 = vcmask (!%p877_p2), 64512   ;;  %v6265_v26 = vmov (!%p877_p2), 1   ;;  %s7441_s28 = smov (!%p877_p2), 96  }
  0x4b   : > { %5656 = vmatprep.subr.mxu0 (!%p877_p2), %v6264_v14  ;;  %5658 = vmatprep.mubr.msk.f32.mxu0 (!%p877_p2), %vm6263_vm1, %v6264_v14  ;;  %v5363_v22 = vld [vmem:[%s6313_s21] ss:$0 sm:$0xff] (!%p877_p2)  ;;  %s7439_s1 = smov (!%p877_p2), 120   ;;  %v6268_v38 = vmov (!%p877_p2), 2   ;;  %v6269_v39 = vmov (!%p877_p2), 3   ;;  %v6270_v40 = vmov (!%p877_p2), 4  }
  0x4c   : > { %5905 = vmatpush3.bf16.msra.mxu1 (!%p877_p2), %v5904_v12  ;;  %v6488_v25 = vld [vmem:[%s7471_s9] sm:$0x7f] (!%p877_p2)  ;;  %6051 = vset.pattern.permute.xlu0 (!%p877_p2), %v6265_v26  ;;  %v6271_v41 = vmov (!%p877_p2), 5   ;;  %v6272_v42 = vmov (!%p877_p2), 6   ;;  %vm1265_vm4 = vcmask (!%p877_p2), 1045504   ;;  %v6541_v55 = vshrl.u32 (!%p877_p2), %v970_v53, 7 }
  0x4d   : > { %5906 = vmatprep.subr.bf16.mxu1 (!%p877_p2), %v6262_v11  ;;  %v5364_v27 = vld [vmem:[%s6323_s29] ss:$0 sm:$0xff] (!%p877_p2)  ;;  %v973_v56 = vand.u32 (!%p877_p2), 127, %v970_v53  ;;  %s7476_s13 = sld [smem:[#allocation5_spill]] (!%p877_p2)  ;;  %s7438_s7 = smov (!%p877_p2), 64  }
  0x4e   : > { %v5367_v29 = vld [vmem:[%s7473_s8] ss:$0 sm:$0xff] (!%p877_p2)  ;;  %s7436_s10 = smov (!%p877_p2), 88   ;;  %s7433_s11 = smov (!%p877_p2), 112  }
  0x4f   : > { %v5366_v33 = vld [vmem:[%s7472_s3] ss:$0 sm:$0xff] (!%p877_p2)  ;;  %v6544_v58 = vsub.s32 (!%p877_p2), %v973_v56, %v6541_v55  ;;  %s7432_s15 = smov (!%p877_p2), 56   ;;  %s7413_s16 = smov (!%p877_p2), 104  }
  0x50   : > { %s7617_s23 = smov (!%p957_p3, %s5355_s23), 1  ;;  %5908 = vmatpush3.bf16.msra.mxu1 %v5907_v15  ;;  %s7431_s18 = smov 80  }
  0x51   : > { %s7410_s0 = sshll.u32 %s7617_s23, 3  ;;  %5646 = vmatprep.subr.mxu1 %v6264_v14  ;;  %vm1221_vm5 = vcmp.eq.s32.totalorder %v6544_v58, 4294967291  ;;  %vm1213_vm6 = vcmp.eq.s32.totalorder %v6544_v58, 4294967290  ;;  %vm1228_vm7 = vcmp.eq.s32.totalorder %v6544_v58, 4294967292  ;;  %vm7426_vm8 = vcmp.eq.s32.totalorder %v6544_v58, 4294967293  ;;  %s7515_s22 = sld [smem:[#allocation21_spill]] }
  0x52   : > { %s6465_s26 = scalar_lea.vmem %s7475_s5, %s7410_s0  ;;  %vm7406_vm9 = vcmp.eq.s32.totalorder %v6544_v58, 4294967294  ;;  %vm7407_vm10 = vcmp.eq.s32.totalorder %v6544_v58, 4294967295  ;;  %vm7408_vm11 = vcmp.eq.s32.totalorder %v6544_v58, 0  ;;  %vm7425_vm12 = vcmp.eq.s32.totalorder %v6544_v58, 2  ;;  %s7411_s0 = smov 72  }
  0x53   : > { %v1002_v1 = vld [vmem:[%s6465_s26] sm:$0x7f]  ;;  %s963_s2 = scalar_lea.vmem %s7476_s13, %s7617_s23  ;;  %vm7424_vm13 = vcmp.eq.s32.totalorder %v6544_v58, 3  ;;  %vm7403_vm14 = vcmp.eq.s32.totalorder %v6544_v58, 4  ;;  %vm7404_vm15 = vcmp.eq.s32.totalorder %v6544_v58, 5  ;;  %s7513_s5 = sld [smem:[#allocation18_spill]] }
  0x54   : > { %v1006_v2 = vsel %vm7401_vm0, %v1002_v1, 0.0  ;;  %v968_v15 = vld [vmem:[%s963_s2] sm:$0x1]  ;;  %s7412_s2 = smov 48   ;;  %s7514_s13 = sld [smem:[#allocation20_spill]] }
  0x55   : > { %1007 = vadd.xlane.f32.xlu0 %v1006_v2 }
  0x57   : > { %s7516_s20 = smov %s7515_s22 }
  0xe2   : > { %v1008_v3 = vpop.xlane.xlu0 %1007 }
  0xe3   : > { %v1010_v4 = vmul.f32 0.03125, %v1008_v3 }
  0xe5   : > { %v1011_v5 = vsub.f32 %v1002_v1, %v1010_v4 }
  0xe7   : > { %v1012_v6 = vmul.f32 %v1011_v5, %v1011_v5 }
  0xe9   : > { %v1013_v7 = vsel %vm7401_vm0, %v1012_v6, 0.0  ;;  %vm969_vm0 = vcmp.gt.f32.partialorder %v968_v15, 0.5 }
  0xea   : > { %1014 = vadd.xlane.f32.xlu0 %v1013_v7 }
 0x177   : > { %v1015_v16 = vpop.xlane.xlu0 %1014 }
 0x178   : > { %v1016_v17 = vmul.f32 0.03125, %v1015_v16 }
 0x17a   : > { %v1017_v18 = vadd.f32 1e-05, %v1016_v17 }
 0x17c   : > { %6147 = vrsqrt.f32 %v1017_v18 }
 0x186   : > { %v6148_v19 = vpop.eup %6147 }
 0x187   : > { %v1019_v21 = vmul.f32 %v6148_v19, %v1011_v5 }
 0x189   : > { %v1026_v23 = vmul.f32 %v5362_v20, %v1019_v21 }
 0x18b   : > { %v1033_v24 = vadd.f32 %v5363_v22, %v1026_v23  ;;  %v6580_v22 = vsub.s32 0, %v6541_v55 }
 0x18d   : > { %5644 = vmatmul.mubr.msk.f32.vlgmr.msra.gmra.mrb[0].mxu1 %vm7402_vm2, %v1033_v24  ;;  %v1382_v24 = vsel %vm969_vm0, 1, %v6261_v0  ;;  %vm7423_vm2 = vcmp.eq.s32.totalorder %v6544_v58, 6  ;;  %vm7405_vm0 = vcmask 1046528  }
 0x18e   : > { %5648 = vmatprep.mubr.msk.f32.mxu1 %vm6263_vm1, %v6264_v14  ;;  %5647 = vmatpush3.xpose.msk.msra.mxu1 %vm1136_vm3, %v6488_v25 }
 0x18f   : > { %5651 = vmatprep.subr.mxu1 %v6264_v14 }
 0x260   : > { %v1115_v28 = vpop.f32.mrb[0].mxu1 }
 0x261   : > { %v6496_v30 = vadd.f32 %v5364_v27, %v1115_v28  ;;  %v5645_v31 = vpop.f32.mrb[1].mxu1 }
 0x262   : > { %v1386_v31 = vrot.slane %v1382_v24, %v6580_v22 }
 0x263   : > { %1304 = vrot.lane.b32.xlu1 %v6496_v30, %s7441_s28  ;;  %v6501_v32 = vadd.f32 %v5367_v29, %v6496_v30  ;;  %v6510_v35 = vadd.f32 %v5366_v33, %v6496_v30 }
 0x265   : > { %5649 = vmatmul.mubr.msk.f32.vlgmr.msra.gmra.mrb[2].mxu1 %vm1136_vm3, %v6501_v32 }
 0x266   : > { %5653 = vmatprep.mubr.msk.f32.mxu1 %vm6263_vm1, %v6264_v14 }
 0x2d5   : > { %v1305_v34 = vpop.permute.xlu1 %1304 }
 0x2d6   : > { %5652 = vmatpush3.xpose.msk.msra.mxu1 %vm1136_vm3, %v1305_v34 }
 0x2d7   : > { %5661 = vmatprep.subr.mxu1 %v6264_v14 }
 0x2d9   : > { %5654 = vmatmul.mubr.msk.f32.vlgmr.msra.gmra.mrb[4].mxu1 %vm1136_vm3, %v6510_v35 }
 0x2da   : > { %5663 = vmatprep.mubr.msk.f32.mxu1 %vm6263_vm1, %v6264_v14 }
 0x338   : > { %v1209_v36 = vpop.f32.mrb[2].mxu1 }
 0x339   : > { %1223 = vperm.xlu0 %6051, %v1209_v36   ;;  %1216 = vperm.xlu1 %6050, %v1209_v36   ;;  %v5650_v37 = vpop.f32.mrb[3].mxu1  ;;  %v1263_v43 = vrot.slane %v1209_v36, 1 }
 0x33b   : > { %v1266_v44 = vsel %vm1265_vm4, %v1263_v43, 0.0 }
 0x33d   : > { %1485 = vrot.lane.b32.xlu0 %v6488_v25, %s7439_s1  ;;  %6052 = vset.pattern.permute.xlu1 %v6268_v38 }
 0x33e   : > { %1230 = vperm.xlu1 %6052, %v1209_v36   ;;  %6064 = vset.pattern.permute.xlu0 %v6268_v38 }
 0x341   : > { %1483 = vrot.lane.b32.xlu0 %v6501_v32, %s7439_s1 }
 0x342   : > { %6053 = vset.pattern.permute.xlu1 %v6269_v39 }
 0x343   : > { %1237 = vperm.xlu1 %6053, %v1209_v36  }
 0x347   : > { %6054 = vset.pattern.permute.xlu1 %v6270_v40 }
 0x348   : > { %1244 = vperm.xlu1 %6054, %v1209_v36  }
 0x34c   : > { %6055 = vset.pattern.permute.xlu1 %v6271_v41 }
 0x34d   : > { %1251 = vperm.xlu1 %6055, %v1209_v36  }
 0x351   : > { %6056 = vset.pattern.permute.xlu1 %v6272_v42 }
 0x352   : > { %1258 = vperm.xlu1 %6056, %v1209_v36  }
 0x356   : > { %6057 = vset.pattern.permute.xlu1 %v6261_v0 }
 0x357   : > { %1270 = vperm.xlu1 %6057, %v1266_v44  }
 0x35b   : > { %6058 = vset.pattern.permute.xlu1 %v6265_v26 }
 0x35c   : > { %1277 = vperm.xlu1 %6058, %v1266_v44  }
 0x360   : > { %6059 = vset.pattern.permute.xlu1 %v6268_v38 }
 0x361   : > { %1284 = vperm.xlu1 %6059, %v1266_v44  }
 0x365   : > { %6060 = vset.pattern.permute.xlu1 %v6269_v39 }
 0x366   : > { %1291 = vperm.xlu1 %6060, %v1266_v44  }
 0x36a   : > { %6061 = vset.pattern.permute.xlu1 %v6270_v40 }
 0x36b   : > { %1298 = vperm.xlu1 %6061, %v1266_v44  }
 0x36f   : > { %6062 = vset.pattern.permute.xlu1 %v6261_v0 }
 0x3ac   : > { %v6534_v45 = vpop.f32.mrb[4].mxu1 }
 0x3ad   : > { %v5655_v46 = vpop.f32.mrb[5].mxu1 }
 0x3b8   : > { %v1224_v47 = vpop.permute.xlu0 %1223  ;;  %v1217_v48 = vpop.permute.xlu1 %1216 }
 0x3b9   : > { %v1226_v60 = vsel %vm1221_vm5, %v1224_v47, 0.0  ;;  %v1219_v61 = vsel %vm1213_vm6, %v1217_v48, 0.0 }
 0x3ba   : > { %v1227_v1 = vadd.f32 %v1226_v60, %v1219_v61 }
 0x3bc   : > { %v1486_v49 = vpop.permute.xlu0 %1485 }
 0x3bd   : > { %v1231_v50 = vpop.permute.xlu1 %1230  ;;  %5662 = vmatpush3.xpose.msk.msra.mxu1 %vm1136_vm3, %v1486_v49 }
 0x3be   : > { %5671 = vmatprep.subr.mxu1 %v6264_v14  ;;  %v1233_v63 = vsel %vm1228_vm7, %v1231_v50, 0.0 }
 0x3bf   : > { %v1234_v3 = vadd.f32 %v1233_v63, %v1227_v1 }
 0x3c0   : > { %v1484_v51 = vpop.permute.xlu0 %1483 }
 0x3c1   : > { %5664 = vmatmul.mubr.msk.f32.vlgmr.msra.gmra.mrb[6].mxu1 %vm1136_vm3, %v1484_v51 }
 0x3c2   : > { %v1238_v52 = vpop.permute.xlu1 %1237  ;;  %5673 = vmatprep.mubr.msk.f32.mxu1 %vm6263_vm1, %v6264_v14 }
 0x3c3   : > { %v1240_v2 = vsel %vm7426_vm8, %v1238_v52, 0.0 }
 0x3c4   : > { %v1241_v6 = vadd.f32 %v1240_v2, %v1234_v3 }
 0x3c7   : > { %v1245_v54 = vpop.permute.xlu1 %1244 }
 0x3c8   : > { %v1247_v4 = vsel %vm7406_vm9, %v1245_v54, 0.0 }
 0x3c9   : > { %v1248_v8 = vadd.f32 %v1247_v4, %v1241_v6 }
 0x3cc   : > { %v1252_v57 = vpop.permute.xlu1 %1251 }
 0x3cd   : > { %v1254_v7 = vsel %vm7407_vm10, %v1252_v57, 0.0 }
 0x3ce   : > { %v1255_v10 = vadd.f32 %v1254_v7, %v1248_v8 }
 0x3d1   : > { %v1259_v59 = vpop.permute.xlu1 %1258 }
 0x3d2   : > { %v1261_v9 = vsel %vm7408_vm11, %v1259_v59, 0.0 }
 0x3d3   : > { %v1262_v16 = vadd.f32 %v1261_v9, %v1255_v10 }
 0x3d6   : > { %v1271_v62 = vpop.permute.xlu1 %1270 }
 0x3d7   : > { %v1273_v13 = vsel %vm7425_vm12, %v1271_v62, 0.0 }
 0x3d8   : > { %v1274_v18 = vadd.f32 %v1273_v13, %v1262_v16 }
 0x3db   : > { %v1278_v5 = vpop.permute.xlu1 %1277 }
 0x3dc   : > { %v1280_v17 = vsel %vm7424_vm13, %v1278_v5, 0.0 }
 0x3dd   : > { %v1281_v21 = vadd.f32 %v1280_v17, %v1274_v18 }
 0x3e0   : > { %v1285_v12 = vpop.permute.xlu1 %1284 }
 0x3e1   : > { %v1287_v19 = vsel %vm7403_vm14, %v1285_v12, 0.0  ;;  %vm6590_vm14 = vcmp.eq.s32.totalorder %v1386_v31, 1 }
 0x3e2   : > { %v1288_v27 = vadd.f32 %v1287_v19, %v1281_v21 }
 0x3e5   : > { %v1292_v20 = vpop.permute.xlu1 %1291 }
 0x3e6   : > { %v1294_v23 = vsel %vm7404_vm15, %v1292_v20, 0.0  ;;  %vm7422_vm15 = vcmask 55296  }
 0x3e7   : > { %v1295_v28 = vadd.f32 %v1294_v23, %v1288_v27 }
 0x3ea   : > { %v1299_v29 = vpop.permute.xlu1 %1298 }
 0x3eb   : > { %v1301_v33 = vsel %vm7423_vm2, %v1299_v29, 0.0 }
 0x3ec   : > { %v1302_v34 = vadd.f32 %v1301_v33, %v1295_v28 }
 0x3ee   : > { %v1378_v36 = vadd.f32 %v6534_v45, %v1302_v34 }
 0x3f0   : > { %v1381_v43 = vmul.f32 0.35355338, %v1378_v36 }
 0x3f2   : > { %v1388_v44 = vsel %vm6590_vm14, %v1381_v43, -3.4028235e+38 }
 0x3f3   : > { %v1390_v46 = vsel %vm7422_vm15, %v1388_v44, -inf }
 0x3f4   : > { %1391 = vmax.xlane.f32.xlu1 %v1390_v46 }
 0x405   : > { %1402 = vrot.lane.b32.xlu1 %v6496_v30, %s7438_s7  ;;  %s7509_s7 = sld [smem:[#allocation15_spill]] }
 0x409   : > { %1638 = vrot.lane.b32.xlu1 %v6510_v35, %s7439_s1  ;;  %s7510_s1 = sld [smem:[#allocation16_spill]] }
 0x481   : > { %v1392_v45 = vpop.xlane.xlu1 %1391 }
 0x482   : > { %v1393_v47 = vsub.f32 %v1388_v44, %v1392_v45 }
 0x484   : > { %v1394_v48 = vmul.f32 1.442695, %v1393_v47 }
 0x485   : > { %v1403_v49 = vpop.permute.xlu1 %1402 }
 0x486   : > { %6149 = vpow2.f32 %v1394_v48  ;;  %5657 = vmatpush3.msk.msra.mxu0 %vm7405_vm0, %v1403_v49  ;;  %vm7421_vm0 = vcmask 56320  }
 0x487   : > { %5666 = vmatprep.subr.mxu0 %v6264_v14 }
 0x489   : > { %v1639_v2 = vpop.permute.xlu1 %1638 }
 0x490   : > { %v6150_v50 = vpop.eup %6149 }
 0x491   : > { %v1396_v51 = vsel %vm7422_vm15, %v6150_v50, 0.0 }
 0x492   : > { %1397 = vadd.xlane.f32.xlu0 %v1396_v51 }
 0x494   : > { %v1557_v52 = vpop.f32.mrb[6].mxu1 }
 0x495   : > { %1563 = vperm.xlu1 %6062, %v1557_v52   ;;  %v5665_v53 = vpop.f32.mrb[7].mxu1  ;;  %v1604_v54 = vrot.slane %v1557_v52, 1 }
 0x497   : > { %v1606_v56 = vsel %vm1265_vm4, %v1604_v54, 0.0 }
 0x499   : > { %6063 = vset.pattern.permute.xlu1 %v6265_v26 }
 0x49a   : > { %1569 = vperm.xlu1 %6063, %v1557_v52  }
 0x49e   : > { %6065 = vset.pattern.permute.xlu1 %v6269_v39 }
 0x49f   : > { %1581 = vperm.xlu1 %6065, %v1557_v52  }
 0x4a3   : > { %6066 = vset.pattern.permute.xlu1 %v6270_v40 }
 0x4a4   : > { %1587 = vperm.xlu1 %6066, %v1557_v52  }
 0x4a8   : > { %1640 = vrot.lane.b32.xlu0 %v6496_v30, %s7436_s10  ;;  %6068 = vset.pattern.permute.xlu1 %v6272_v42  ;;  %s7506_s10 = sld [smem:[#allocation17_spill]] }
 0x4a9   : > { %1599 = vperm.xlu1 %6068, %v1557_v52  }
 0x4ac   : > { %1575 = vperm.xlu0 %6064, %v1557_v52  }
 0x4ad   : > { %6069 = vset.pattern.permute.xlu1 %v6261_v0 }
 0x4ae   : > { %1609 = vperm.xlu1 %6069, %v1606_v56  }
 0x4b0   : > { %6067 = vset.pattern.permute.xlu0 %v6271_v41 }
 0x4b1   : > { %1593 = vperm.xlu0 %6067, %v1557_v52  }
 0x4b2   : > { %6071 = vset.pattern.permute.xlu1 %v6268_v38 }
 0x4b3   : > { %1621 = vperm.xlu1 %6071, %v1606_v56  }
 0x4b5   : > { %6070 = vset.pattern.permute.xlu0 %v6265_v26 }
 0x4b6   : > { %1615 = vperm.xlu0 %6070, %v1606_v56  }
 0x4b7   : > { %6072 = vset.pattern.permute.xlu1 %v6269_v39 }
 0x4b8   : > { %1627 = vperm.xlu1 %6072, %v1606_v56  }
 0x4ba   : > { %6073 = vset.pattern.permute.xlu0 %v6270_v40 }
 0x4bb   : > { %1633 = vperm.xlu0 %6073, %v1606_v56  }
 0x4bc   : > { %6074 = vset.pattern.permute.xlu1 %v6261_v0 }
 0x4bf   : > { %1815 = vrot.lane.b32.xlu0 %v6488_v25, %s7433_s11 }
 0x4c0   : > { %6077 = vset.pattern.permute.xlu0 %v6269_v39 }
 0x4c3   : > { %1813 = vrot.lane.b32.xlu0 %v6501_v32, %s7433_s11 }
 0x514   : > { %v1564_v7 = vpop.permute.xlu1 %1563 }
 0x515   : > { %v1566_v10 = vsel %vm1213_vm6, %v1564_v7, 0.0 }
 0x519   : > { %v1570_v8 = vpop.permute.xlu1 %1569 }
 0x51a   : > { %v1572_v9 = vsel %vm1221_vm5, %v1570_v8, 0.0 }
 0x51b   : > { %v1573_v13 = vadd.f32 %v1572_v9, %v1566_v10 }
 0x51e   : > { %v1582_v15 = vpop.permute.xlu1 %1581 }
 0x51f   : > { %v1398_v57 = vpop.xlane.xlu0 %1397  ;;  %v1584_v17 = vsel %vm7426_vm8, %v1582_v15, 0.0 }
 0x520   : > { %6151 = vrcp.f32 %v1398_v57 }
 0x523   : > { %v1641_v59 = vpop.permute.xlu0 %1640  ;;  %v1588_v18 = vpop.permute.xlu1 %1587 }
 0x524   : > { %v1590_v20 = vsel %vm7406_vm9, %v1588_v18, 0.0  ;;  %vm7479_vm9 = vcmp.eq.s32.totalorder %v6544_v58, 4 }
 0x528   : > { %v1600_v24 = vpop.permute.xlu1 %1599 }
 0x529   : > { %v1602_v28 = vsel %vm7408_vm11, %v1600_v24, 0.0  ;;  %vm7409_vm11 = vcmask 63488  }
 0x52a   : > { %v6152_v60 = vpop.eup %6151 }
 0x52b   : > { %v1576_v61 = vpop.permute.xlu0 %1575  ;;  %v1400_v62 = vmul.f32 %v6152_v60, %v6150_v50 }
 0x52c   : > { %v1578_v12 = vsel %vm1228_vm7, %v1576_v61, 0.0 }
 0x52d   : > { %v1401_v63 = vsel %vm6590_vm14, %v1400_v62, 0.0  ;;  %v1579_v16 = vadd.f32 %v1578_v12, %v1573_v13  ;;  %v1610_v29 = vpop.permute.xlu1 %1609 }
 0x52e   : > { %5659 = vmatmul.mubr.msk.f32.vlgmr.msra.gmra.mrb[0].mxu0 %vm7421_vm0, %v1401_v63  ;;  %v1612_v33 = vsel %vm7425_vm12, %v1610_v29, 0.0 }
 0x52f   : > { %5667 = vmatpush3.xpose.msk.msra.mxu0 %vm1136_vm3, %v1641_v59  ;;  %5668 = vmatprep.mubr.msk.f32.mxu0 %vm6263_vm1, %v6264_v14  ;;  %v1585_v19 = vadd.f32 %v1584_v17, %v1579_v16 }
 0x530   : > { %v1594_v1 = vpop.permute.xlu0 %1593  ;;  %5676 = vmatprep.subr.mxu0 %v6264_v14 }
 0x531   : > { %v1591_v21 = vadd.f32 %v1590_v20, %v1585_v19  ;;  %v1596_v23 = vsel %vm7407_vm10, %v1594_v1, 0.0  ;;  %vm7480_vm10 = vcmp.eq.s32.totalorder %v6544_v58, 5 }
 0x532   : > { %5669 = vmatmul.mubr.msk.f32.vlgmr.msra.gmra.mrb[2].mxu0 %vm1136_vm3, %v1639_v2  ;;  %v1622_v36 = vpop.permute.xlu1 %1621 }
 0x533   : > { %5678 = vmatprep.mubr.msk.f32.mxu0 %vm6263_vm1, %v6264_v14  ;;  %v1597_v27 = vadd.f32 %v1596_v23, %v1591_v21  ;;  %v1624_v46 = vsel %vm7479_vm9, %v1622_v36, 0.0  ;;  %vm7481_vm9 = vcmask 1046528  }
 0x535   : > { %v1616_v3 = vpop.permute.xlu0 %1615  ;;  %v1603_v31 = vadd.f32 %v1602_v28, %v1597_v27 }
 0x536   : > { %v1618_v43 = vsel %vm7424_vm13, %v1616_v3, 0.0 }
 0x537   : > { %v1613_v34 = vadd.f32 %v1612_v33, %v1603_v31  ;;  %v1628_v47 = vpop.permute.xlu1 %1627 }
 0x538   : > { %v1630_v48 = vsel %vm7480_vm10, %v1628_v47, 0.0  ;;  %vm7482_vm10 = vcmp.eq.s32.totalorder %v6544_v58, 4294967294 }
 0x539   : > { %v1619_v44 = vadd.f32 %v1618_v43, %v1613_v34 }
 0x53a   : > { %v1634_v4 = vpop.permute.xlu0 %1633 }
 0x53b   : > { %v1625_v45 = vadd.f32 %v1624_v46, %v1619_v44  ;;  %v1636_v52 = vsel %vm7423_vm2, %v1634_v4, 0.0 }
 0x53d   : > { %v1631_v49 = vadd.f32 %v1630_v48, %v1625_v45 }
 0x53e   : > { %v1816_v5 = vpop.permute.xlu0 %1815 }
 0x53f   : > { %5677 = vmatpush3.xpose.msk.msra.mxu0 %vm1136_vm3, %v1816_v5  ;;  %v1637_v53 = vadd.f32 %v1636_v52, %v1631_v49 }
 0x540   : > { %5686 = vmatprep.subr.mxu0 %v6264_v14 }
 0x542   : > { %v1814_v6 = vpop.permute.xlu0 %1813 }
 0x543   : > { %5679 = vmatmul.mubr.msk.f32.vlgmr.msra.gmra.mrb[4].mxu0 %vm1136_vm3, %v1814_v6 }
 0x544   : > { %5688 = vmatprep.mubr.msk.f32.mxu0 %vm6263_vm1, %v6264_v14 }
 0x601   : > { %v1477_v50 = vpop.f32.mrb[0].mxu0 }
 0x602   : > { %1482 = vst.msk [vmem:[#allocation2] sm:$0x7f] %vm7409_vm11, %v1477_v50  ;;  %v5660_v51 = vpop.f32.mrb[1].mxu0  ;;  %vm7484_vm11 = vcmp.eq.s32.totalorder %v6544_v58, 0 }
 0x605   : > { %v1712_v54 = vpop.f32.mrb[2].mxu0 }
 0x606   : > { %v1713_v56 = vadd.f32 %v1712_v54, %v1637_v53  ;;  %v5670_v57 = vpop.f32.mrb[3].mxu0 }
 0x608   : > { %v1716_v59 = vmul.f32 0.35355338, %v1713_v56 }
 0x60a   : > { %v1717_v60 = vsel %vm6590_vm14, %v1716_v59, -3.4028235e+38 }
 0x60b   : > { %v1718_v61 = vsel %vm7422_vm15, %v1717_v60, -inf }
 0x60c   : > { %1719 = vmax.xlane.f32.xlu1 %v1718_v61 }
 0x616   : > { %v1887_v62 = vpop.f32.mrb[4].mxu0 }
 0x617   : > { %v5680_v63 = vpop.f32.mrb[5].mxu0  ;;  %v1934_v1 = vrot.slane %v1887_v62, 1 }
 0x619   : > { %v1936_v2 = vsel %vm1265_vm4, %v1934_v1, 0.0 }
 0x61d   : > { %1730 = vrot.lane.b32.xlu1 %v6496_v30, %s7432_s15  ;;  %s7503_s15 = sld [smem:[#allocation12_spill]] }
 0x621   : > { %1968 = vrot.lane.b32.xlu1 %v6510_v35, %s7433_s11  ;;  %s7504_s11 = sld [smem:[#allocation14_spill]] }
 0x625   : > { %1893 = vperm.xlu1 %6074, %v1887_v62  }
 0x629   : > { %6075 = vset.pattern.permute.xlu1 %v6265_v26 }
 0x62a   : > { %1899 = vperm.xlu1 %6075, %v1887_v62  }
 0x62e   : > { %6076 = vset.pattern.permute.xlu1 %v6268_v38 }
 0x62f   : > { %1905 = vperm.xlu1 %6076, %v1887_v62  }
 0x633   : > { %6078 = vset.pattern.permute.xlu1 %v6270_v40 }
 0x634   : > { %1917 = vperm.xlu1 %6078, %v1887_v62  }
 0x638   : > { %6079 = vset.pattern.permute.xlu1 %v6271_v41 }
 0x639   : > { %1923 = vperm.xlu1 %6079, %v1887_v62  }
 0x63d   : > { %6081 = vset.pattern.permute.xlu1 %v6261_v0 }
 0x63e   : > { %1939 = vperm.xlu1 %6081, %v1936_v2  }
 0x642   : > { %6082 = vset.pattern.permute.xlu1 %v6265_v26 }
 0x643   : > { %1945 = vperm.xlu1 %6082, %v1936_v2  }
 0x647   : > { %6084 = vset.pattern.permute.xlu1 %v6269_v39 }
 0x648   : > { %1957 = vperm.xlu1 %6084, %v1936_v2  }
 0x64c   : > { %6085 = vset.pattern.permute.xlu1 %v6270_v40 }
 0x64d   : > { %1963 = vperm.xlu1 %6085, %v1936_v2  }
 0x651   : > { %2145 = vrot.lane.b32.xlu1 %v6488_v25, %s7413_s16 }
 0x652   : > { %6087 = vset.pattern.permute.xlu1 %v6265_v26 }
 0x655   : > { %2143 = vrot.lane.b32.xlu1 %v6501_v32, %s7413_s16 }
 0x699   : > { %v1720_v3 = vpop.xlane.xlu1 %1719 }
 0x69a   : > { %v1721_v4 = vsub.f32 %v1717_v60, %v1720_v3 }
 0x69c   : > { %v1722_v5 = vmul.f32 1.442695, %v1721_v4 }
 0x69d   : > { %v1731_v6 = vpop.permute.xlu1 %1730 }
 0x69e   : > { %6153 = vpow2.f32 %v1722_v5  ;;  %5672 = vmatpush3.msk.msra.mxu1 %vm7481_vm9, %v1731_v6  ;;  %vm7483_vm9 = vcmp.eq.s32.totalorder %v6544_v58, 4294967295 }
 0x69f   : > { %5681 = vmatprep.subr.mxu1 %v6264_v14 }
 0x6a1   : > { %v1969_v25 = vpop.permute.xlu1 %1968 }
 0x6a5   : > { %v1894_v32 = vpop.permute.xlu1 %1893 }
 0x6a6   : > { %v1896_v33 = vsel %vm1213_vm6, %v1894_v32, 0.0 }
 0x6a8   : > { %v6154_v7 = vpop.eup %6153 }
 0x6a9   : > { %v1724_v8 = vsel %vm7422_vm15, %v6154_v7, 0.0  ;;  %v1900_v9 = vpop.permute.xlu1 %1899 }
 0x6aa   : > { %1725 = vadd.xlane.f32.xlu0 %v1724_v8  ;;  %v1902_v29 = vsel %vm1221_vm5, %v1900_v9, 0.0 }
 0x6ab   : > { %v1903_v36 = vadd.f32 %v1902_v29, %v1896_v33 }
 0x6ae   : > { %v1906_v10 = vpop.permute.xlu1 %1905 }
 0x6af   : > { %v1908_v34 = vsel %vm1228_vm7, %v1906_v10, 0.0 }
 0x6b0   : > { %v1909_v44 = vadd.f32 %v1908_v34, %v1903_v36 }
 0x6b3   : > { %v1918_v12 = vpop.permute.xlu1 %1917 }
 0x6b4   : > { %v1920_v45 = vsel %vm7482_vm10, %v1918_v12, 0.0  ;;  %vm7485_vm10 = vcmp.eq.s32.totalorder %v6544_v58, 4 }
 0x6b8   : > { %v1924_v13 = vpop.permute.xlu1 %1923 }
 0x6b9   : > { %v1926_v49 = vsel %vm7483_vm9, %v1924_v13, 0.0  ;;  %vm7486_vm9 = vcmp.eq.s32.totalorder %v6544_v58, 5 }
 0x6bd   : > { %v1940_v15 = vpop.permute.xlu1 %1939 }
 0x6be   : > { %v1942_v53 = vsel %vm7425_vm12, %v1940_v15, 0.0 }
 0x6c0   : > { %1970 = vrot.lane.b32.xlu0 %v6496_v30, %s7431_s18  ;;  %s7502_s18 = sld [smem:[#allocation11_spill]] }
 0x6c2   : > { %v1946_v16 = vpop.permute.xlu1 %1945 }
 0x6c3   : > { %v1948_v56 = vsel %vm7424_vm13, %v1946_v16, 0.0 }
 0x6c4   : > { %1911 = vperm.xlu0 %6077, %v1887_v62  }
 0x6c7   : > { %v1958_v18 = vpop.permute.xlu1 %1957 }
 0x6c8   : > { %6080 = vset.pattern.permute.xlu0 %v6272_v42 }
 0x6c9   : > { %1929 = vperm.xlu0 %6080, %v1887_v62   ;;  %v1960_v62 = vsel %vm7486_vm9, %v1958_v18, 0.0  ;;  %vm7489_vm9 = vcmp.eq.s32.totalorder %v6544_v58, 4294967295 }
 0x6cc   : > { %v1964_v19 = vpop.permute.xlu1 %1963 }
 0x6cd   : > { %6083 = vset.pattern.permute.xlu0 %v6268_v38  ;;  %v1966_v3 = vsel %vm7423_vm2, %v1964_v19, 0.0 }
 0x6ce   : > { %1951 = vperm.xlu0 %6083, %v1936_v2  }
 0x6d0   : > { %v2146_v27 = vpop.permute.xlu1 %2145 }
 0x6d2   : > { %6086 = vset.pattern.permute.xlu0 %v6261_v0 }
 0x6d4   : > { %v2144_v28 = vpop.permute.xlu1 %2143 }
 0x737   : > { %v1726_v17 = vpop.xlane.xlu0 %1725 }
 0x738   : > { %6155 = vrcp.f32 %v1726_v17 }
 0x73b   : > { %v1971_v24 = vpop.permute.xlu0 %1970 }
 0x742   : > { %v6156_v20 = vpop.eup %6155 }
 0x743   : > { %v1728_v21 = vmul.f32 %v6156_v20, %v6154_v7  ;;  %v1912_v31 = vpop.permute.xlu0 %1911 }
 0x744   : > { %v1914_v43 = vsel %vm7426_vm8, %v1912_v31, 0.0 }
 0x745   : > { %v1729_v23 = vsel %vm6590_vm14, %v1728_v21, 0.0  ;;  %v1915_v46 = vadd.f32 %v1914_v43, %v1909_v44 }
 0x746   : > { %5674 = vmatmul.mubr.msk.f32.vlgmr.msra.gmra.mrb[8].mxu1 %vm7421_vm0, %v1729_v23 }
 0x747   : > { %5682 = vmatpush3.xpose.msk.msra.mxu1 %vm1136_vm3, %v1971_v24  ;;  %5683 = vmatprep.mubr.msk.f32.mxu1 %vm6263_vm1, %v6264_v14  ;;  %v1921_v47 = vadd.f32 %v1920_v45, %v1915_v46 }
 0x748   : > { %5691 = vmatprep.subr.mxu1 %v6264_v14  ;;  %v1930_v48 = vpop.permute.xlu0 %1929 }
 0x749   : > { %v1927_v50 = vadd.f32 %v1926_v49, %v1921_v47  ;;  %v1932_v51 = vsel %vm7484_vm11, %v1930_v48, 0.0  ;;  %vm7487_vm11 = vcmask 1046528  }
 0x74a   : > { %5684 = vmatmul.mubr.msk.f32.vlgmr.msra.gmra.mrb[10].mxu1 %vm1136_vm3, %v1969_v25 }
 0x74b   : > { %5692 = vmatpush3.xpose.msk.msra.mxu1 %vm1136_vm3, %v2146_v27  ;;  %5693 = vmatprep.mubr.msk.f32.mxu1 %vm6263_vm1, %v6264_v14  ;;  %v1933_v52 = vadd.f32 %v1932_v51, %v1927_v50 }
 0x74c   : > { %5701 = vmatprep.subr.mxu1 %v6264_v14 }
 0x74d   : > { %v1943_v54 = vadd.f32 %v1942_v53, %v1933_v52  ;;  %v1952_v57 = vpop.permute.xlu0 %1951 }
 0x74e   : > { %5694 = vmatmul.mubr.msk.f32.vlgmr.msra.gmra.mrb[12].mxu1 %vm1136_vm3, %v2144_v28  ;;  %v1954_v60 = vsel %vm7485_vm10, %v1952_v57, 0.0  ;;  %vm7488_vm10 = vcmp.eq.s32.totalorder %v6544_v58, 4294967294 }
 0x74f   : > { %5703 = vmatprep.mubr.msk.f32.mxu1 %vm6263_vm1, %v6264_v14  ;;  %v1949_v59 = vadd.f32 %v1948_v56, %v1943_v54 }
 0x751   : > { %v1955_v61 = vadd.f32 %v1954_v60, %v1949_v59 }
 0x753   : > { %v1961_v63 = vadd.f32 %v1960_v62, %v1955_v61 }
 0x755   : > { %v1967_v4 = vadd.f32 %v1966_v3, %v1961_v63 }
 0x819   : > { %v6729_v1 = vpop.f32.mrb[8].mxu1 }
 0x81a   : > { %v5675_v2 = vpop.f32.mrb[9].mxu1 }
 0x81d   : > { %v2042_v5 = vpop.f32.mrb[10].mxu1 }
 0x81e   : > { %v2043_v6 = vadd.f32 %v2042_v5, %v1967_v4  ;;  %v5685_v7 = vpop.f32.mrb[11].mxu1 }
 0x820   : > { %v2046_v8 = vmul.f32 0.35355338, %v2043_v6 }
 0x821   : > { %v2217_v25 = vpop.f32.mrb[12].mxu1 }
 0x822   : > { %v5695_v32 = vpop.f32.mrb[13].mxu1  ;;  %v2047_v9 = vsel %vm6590_vm14, %v2046_v8, -3.4028235e+38  ;;  %v2264_v12 = vrot.slane %v2217_v25, 1 }
 0x823   : > { %v2048_v10 = vsel %vm7422_vm15, %v2047_v9, -inf }
 0x824   : > { %2049 = vmax.xlane.f32.xlu0 %v2048_v10  ;;  %v2266_v13 = vsel %vm1265_vm4, %v2264_v12, 0.0 }
 0x83a   : > { %2060 = vrot.lane.b32.xlu0 %v6496_v30, %s7412_s2  ;;  %s7419_s2 = smov 16  }
 0x83e   : > { %2298 = vrot.lane.b32.xlu0 %v6510_v35, %s7413_s16  ;;  %s7415_s16 = smov 8  }
 0x842   : > { %2223 = vperm.xlu0 %6086, %v2217_v25  }
 0x846   : > { %6088 = vset.pattern.permute.xlu0 %v6268_v38 }
 0x847   : > { %2235 = vperm.xlu0 %6088, %v2217_v25  }
 0x84b   : > { %6091 = vset.pattern.permute.xlu0 %v6271_v41 }
 0x84c   : > { %2253 = vperm.xlu0 %6091, %v2217_v25  }
 0x850   : > { %6094 = vset.pattern.permute.xlu0 %v6265_v26 }
 0x851   : > { %2275 = vperm.xlu0 %6094, %v2266_v13  }
 0x855   : > { %6097 = vset.pattern.permute.xlu0 %v6270_v40 }
 0x856   : > { %2293 = vperm.xlu0 %6097, %v2266_v13  }
 0x85a   : > { %6101 = vset.pattern.permute.xlu0 %v6269_v39 }
 0x8b1   : > { %v2050_v15 = vpop.xlane.xlu0 %2049 }
 0x8b2   : > { %v2051_v35 = vsub.f32 %v2047_v9, %v2050_v15 }
 0x8b4   : > { %v2052_v16 = vmul.f32 1.442695, %v2051_v35 }
 0x8b5   : > { %v2061_v17 = vpop.permute.xlu0 %2060 }
 0x8b6   : > { %6157 = vpow2.f32 %v2052_v16  ;;  %5687 = vmatpush3.msk.msra.mxu0 %vm7487_vm11, %v2061_v17  ;;  %vm7490_vm11 = vcmp.eq.s32.totalorder %v6544_v58, 0 }
 0x8b7   : > { %5696 = vmatprep.subr.mxu0 %v6264_v14 }
 0x8b9   : > { %v2299_v28 = vpop.permute.xlu0 %2298 }
 0x8c0   : > { %v6158_v18 = vpop.eup %6157 }
 0x8c1   : > { %v2054_v19 = vsel %vm7422_vm15, %v6158_v18, 0.0  ;;  %v2224_v31 = vpop.permute.xlu0 %2223 }
 0x8c2   : > { %2055 = vadd.xlane.f32.xlu1 %v2054_v19  ;;  %v2226_v36 = vsel %vm1213_vm6, %v2224_v31, 0.0 }
 0x8c6   : > { %v2236_v43 = vpop.permute.xlu0 %2235 }
 0x8c7   : > { %v2238_v45 = vsel %vm1228_vm7, %v2236_v43, 0.0  ;;  %v2475_v43 = vld [vmem:[%s6338_s14 + $0x8] sm:$0xff] }
 0x8cb   : > { %v2254_v52 = vpop.permute.xlu0 %2253 }
 0x8cc   : > { %v2256_v56 = vsel %vm7489_vm9, %v2254_v52, 0.0  ;;  %vm7492_vm9 = vcmp.eq.s32.totalorder %v6544_v58, 5 }
 0x8d0   : > { %v2276_v63 = vpop.permute.xlu0 %2275 }
 0x8d1   : > { %v2278_v3 = vsel %vm7424_vm13, %v2276_v63, 0.0 }
 0x8d3   : > { %2300 = vrot.lane.b32.xlu1 %v6496_v30, %s7411_s0  ;;  %s7429_s0 = smov 40  }
 0x8d7   : > { %2229 = vperm.xlu1 %6087, %v2217_v25  }
 0x8db   : > { %6089 = vset.pattern.permute.xlu1 %v6269_v39 }
 0x8dc   : > { %2241 = vperm.xlu1 %6089, %v2217_v25  }
 0x8e0   : > { %6090 = vset.pattern.permute.xlu1 %v6270_v40 }
 0x8e1   : > { %2247 = vperm.xlu1 %6090, %v2217_v25  }
 0x8e5   : > { %6092 = vset.pattern.permute.xlu1 %v6272_v42 }
 0x8e6   : > { %2259 = vperm.xlu1 %6092, %v2217_v25   ;;  %v2294_v25 = vpop.permute.xlu0 %2293 }
 0x8e7   : > { %v2296_v12 = vsel %vm7423_vm2, %v2294_v25, 0.0 }
 0x8ea   : > { %6093 = vset.pattern.permute.xlu1 %v6261_v0 }
 0x8eb   : > { %2269 = vperm.xlu1 %6093, %v2266_v13  }
 0x8ef   : > { %6095 = vset.pattern.permute.xlu1 %v6268_v38 }
 0x8f0   : > { %2281 = vperm.xlu1 %6095, %v2266_v13  }
 0x8f4   : > { %6096 = vset.pattern.permute.xlu1 %v6269_v39 }
 0x8f5   : > { %2287 = vperm.xlu1 %6096, %v2266_v13  }
 0x8f9   : > { %6098 = vset.pattern.permute.xlu1 %v6261_v0 }
 0x94f   : > { %v2056_v20 = vpop.xlane.xlu1 %2055 }
 0x950   : > { %6159 = vrcp.f32 %v2056_v20 }
 0x953   : > { %v2301_v27 = vpop.permute.xlu1 %2300 }
 0x957   : > { %v2230_v29 = vpop.permute.xlu1 %2229 }
 0x958   : > { %v2232_v34 = vsel %vm1221_vm5, %v2230_v29, 0.0 }
 0x959   : > { %v2233_v44 = vadd.f32 %v2232_v34, %v2226_v36 }
 0x95a   : > { %v6160_v21 = vpop.eup %6159 }
 0x95b   : > { %v2058_v23 = vmul.f32 %v6160_v21, %v6158_v18  ;;  %v2242_v33 = vpop.permute.xlu1 %2241  ;;  %v2239_v47 = vadd.f32 %v2238_v45, %v2233_v44  ;;  %v2477_v45 = vld [vmem:[%s6338_s14 + $0x18] sm:$0xff] }
 0x95c   : > { %v2244_v48 = vsel %vm7426_vm8, %v2242_v33, 0.0  ;;  %vm7448_vm8 = vcmask 1044480  }
 0x95d   : > { %v2059_v24 = vsel %vm6590_vm14, %v2058_v23, 0.0  ;;  %v2245_v51 = vadd.f32 %v2244_v48, %v2239_v47 }
 0x95e   : > { %5689 = vmatmul.mubr.msk.f32.vlgmr.msra.gmra.mrb[6].mxu0 %vm7421_vm0, %v2059_v24 }
 0x95f   : > { %5697 = vmatpush3.xpose.msk.msra.mxu0 %vm1136_vm3, %v2301_v27  ;;  %5698 = vmatprep.mubr.msk.f32.mxu0 %vm6263_vm1, %v6264_v14 }
 0x960   : > { %5909 = vmatprep.subr.bf16.mxu0 %v6262_v11  ;;  %v2248_v46 = vpop.permute.xlu1 %2247 }
 0x961   : > { %v2250_v50 = vsel %vm7488_vm10, %v2248_v46, 0.0  ;;  %vm7491_vm10 = vcmp.eq.s32.totalorder %v6544_v58, 4  ;;  %v2476_v46 = vld [vmem:[%s6338_s14 + $0x10] sm:$0xff] }
 0x962   : > { %5699 = vmatmul.mubr.msk.f32.vlgmr.msra.gmra.mrb[8].mxu0 %vm1136_vm3, %v2299_v28  ;;  %v2251_v53 = vadd.f32 %v2250_v50, %v2245_v51  ;;  %v5913_v47 = vpack.c.bf16 %v2477_v45, %v2476_v46  ;;  %v2708_v45 = vsub.s32 1, %v6541_v55 }
 0x963   : > { %5714 = vmatprep.mubr.msk.f32.mxu0 %vm6263_vm1, %v6264_v14 }
 0x964   : > { %v2257_v57 = vadd.f32 %v2256_v56, %v2251_v53  ;;  %v5393_v53 = vld [vmem:[%s6343_s19] ss:$0 sm:$0xff] }
 0x965   : > { %v2260_v49 = vpop.permute.xlu1 %2259 }
 0x966   : > { %v2262_v59 = vsel %vm7490_vm11, %v2260_v49, 0.0  ;;  %vm7493_vm11 = vcmask 1046528  }
 0x967   : > { %v2263_v61 = vadd.f32 %v2262_v59, %v2257_v57 }
 0x96a   : > { %v2270_v54 = vpop.permute.xlu1 %2269 }
 0x96b   : > { %v2272_v60 = vsel %vm7425_vm12, %v2270_v54, 0.0  ;;  %v6221_v54 = vld [vmem:[%s6465_s26] sm:$0x7f]  ;;  %s7497_s26 = sld [smem:[#allocation8_spill]] }
 0x96c   : > { %v2273_v2 = vadd.f32 %v2272_v60, %v2263_v61 }
 0x96e   : > { %v2279_v4 = vadd.f32 %v2278_v3, %v2273_v2 }
 0x96f   : > { %v2282_v62 = vpop.permute.xlu1 %2281 }
 0x970   : > { %v2284_v6 = vsel %vm7491_vm10, %v2282_v62, 0.0  ;;  %vm7417_vm10 = vcmask 129088  }
 0x971   : > { %v2285_v8 = vadd.f32 %v2284_v6, %v2279_v4  ;;  %v2589_v4 = vld [vmem:[%s6358_s6] sm:$0xff] }
 0x974   : > { %v2288_v5 = vpop.permute.xlu1 %2287 }
 0x975   : > { %v2290_v7 = vsel %vm7492_vm9, %v2288_v5, 0.0  ;;  %vm7416_vm9 = vcmask 194688   ;;  %v2590_v5 = vld [vmem:[%s6358_s6 + $0x8] sm:$0xff] }
 0x976   : > { %v2291_v32 = vadd.f32 %v2290_v7, %v2285_v8  ;;  %v5916_v6 = vpack.c.bf16 %v2590_v5, %v2589_v4  ;;  %v2591_v7 = vld [vmem:[%s6358_s6 + $0x10] sm:$0xff]  ;;  %v2592_v8 = vld [vmem:[%s6358_s6 + $0x18] sm:$0xff] }
 0x977   : > { %v5919_v25 = vpack.c.bf16 %v2592_v8, %v2591_v7 }
 0x978   : > { %v2297_v13 = vadd.f32 %v2296_v12, %v2291_v32 }
 0xa31   : > { %v2133_v9 = vpop.f32.mrb[6].mxu0 }
 0xa32   : > { %v5690_v10 = vpop.f32.mrb[7].mxu0 }
 0xa35   : > { %v2372_v15 = vpop.f32.mrb[8].mxu0 }
 0xa36   : > { %v2373_v35 = vadd.f32 %v2372_v15, %v2297_v13  ;;  %v5700_v16 = vpop.f32.mrb[9].mxu0  ;;  %v5394_v13 = vld [vmem:[%s6348_s24] ss:$0 sm:$0xff] }
 0xa38   : > { %v2376_v17 = vmul.f32 0.35355338, %v2373_v35  ;;  %v5395_v35 = vld [vmem:[%s6353_s30] ss:$0 sm:$0xff] }
 0xa3a   : > { %v2377_v18 = vsel %vm6590_vm14, %v2376_v17, -3.4028235e+38 }
 0xa3b   : > { %v2378_v19 = vsel %vm7422_vm15, %v2377_v18, -inf }
 0xa3c   : > { %2379 = vmax.xlane.f32.xlu1 %v2378_v19 }
 0xa4d   : > { %2390 = vrot.lane.b32.xlu1 %v6496_v30, %s7429_s0  ;;  %s7501_s0 = sld [smem:[#allocation10_spill]] }
 0xa51   : > { %2138 = vrot.lane.b32.xlu1 %v2133_v9, %s7419_s2  ;;  %s7500_s2 = sld [smem:[#allocation9_spill]] }
 0xa57   : > { %v2684_v46 = vld [vmem:[%s7500_s2] sm:$0x7f] }
 0xac9   : > { %v2380_v20 = vpop.xlane.xlu1 %2379 }
 0xaca   : > { %v2381_v21 = vsub.f32 %v2377_v18, %v2380_v20  ;;  %v5396_v18 = vld [vmem:[%s7497_s26] ss:$0 sm:$0xff] }
 0xacc   : > { %v2382_v23 = vmul.f32 1.442695, %v2381_v21 }
 0xacd   : > { %v2391_v24 = vpop.permute.xlu1 %2390 }
 0xace   : > { %6161 = vpow2.f32 %v2382_v23  ;;  %5702 = vmatpush3.msk.msra.mxu1 %vm7493_vm11, %v2391_v24  ;;  %vm7420_vm11 = vcmask 260288  }
 0xacf   : > { %5915 = vmatprep.subr.bf16.mxu1 %v6262_v11 }
 0xad1   : > { %v2139_v31 = vpop.permute.xlu1 %2138 }
 0xad8   : > { %v6162_v27 = vpop.eup %6161 }
 0xad9   : > { %v2384_v28 = vsel %vm7422_vm15, %v6162_v27, 0.0 }
 0xada   : > { %2385 = vadd.xlane.f32.xlu0 %v2384_v28 }
 0xaf0   : > { %1808 = vrot.lane.b32.xlu0 %v6729_v1, %s7415_s16  ;;  %v2474_v1 = vld [vmem:[%s6338_s14] sm:$0xff]  ;;  %s7418_s16 = smov 24  }
 0xaf1   : > { %v5910_v44 = vpack.c.bf16 %v2475_v43, %v2474_v1  ;;  %v6849_v1 = vadd.s32 4294967293, %v6541_v55  ;;  %v6852_v43 = vadd.s32 4294967294, %v6541_v55 }
 0xaf3   : > { %5911 = vmatpush3.bf16.msra.mxu0 %v5910_v44  ;;  %v6855_v44 = vadd.s32 4294967295, %v6541_v55  ;;  %vm7428_vm15 = vcmp.ge.s32.totalorder %v6849_v1, 0  ;;  %vm980_vm2 = vcmp.ge.s32.totalorder %v6852_v43, 0 }
 0xaf4   : > { %5912 = vmatprep.subr.bf16.mxu0 %v6262_v11 }
 0xaf5   : > { %vm7430_vm13 = vcmp.ge.s32.totalorder %v6855_v44, 0 }
 0xaf7   : > { %5914 = vmatpush3.bf16.msra.mxu0 %v5913_v47  ;;  %v2721_v47 = vsub.s32 2, %v6541_v55 }
 0xaf8   : > { %5921 = vmatprep.subr.bf16.mxu0 %v6262_v11 }
 0xb67   : > { %v2386_v30 = vpop.xlane.xlu0 %2385 }
 0xb68   : > { %6163 = vrcp.f32 %v2386_v30 }
 0xb6b   : > { %v1809_v29 = vpop.permute.xlu0 %1808 }
 0xb6c   : > { %1812 = vst.msk [vmem:[#allocation2] sm:$0x7f] %vm7417_vm10, %v1809_v29  ;;  %vm7495_vm10 = vcmask 260096  }
 0xb6d   : > { %2142 = vst.msk [vmem:[#allocation2] sm:$0x7f] %vm7416_vm9, %v2139_v31  ;;  %vm7494_vm9 = vcmask 261120  }
 0xb72   : > { %v6164_v33 = vpop.eup %6163 }
 0xb73   : > { %v2388_v34 = vmul.f32 %v6164_v33, %v6162_v27 }
 0xb75   : > { %v2389_v36 = vsel %vm6590_vm14, %v2388_v34, 0.0 }
 0xb76   : > { %5704 = vmatmul.mubr.msk.f32.vlgmr.msra.gmra.mrb[14].mxu1 %vm7421_vm0, %v2389_v36  ;;  %vm7427_vm0 = vcmask 1040384  }
 0xb77   : > { %5725 = vmatprep.mubr.msk.f32.mxu1 %vm6263_vm1, %v6264_v14  ;;  %5917 = vmatpush3.bf16.msra.mxu1 %v5916_v6 }
 0xb78   : > { %5918 = vmatprep.subr.bf16.mxu1 %v6262_v11 }
 0xb7b   : > { %5920 = vmatpush3.bf16.msra.mxu1 %v5919_v25 }
 0xb7c   : > { %5927 = vmatprep.subr.bf16.mxu1 %v6262_v11 }
 0xc49   : > { %v2463_v48 = vpop.f32.mrb[14].mxu1 }
 0xc4a   : > { %2468 = vrot.lane.b32.xlu1 %v2463_v48, %s7418_s16  ;;  %v5705_v49 = vpop.f32.mrb[15].mxu1  ;;  %s7498_s16 = sld [smem:[#allocation13_spill]]  ;;  %v2730_v48 = vsub.s32 3, %v6541_v55 }
 0xc4b   : > { %v2696_v49 = vrot.slane %v2684_v46, %v6580_v22 }
 0xc50   : > { %v2803_v28 = vld [vmem:[%s7498_s16] sm:$0xff]  ;;  %v2804_v30 = vld [vmem:[%s7498_s16 + $0x8] sm:$0xff]  ;;  %v2805_v29 = vld [vmem:[%s7498_s16 + $0x10] sm:$0xff] }
 0xc51   : > { %v5922_v31 = vpack.c.bf16 %v2804_v30, %v2803_v28  ;;  %v2806_v33 = vld [vmem:[%s7498_s16 + $0x18] sm:$0xff] }
 0xc52   : > { %v5925_v34 = vpack.c.bf16 %v2806_v33, %v2805_v29 }
 0xcbc   : > { %v2469_v50 = vpop.permute.xlu1 %2468 }
 0xcbd   : > { %2472 = vst.msk [vmem:[#allocation2] sm:$0x7f] %vm7420_vm11, %v2469_v50  ;;  %vm2701_vm11 = vcmask 1041408  }
 0xcc4   : > { %v2473_v51 = vld [vmem:[#allocation2] sm:$0x7f] }
 0xcc5   : > { %5715 = vmatmul.mubr.msk.f32.vlgmr.msra.gmra.mrb[10].mxu0 %vm7494_vm9, %v2473_v51  ;;  %vm7496_vm9 = vmmov %vm7495_vm10  ;;  %v6864_v51 = vadd.s32 1, %v6541_v55 }
 0xcc6   : > { %5736 = vmatprep.mubr.msk.f32.mxu0 %vm6263_vm1, %v6264_v14  ;;  %5923 = vmatpush3.bf16.msra.mxu0 %v5922_v31 }
 0xcc7   : > { %5924 = vmatprep.subr.bf16.mxu0 %v6262_v11  ;;  %vm7447_vm12 = vcmp.le.s32.totalorder %v6864_v51, 6 }
 0xcca   : > { %5926 = vmatpush3.bf16.msra.mxu0 %v5925_v34 }
 0xccb   : > { %5933 = vmatprep.subr.bf16.mxu0 %v6262_v11 }
 0xd98   : > { %v2547_v52 = vpop.f32.mrb[10].mxu0 }
 0xd99   : > { %v2551_v56 = vadd.f32 %v6221_v54, %v2547_v52  ;;  %v5716_v57 = vpop.f32.mrb[11].mxu0  ;;  %v2722_v54 = vrot.slane %v2684_v46, %v2721_v47 }
 0xd9a   : > { %v6876_v57 = vadd.s32 2, %v6541_v55 }
 0xd9b   : > { %v6823_v59 = vadd.f32 %v5393_v53, %v2551_v56  ;;  %v2709_v53 = vrot.slane %v2684_v46, %v2708_v45  ;;  %v2731_v56 = vrot.slane %v2684_v46, %v2730_v48 }
 0xd9d   : > { %v2562_v60 = vsel %vm7495_vm10, %v6823_v59, 0.0  ;;  %vm7499_vm10 = vcmask 261120  }
 0xd9e   : > { %2563 = vadd.xlane.f32.xlu0 %v2562_v60 }
 0xe2b   : > { %v2564_v61 = vpop.xlane.xlu0 %2563 }
 0xe2c   : > { %v2565_v62 = vmul.f32 0.03125, %v2564_v61 }
 0xe2e   : > { %v2566_v63 = vsub.f32 %v6823_v59, %v2565_v62 }
 0xe30   : > { %v2567_v2 = vmul.f32 %v2566_v63, %v2566_v63 }
 0xe32   : > { %v2568_v3 = vsel %vm7496_vm9, %v2567_v2, 0.0  ;;  %vm988_vm9 = vcmp.le.s32.totalorder %v6541_v55, 6 }
 0xe33   : > { %2569 = vadd.xlane.f32.xlu1 %v2568_v3  ;;  %v2742_v3 = vsub.s32 4, %v6541_v55 }
 0xec0   : > { %v2570_v32 = vpop.xlane.xlu1 %2569 }
 0xec1   : > { %v2571_v9 = vmul.f32 0.03125, %v2570_v32 }
 0xec3   : > { %v2572_v10 = vadd.f32 1e-05, %v2571_v9  ;;  %v2755_v9 = vsub.s32 5, %v6541_v55 }
 0xec5   : > { %6165 = vrsqrt.f32 %v2572_v10 }
 0xecf   : > { %v6166_v12 = vpop.eup %6165 }
 0xed0   : > { %v2574_v15 = vmul.f32 %v6166_v12, %v2566_v63  ;;  %v6879_v63 = vadd.s32 3, %v6541_v55 }
 0xed2   : > { %v2581_v16 = vmul.f32 %v5394_v13, %v2574_v15 }
 0xed4   : > { %v2588_v17 = vadd.f32 %v5395_v35, %v2581_v16  ;;  %v2743_v16 = vrot.slane %v2684_v46, %v2742_v3 }
 0xed6   : > { %5726 = vmatmul.mubr.msk.f32.vlgmr.msra.gmra.mrb[16].mxu1 %vm7499_vm10, %v2588_v17  ;;  %vm2688_vm10 = vcmask 1042432  }
 0xed7   : > { %5747 = vmatprep.mubr.msk.f32.mxu1 %vm6263_vm1, %v6264_v14 }
 0xfa9   : > { %v2669_v19 = vpop.f32.mrb[16].mxu1 }
 0xfaa   : > { %v2670_v20 = vadd.f32 %v5396_v18, %v2669_v19  ;;  %v5727_v21 = vpop.f32.mrb[17].mxu1 }
 0xfac   : > { %v5398_v23 = vmul.f32 -1.442695, %v2670_v20 }
 0xfae   : > { %6167 = vpow2.f32 %v5398_v23 }
 0xfb8   : > { %v6168_v24 = vpop.eup %6167 }
 0xfb9   : > { %v2676_v27 = vadd.f32 1.0, %v6168_v24 }
 0xfbb   : > { %6169 = vrcp.f32 %v2676_v27  ;;  %v2756_v27 = vrot.slane %v2684_v46, %v2755_v9 }
 0xfc5   : > { %v6170_v36 = vpop.eup %6169 }
 0xfc6   : > { %2680 = vrot.lane.b32.xlu0 %v6170_v36, %s7441_s28  ;;  %s7511_s28 = sld [smem:[#allocation19_spill]] }
0x1038   : > { %v2681_v50 = vpop.permute.xlu0 %2680 }
0x1039   : > { %v2683_v52 = vmul.f32 %v2681_v50, %v2670_v20  ;;  %v2768_v20 = vsub.s32 6, %v6541_v55 }
0x103b   : > { %v2686_v60 = vrot.slane %v2683_v52, 5  ;;  %v2699_v61 = vrot.slane %v2683_v52, 6  ;;  %v2712_v62 = vrot.slane %v2683_v52, 7  ;;  %v2734_v2 = vrot.slane %v2683_v52, 1 }
0x103c   : > { %v2746_v7 = vrot.slane %v2683_v52, 2  ;;  %v2759_v15 = vrot.slane %v2683_v52, 3  ;;  %v2727_v35 = vsel %vm988_vm9, %v2683_v52, 0.0  ;;  %v2769_v33 = vrot.slane %v2684_v46, %v2768_v20 }
0x103d   : > { %v2689_v4 = vsel %vm2688_vm10, 0.0, %v2686_v60  ;;  %v2702_v5 = vsel %vm2701_vm11, 0.0, %v2699_v61  ;;  %v2715_v6 = vsel %vm7427_vm0, 0.0, %v2712_v62  ;;  %v2736_v13 = vsel %vm1265_vm4, %v2734_v2, 0.0  ;;  %v5401_v61 = vld [vmem:[%s7503_s15] ss:$0 sm:$0xff] }
0x103e   : > { %v2692_v8 = vsel %vm7428_vm15, %v2689_v4, 0.0  ;;  %v2705_v25 = vsel %vm980_vm2, %v2702_v5, 0.0  ;;  %v2718_v32 = vsel %vm7430_vm13, %v2715_v6, 0.0  ;;  %vm7437_vm0 = vcmp.le.s32.totalorder %v6876_v57, 6 }
0x103f   : > { %v2697_v10 = vmul.f32 %v2696_v49, %v2692_v8  ;;  %v2710_v12 = vmul.f32 %v2709_v53, %v2705_v25  ;;  %vm7444_vm15 = vcmask 1043456   ;;  %v2723_v17 = vmul.f32 %v2722_v54, %v2718_v32  ;;  %v5399_v53 = vld [vmem:[%s7501_s0] ss:$0 sm:$0xff] }
0x1040   : > { %v2749_v19 = vsel %vm7448_vm8, %v2746_v7, 0.0  ;;  %vm7435_vm13 = vcmp.le.s32.totalorder %v6879_v63, 6  ;;  %v2739_v21 = vsel %vm7447_vm12, %v2736_v13, 0.0  ;;  %v2732_v23 = vmul.f32 %v2731_v56, %v2727_v35  ;;  %v5400_v56 = vld [vmem:[%s7502_s18] ss:$0 sm:$0xff] }
0x1041   : > { %v2711_v18 = vadd.f32 %v2710_v12, %v2697_v10  ;;  %v2762_v28 = vsel %vm7444_vm15, %v2759_v15, 0.0  ;;  %v2752_v30 = vsel %vm7437_vm0, %v2749_v19, 0.0  ;;  %v2744_v31 = vmul.f32 %v2743_v16, %v2739_v21  ;;  %v5404_v25 = vld [vmem:[%s7504_s11] ss:$0 sm:$0xff]  ;;  %v2919_v21 = vld [vmem:[%s7506_s10 + $0x8] sm:$0xff] }
0x1042   : > { %v2765_v34 = vsel %vm7435_vm13, %v2762_v28, 0.0  ;;  %v2757_v49 = vmul.f32 %v2756_v27, %v2752_v30  ;;  %vm7505_vm13 = vcmask 261120   ;;  %vm7507_vm0 = vcmask 260096   ;;  %v2918_v19 = vld [vmem:[%s7506_s10] sm:$0xff] }
0x1043   : > { %v2724_v24 = vadd.f32 %v2723_v17, %v2711_v18  ;;  %v2770_v52 = vmul.f32 %v2769_v33, %v2765_v34  ;;  %v5405_v33 = vld [vmem:[%s7509_s7] ss:$0 sm:$0xff]  ;;  %vm7526_vm12 = vcmp.eq.s32.totalorder %v6544_v58, 0  ;;  %vm7527_vm8 = vcmp.eq.s32.totalorder %v6544_v58, 2 }
0x1045   : > { %v2733_v29 = vadd.f32 %v2732_v23, %v2724_v24  ;;  %v2920_v23 = vld [vmem:[%s7506_s10 + $0x10] sm:$0xff]  ;;  %v2921_v24 = vld [vmem:[%s7506_s10 + $0x18] sm:$0xff] }
0x1046   : > { %v5931_v27 = vpack.c.bf16 %v2921_v24, %v2920_v23 }
0x1047   : > { %v2745_v36 = vadd.f32 %v2744_v31, %v2733_v29 }
0x1049   : > { %v2758_v50 = vadd.f32 %v2757_v49, %v2745_v36  ;;  %v5406_v36 = vld [vmem:[%s7510_s1] ss:$0 sm:$0xff] }
0x104b   : > { %v2771_v54 = vadd.f32 %v2770_v52, %v2758_v50  ;;  %v3009_v52 = vld [vmem:[%s7511_s28] sm:$0xff] }
0x104d   : > { %v2779_v60 = vadd.f32 %v5399_v53, %v2771_v54  ;;  %v3010_v53 = vld [vmem:[%s7511_s28 + $0x8] sm:$0xff] }
0x104e   : > { %v5934_v54 = vpack.c.bf16 %v3010_v53, %v3009_v52 }
0x104f   : > { %v2787_v62 = vmul.f32 %v5400_v56, %v2779_v60  ;;  %v3011_v56 = vld [vmem:[%s7511_s28 + $0x10] sm:$0xff]  ;;  %v3012_v60 = vld [vmem:[%s7511_s28 + $0x18] sm:$0xff] }
0x1051   : > { %v2795_v2 = vadd.f32 %v5401_v61, %v2787_v62  ;;  %v5937_v61 = vpack.c.bf16 %v3012_v60, %v3011_v56  ;;  %v3013_v62 = vld [vmem:[%s7511_s28 + $0x20] sm:$0xff] }
0x1053   : > { %v5402_v4 = vmul.f32 -1.442695, %v2795_v2 }
0x1055   : > { %6171 = vpow2.f32 %v5402_v4 }
0x105f   : > { %v6172_v5 = vpop.eup %6171 }
0x1060   : > { %v2799_v6 = vadd.f32 1.0, %v6172_v5  ;;  %v3015_v5 = vld [vmem:[%s7511_s28 + $0x30] sm:$0xff] }
0x1062   : > { %6173 = vrcp.f32 %v2799_v6  ;;  %v3016_v6 = vld [vmem:[%s7511_s28 + $0x38] sm:$0xff] }
0x106c   : > { %v6174_v46 = vpop.eup %6173 }
0x106d   : > { %v2802_v7 = vmul.f32 %v6174_v46, %v2795_v2  ;;  %v3014_v2 = vld [vmem:[%s7511_s28 + $0x28] sm:$0xff]  ;;  %v5943_v46 = vpack.c.bf16 %v3016_v6, %v3015_v5 }
0x106e   : > { %v5940_v4 = vpack.c.bf16 %v3014_v2, %v3013_v62  ;;  %v5419_v5 = vld [vmem:[%s6318_s25 + $0x28] sm:$0xff] }
0x106f   : > { %5737 = vmatmul.mubr.msk.f32.vlgmr.msra.gmra.mrb[12].mxu0 %vm7505_vm13, %v2802_v7  ;;  %vm7508_vm13 = vmmov %vm7507_vm0  ;;  %v5407_v7 = vld [vmem:[%s7513_s5] ss:$0 sm:$0xff] }
0x1070   : > { %5766 = vmatprep.mubr.msk.f32.mxu0 %vm6263_vm1, %v6264_v14  ;;  %5935 = vmatpush3.bf16.msra.mxu0 %v5934_v54 }
0x1071   : > { %5936 = vmatprep.subr.bf16.mxu0 %v6262_v11 }
0x1074   : > { %5938 = vmatpush3.bf16.msra.mxu0 %v5937_v61 }
0x1075   : > { %5939 = vmatprep.subr.bf16.mxu0 %v6262_v11 }
0x1078   : > { %5941 = vmatpush3.bf16.msra.mxu0 %v5940_v4  ;;  %v5418_v4 = vld [vmem:[%s6318_s25 + $0x20] sm:$0xff] }
0x1079   : > { %5942 = vmatprep.subr.bf16.mxu0 %v6262_v11  ;;  %v5946_v6 = vpack.c.bf16 %v5419_v5, %v5418_v4 }
0x107c   : > { %5944 = vmatpush3.bf16.msra.mxu0 %v5943_v46  ;;  %v5420_v46 = vld [vmem:[%s6318_s25 + $0x30] sm:$0xff] }
0x107d   : > { %5790 = vmatprep.subr.mxu0 %v6264_v14 }
0x1142   : > { %v2876_v8 = vpop.f32.mrb[12].mxu0 }
0x1143   : > { %v2880_v32 = vadd.f32 %v2876_v8, %v6823_v59  ;;  %v5738_v10 = vpop.f32.mrb[13].mxu0  ;;  %v5928_v59 = vpack.c.bf16 %v2919_v21, %v2918_v19 }
0x1145   : > { %v6921_v12 = vadd.f32 %v5404_v25, %v2880_v32  ;;  %5929 = vmatpush3.bf16.msra.mxu1 %v5928_v59 }
0x1146   : > { %5930 = vmatprep.subr.bf16.mxu1 %v6262_v11 }
0x1147   : > { %v2891_v13 = vsel %vm7507_vm0, %v6921_v12, 0.0  ;;  %vm7512_vm0 = vcmask 261120  }
0x1148   : > { %2892 = vadd.xlane.f32.xlu1 %v2891_v13 }
0x1149   : > { %5932 = vmatpush3.bf16.msra.mxu1 %v5931_v27 }
0x114a   : > { %5945 = vmatprep.subr.bf16.mxu1 %v6262_v11 }
0x11d5   : > { %v2893_v15 = vpop.xlane.xlu1 %2892 }
0x11d6   : > { %v2894_v35 = vmul.f32 0.03125, %v2893_v15 }
0x11d8   : > { %v2895_v16 = vsub.f32 %v6921_v12, %v2894_v35 }
0x11da   : > { %v2896_v17 = vmul.f32 %v2895_v16, %v2895_v16 }
0x11dc   : > { %v2897_v18 = vsel %vm7508_vm13, %v2896_v17, 0.0  ;;  %vm7446_vm13 = vcmask 523264  }
0x11dd   : > { %2898 = vadd.xlane.f32.xlu1 %v2897_v18  ;;  %v5411_v18 = vld [vmem:[%s7514_s13] ss:$0 sm:$0xff] }
0x126a   : > { %v2899_v28 = vpop.xlane.xlu1 %2898 }
0x126b   : > { %v2900_v30 = vmul.f32 0.03125, %v2899_v28 }
0x126d   : > { %v2901_v29 = vadd.f32 1e-05, %v2900_v30 }
0x126f   : > { %6175 = vrsqrt.f32 %v2901_v29 }
0x1279   : > { %v6176_v31 = vpop.eup %6175 }
0x127a   : > { %v2903_v34 = vmul.f32 %v6176_v31, %v2895_v16 }
0x127c   : > { %v2910_v49 = vmul.f32 %v5405_v33, %v2903_v34 }
0x127e   : > { %v2917_v50 = vadd.f32 %v5406_v36, %v2910_v49  ;;  %v5412_v36 = vld [vmem:[%s7515_s22] ss:$0 sm:$0xff]  ;;  %s7521_s22 = smov 96  }
0x1280   : > { %5748 = vmatmul.mubr.msk.f32.vlgmr.msra.gmra.mrb[18].mxu1 %vm7512_vm0, %v2917_v50  ;;  %vm7517_vm0 = vcmask 260096   ;;  %v5413_v50 = vld [vmem:[%s6433_s27] ss:$0 sm:$0xff] }
0x1281   : > { %5777 = vmatprep.mubr.msk.f32.mxu1 %vm6263_vm1, %v6264_v14  ;;  %vm7518_vm15 = vmmov %vm7517_vm0  ;;  %5947 = vmatpush3.bf16.msra.mxu1 %v5946_v6 }
0x1282   : > { %5948 = vmatprep.subr.bf16.mxu1 %v6262_v11 }
0x1353   : > { %v2998_v8 = vpop.f32.mrb[18].mxu1 }
0x1354   : > { %v2999_v25 = vadd.f32 %v5407_v7, %v2998_v8  ;;  %v5749_v32 = vpop.f32.mrb[19].mxu1  ;;  %v5421_v7 = vld [vmem:[%s6318_s25 + $0x38] sm:$0xff] }
0x1355   : > { %v5949_v8 = vpack.c.bf16 %v5421_v7, %v5420_v46 }
0x1356   : > { %v5409_v10 = vmul.f32 -1.442695, %v2999_v25 }
0x1357   : > { %5950 = vmatpush3.bf16.msra.mxu1 %v5949_v8 }
0x1358   : > { %6177 = vpow2.f32 %v5409_v10  ;;  %5780 = vmatprep.subr.mxu1 %v6264_v14 }
0x1362   : > { %v6178_v13 = vpop.eup %6177 }
0x1363   : > { %v3005_v15 = vadd.f32 1.0, %v6178_v13 }
0x1365   : > { %6179 = vrcp.f32 %v3005_v15  ;;  %v5416_v15 = vld [vmem:[%s6308_s17 + $0x1] ss:$0 sm:$0xff] }
0x136f   : > { %v6180_v35 = vpop.eup %6179 }
0x1370   : > { %v3008_v16 = vmul.f32 %v6180_v35, %v2999_v25 }
0x1372   : > { %5767 = vmatmul.mubr.msk.f32.vlgmr.msra.gmra.mrb[14].mxu0 %vm7446_vm13, %v3008_v16  ;;  %v5417_v16 = vld [vmem:[%s6313_s21 + $0x1] ss:$0 sm:$0xff]  ;;  %vm7525_vm13 = vcmp.eq.s32.totalorder %v6544_v58, 4294967295 }
0x1373   : > { %5792 = vmatprep.mubr.msk.f32.mxu0 %vm6263_vm1, %v6264_v14 }
0x1445   : > { %v3087_v17 = vpop.f32.mrb[14].mxu0 }
0x1446   : > { %v3091_v19 = vadd.f32 %v3087_v17, %v6921_v12  ;;  %v5768_v21 = vpop.f32.mrb[15].mxu0 }
0x1447   : > { %v5423_v21 = vld [vmem:[%s6323_s29 + $0x1] ss:$0 sm:$0xff] }
0x1448   : > { %v3099_v59 = vadd.f32 %v5411_v18, %v3091_v19  ;;  %v6978_v19 = vld [vmem:[%s7471_s9 + $0x8] sm:$0x7f]  ;;  %s7585_s9 = smov 8  }
0x144a   : > { %v3102_v23 = vsel %vm7517_vm0, %v3099_v59, 0.0 }
0x144b   : > { %3103 = vadd.xlane.f32.xlu1 %v3102_v23  ;;  %v5429_v23 = vld [vmem:[%s7473_s8 + $0x1] ss:$0 sm:$0xff]  ;;  %s7522_s8 = smov 120  }
0x14d8   : > { %v3104_v24 = vpop.xlane.xlu1 %3103 }
0x14d9   : > { %v3105_v27 = vmul.f32 0.03125, %v3104_v24 }
0x14db   : > { %v3106_v28 = vsub.f32 %v3099_v59, %v3105_v27 }
0x14dd   : > { %v3107_v30 = vmul.f32 %v3106_v28, %v3106_v28 }
0x14df   : > { %v3108_v29 = vsel %vm7518_vm15, %v3107_v30, 0.0  ;;  %vm7519_vm15 = vmmov %vm7517_vm0  ;;  %v5427_v30 = vld [vmem:[%s7472_s3 + $0x1] ss:$0 sm:$0xff]  ;;  %s7533_s3 = smov 64  }
0x14e0   : > { %3109 = vadd.xlane.f32.xlu1 %v3108_v29 }
0x156d   : > { %v3110_v31 = vpop.xlane.xlu1 %3109 }
0x156e   : > { %v3111_v33 = vmul.f32 0.03125, %v3110_v31 }
0x1570   : > { %v3112_v34 = vadd.f32 1e-05, %v3111_v33 }
0x1572   : > { %6181 = vrsqrt.f32 %v3112_v34 }
0x157c   : > { %v6182_v12 = vpop.eup %6181 }
0x157d   : > { %v3114_v49 = vmul.f32 %v6182_v12, %v3106_v28 }
0x157f   : > { %v3121_v52 = vmul.f32 %v5412_v36, %v3114_v49 }
0x1581   : > { %v6960_v53 = vadd.f32 %v5413_v50, %v3121_v52 }
0x1583   : > { %v3133_v54 = vsel %vm7517_vm0, %v6960_v53, 0.0  ;;  %vm7520_vm0 = vcmask 261120  }
0x1584   : > { %3134 = vadd.xlane.f32.xlu1 %v3133_v54 }
0x1611   : > { %v3135_v56 = vpop.xlane.xlu1 %3134 }
0x1612   : > { %v3136_v60 = vmul.f32 0.03125, %v3135_v56 }
0x1614   : > { %v3137_v61 = vsub.f32 %v6960_v53, %v3136_v60 }
0x1616   : > { %v3138_v62 = vmul.f32 %v3137_v61, %v3137_v61 }
0x1618   : > { %v3139_v2 = vsel %vm7519_vm15, %v3138_v62, 0.0  ;;  %vm7523_vm15 = vcmp.eq.s32.totalorder %v6544_v58, 4294967293 }
0x1619   : > { %3140 = vadd.xlane.f32.xlu0 %v3139_v2 }
0x16a6   : > { %v3141_v25 = vpop.xlane.xlu0 %3140 }
0x16a7   : > { %v3142_v32 = vmul.f32 0.03125, %v3141_v25 }
0x16a9   : > { %v3143_v10 = vadd.f32 1e-05, %v3142_v32 }
0x16ab   : > { %6183 = vrsqrt.f32 %v3143_v10 }
0x16b5   : > { %v6184_v13 = vpop.eup %6183 }
0x16b6   : > { %v3145_v35 = vmul.f32 %v6184_v13, %v3137_v61 }
0x16b8   : > { %v3152_v17 = vmul.f32 %v5416_v15, %v3145_v35 }
0x16ba   : > { %v3159_v18 = vadd.f32 %v5417_v16, %v3152_v17 }
0x16bc   : > { %5778 = vmatmul.mubr.msk.f32.vlgmr.msra.gmra.mrb[20].mxu1 %vm7520_vm0, %v3159_v18  ;;  %vm7524_vm0 = vcmp.eq.s32.totalorder %v6544_v58, 4294967294 }
0x16bd   : > { %5782 = vmatprep.mubr.msk.f32.mxu1 %vm6263_vm1, %v6264_v14  ;;  %5781 = vmatpush3.xpose.msk.msra.mxu1 %vm1136_vm3, %v6978_v19 }
0x16be   : > { %5785 = vmatprep.subr.mxu1 %v6264_v14 }
0x178f   : > { %v3242_v59 = vpop.f32.mrb[20].mxu1 }
0x1790   : > { %v6985_v24 = vadd.f32 %v5423_v21, %v3242_v59  ;;  %v5779_v27 = vpop.f32.mrb[21].mxu1 }
0x1792   : > { %3420 = vrot.lane.b32.xlu1 %v6985_v24, %s7521_s22  ;;  %v6990_v28 = vadd.f32 %v5429_v23, %v6985_v24  ;;  %v6999_v31 = vadd.f32 %v5427_v30, %v6985_v24 }
0x1794   : > { %5783 = vmatmul.mubr.msk.f32.vlgmr.msra.gmra.mrb[22].mxu1 %vm1136_vm3, %v6990_v28 }
0x1795   : > { %5787 = vmatprep.mubr.msk.f32.mxu1 %vm6263_vm1, %v6264_v14 }
0x1804   : > { %v3421_v29 = vpop.permute.xlu1 %3420 }
0x1805   : > { %5786 = vmatpush3.xpose.msk.msra.mxu1 %vm1136_vm3, %v3421_v29 }
0x1806   : > { %5795 = vmatprep.subr.mxu1 %v6264_v14 }
0x1808   : > { %5788 = vmatmul.mubr.msk.f32.vlgmr.msra.gmra.mrb[24].mxu1 %vm1136_vm3, %v6999_v31 }
0x1809   : > { %5797 = vmatprep.mubr.msk.f32.mxu1 %vm6263_vm1, %v6264_v14 }
0x1867   : > { %v3338_v33 = vpop.f32.mrb[22].mxu1 }
0x1868   : > { %3362 = vperm.xlu0 %6101, %v3338_v33   ;;  %3344 = vperm.xlu1 %6098, %v3338_v33   ;;  %v5784_v34 = vpop.f32.mrb[23].mxu1  ;;  %v3385_v12 = vrot.slane %v3338_v33, 1 }
0x186a   : > { %v3387_v36 = vsel %vm1265_vm4, %v3385_v12, 0.0 }
0x186c   : > { %3591 = vrot.lane.b32.xlu0 %v6978_v19, %s7522_s8  ;;  %6099 = vset.pattern.permute.xlu1 %v6265_v26 }
0x186d   : > { %3350 = vperm.xlu1 %6099, %v3338_v33   ;;  %6114 = vset.pattern.permute.xlu0 %v6270_v40 }
0x1870   : > { %3589 = vrot.lane.b32.xlu0 %v6990_v28, %s7522_s8 }
0x1871   : > { %6100 = vset.pattern.permute.xlu1 %v6268_v38 }
0x1872   : > { %3356 = vperm.xlu1 %6100, %v3338_v33  }
0x1876   : > { %6102 = vset.pattern.permute.xlu1 %v6270_v40 }
0x1877   : > { %3368 = vperm.xlu1 %6102, %v3338_v33  }
0x187b   : > { %6103 = vset.pattern.permute.xlu1 %v6271_v41 }
0x187c   : > { %3374 = vperm.xlu1 %6103, %v3338_v33  }
0x1880   : > { %6104 = vset.pattern.permute.xlu1 %v6272_v42 }
0x1881   : > { %3380 = vperm.xlu1 %6104, %v3338_v33  }
0x1885   : > { %6105 = vset.pattern.permute.xlu1 %v6261_v0 }
0x1886   : > { %3390 = vperm.xlu1 %6105, %v3387_v36  }
0x188a   : > { %6106 = vset.pattern.permute.xlu1 %v6265_v26 }
0x188b   : > { %3396 = vperm.xlu1 %6106, %v3387_v36  }
0x188f   : > { %6107 = vset.pattern.permute.xlu1 %v6268_v38 }
0x1890   : > { %3402 = vperm.xlu1 %6107, %v3387_v36  }
0x1894   : > { %6108 = vset.pattern.permute.xlu1 %v6269_v39 }
0x1895   : > { %3408 = vperm.xlu1 %6108, %v3387_v36  }
0x1899   : > { %6109 = vset.pattern.permute.xlu1 %v6270_v40 }
0x189a   : > { %3414 = vperm.xlu1 %6109, %v3387_v36  }
0x189e   : > { %6110 = vset.pattern.permute.xlu1 %v6261_v0 }
0x18db   : > { %v3493_v49 = vpop.f32.mrb[24].mxu1 }
0x18dc   : > { %v5789_v50 = vpop.f32.mrb[25].mxu1 }
0x18e7   : > { %v3363_v52 = vpop.permute.xlu0 %3362  ;;  %v3345_v54 = vpop.permute.xlu1 %3344 }
0x18e8   : > { %v3347_v46 = vsel %vm1213_vm6, %v3345_v54, 0.0  ;;  %v3365_v10 = vsel %vm7523_vm15, %v3363_v52, 0.0  ;;  %vm7528_vm15 = vcmp.eq.s32.totalorder %v6544_v58, 3 }
0x18eb   : > { %v3592_v56 = vpop.permute.xlu0 %3591 }
0x18ec   : > { %v3351_v60 = vpop.permute.xlu1 %3350  ;;  %5796 = vmatpush3.xpose.msk.msra.mxu1 %vm1136_vm3, %v3592_v56 }
0x18ed   : > { %5805 = vmatprep.subr.mxu1 %v6264_v14  ;;  %v3353_v5 = vsel %vm1221_vm5, %v3351_v60, 0.0 }
0x18ee   : > { %v3354_v8 = vadd.f32 %v3353_v5, %v3347_v46 }
0x18ef   : > { %v3590_v61 = vpop.permute.xlu0 %3589 }
0x18f0   : > { %5798 = vmatmul.mubr.msk.f32.vlgmr.msra.gmra.mrb[26].mxu1 %vm1136_vm3, %v3590_v61 }
0x18f1   : > { %v3357_v62 = vpop.permute.xlu1 %3356  ;;  %5807 = vmatprep.mubr.msk.f32.mxu1 %vm6263_vm1, %v6264_v14 }
0x18f2   : > { %v3359_v7 = vsel %vm1228_vm7, %v3357_v62, 0.0 }
0x18f3   : > { %v3360_v25 = vadd.f32 %v3359_v7, %v3354_v8 }
0x18f5   : > { %v3366_v13 = vadd.f32 %v3365_v10, %v3360_v25 }
0x18f6   : > { %v3369_v2 = vpop.permute.xlu1 %3368 }
0x18f7   : > { %v3371_v15 = vsel %vm7524_vm0, %v3369_v2, 0.0  ;;  %vm7529_vm0 = vcmp.eq.s32.totalorder %v6544_v58, 4 }
0x18f8   : > { %v3372_v17 = vadd.f32 %v3371_v15, %v3366_v13 }
0x18fb   : > { %v3375_v4 = vpop.permute.xlu1 %3374 }
0x18fc   : > { %v3377_v16 = vsel %vm7525_vm13, %v3375_v4, 0.0  ;;  %vm7530_vm13 = vcmp.eq.s32.totalorder %v6544_v58, 5 }
0x18fd   : > { %v3378_v21 = vadd.f32 %v3377_v16, %v3372_v17 }
0x1900   : > { %v3381_v6 = vpop.permute.xlu1 %3380 }
0x1901   : > { %v3383_v18 = vsel %vm7526_vm12, %v3381_v6, 0.0  ;;  %vm7531_vm12 = vcmp.eq.s32.totalorder %v6544_v58, 6 }
0x1902   : > { %v3384_v27 = vadd.f32 %v3383_v18, %v3378_v21 }
0x1905   : > { %v3391_v32 = vpop.permute.xlu1 %3390 }
0x1906   : > { %v3393_v23 = vsel %vm7527_vm8, %v3391_v32, 0.0  ;;  %vm7532_vm8 = vcmask 55296  }
0x1907   : > { %v3394_v29 = vadd.f32 %v3393_v23, %v3384_v27 }
0x190a   : > { %v3397_v35 = vpop.permute.xlu1 %3396 }
0x190b   : > { %v3399_v30 = vsel %vm7528_vm15, %v3397_v35, 0.0  ;;  %vm7534_vm15 = vcmask 1046528  }
0x190c   : > { %v3400_v12 = vadd.f32 %v3399_v30, %v3394_v29 }
0x190f   : > { %v3403_v59 = vpop.permute.xlu1 %3402 }
0x1910   : > { %v3405_v33 = vsel %vm7529_vm0, %v3403_v59, 0.0  ;;  %vm7535_vm0 = vmmov %vm7532_vm8 }
0x1911   : > { %v3406_v50 = vadd.f32 %v3405_v33, %v3400_v12 }
0x1914   : > { %v3409_v34 = vpop.permute.xlu1 %3408 }
0x1915   : > { %v3411_v36 = vsel %vm7530_vm13, %v3409_v34, 0.0  ;;  %vm7538_vm13 = vcmp.eq.s32.totalorder %v6544_v58, 4294967293 }
0x1916   : > { %v3412_v52 = vadd.f32 %v3411_v36, %v3406_v50 }
0x1919   : > { %v3415_v54 = vpop.permute.xlu1 %3414 }
0x191a   : > { %v3417_v56 = vsel %vm7531_vm12, %v3415_v54, 0.0  ;;  %vm7539_vm12 = vcmp.eq.s32.totalorder %v6544_v58, 4294967294 }
0x191b   : > { %v3418_v60 = vadd.f32 %v3417_v56, %v3412_v52 }
0x191d   : > { %v3494_v61 = vadd.f32 %v3493_v49, %v3418_v60 }
0x191f   : > { %v3497_v62 = vmul.f32 0.35355338, %v3494_v61 }
0x1921   : > { %v3498_v2 = vsel %vm6590_vm14, %v3497_v62, -3.4028235e+38 }
0x1922   : > { %v3499_v4 = vsel %vm7532_vm8, %v3498_v2, -inf  ;;  %vm7540_vm8 = vcmp.eq.s32.totalorder %v6544_v58, 4294967295 }
0x1923   : > { %3500 = vmax.xlane.f32.xlu1 %v3499_v4 }
0x1934   : > { %3511 = vrot.lane.b32.xlu1 %v6985_v24, %s7533_s3  ;;  %s7536_s3 = smov 88  }
0x1938   : > { %3744 = vrot.lane.b32.xlu1 %v6999_v31, %s7522_s8  ;;  %s7537_s8 = smov 112  }
0x19b0   : > { %v3501_v5 = vpop.xlane.xlu1 %3500 }
0x19b1   : > { %v3502_v6 = vsub.f32 %v3498_v2, %v3501_v5 }
0x19b3   : > { %v3503_v46 = vmul.f32 1.442695, %v3502_v6 }
0x19b4   : > { %v3512_v7 = vpop.permute.xlu1 %3511 }
0x19b5   : > { %6185 = vpow2.f32 %v3503_v46  ;;  %5791 = vmatpush3.msk.msra.mxu0 %vm7534_vm15, %v3512_v7  ;;  %vm7541_vm15 = vcmask 56320  }
0x19b6   : > { %5800 = vmatprep.subr.mxu0 %v6264_v14 }
0x19b8   : > { %v3745_v15 = vpop.permute.xlu1 %3744 }
0x19bf   : > { %v6186_v49 = vpop.eup %6185 }
0x19c0   : > { %v3505_v8 = vsel %vm7535_vm0, %v6186_v49, 0.0  ;;  %vm7542_vm0 = vcmp.eq.s32.totalorder %v6544_v58, 0 }
0x19c1   : > { %3506 = vadd.xlane.f32.xlu0 %v3505_v8 }
0x19c3   : > { %v3663_v25 = vpop.f32.mrb[26].mxu1 }
0x19c4   : > { %3669 = vperm.xlu1 %6110, %v3663_v25   ;;  %v5799_v32 = vpop.f32.mrb[27].mxu1  ;;  %v3710_v10 = vrot.slane %v3663_v25, 1 }
0x19c6   : > { %v3712_v13 = vsel %vm1265_vm4, %v3710_v10, 0.0 }
0x19c8   : > { %6111 = vset.pattern.permute.xlu1 %v6265_v26 }
0x19c9   : > { %3675 = vperm.xlu1 %6111, %v3663_v25  }
0x19cd   : > { %6112 = vset.pattern.permute.xlu1 %v6268_v38 }
0x19ce   : > { %3681 = vperm.xlu1 %6112, %v3663_v25  }
0x19d2   : > { %6113 = vset.pattern.permute.xlu1 %v6269_v39 }
0x19d3   : > { %3687 = vperm.xlu1 %6113, %v3663_v25  }
0x19d7   : > { %3746 = vrot.lane.b32.xlu0 %v6985_v24, %s7536_s3  ;;  %6115 = vset.pattern.permute.xlu1 %v6271_v41  ;;  %s7550_s3 = smov 56  }
0x19d8   : > { %3699 = vperm.xlu1 %6115, %v3663_v25  }
0x19db   : > { %3693 = vperm.xlu0 %6114, %v3663_v25  }
0x19dc   : > { %6116 = vset.pattern.permute.xlu1 %v6272_v42 }
0x19dd   : > { %3705 = vperm.xlu1 %6116, %v3663_v25  }
0x19df   : > { %6117 = vset.pattern.permute.xlu0 %v6261_v0 }
0x19e0   : > { %3715 = vperm.xlu0 %6117, %v3712_v13  }
0x19e1   : > { %6118 = vset.pattern.permute.xlu1 %v6265_v26 }
0x19e2   : > { %3721 = vperm.xlu1 %6118, %v3712_v13  }
0x19e4   : > { %6120 = vset.pattern.permute.xlu0 %v6269_v39 }
0x19e5   : > { %3733 = vperm.xlu0 %6120, %v3712_v13  }
0x19e6   : > { %6119 = vset.pattern.permute.xlu1 %v6268_v38 }
0x19e7   : > { %3727 = vperm.xlu1 %6119, %v3712_v13  }
0x19e9   : > { %3920 = vrot.lane.b32.xlu0 %v6978_v19, %s7537_s8 }
0x19ea   : > { %6124 = vset.pattern.permute.xlu0 %v6268_v38 }
0x19eb   : > { %6121 = vset.pattern.permute.xlu1 %v6270_v40 }
0x19ec   : > { %3739 = vperm.xlu1 %6121, %v3712_v13  }
0x19ed   : > { %3918 = vrot.lane.b32.xlu0 %v6990_v28, %s7537_s8 }
0x19f0   : > { %6122 = vset.pattern.permute.xlu1 %v6261_v0 }
0x1a43   : > { %v3670_v35 = vpop.permute.xlu1 %3669 }
0x1a44   : > { %v3672_v23 = vsel %vm1213_vm6, %v3670_v35, 0.0 }
0x1a48   : > { %v3676_v16 = vpop.permute.xlu1 %3675 }
0x1a49   : > { %v3678_v59 = vsel %vm1221_vm5, %v3676_v16, 0.0 }
0x1a4a   : > { %v3679_v30 = vadd.f32 %v3678_v59, %v3672_v23 }
0x1a4d   : > { %v3682_v17 = vpop.permute.xlu1 %3681 }
0x1a4e   : > { %v3507_v18 = vpop.xlane.xlu0 %3506  ;;  %v3684_v27 = vsel %vm1228_vm7, %v3682_v17, 0.0 }
0x1a4f   : > { %6187 = vrcp.f32 %v3507_v18  ;;  %v3685_v12 = vadd.f32 %v3684_v27, %v3679_v30 }
0x1a52   : > { %v3688_v21 = vpop.permute.xlu1 %3687  ;;  %v3747_v29 = vpop.permute.xlu0 %3746 }
0x1a53   : > { %v3690_v33 = vsel %vm7538_vm13, %v3688_v21, 0.0  ;;  %vm7543_vm13 = vcmp.eq.s32.totalorder %v6544_v58, 2 }
0x1a54   : > { %v3691_v50 = vadd.f32 %v3690_v33, %v3685_v12 }
0x1a57   : > { %v3700_v34 = vpop.permute.xlu1 %3699 }
0x1a58   : > { %v3702_v2 = vsel %vm7540_vm8, %v3700_v34, 0.0  ;;  %vm7545_vm8 = vcmp.eq.s32.totalorder %v6544_v58, 4 }
0x1a59   : > { %v6188_v36 = vpop.eup %6187 }
0x1a5a   : > { %v3694_v52 = vpop.permute.xlu0 %3693  ;;  %v3509_v54 = vmul.f32 %v6188_v36, %v6186_v49 }
0x1a5b   : > { %v3696_v56 = vsel %vm7539_vm12, %v3694_v52, 0.0  ;;  %vm7544_vm12 = vcmp.eq.s32.totalorder %v6544_v58, 3 }
0x1a5c   : > { %v3697_v60 = vadd.f32 %v3696_v56, %v3691_v50  ;;  %v3706_v61 = vpop.permute.xlu1 %3705  ;;  %v3510_v62 = vsel %vm6590_vm14, %v3509_v54, 0.0 }
0x1a5d   : > { %5793 = vmatmul.mubr.msk.f32.vlgmr.msra.gmra.mrb[16].mxu0 %vm7541_vm15, %v3510_v62  ;;  %v3708_v5 = vsel %vm7542_vm0, %v3706_v61, 0.0  ;;  %vm7546_vm15 = vcmp.eq.s32.totalorder %v6544_v58, 5  ;;  %vm7547_vm0 = vcmp.eq.s32.totalorder %v6544_v58, 6 }
0x1a5e   : > { %v3703_v4 = vadd.f32 %v3702_v2, %v3697_v60  ;;  %5801 = vmatpush3.xpose.msk.msra.mxu0 %vm1136_vm3, %v3747_v29  ;;  %5802 = vmatprep.mubr.msk.f32.mxu0 %vm6263_vm1, %v6264_v14 }
0x1a5f   : > { %v3716_v6 = vpop.permute.xlu0 %3715  ;;  %5810 = vmatprep.subr.mxu0 %v6264_v14 }
0x1a60   : > { %v3709_v46 = vadd.f32 %v3708_v5, %v3703_v4  ;;  %v3718_v7 = vsel %vm7543_vm13, %v3716_v6, 0.0  ;;  %vm7548_vm13 = vcmask 63488  }
0x1a61   : > { %5803 = vmatmul.mubr.msk.f32.vlgmr.msra.gmra.mrb[18].mxu0 %vm1136_vm3, %v3745_v15  ;;  %v3722_v49 = vpop.permute.xlu1 %3721 }
0x1a62   : > { %v3719_v8 = vadd.f32 %v3718_v7, %v3709_v46  ;;  %5812 = vmatprep.mubr.msk.f32.mxu0 %vm6263_vm1, %v6264_v14  ;;  %v3724_v25 = vsel %vm7544_vm12, %v3722_v49, 0.0  ;;  %vm7549_vm12 = vcmask 55296  }
0x1a64   : > { %v3734_v32 = vpop.permute.xlu0 %3733  ;;  %v3725_v10 = vadd.f32 %v3724_v25, %v3719_v8 }
0x1a65   : > { %v3736_v18 = vsel %vm7546_vm15, %v3734_v32, 0.0  ;;  %vm7552_vm15 = vmmov %vm7549_vm12 }
0x1a66   : > { %v3728_v13 = vpop.permute.xlu1 %3727 }
0x1a67   : > { %v3730_v35 = vsel %vm7545_vm8, %v3728_v13, 0.0  ;;  %vm7551_vm8 = vcmask 1046528  }
0x1a68   : > { %v3731_v16 = vadd.f32 %v3730_v35, %v3725_v10  ;;  %v3921_v17 = vpop.permute.xlu0 %3920 }
0x1a69   : > { %5811 = vmatpush3.xpose.msk.msra.mxu0 %vm1136_vm3, %v3921_v17 }
0x1a6a   : > { %v3737_v15 = vadd.f32 %v3736_v18, %v3731_v16  ;;  %5820 = vmatprep.subr.mxu0 %v6264_v14 }
0x1a6b   : > { %v3740_v59 = vpop.permute.xlu1 %3739 }
0x1a6c   : > { %v3919_v21 = vpop.permute.xlu0 %3918  ;;  %v3742_v23 = vsel %vm7547_vm0, %v3740_v59, 0.0  ;;  %vm7555_vm0 = vcmp.eq.s32.totalorder %v6544_v58, 4294967293 }
0x1a6d   : > { %5813 = vmatmul.mubr.msk.f32.vlgmr.msra.gmra.mrb[20].mxu0 %vm1136_vm3, %v3919_v21  ;;  %v3743_v29 = vadd.f32 %v3742_v23, %v3737_v15 }
0x1a6e   : > { %5822 = vmatprep.mubr.msk.f32.mxu0 %vm6263_vm1, %v6264_v14 }
0x1b30   : > { %v3584_v27 = vpop.f32.mrb[16].mxu0 }
0x1b31   : > { %3588 = vst.msk [vmem:[#allocation2] sm:$0x7f] %vm7548_vm13, %v3584_v27  ;;  %v5794_v30 = vpop.f32.mrb[17].mxu0  ;;  %vm7556_vm13 = vcmask 56320  }
0x1b34   : > { %v3818_v33 = vpop.f32.mrb[18].mxu0 }
0x1b35   : > { %v3819_v34 = vadd.f32 %v3818_v33, %v3743_v29  ;;  %v5804_v12 = vpop.f32.mrb[19].mxu0 }
0x1b37   : > { %v3822_v36 = vmul.f32 0.35355338, %v3819_v34 }
0x1b39   : > { %v3823_v50 = vsel %vm6590_vm14, %v3822_v36, -3.4028235e+38 }
0x1b3a   : > { %v3824_v52 = vsel %vm7549_vm12, %v3823_v50, -inf  ;;  %vm7557_vm12 = vcmp.eq.s32.totalorder %v6544_v58, 4294967294 }
0x1b3b   : > { %3825 = vmax.xlane.f32.xlu1 %v3824_v52 }
0x1b40   : > { %v3992_v54 = vpop.f32.mrb[20].mxu0 }
0x1b41   : > { %v5814_v56 = vpop.f32.mrb[21].mxu0  ;;  %v4039_v60 = vrot.slane %v3992_v54, 1 }
0x1b43   : > { %v4041_v61 = vsel %vm1265_vm4, %v4039_v60, 0.0 }
0x1b4c   : > { %3836 = vrot.lane.b32.xlu1 %v6985_v24, %s7550_s3  ;;  %s7554_s3 = smov 104  }
0x1b50   : > { %4073 = vrot.lane.b32.xlu1 %v6999_v31, %s7537_s8  ;;  %s7553_s8 = smov 80  }
0x1b54   : > { %3998 = vperm.xlu1 %6122, %v3992_v54  }
0x1b58   : > { %6123 = vset.pattern.permute.xlu1 %v6265_v26 }
0x1b59   : > { %4004 = vperm.xlu1 %6123, %v3992_v54  }
0x1b5d   : > { %6125 = vset.pattern.permute.xlu1 %v6269_v39 }
0x1b5e   : > { %4016 = vperm.xlu1 %6125, %v3992_v54  }
0x1b62   : > { %6126 = vset.pattern.permute.xlu1 %v6270_v40 }
0x1b63   : > { %4022 = vperm.xlu1 %6126, %v3992_v54  }
0x1b67   : > { %6128 = vset.pattern.permute.xlu1 %v6272_v42 }
0x1b68   : > { %4034 = vperm.xlu1 %6128, %v3992_v54  }
0x1b6c   : > { %6129 = vset.pattern.permute.xlu1 %v6261_v0 }
0x1b6d   : > { %4044 = vperm.xlu1 %6129, %v4041_v61  }
0x1b71   : > { %6131 = vset.pattern.permute.xlu1 %v6268_v38 }
0x1b72   : > { %4056 = vperm.xlu1 %6131, %v4041_v61  }
0x1b76   : > { %6132 = vset.pattern.permute.xlu1 %v6269_v39 }
0x1b77   : > { %4062 = vperm.xlu1 %6132, %v4041_v61  }
0x1b7b   : > { %6134 = vset.pattern.permute.xlu1 %v6261_v0 }
0x1bc8   : > { %v3826_v62 = vpop.xlane.xlu1 %3825 }
0x1bc9   : > { %v3827_v2 = vsub.f32 %v3823_v50, %v3826_v62 }
0x1bcb   : > { %v3828_v4 = vmul.f32 1.442695, %v3827_v2 }
0x1bcc   : > { %v3837_v5 = vpop.permute.xlu1 %3836 }
0x1bcd   : > { %6189 = vpow2.f32 %v3828_v4  ;;  %5806 = vmatpush3.msk.msra.mxu1 %vm7551_vm8, %v3837_v5  ;;  %vm7558_vm8 = vcmp.eq.s32.totalorder %v6544_v58, 4294967295 }
0x1bce   : > { %5815 = vmatprep.subr.mxu1 %v6264_v14 }
0x1bd0   : > { %v4074_v7 = vpop.permute.xlu1 %4073 }
0x1bd4   : > { %v3999_v49 = vpop.permute.xlu1 %3998 }
0x1bd7   : > { %v6190_v6 = vpop.eup %6189 }
0x1bd8   : > { %v3830_v46 = vsel %vm7552_vm15, %v6190_v6, 0.0  ;;  %v4005_v8 = vpop.permute.xlu1 %4004  ;;  %vm7559_vm15 = vcmp.eq.s32.totalorder %v6544_v58, 0 }
0x1bd9   : > { %3831 = vadd.xlane.f32.xlu0 %v3830_v46  ;;  %v4007_v16 = vsel %vm1221_vm5, %v4005_v8, 0.0 }
0x1bdd   : > { %v4017_v25 = vpop.permute.xlu1 %4016 }
0x1bde   : > { %v4019_v30 = vsel %vm7555_vm0, %v4017_v25, 0.0  ;;  %vm7560_vm0 = vcmp.eq.s32.totalorder %v6544_v58, 2 }
0x1be2   : > { %v4023_v10 = vpop.permute.xlu1 %4022 }
0x1be3   : > { %v4025_v33 = vsel %vm7557_vm12, %v4023_v10, 0.0  ;;  %vm7562_vm12 = vcmp.eq.s32.totalorder %v6544_v58, 4 }
0x1be7   : > { %v4035_v13 = vpop.permute.xlu1 %4034 }
0x1bec   : > { %v4045_v59 = vpop.permute.xlu1 %4044 }
0x1bef   : > { %4075 = vrot.lane.b32.xlu0 %v6985_v24, %s7553_s8  ;;  %s7566_s8 = smov 48  }
0x1bf1   : > { %v4057_v50 = vpop.permute.xlu1 %4056 }
0x1bf3   : > { %4010 = vperm.xlu0 %6124, %v3992_v54  }
0x1bf6   : > { %v4063_v4 = vpop.permute.xlu1 %4062 }
0x1bf7   : > { %6127 = vset.pattern.permute.xlu0 %v6271_v41 }
0x1bf8   : > { %4028 = vperm.xlu0 %6127, %v3992_v54   ;;  %v4037_v54 = vsel %vm7559_vm15, %v4035_v13, 0.0  ;;  %vm7564_vm15 = vcmp.eq.s32.totalorder %v6544_v58, 6 }
0x1bfc   : > { %6130 = vset.pattern.permute.xlu0 %v6265_v26 }
0x1bfd   : > { %4050 = vperm.xlu0 %6130, %v4041_v61  }
0x1c01   : > { %6133 = vset.pattern.permute.xlu0 %v6270_v40 }
0x1c02   : > { %4068 = vperm.xlu0 %6133, %v4041_v61   ;;  %v4047_v61 = vsel %vm7560_vm0, %v4045_v59, 0.0  ;;  %vm7565_vm0 = vcmask 55296  }
0x1c06   : > { %4249 = vrot.lane.b32.xlu0 %v6978_v19, %s7554_s3  ;;  %v4001_v19 = vsel %vm1213_vm6, %v3999_v49, 0.0 }
0x1c07   : > { %6137 = vset.pattern.permute.xlu0 %v6269_v39  ;;  %v4008_v18 = vadd.f32 %v4007_v16, %v4001_v19 }
0x1c0a   : > { %4247 = vrot.lane.b32.xlu0 %v6990_v28, %s7554_s3 }
0x1c66   : > { %v3832_v32 = vpop.xlane.xlu0 %3831 }
0x1c67   : > { %6191 = vrcp.f32 %v3832_v32 }
0x1c6a   : > { %v4076_v35 = vpop.permute.xlu0 %4075 }
0x1c71   : > { %v6192_v17 = vpop.eup %6191 }
0x1c72   : > { %v4011_v15 = vpop.permute.xlu0 %4010  ;;  %v3834_v21 = vmul.f32 %v6192_v17, %v6190_v6  ;;  %v4059_v6 = vsel %vm7562_vm12, %v4057_v50, 0.0  ;;  %vm7568_vm12 = vmmov %vm7565_vm0 }
0x1c73   : > { %v4013_v28 = vsel %vm1228_vm7, %v4011_v15, 0.0 }
0x1c74   : > { %v4014_v23 = vadd.f32 %v4013_v28, %v4008_v18  ;;  %v3835_v27 = vsel %vm6590_vm14, %v3834_v21, 0.0 }
0x1c75   : > { %5808 = vmatmul.mubr.msk.f32.vlgmr.msra.gmra.mrb[28].mxu1 %vm7556_vm13, %v3835_v27  ;;  %vm7561_vm13 = vcmp.eq.s32.totalorder %v6544_v58, 3 }
0x1c76   : > { %v4020_v29 = vadd.f32 %v4019_v30, %v4014_v23  ;;  %5816 = vmatpush3.xpose.msk.msra.mxu1 %vm1136_vm3, %v4076_v35  ;;  %5817 = vmatprep.mubr.msk.f32.mxu1 %vm6263_vm1, %v6264_v14 }
0x1c77   : > { %v4029_v34 = vpop.permute.xlu0 %4028  ;;  %5825 = vmatprep.subr.mxu1 %v6264_v14 }
0x1c78   : > { %v4026_v12 = vadd.f32 %v4025_v33, %v4020_v29  ;;  %v4031_v36 = vsel %vm7558_vm8, %v4029_v34, 0.0  ;;  %vm7563_vm8 = vcmp.eq.s32.totalorder %v6544_v58, 5 }
0x1c79   : > { %5818 = vmatmul.mubr.msk.f32.vlgmr.msra.gmra.mrb[30].mxu1 %vm1136_vm3, %v4074_v7  ;;  %v4065_v49 = vsel %vm7563_vm8, %v4063_v4, 0.0  ;;  %vm7570_vm8 = vcmask 56320  }
0x1c7a   : > { %v4032_v52 = vadd.f32 %v4031_v36, %v4026_v12  ;;  %5827 = vmatprep.mubr.msk.f32.mxu1 %vm6263_vm1, %v6264_v14 }
0x1c7c   : > { %v4038_v56 = vadd.f32 %v4037_v54, %v4032_v52  ;;  %v4051_v60 = vpop.permute.xlu0 %4050 }
0x1c7d   : > { %v4053_v2 = vsel %vm7561_vm13, %v4051_v60, 0.0  ;;  %vm7567_vm13 = vcmask 1046528  }
0x1c7e   : > { %v4048_v62 = vadd.f32 %v4047_v61, %v4038_v56 }
0x1c80   : > { %v4054_v5 = vadd.f32 %v4053_v2, %v4048_v62 }
0x1c81   : > { %v4069_v46 = vpop.permute.xlu0 %4068 }
0x1c82   : > { %v4060_v7 = vadd.f32 %v4059_v6, %v4054_v5  ;;  %v4071_v25 = vsel %vm7564_vm15, %v4069_v46, 0.0  ;;  %vm7571_vm15 = vcmp.eq.s32.totalorder %v6544_v58, 4294967293 }
0x1c84   : > { %v4066_v8 = vadd.f32 %v4065_v49, %v4060_v7 }
0x1c85   : > { %v4250_v32 = vpop.permute.xlu0 %4249 }
0x1c86   : > { %v4072_v10 = vadd.f32 %v4071_v25, %v4066_v8  ;;  %5826 = vmatpush3.xpose.msk.msra.mxu1 %vm1136_vm3, %v4250_v32 }
0x1c87   : > { %5835 = vmatprep.subr.mxu1 %v6264_v14 }
0x1c89   : > { %v4248_v13 = vpop.permute.xlu0 %4247 }
0x1c8a   : > { %5828 = vmatmul.mubr.msk.f32.vlgmr.msra.gmra.mrb[32].mxu1 %vm1136_vm3, %v4248_v13 }
0x1c8b   : > { %5837 = vmatprep.mubr.msk.f32.mxu1 %vm6263_vm1, %v6264_v14 }
0x1d48   : > { %v7189_v35 = vpop.f32.mrb[28].mxu1 }
0x1d49   : > { %v5809_v16 = vpop.f32.mrb[29].mxu1 }
0x1d4c   : > { %v4147_v17 = vpop.f32.mrb[30].mxu1 }
0x1d4d   : > { %v4148_v19 = vadd.f32 %v4147_v17, %v4072_v10  ;;  %v5819_v18 = vpop.f32.mrb[31].mxu1 }
0x1d4f   : > { %v4151_v15 = vmul.f32 0.35355338, %v4148_v19 }
0x1d51   : > { %v4152_v21 = vsel %vm6590_vm14, %v4151_v15, -3.4028235e+38 }
0x1d52   : > { %v4153_v28 = vsel %vm7565_vm0, %v4152_v21, -inf  ;;  %vm7576_vm0 = vcmp.eq.s32.totalorder %v6544_v58, 3 }
0x1d53   : > { %4154 = vmax.xlane.f32.xlu1 %v4153_v28 }
0x1d5d   : > { %v4321_v59 = vpop.f32.mrb[32].mxu1 }
0x1d5e   : > { %v5829_v23 = vpop.f32.mrb[33].mxu1  ;;  %v4368_v27 = vrot.slane %v4321_v59, 1 }
0x1d60   : > { %v4370_v30 = vsel %vm1265_vm4, %v4368_v27, 0.0 }
0x1d64   : > { %4165 = vrot.lane.b32.xlu1 %v6985_v24, %s7566_s8  ;;  %s7581_s8 = smov 40  }
0x1d68   : > { %4402 = vrot.lane.b32.xlu1 %v6999_v31, %s7554_s3  ;;  %s7569_s3 = smov 72  }
0x1d6c   : > { %4327 = vperm.xlu1 %6134, %v4321_v59  }
0x1d70   : > { %6135 = vset.pattern.permute.xlu1 %v6265_v26 }
0x1d71   : > { %4333 = vperm.xlu1 %6135, %v4321_v59  }
0x1d75   : > { %6136 = vset.pattern.permute.xlu1 %v6268_v38 }
0x1d76   : > { %4339 = vperm.xlu1 %6136, %v4321_v59  }
0x1d7a   : > { %6138 = vset.pattern.permute.xlu1 %v6270_v40 }
0x1d7b   : > { %4351 = vperm.xlu1 %6138, %v4321_v59  }
0x1d7f   : > { %6139 = vset.pattern.permute.xlu1 %v6271_v41 }
0x1d80   : > { %4357 = vperm.xlu1 %6139, %v4321_v59  }
0x1d84   : > { %6141 = vset.pattern.permute.xlu1 %v6261_v0 }
0x1d85   : > { %4373 = vperm.xlu1 %6141, %v4370_v30  }
0x1d89   : > { %6142 = vset.pattern.permute.xlu1 %v6265_v26 }
0x1d8a   : > { %4379 = vperm.xlu1 %6142, %v4370_v30  }
0x1d8e   : > { %6144 = vset.pattern.permute.xlu1 %v6269_v39 }
0x1d8f   : > { %4391 = vperm.xlu1 %6144, %v4370_v30  }
0x1d93   : > { %6145 = vset.pattern.permute.xlu1 %v6270_v40 }
0x1d94   : > { %4397 = vperm.xlu1 %6145, %v4370_v30  }
0x1de0   : > { %v4155_v31 = vpop.xlane.xlu1 %4154 }
0x1de1   : > { %v4156_v29 = vsub.f32 %v4152_v21, %v4155_v31 }
0x1de3   : > { %v4157_v33 = vmul.f32 1.442695, %v4156_v29 }
0x1de4   : > { %v4166_v41 = vpop.permute.xlu1 %4165 }
0x1de5   : > { %6193 = vpow2.f32 %v4157_v33  ;;  %5821 = vmatpush3.msk.msra.mxu0 %vm7567_vm13, %v4166_v41  ;;  %vm7577_vm13 = vcmp.eq.s32.totalorder %v6544_v58, 4 }
0x1de6   : > { %5830 = vmatprep.subr.mxu0 %v6264_v14 }
0x1def   : > { %v6194_v0 = vpop.eup %6193 }
0x1df0   : > { %v4159_v34 = vsel %vm7568_vm12, %v6194_v0, 0.0  ;;  %vm7578_vm12 = vcmp.eq.s32.totalorder %v6544_v58, 5 }
0x1df1   : > { %4160 = vadd.xlane.f32.xlu0 %v4159_v34 }
0x1e07   : > { %4404 = vrot.lane.b32.xlu0 %v6985_v24, %s7569_s3  ;;  %s7582_s3 = smov 16  }
0x1e0b   : > { %4345 = vperm.xlu0 %6137, %v4321_v59  }
0x1e0f   : > { %6140 = vset.pattern.permute.xlu0 %v6272_v42 }
0x1e10   : > { %4363 = vperm.xlu0 %6140, %v4321_v59  }
0x1e14   : > { %6143 = vset.pattern.permute.xlu0 %v6268_v38  ;;  %v4403_v38 = vpop.permute.xlu1 %4402 }
0x1e15   : > { %4385 = vperm.xlu0 %6143, %v4370_v30  }
0x1e19   : > { %6146 = vset.pattern.permute.xlu0 %v6270_v40  ;;  %v4328_v40 = vpop.permute.xlu1 %4327 }
0x1e1a   : > { %v4330_v60 = vsel %vm1213_vm6, %v4328_v40, 0.0  ;;  %vm7574_vm6 = vcmp.eq.s32.totalorder %v6544_v58, 0 }
0x1e1d   : > { %v4334_v42 = vpop.permute.xlu1 %4333 }
0x1e1e   : > { %v4336_v54 = vsel %vm1221_vm5, %v4334_v42, 0.0  ;;  %vm7573_vm5 = vcmp.eq.s32.totalorder %v6544_v58, 4294967295 }
0x1e1f   : > { %v4337_v62 = vadd.f32 %v4336_v54, %v4330_v60 }
0x1e21   : > { %v4340_v52 = vpop.permute.xlu1 %4339 }
0x1e22   : > { %v4342_v61 = vsel %vm1228_vm7, %v4340_v52, 0.0  ;;  %vm7575_vm7 = vcmp.eq.s32.totalorder %v6544_v58, 2 }
0x1e23   : > { %v4343_v4 = vadd.f32 %v4342_v61, %v4337_v62 }
0x1e25   : > { %v4352_v5 = vpop.permute.xlu1 %4351 }
0x1e29   : > { %v4358_v7 = vpop.permute.xlu1 %4357 }
0x1e2a   : > { %v4360_v25 = vsel %vm7573_vm5, %v4358_v7, 0.0  ;;  %v5457_v7 = vld [vmem:[%s6338_s14 + $0x38] sm:$0xff] }
0x1e2d   : > { %v4374_v13 = vpop.permute.xlu1 %4373 }
0x1e2e   : > { %v4376_v17 = vsel %vm7575_vm7, %v4374_v13, 0.0  ;;  %vm7587_vm7 = vcmask 194688   ;;  %v5460_v13 = vld [vmem:[%s6343_s19 + $0x1] ss:$0 sm:$0xff] }
0x1e31   : > { %v4380_v19 = vpop.permute.xlu1 %4379 }
0x1e32   : > { %v4382_v15 = vsel %vm7576_vm0, %v4380_v19, 0.0  ;;  %vm7588_vm0 = vcmask 56320  }
0x1e35   : > { %v4392_v59 = vpop.permute.xlu1 %4391 }
0x1e36   : > { %v4394_v30 = vsel %vm7578_vm12, %v4392_v59, 0.0  ;;  %vm7592_vm12 = vcmask 260096  }
0x1e39   : > { %v4398_v31 = vpop.permute.xlu1 %4397 }
0x1e7e   : > { %v4161_v26 = vpop.xlane.xlu0 %4160 }
0x1e7f   : > { %6195 = vrcp.f32 %v4161_v26 }
0x1e82   : > { %v4405_v50 = vpop.permute.xlu0 %4404 }
0x1e89   : > { %v6196_v39 = vpop.eup %6195 }
0x1e8a   : > { %v4163_v12 = vmul.f32 %v6196_v39, %v6194_v0  ;;  %v4346_v56 = vpop.permute.xlu0 %4345 }
0x1e8b   : > { %v4348_v2 = vsel %vm7571_vm15, %v4346_v56, 0.0  ;;  %vm7580_vm15 = vcmask 55296  }
0x1e8c   : > { %v4164_v36 = vsel %vm6590_vm14, %v4163_v12, 0.0  ;;  %v4349_v6 = vadd.f32 %v4348_v2, %v4343_v4  ;;  %vm7584_vm5 = vmmov %vm7580_vm15 }
0x1e8d   : > { %5823 = vmatmul.mubr.msk.f32.vlgmr.msra.gmra.mrb[22].mxu0 %vm7570_vm8, %v4164_v36  ;;  %vm7579_vm8 = vcmp.eq.s32.totalorder %v6544_v58, 6 }
0x1e8e   : > { %5831 = vmatpush3.xpose.msk.msra.mxu0 %vm1136_vm3, %v4405_v50  ;;  %5832 = vmatprep.mubr.msk.f32.mxu0 %vm6263_vm1, %v6264_v14  ;;  %v4400_v0 = vsel %vm7579_vm8, %v4398_v31, 0.0  ;;  %vm7593_vm8 = vmmov %vm7592_vm12  ;;  %v5467_v31 = vld [vmem:[%s6358_s6 + $0x30] sm:$0xff] }
0x1e8f   : > { %5951 = vmatprep.subr.bf16.mxu0 %v6262_v11  ;;  %v4364_v8 = vpop.permute.xlu0 %4363 }
0x1e90   : > { %v4366_v10 = vsel %vm7574_vm6, %v4364_v8, 0.0  ;;  %vm7586_vm6 = vcmask 129088  }
0x1e91   : > { %5833 = vmatmul.mubr.msk.f32.vlgmr.msra.gmra.mrb[24].mxu0 %vm1136_vm3, %v4403_v38  ;;  %vm7572_vm3 = vcmp.eq.s32.totalorder %v6544_v58, 4294967294 }
0x1e92   : > { %5848 = vmatprep.mubr.msk.f32.mxu0 %vm6263_vm1, %v6264_v14  ;;  %v4354_v46 = vsel %vm7572_vm3, %v4352_v5, 0.0  ;;  %vm7583_vm3 = vcmask 1046528   ;;  %v5455_v5 = vld [vmem:[%s6338_s14 + $0x28] sm:$0xff] }
0x1e93   : > { %v4355_v49 = vadd.f32 %v4354_v46, %v4349_v6  ;;  %v5456_v6 = vld [vmem:[%s6338_s14 + $0x30] sm:$0xff] }
0x1e94   : > { %v4386_v21 = vpop.permute.xlu0 %4385 }
0x1e95   : > { %v4361_v32 = vadd.f32 %v4360_v25, %v4355_v49  ;;  %v4388_v23 = vsel %vm7577_vm13, %v4386_v21, 0.0  ;;  %v5955_v49 = vpack.c.bf16 %v5457_v7, %v5456_v6  ;;  %vm7591_vm13 = vcmask 261120  }
0x1e97   : > { %v4367_v16 = vadd.f32 %v4366_v10, %v4361_v32 }
0x1e99   : > { %v4377_v18 = vadd.f32 %v4376_v17, %v4367_v16 }
0x1e9b   : > { %v4383_v28 = vadd.f32 %v4382_v15, %v4377_v18 }
0x1e9d   : > { %v4389_v27 = vadd.f32 %v4388_v23, %v4383_v28 }
0x1e9f   : > { %v4395_v29 = vadd.f32 %v4394_v30, %v4389_v27  ;;  %v5465_v27 = vld [vmem:[%s6358_s6 + $0x20] sm:$0xff]  ;;  %v5466_v30 = vld [vmem:[%s6358_s6 + $0x28] sm:$0xff] }
0x1ea1   : > { %v4401_v34 = vadd.f32 %v4400_v0, %v4395_v29  ;;  %v5468_v29 = vld [vmem:[%s6358_s6 + $0x38] sm:$0xff] }
0x1f60   : > { %v4238_v33 = vpop.f32.mrb[22].mxu0 }
0x1f61   : > { %v5824_v41 = vpop.f32.mrb[23].mxu0 }
0x1f64   : > { %v4476_v26 = vpop.f32.mrb[24].mxu0 }
0x1f65   : > { %v4477_v39 = vadd.f32 %v4476_v26, %v4401_v34  ;;  %v5834_v12 = vpop.f32.mrb[25].mxu0 }
0x1f67   : > { %v4480_v36 = vmul.f32 0.35355338, %v4477_v39  ;;  %v5463_v39 = vld [vmem:[%s6348_s24 + $0x1] ss:$0 sm:$0xff] }
0x1f69   : > { %v4481_v50 = vsel %vm6590_vm14, %v4480_v36, -3.4028235e+38  ;;  %v5464_v36 = vld [vmem:[%s6353_s30 + $0x1] ss:$0 sm:$0xff] }
0x1f6a   : > { %v4482_v38 = vsel %vm7580_vm15, %v4481_v50, -inf  ;;  %vm7594_vm15 = vmmov %vm7591_vm13 }
0x1f6b   : > { %4483 = vmax.xlane.f32.xlu0 %v4482_v38 }
0x1f81   : > { %4494 = vrot.lane.b32.xlu0 %v6985_v24, %s7581_s8  ;;  %s7613_s8 = sshll.u32 %s7617_s23, 3 }
0x1f85   : > { %4243 = vrot.lane.b32.xlu0 %v4238_v33, %s7582_s3  ;;  %v5961_v33 = vpack.c.bf16 %v5468_v29, %v5467_v31 }
0x1ff8   : > { %v4484_v40 = vpop.xlane.xlu0 %4483 }
0x1ff9   : > { %v4485_v42 = vsub.f32 %v4481_v50, %v4484_v40  ;;  %v5470_v40 = vld [vmem:[%s7497_s26 + $0x1] ss:$0 sm:$0xff] }
0x1ffb   : > { %v4486_v58 = vmul.f32 1.442695, %v4485_v42 }
0x1ffc   : > { %v4495_v52 = vpop.permute.xlu0 %4494 }
0x1ffd   : > { %6197 = vpow2.f32 %v4486_v58  ;;  %5836 = vmatpush3.msk.msra.mxu1 %vm7583_vm3, %v4495_v52  ;;  %vm7595_vm3 = vcmask 1040384  }
0x1ffe   : > { %5957 = vmatprep.subr.bf16.mxu1 %v6262_v11 }
0x2000   : > { %v4244_v61 = vpop.permute.xlu0 %4243 }
0x2007   : > { %v6198_v54 = vpop.eup %6197 }
0x2008   : > { %v4488_v56 = vsel %vm7584_vm5, %v6198_v54, 0.0  ;;  %vm7596_vm5 = vcmp.ge.s32.totalorder %v6849_v1, 0 }
0x2009   : > { %4489 = vadd.xlane.f32.xlu1 %v4488_v56 }
0x201a   : > { %3914 = vrot.lane.b32.xlu1 %v7189_v35, %s7585_s9  ;;  %v5454_v35 = vld [vmem:[%s6338_s14 + $0x20] sm:$0xff]  ;;  %s7589_s9 = smov 24  }
0x201b   : > { %v5952_v46 = vpack.c.bf16 %v5455_v5, %v5454_v35 }
0x201d   : > { %5953 = vmatpush3.bf16.msra.mxu0 %v5952_v46  ;;  %v5473_v46 = vld [vmem:[%s7500_s2 + $0x8] sm:$0x7f] }
0x201e   : > { %5954 = vmatprep.subr.bf16.mxu0 %v6262_v11  ;;  %v4840_v1 = vrot.slane %v5473_v46, %v2742_v3 }
0x2021   : > { %5956 = vmatpush3.bf16.msra.mxu0 %v5955_v49  ;;  %v4803_v49 = vrot.slane %v5473_v46, %v6580_v22  ;;  %v4830_v22 = vrot.slane %v5473_v46, %v2730_v48 }
0x2022   : > { %5963 = vmatprep.subr.bf16.mxu0 %v6262_v11 }
0x2096   : > { %v4490_v24 = vpop.xlane.xlu1 %4489 }
0x2097   : > { %6199 = vrcp.f32 %v4490_v24 }
0x209a   : > { %v3915_v60 = vpop.permute.xlu1 %3914 }
0x209b   : > { %3917 = vst.msk [vmem:[#allocation2] sm:$0x7f] %vm7586_vm6, %v3915_v60  ;;  %v5481_v60 = vld [vmem:[%s7498_s16 + $0x20] sm:$0xff]  ;;  %vm7597_vm6 = vcmp.ge.s32.totalorder %v6855_v44, 0 }
0x209c   : > { %4246 = vst.msk [vmem:[#allocation2] sm:$0x7f] %vm7587_vm7, %v4244_v61  ;;  %v5482_v61 = vld [vmem:[%s7498_s16 + $0x28] sm:$0xff]  ;;  %vm7603_vm7 = vmmov %vm7591_vm13 }
0x20a1   : > { %v6200_v62 = vpop.eup %6199 }
0x20a2   : > { %v4492_v2 = vmul.f32 %v6200_v62, %v6198_v54  ;;  %v5483_v62 = vld [vmem:[%s7498_s16 + $0x30] sm:$0xff] }
0x20a4   : > { %v4493_v4 = vsel %vm6590_vm14, %v4492_v2, 0.0  ;;  %vm7590_vm14 = vcmask 260288   ;;  %v5964_v2 = vpack.c.bf16 %v5482_v61, %v5481_v60  ;;  %v5487_v60 = vld [vmem:[%s7504_s11 + $0x1] ss:$0 sm:$0xff] }
0x20a5   : > { %5838 = vmatmul.mubr.msk.f32.vlgmr.msra.gmra.mrb[34].mxu1 %vm7588_vm0, %v4493_v4  ;;  %v5484_v4 = vld [vmem:[%s7498_s16 + $0x38] sm:$0xff]  ;;  %vm7604_vm0 = vmmov %vm7593_vm8 }
0x20a6   : > { %5859 = vmatprep.mubr.msk.f32.mxu1 %vm6263_vm1, %v6264_v14  ;;  %v5967_v35 = vpack.c.bf16 %v5484_v4, %v5483_v62 }
0x2178   : > { %v4567_v37 = vpop.f32.mrb[34].mxu1 }
0x2179   : > { %4572 = vrot.lane.b32.xlu1 %v4567_v37, %s7589_s9  ;;  %v5839_v8 = vpop.f32.mrb[35].mxu1  ;;  %v4813_v37 = vrot.slane %v5473_v46, %v2708_v45 }
0x21eb   : > { %v4573_v25 = vpop.permute.xlu1 %4572 }
0x21ec   : > { %4575 = vst.msk [vmem:[#allocation2] sm:$0x7f] %vm7590_vm14, %v4573_v25  ;;  %vm7605_vm14 = vmmov %vm7604_vm0 }
0x21f3   : > { %v4576_v32 = vld [vmem:[#allocation2] sm:$0x7f] }
0x21f4   : > { %5849 = vmatmul.mubr.msk.f32.vlgmr.msra.gmra.mrb[26].mxu0 %vm7591_vm13, %v4576_v32  ;;  %vm7607_vm13 = vcmask 523264  }
0x21f5   : > { %5870 = vmatprep.mubr.msk.f32.mxu0 %vm6263_vm1, %v6264_v14  ;;  %5965 = vmatpush3.bf16.msra.mxu0 %v5964_v2 }
0x21f6   : > { %5966 = vmatprep.subr.bf16.mxu0 %v6262_v11 }
0x21f9   : > { %5968 = vmatpush3.bf16.msra.mxu0 %v5967_v35 }
0x21fa   : > { %5975 = vmatprep.subr.bf16.mxu0 %v6262_v11 }
0x22c7   : > { %v4651_v10 = vpop.f32.mrb[26].mxu0 }
0x22c8   : > { %v4655_v16 = vadd.f32 %v4651_v10, %v6960_v53  ;;  %v5850_v17 = vpop.f32.mrb[27].mxu0  ;;  %v5958_v53 = vpack.c.bf16 %v5466_v30, %v5465_v27  ;;  %v4823_v10 = vrot.slane %v5473_v46, %v2721_v47 }
0x22ca   : > { %v7280_v19 = vadd.f32 %v5460_v13, %v4655_v16  ;;  %5959 = vmatpush3.bf16.msra.mxu1 %v5958_v53 }
0x22cb   : > { %5960 = vmatprep.subr.bf16.mxu1 %v6262_v11 }
0x22cc   : > { %v4669_v18 = vsel %vm7592_vm12, %v7280_v19, 0.0  ;;  %vm7608_vm12 = vmmov %vm7604_vm0 }
0x22cd   : > { %4670 = vadd.xlane.f32.xlu0 %v4669_v18 }
0x22ce   : > { %5962 = vmatpush3.bf16.msra.mxu1 %v5961_v33  ;;  %v4850_v33 = vrot.slane %v5473_v46, %v2755_v9  ;;  %v5477_v9 = vld [vmem:[%s7502_s18 + $0x1] ss:$0 sm:$0xff] }
0x22cf   : > { %5969 = vmatprep.subr.bf16.mxu1 %v6262_v11 }
0x235a   : > { %v4671_v15 = vpop.xlane.xlu0 %4670 }
0x235b   : > { %v4672_v21 = vmul.f32 0.03125, %v4671_v15 }
0x235d   : > { %v4673_v28 = vsub.f32 %v7280_v19, %v4672_v21 }
0x235f   : > { %v4674_v59 = vmul.f32 %v4673_v28, %v4673_v28 }
0x2361   : > { %v4675_v23 = vsel %vm7593_vm8, %v4674_v59, 0.0  ;;  %vm7609_vm8 = vmmov %vm7604_vm0 }
0x2362   : > { %4676 = vadd.xlane.f32.xlu1 %v4675_v23 }
0x23ef   : > { %v4677_v41 = vpop.xlane.xlu1 %4676 }
0x23f0   : > { %v4678_v0 = vmul.f32 0.03125, %v4677_v41 }
0x23f2   : > { %v4679_v34 = vadd.f32 1e-05, %v4678_v0 }
0x23f4   : > { %6201 = vrsqrt.f32 %v4679_v34 }
0x23fe   : > { %v6202_v26 = vpop.eup %6201 }
0x23ff   : > { %v4681_v12 = vmul.f32 %v6202_v26, %v4673_v28  ;;  %v4860_v26 = vrot.slane %v5473_v46, %v2768_v20 }
0x2401   : > { %v4688_v50 = vmul.f32 %v5463_v39, %v4681_v12 }
0x2403   : > { %v4695_v38 = vadd.f32 %v5464_v36, %v4688_v50 }
0x2405   : > { %5860 = vmatmul.mubr.msk.f32.vlgmr.msra.gmra.mrb[36].mxu1 %vm7594_vm15, %v4695_v38  ;;  %v5475_v38 = vld [vmem:[%s7501_s0 + $0x1] ss:$0 sm:$0xff]  ;;  %vm7610_vm15 = vmmov %vm7604_vm0 }
0x2406   : > { %5881 = vmatprep.mubr.msk.f32.mxu1 %vm6263_vm1, %v6264_v14 }
0x24d8   : > { %v4778_v42 = vpop.f32.mrb[36].mxu1 }
0x24d9   : > { %v4779_v58 = vadd.f32 %v5470_v40, %v4778_v42  ;;  %v5861_v52 = vpop.f32.mrb[37].mxu1 }
0x24db   : > { %v5472_v54 = vmul.f32 -1.442695, %v4779_v58 }
0x24dd   : > { %6203 = vpow2.f32 %v5472_v54 }
0x24e7   : > { %v6204_v56 = vpop.eup %6203 }
0x24e8   : > { %v4785_v24 = vadd.f32 1.0, %v6204_v56 }
0x24ea   : > { %6205 = vrcp.f32 %v4785_v24 }
0x24f4   : > { %v6206_v5 = vpop.eup %6205 }
0x24f5   : > { %4789 = vrot.lane.b32.xlu0 %v6206_v5, %s7521_s22  ;;  %s7611_s22 = sld [smem:[#allocation22_spill]] }
0x24fb   : > { %s967_s3 = scalar_lea.vmem %s7611_s22, %s7613_s8 }
0x2567   : > { %v4790_v6 = vpop.permute.xlu0 %4789 }
0x2568   : > { %v4792_v7 = vmul.f32 %v4790_v6, %v4779_v58  ;;  %v5479_v58 = vld [vmem:[%s7503_s15 + $0x1] ss:$0 sm:$0xff] }
0x256a   : > { %v4796_v8 = vrot.slane %v4792_v7, 5  ;;  %v4806_v25 = vrot.slane %v4792_v7, 6  ;;  %v4816_v32 = vrot.slane %v4792_v7, 7  ;;  %v4833_v13 = vrot.slane %v4792_v7, 1 }
0x256b   : > { %v4843_v15 = vrot.slane %v4792_v7, 2  ;;  %v4853_v27 = vrot.slane %v4792_v7, 3  ;;  %v4826_v30 = vsel %vm988_vm9, %v4792_v7, 0.0  ;;  %vm7601_vm9 = vcmp.le.s32.totalorder %v6876_v57, 6 }
0x256c   : > { %v4798_v16 = vsel %vm2688_vm10, 0.0, %v4796_v8  ;;  %v4808_v17 = vsel %vm2701_vm11, 0.0, %v4806_v25  ;;  %v4818_v18 = vsel %vm7595_vm3, 0.0, %v4816_v32  ;;  %v4835_v23 = vsel %vm1265_vm4, %v4833_v13, 0.0  ;;  %v5494_v8 = vld [vmem:[%s7506_s10 + $0x30] sm:$0xff]  ;;  %v5495_v25 = vld [vmem:[%s7506_s10 + $0x38] sm:$0xff]  ;;  %vm7612_vm3 = vmmov %vm7604_vm0 }
0x256d   : > { %v4799_v45 = vsel %vm7596_vm5, %v4798_v16, 0.0  ;;  %v4809_v21 = vsel %vm980_vm2, %v4808_v17, 0.0  ;;  %v4819_v47 = vsel %vm7597_vm6, %v4818_v18, 0.0  ;;  %vm7598_vm11 = vcmask 1044480   ;;  %v5490_v17 = vld [vmem:[%s7509_s7 + $0x1] ss:$0 sm:$0xff]  ;;  %vm7614_vm5 = vmmov %vm7604_vm0 }
0x256e   : > { %v4804_v28 = vmul.f32 %v4803_v49, %v4799_v45  ;;  %v4814_v59 = vmul.f32 %v4813_v37, %v4809_v21  ;;  %v4824_v53 = vmul.f32 %v4823_v10, %v4819_v47  ;;  %v4845_v43 = vsel %vm7598_vm11, %v4843_v15, 0.0  ;;  %v5493_v49 = vld [vmem:[%s7506_s10 + $0x28] sm:$0xff]  ;;  %v5491_v15 = vld [vmem:[%s7510_s1 + $0x1] ss:$0 sm:$0xff] }
0x256f   : > { %vm7599_vm2 = vcmp.le.s32.totalorder %v6864_v51, 6  ;;  %v4831_v48 = vmul.f32 %v4830_v22, %v4826_v30  ;;  %vm7600_vm4 = vcmask 1043456   ;;  %v4846_v0 = vsel %vm7601_vm9, %v4845_v43, 0.0  ;;  %v5500_v21 = vld [vmem:[%s7511_s28 + $0x40] sm:$0xff]  ;;  %v5501_v47 = vld [vmem:[%s7511_s28 + $0x48] sm:$0xff]  ;;  %v5507_v43 = vld [vmem:[%s7511_s28 + $0x78] sm:$0xff] }
0x2570   : > { %v4815_v31 = vadd.f32 %v4814_v59, %v4804_v28  ;;  %v4836_v44 = vsel %vm7599_vm2, %v4835_v23, 0.0  ;;  %v4855_v41 = vsel %vm7600_vm4, %v4853_v27, 0.0  ;;  %vm7602_vm10 = vcmp.le.s32.totalorder %v6879_v63, 6  ;;  %v5502_v59 = vld [vmem:[%s7511_s28 + $0x50] sm:$0xff]  ;;  %v5503_v23 = vld [vmem:[%s7511_s28 + $0x58] sm:$0xff]  ;;  %v5504_v30 = vld [vmem:[%s7511_s28 + $0x60] sm:$0xff] }
0x2571   : > { %v4841_v3 = vmul.f32 %v4840_v1, %v4836_v44  ;;  %v4856_v51 = vsel %vm7602_vm10, %v4855_v41, 0.0  ;;  %v4851_v12 = vmul.f32 %v4850_v33, %v4846_v0  ;;  %v5976_v28 = vpack.c.bf16 %v5501_v47, %v5500_v21  ;;  %v5506_v1 = vld [vmem:[%s7511_s28 + $0x70] sm:$0xff] }
0x2572   : > { %v4825_v29 = vadd.f32 %v4824_v53, %v4815_v31  ;;  %v4861_v50 = vmul.f32 %v4860_v26, %v4856_v51  ;;  %v5979_v27 = vpack.c.bf16 %v5503_v23, %v5502_v59  ;;  %v5505_v53 = vld [vmem:[%s7511_s28 + $0x68] sm:$0xff]  ;;  %v5985_v44 = vpack.c.bf16 %v5507_v43, %v5506_v1 }
0x2573   : > { %v5982_v31 = vpack.c.bf16 %v5505_v53, %v5504_v30 }
0x2574   : > { %v4832_v34 = vadd.f32 %v4831_v48, %v4825_v29  ;;  %v5497_v48 = vld [vmem:[%s7513_s5 + $0x1] ss:$0 sm:$0xff] }
0x2576   : > { %v4842_v39 = vadd.f32 %v4841_v3, %v4832_v34 }
0x2578   : > { %v4852_v36 = vadd.f32 %v4851_v12, %v4842_v39 }
0x257a   : > { %v4862_v40 = vadd.f32 %v4861_v50, %v4852_v36 }
0x257c   : > { %v4871_v42 = vadd.f32 %v5475_v38, %v4862_v40 }
0x257e   : > { %v4880_v57 = vmul.f32 %v5477_v9, %v4871_v42 }
0x2580   : > { %v4889_v52 = vadd.f32 %v5479_v58, %v4880_v57 }
0x2582   : > { %v5480_v54 = vmul.f32 -1.442695, %v4889_v52 }
0x2584   : > { %6207 = vpow2.f32 %v5480_v54 }
0x258e   : > { %v6208_v56 = vpop.eup %6207 }
0x258f   : > { %v4893_v55 = vadd.f32 1.0, %v6208_v56 }
0x2591   : > { %6209 = vrcp.f32 %v4893_v55 }
0x259b   : > { %v6210_v20 = vpop.eup %6209 }
0x259c   : > { %v4896_v63 = vmul.f32 %v6210_v20, %v4889_v52  ;;  %v5513_v20 = vld [vmem:[%s7516_s20 + $0x1] ss:$0 sm:$0xff] }
0x259e   : > { %5871 = vmatmul.mubr.msk.f32.vlgmr.msra.gmra.mrb[28].mxu0 %vm7603_vm7, %v4896_v63 }
0x259f   : > { %5900 = vmatprep.mubr.msk.f32.mxu0 %vm6263_vm1, %v6264_v14  ;;  %v5492_v14 = vld [vmem:[%s7506_s10 + $0x20] sm:$0xff]  ;;  %vm7606_vm1 = vmmov %vm7603_vm7  ;;  %5977 = vmatpush3.bf16.msra.mxu0 %v5976_v28 }
0x25a0   : > { %v5970_v37 = vpack.c.bf16 %v5493_v49, %v5492_v14  ;;  %5978 = vmatprep.subr.bf16.mxu0 %v6262_v11 }
0x25a2   : > { %5971 = vmatpush3.bf16.msra.mxu1 %v5970_v37  ;;  %v5515_v37 = vld [vmem:[%s6438_s4] ss:$0 sm:$0xff] }
0x25a3   : > { %5972 = vmatprep.subr.bf16.mxu1 %v6262_v11  ;;  %5980 = vmatpush3.bf16.msra.mxu0 %v5979_v27 }
0x25a4   : > { %5981 = vmatprep.subr.bf16.mxu0 %v6262_v11 }
0x25a7   : > { %5983 = vmatpush3.bf16.msra.mxu0 %v5982_v31 }
0x25a8   : > { %5984 = vmatprep.subr.bf16.mxu0 %v6262_v11  ;;  %v5510_v11 = vld [vmem:[%s7514_s13 + $0x1] ss:$0 sm:$0xff] }
0x25ab   : > { %5986 = vmatpush3.bf16.msra.mxu0 %v5985_v44 }
0x2671   : > { %v4971_v24 = vpop.f32.mrb[28].mxu0 }
0x2672   : > { %v4975_v61 = vadd.f32 %v4971_v24, %v7280_v19  ;;  %v5872_v62 = vpop.f32.mrb[29].mxu0  ;;  %v5973_v19 = vpack.c.bf16 %v5495_v25, %v5494_v8  ;;  %v5514_v24 = vld [vmem:[%s6433_s27 + $0x1] ss:$0 sm:$0xff]  ;;  %v5516_v25 = vld [vmem:[%s6443_s12] ss:$0 sm:$0xff] }
0x2674   : > { %v4984_v2 = vadd.f32 %v5487_v60, %v4975_v61  ;;  %5974 = vmatpush3.bf16.msra.mxu1 %v5973_v19 }
0x2676   : > { %v4989_v4 = vsel %vm7604_vm0, %v4984_v2, 0.0 }
0x2677   : > { %4990 = vadd.xlane.f32.xlu1 %v4989_v4 }
0x2704   : > { %v4991_v35 = vpop.xlane.xlu1 %4990 }
0x2705   : > { %v4992_v5 = vmul.f32 0.03125, %v4991_v35 }
0x2707   : > { %v4993_v6 = vsub.f32 %v4984_v2, %v4992_v5 }
0x2709   : > { %v4994_v46 = vmul.f32 %v4993_v6, %v4993_v6 }
0x270b   : > { %v4995_v7 = vsel %vm7605_vm14, %v4994_v46, 0.0 }
0x270c   : > { %4996 = vadd.xlane.f32.xlu1 %v4995_v7 }
0x2799   : > { %v4997_v32 = vpop.xlane.xlu1 %4996 }
0x279a   : > { %v4998_v10 = vmul.f32 0.03125, %v4997_v32 }
0x279c   : > { %v4999_v13 = vadd.f32 1e-05, %v4998_v10 }
0x279e   : > { %6211 = vrsqrt.f32 %v4999_v13 }
0x27a8   : > { %v6212_v16 = vpop.eup %6211 }
0x27a9   : > { %v5001_v18 = vmul.f32 %v6212_v16, %v4993_v6 }
0x27ab   : > { %v5008_v22 = vmul.f32 %v5490_v17, %v5001_v18 }
0x27ad   : > { %v5015_v45 = vadd.f32 %v5491_v15, %v5008_v22 }
0x27af   : > { %5882 = vmatmul.mubr.msk.f32.vlgmr.msra.gmra.mrb[38].mxu1 %vm7606_vm1, %v5015_v45 }
0x2882   : > { %v5098_v29 = vpop.f32.mrb[38].mxu1 }
0x2883   : > { %v5099_v33 = vadd.f32 %v5497_v48, %v5098_v29  ;;  %v5883_v41 = vpop.f32.mrb[39].mxu1 }
0x2885   : > { %v5499_v0 = vmul.f32 -1.442695, %v5099_v33 }
0x2887   : > { %6213 = vpow2.f32 %v5499_v0 }
0x2891   : > { %v6214_v34 = vpop.eup %6213 }
0x2892   : > { %v5105_v3 = vadd.f32 1.0, %v6214_v34 }
0x2894   : > { %6215 = vrcp.f32 %v5105_v3 }
0x289e   : > { %v6216_v26 = vpop.eup %6215 }
0x289f   : > { %v5108_v51 = vmul.f32 %v6216_v26, %v5099_v33 }
0x28a1   : > { %5901 = vmatmul.mubr.msk.f32.vlgmr.msra.gmra.mrb[30].mxu0 %vm7607_vm13, %v5108_v51 }
0x2974   : > { %v5187_v39 = vpop.f32.mrb[30].mxu0 }
0x2975   : > { %v5191_v12 = vadd.f32 %v5187_v39, %v4984_v2  ;;  %v5902_v36 = vpop.f32.mrb[31].mxu0 }
0x2977   : > { %v5200_v50 = vadd.f32 %v5510_v11, %v5191_v12 }
0x2979   : > { %v5205_v38 = vsel %vm7608_vm12, %v5200_v50, 0.0 }
0x297a   : > { %5206 = vadd.xlane.f32.xlu1 %v5205_v38 }
0x2a07   : > { %v5207_v40 = vpop.xlane.xlu1 %5206 }
0x2a08   : > { %v5208_v9 = vmul.f32 0.03125, %v5207_v40 }
0x2a0a   : > { %v5209_v42 = vsub.f32 %v5200_v50, %v5208_v9 }
0x2a0c   : > { %v5210_v58 = vmul.f32 %v5209_v42, %v5209_v42 }
0x2a0e   : > { %v5211_v57 = vsel %vm7609_vm8, %v5210_v58, 0.0 }
0x2a0f   : > { %5212 = vadd.xlane.f32.xlu1 %v5211_v57 }
0x2a9c   : > { %v5213_v52 = vpop.xlane.xlu1 %5212 }
0x2a9d   : > { %v5214_v54 = vmul.f32 0.03125, %v5213_v52 }
0x2a9f   : > { %v5215_v56 = vadd.f32 1e-05, %v5214_v54 }
0x2aa1   : > { %6217 = vrsqrt.f32 %v5215_v56 }
0x2aab   : > { %v6218_v55 = vpop.eup %6217 }
0x2aac   : > { %v5217_v63 = vmul.f32 %v6218_v55, %v5209_v42 }
0x2aae   : > { %v5224_v60 = vmul.f32 %v5513_v20, %v5217_v63 }
0x2ab0   : > { %v5231_v61 = vadd.f32 %v5514_v24, %v5224_v60 }
0x2ab2   : > { %v5234_v62 = vsel %vm7610_vm15, %v5231_v61, 0.0 }
0x2ab3   : > { %5235 = vadd.xlane.f32.xlu0 %v5234_v62 }
0x2b40   : > { %v5236_v2 = vpop.xlane.xlu0 %5235 }
0x2b41   : > { %v5237_v4 = vmul.f32 0.03125, %v5236_v2 }
0x2b43   : > { %v5238_v35 = vsub.f32 %v5231_v61, %v5237_v4 }
0x2b45   : > { %v5239_v5 = vmul.f32 %v5238_v35, %v5238_v35 }
0x2b47   : > { %v5240_v6 = vsel %vm7612_vm3, %v5239_v5, 0.0 }
0x2b48   : > { %5241 = vadd.xlane.f32.xlu1 %v5240_v6 }
0x2bd5   : > { %v5242_v46 = vpop.xlane.xlu1 %5241 }
0x2bd6   : > { %v5243_v7 = vmul.f32 0.03125, %v5242_v46 }
0x2bd8   : > { %v5244_v14 = vadd.f32 1e-05, %v5243_v7 }
0x2bda   : > { %6219 = vrsqrt.f32 %v5244_v14 }
0x2be4   : > { %v6220_v49 = vpop.eup %6219 }
0x2be5   : > { %v5246_v8 = vmul.f32 %v6220_v49, %v5238_v35 }
0x2be7   : > { %v5253_v19 = vmul.f32 %v5515_v37, %v5246_v8 }
0x2be9   : > { %v5260_v32 = vadd.f32 %v5516_v25, %v5253_v19 }
0x2beb   : > { %5261 = vst.msk [vmem:[%s967_s3] sm:$0x7f] %vm7614_vm5, %v5260_v32 }
0x2bec PF: > { %s7615_s9 = sld [smem:[#allocation23_spill]] }
0x2bf2   : > { %s73_s22 = sadd.s32 1, %s7615_s9  }
0x2bf3   : > { %p70_p4 = scmp.ge.s32.totalorder %s73_s22, 4  }
0x2bf5   :  { %72 = sbr.rel (!%p70_p4) target bundleno = 66 (0x42), region = 235 }

</bundles_post_ra>
